<compile_context>
chip_gen: v7x
topology: tpu7x:2x2x1
jax: 0.10.0
libtpu: 0.0.40
codegen_flags: <defaults>
</compile_context>

<pallas_src>
import jax
import jax.numpy as jnp
from jax.experimental import pallas as pl
from jax.experimental.pallas import tpu as pltpu

BN_EPS = 1e-5
VMEM_LIMIT = 32 * 1024 * 1024  # well under the 48 MiB v7x guidance, overrides v5e default


def _spike(x):
    # MultiSpike forward: round(clamp(x, 0, 4)) / 4  (round-half-to-even, like torch.round)
    return jnp.round(jnp.clip(x, 0.0, 4.0)) * 0.25


# ----------------------------------------------------------------------------
# The fused per-image block kernel.
# ----------------------------------------------------------------------------
def _make_block_kernel(C, Cv, num_heads, scale2):
    d = C // num_heads
    dv = Cv // num_heads

    def kernel(x_nc_ref, x_cn_ref,
               wq_ref, sq_ref, tq_ref,
               wkT_ref, sk_ref, tk_ref,
               wv_ref, sv_ref, tv_ref,
               wp_ref, sp_ref, tp_ref,
               w1_ref, s1_ref, t1_ref,
               w2_ref, s2_ref, t2_ref,
               o_ref):
        x_nc = x_nc_ref[0]                                        # (N, C) f32
        N = x_nc.shape[0]
        # head_spike (spiked values are exact in bf16)
        xs_nc = _spike(x_nc).astype(jnp.bfloat16)                 # (N, C)
        xs_cn = _spike(x_cn_ref[0]).astype(jnp.bfloat16)          # (C, N)

        # --- q/k/v 1x1 convs + folded BN + spikes -----------------------------
        # k is computed directly in channel-major (transposed) layout so the
        # per-head k^T @ v contraction below needs no in-kernel transpose.
        q = _spike(jnp.dot(xs_nc, wq_ref[...], preferred_element_type=jnp.float32)
                   * sq_ref[...] + tq_ref[...]).astype(jnp.bfloat16)        # (N, C)
        kT = _spike(jnp.dot(wkT_ref[...], xs_cn, preferred_element_type=jnp.float32)
                    * sk_ref[...] + tk_ref[...]).astype(jnp.bfloat16)       # (C, N)
        v = _spike(jnp.dot(xs_nc, wv_ref[...], preferred_element_type=jnp.float32)
                   * sv_ref[...] + tv_ref[...]).astype(jnp.bfloat16)        # (N, Cv)

        # --- reassociated linear attention + fused attn_spike + proj ---------
        # out_h = q_h @ (k_h^T @ v_h); the spiked result is folded straight
        # into the proj matmul per head, so no (N, Cv) buffer / concat exists.
        wp = wp_ref[...]                                          # (Cv, C) bf16
        acc = jnp.zeros((N, C), jnp.float32)
        for h in range(num_heads):
            qh = q[:, h * d:(h + 1) * d]                          # (N, d)
            kTh = kT[h * d:(h + 1) * d, :]                        # (d, N)
            vh = v[:, h * dv:(h + 1) * dv]                        # (N, dv)
            kv = jnp.dot(kTh, vh, preferred_element_type=jnp.float32)   # (d, dv)
            # kv entries are exact multiples of 1/16 bounded by N.  Split into
            # a coarse part (multiples of 16) and a fine part in [0, 16) so
            # both halves are bf16-exact and q_h @ kv stays bit-exact with
            # plain bf16 MXU matmuls + f32 accumulation (no f32 matmul, no
            # lossy bf16 recast, valid for any head dim).
            kv_hi = jnp.floor(kv * 0.0625) * 16.0
            kv_lo = kv - kv_hi
            oh = (jnp.dot(qh, kv_hi.astype(jnp.bfloat16),
                          preferred_element_type=jnp.float32)
                  + jnp.dot(qh, kv_lo.astype(jnp.bfloat16),
                            preferred_element_type=jnp.float32))          # (N, dv)
            ah = _spike(oh * scale2).astype(jnp.bfloat16)          # attn_spike
            acc = acc + jnp.dot(ah, wp[h * dv:(h + 1) * dv, :],
                                preferred_element_type=jnp.float32)
        # proj BN affine + first residual:  x1 = x + attn(x)
        x1 = x_nc + acc * sp_ref[...] + tp_ref[...]               # (N, C) f32

        # --- MS_MLP (Conv1d + bias + BN folded), fused, second residual ------
        h1 = jnp.dot(_spike(x1).astype(jnp.bfloat16), w1_ref[...],
                     preferred_element_type=jnp.float32)           # (N, hidden)
        h1 = _spike(h1 * s1_ref[...] + t1_ref[...]).astype(jnp.bfloat16)
        y = jnp.dot(h1, w2_ref[...], preferred_element_type=jnp.float32)   # (N, C)
        o_ref[0] = (x1 + y * s2_ref[...] + t2_ref[...]).astype(o_ref.dtype)

    return kernel


# ----------------------------------------------------------------------------
# BN folding + block forward (one pallas_call per block).
# ----------------------------------------------------------------------------
def bn_affine(bn, eps=BN_EPS):
    gamma, beta, mean, var = bn
    s = gamma / jnp.sqrt(var + eps)
    return s, beta - mean * s


def fold_block_params(p):
    sq, tq = bn_affine(p["bnq"])
    sk, tk = bn_affine(p["bnk"])
    sv, tv = bn_affine(p["bnv"])
    sp, tp = bn_affine(p["bnp"])
    s1, t1 = bn_affine(p["bn1"])
    s2, t2 = bn_affine(p["bn2"])
    row = lambda a: a.reshape(1, -1).astype(jnp.float32)
    col = lambda a: a.reshape(-1, 1).astype(jnp.float32)
    return dict(
        w_q=p["wq"].astype(jnp.bfloat16), q_scale=row(sq), q_shift=row(tq),
        # k runs in channel-major layout -> transposed weight, per-row affine
        w_kT=p["wk"].T.astype(jnp.bfloat16), k_scale=col(sk), k_shift=col(tk),
        w_v=p["wv"].astype(jnp.bfloat16), v_scale=row(sv), v_shift=row(tv),
        w_proj=p["wp"].astype(jnp.bfloat16), p_scale=row(sp), p_shift=row(tp),
        w1=p["w1"].astype(jnp.bfloat16), m1_scale=row(s1), m1_shift=row(p["b1"] * s1 + t1),
        w2=p["w2"].astype(jnp.bfloat16), m2_scale=row(s2), m2_shift=row(p["b2"] * s2 + t2),
    )


def ms_block_forward(x_nchw, params):
    B, C, H, W = x_nchw.shape
    N = H * W
    heads = params["num_heads"]
    Cv = 4 * C                       # lamda_ratio = 4 in MS_Block_Spike_SepConv
    d = C // heads
    scale2 = 2.0 * (d ** -0.5)
    hidden = params["w1"].shape[1]

    f = fold_block_params(params)
    x_cn = x_nchw.reshape(B, C, N)               # native channel-major view
    x_nc = jnp.transpose(x_cn, (0, 2, 1))        # channels-last rows

    def full(shape):
        return pl.BlockSpec(shape, lambda b: (0, 0))

    kernel = _make_block_kernel(C, Cv, heads, scale2)

    out_nc = pl.pallas_call(
        kernel,
        grid=(B,),
        in_specs=[
            pl.BlockSpec((1, N, C), lambda b: (b, 0, 0)),
            pl.BlockSpec((1, C, N), lambda b: (b, 0, 0)),
            full((C, C)), full((1, C)), full((1, C)),
            full((C, C)), full((C, 1)), full((C, 1)),
            full((C, Cv)), full((1, Cv)), full((1, Cv)),
            full((Cv, C)), full((1, C)), full((1, C)),
            full((C, hidden)), full((1, hidden)), full((1, hidden)),
            full((hidden, C)), full((1, C)), full((1, C)),
        ],
        out_specs=pl.BlockSpec((1, N, C), lambda b: (b, 0, 0)),
        out_shape=jax.ShapeDtypeStruct((B, N, C), jnp.float32),
        compiler_params=pltpu.CompilerParams(
            dimension_semantics=("parallel",),
            vmem_limit_bytes=VMEM_LIMIT),
    )(
        x_nc, x_cn,
        f["w_q"], f["q_scale"], f["q_shift"],
        f["w_kT"], f["k_scale"], f["k_shift"],
        f["w_v"], f["v_scale"], f["v_shift"],
        f["w_proj"], f["p_scale"], f["p_shift"],
        f["w1"], f["m1_scale"], f["m1_shift"],
        f["w2"], f["m2_scale"], f["m2_shift"],
    )
    return jnp.transpose(out_nc, (0, 2, 1)).reshape(B, C, H, W)


# ----------------------------------------------------------------------------
# Deterministic synthetic parameters (inference-mode BN statistics).
# Weights are generated as exactly-bf16 values so the kernel's bf16 cast is
# lossless and the f32 reference evaluates the identical model.
# ----------------------------------------------------------------------------
def _bf16_exact(x):
    return x.astype(jnp.bfloat16).astype(jnp.float32)


def init_bn(key, C):
    k1, k2, k3, k4 = jax.random.split(key, 4)
    gamma = 1.0 + 0.1 * jax.random.normal(k1, (C,), jnp.float32)
    beta = 0.1 * jax.random.normal(k2, (C,), jnp.float32)
    mean = 0.1 * jax.random.normal(k3, (C,), jnp.float32)
    var = 0.5 + 0.1 * jnp.abs(jax.random.normal(k4, (C,), jnp.float32))
    return gamma, beta, mean, var


def init_block(key, C, num_heads, mlp_ratio=4.0):
    Cv = 4 * C
    hidden = int(C * mlp_ratio)
    ks = jax.random.split(key, 14)

    def w(k, cin, cout, s=0.2):
        return _bf16_exact(s * jax.random.normal(k, (cin, cout), jnp.float32))

    return dict(
        num_heads=num_heads,
        wq=w(ks[0], C, C), bnq=init_bn(ks[1], C),
        wk=w(ks[2], C, C), bnk=init_bn(ks[3], C),
        wv=w(ks[4], C, Cv), bnv=init_bn(ks[5], Cv),
        wp=w(ks[6], Cv, C), bnp=init_bn(ks[7], C),
        w1=w(ks[8], C, hidden),
        b1=0.1 * jax.random.normal(ks[9], (hidden,), jnp.float32),
        bn1=init_bn(ks[10], hidden),
        w2=w(ks[11], hidden, C),
        b2=0.1 * jax.random.normal(ks[12], (C,), jnp.float32),
        bn2=init_bn(ks[13], C),
    )


# ----------------------------------------------------------------------------
# Pure-JAX NCHW reference mirroring the PyTorch module (for validation).
# ----------------------------------------------------------------------------
def ref_bn(x, gamma, beta, mean, var, eps=BN_EPS):
    shape = (1, -1) + (1,) * (x.ndim - 2)
    return ((x - mean.reshape(shape)) / jnp.sqrt(var.reshape(shape) + eps)
            * gamma.reshape(shape) + beta.reshape(shape))


def ref_ms_block(x, p):
    B, C, H, W = x.shape
    N = H * W
    heads = p["num_heads"]
    Cv = 4 * C
    d = C // heads
    dv = Cv // heads
    scale2 = 2.0 * (d ** -0.5)

    # --- MS_Attention_linear ---
    xs = _spike(x)                                                # head_spike
    q = ref_bn(jnp.einsum("bchw,cd->bdhw", xs, p["wq"]), *p["bnq"])
    k = ref_bn(jnp.einsum("bchw,cd->bdhw", xs, p["wk"]), *p["bnk"])
    v = ref_bn(jnp.einsum("bchw,cd->bdhw", xs, p["wv"]), *p["bnv"])

    def heads_of(a, dh):
        return (_spike(a).reshape(B, -1, N).transpose(0, 2, 1)
                .reshape(B, N, heads, dh).transpose(0, 2, 1, 3))

    qh, kh, vh = heads_of(q, d), heads_of(k, d), heads_of(v, dv)
    s = jnp.einsum("bhnd,bhmd->bhnm", qh, kh)                     # q @ k^T
    att = jnp.einsum("bhnm,bhmd->bhnd", s, vh) * scale2           # @ v * (scale*2)
    att = att.transpose(0, 1, 3, 2).reshape(B, Cv, N)
    att = _spike(att).reshape(B, Cv, H, W)                        # attn_spike
    x1 = x + ref_bn(jnp.einsum("bchw,cd->bdhw", att, p["wp"]), *p["bnp"])

    # --- MS_MLP ---
    h = _spike(x1.reshape(B, C, N))                               # fc1_spike
    h = jnp.einsum("bcn,cd->bdn", h, p["w1"]) + p["b1"].reshape(1, -1, 1)
    h = ref_bn(h, *p["bn1"])
    h = _spike(h)                                                 # fc2_spike
    h = jnp.einsum("bdn,dc->bcn", h, p["w2"]) + p["b2"].reshape(1, -1, 1)
    h = ref_bn(h, *p["bn2"])
    return x1 + h.reshape(B, C, H, W)


if __name__ == "__main__":
    B, C, H, W = 2, 64, 16, 16
    num_heads = 4

    key = jax.random.PRNGKey(0)
    kx, kp = jax.random.split(key)
    x = jax.random.normal(kx, (B, C, H, W), jnp.float32)
    params = init_block(kp, C, num_heads)

    fwd = jax.jit(lambda a: ms_block_forward(a, params))
    out = jax.block_until_ready(fwd(x))

    assert out.shape == (B, C, H, W)
    assert bool(jnp.all(jnp.isfinite(out)))

    with jax.default_matmul_precision("highest"):
        ref = ref_ms_block(x, params)
    # tolerant fraction check (round() boundaries in the spike nonlinearity can
    # flip under tiny fp summation-order differences for isolated elements)
    close = jnp.abs(out - ref) <= (1e-2 + 1e-2 * jnp.abs(ref))
    assert float(jnp.mean(close)) > 0.995, float(jnp.mean(close))

    print("KERNEL_OK")
</pallas_src>

<mosaic_0001>
module attributes {stable_mosaic.version = 11 : i64} {
  func.func @kernel(%arg0: i32, %arg1: memref<1x256x64xf32, #tpu.memory_space<vmem>>, %arg2: memref<1x64x256xf32, #tpu.memory_space<vmem>>, %arg3: memref<64x64xbf16, #tpu.memory_space<vmem>>, %arg4: memref<1x64xf32, #tpu.memory_space<vmem>>, %arg5: memref<1x64xf32, #tpu.memory_space<vmem>>, %arg6: memref<64x64xbf16, #tpu.memory_space<vmem>>, %arg7: memref<64x1xf32, #tpu.memory_space<vmem>>, %arg8: memref<64x1xf32, #tpu.memory_space<vmem>>, %arg9: memref<64x256xbf16, #tpu.memory_space<vmem>>, %arg10: memref<1x256xf32, #tpu.memory_space<vmem>>, %arg11: memref<1x256xf32, #tpu.memory_space<vmem>>, %arg12: memref<256x64xbf16, #tpu.memory_space<vmem>>, %arg13: memref<1x64xf32, #tpu.memory_space<vmem>>, %arg14: memref<1x64xf32, #tpu.memory_space<vmem>>, %arg15: memref<64x256xbf16, #tpu.memory_space<vmem>>, %arg16: memref<1x256xf32, #tpu.memory_space<vmem>>, %arg17: memref<1x256xf32, #tpu.memory_space<vmem>>, %arg18: memref<256x64xbf16, #tpu.memory_space<vmem>>, %arg19: memref<1x64xf32, #tpu.memory_space<vmem>>, %arg20: memref<1x64xf32, #tpu.memory_space<vmem>>, %arg21: memref<1x256x64xf32, #tpu.memory_space<vmem>>) attributes {dimension_semantics = [#tpu.dimension_semantics<parallel>], iteration_bounds = array<i64: 2>, scalar_prefetch = 0 : i64, scratch_operands = 0 : i64, tpu.core_type = #tpu.core_type<tc>, window_params = [{transform_indices = @transform_0, window_bounds = array<i64: 1, 256, 64>}, {transform_indices = @transform_1, window_bounds = array<i64: 1, 64, 256>}, {pipeline_mode = #tpu.pipeline_mode<synchronous>, transform_indices = @transform_2, window_bounds = array<i64: 64, 64>}, {pipeline_mode = #tpu.pipeline_mode<synchronous>, transform_indices = @transform_3, window_bounds = array<i64: 1, 64>}, {pipeline_mode = #tpu.pipeline_mode<synchronous>, transform_indices = @transform_4, window_bounds = array<i64: 1, 64>}, {pipeline_mode = #tpu.pipeline_mode<synchronous>, transform_indices = @transform_5, window_bounds = array<i64: 64, 64>}, {pipeline_mode = #tpu.pipeline_mode<synchronous>, transform_indices = @transform_6, window_bounds = array<i64: 64, 1>}, {pipeline_mode = #tpu.pipeline_mode<synchronous>, transform_indices = @transform_7, window_bounds = array<i64: 64, 1>}, {pipeline_mode = #tpu.pipeline_mode<synchronous>, transform_indices = @transform_8, window_bounds = array<i64: 64, 256>}, {pipeline_mode = #tpu.pipeline_mode<synchronous>, transform_indices = @transform_9, window_bounds = array<i64: 1, 256>}, {pipeline_mode = #tpu.pipeline_mode<synchronous>, transform_indices = @transform_10, window_bounds = array<i64: 1, 256>}, {pipeline_mode = #tpu.pipeline_mode<synchronous>, transform_indices = @transform_11, window_bounds = array<i64: 256, 64>}, {pipeline_mode = #tpu.pipeline_mode<synchronous>, transform_indices = @transform_12, window_bounds = array<i64: 1, 64>}, {pipeline_mode = #tpu.pipeline_mode<synchronous>, transform_indices = @transform_13, window_bounds = array<i64: 1, 64>}, {pipeline_mode = #tpu.pipeline_mode<synchronous>, transform_indices = @transform_14, window_bounds = array<i64: 64, 256>}, {pipeline_mode = #tpu.pipeline_mode<synchronous>, transform_indices = @transform_15, window_bounds = array<i64: 1, 256>}, {pipeline_mode = #tpu.pipeline_mode<synchronous>, transform_indices = @transform_16, window_bounds = array<i64: 1, 256>}, {pipeline_mode = #tpu.pipeline_mode<synchronous>, transform_indices = @transform_17, window_bounds = array<i64: 256, 64>}, {pipeline_mode = #tpu.pipeline_mode<synchronous>, transform_indices = @transform_18, window_bounds = array<i64: 1, 64>}, {pipeline_mode = #tpu.pipeline_mode<synchronous>, transform_indices = @transform_19, window_bounds = array<i64: 1, 64>}, {transform_indices = @transform_20, window_bounds = array<i64: 1, 256, 64>}]} {
    %c0 = arith.constant 0 : index
    %c0_0 = arith.constant 0 : index
    %c0_1 = arith.constant 0 : index
    %0 = vector.load %arg1[%c0, %c0_0, %c0_1] : memref<1x256x64xf32, #tpu.memory_space<vmem>>, vector<1x256x64xf32>
    %1 = vector.shape_cast %0 : vector<1x256x64xf32> to vector<256x64xf32>
    %cst = arith.constant 0.000000e+00 : f32
    %cst_2 = arith.constant 4.000000e+00 : f32
    %2 = vector.broadcast %cst : f32 to vector<256x64xf32>
    %3 = arith.maximumf %2, %1 : vector<256x64xf32>
    %4 = vector.broadcast %cst_2 : f32 to vector<256x64xf32>
    %5 = arith.minimumf %4, %3 : vector<256x64xf32>
    %6 = math.roundeven %5 : vector<256x64xf32>
    %cst_3 = arith.constant 2.500000e-01 : f32
    %7 = vector.broadcast %cst_3 : f32 to vector<256x64xf32>
    %8 = arith.mulf %6, %7 : vector<256x64xf32>
    %9 = arith.truncf %8 : vector<256x64xf32> to vector<256x64xbf16>
    %c0_4 = arith.constant 0 : index
    %c0_5 = arith.constant 0 : index
    %c0_6 = arith.constant 0 : index
    %10 = vector.load %arg2[%c0_4, %c0_5, %c0_6] : memref<1x64x256xf32, #tpu.memory_space<vmem>>, vector<1x64x256xf32>
    %11 = vector.shape_cast %10 : vector<1x64x256xf32> to vector<64x256xf32>
    %cst_7 = arith.constant 0.000000e+00 : f32
    %cst_8 = arith.constant 4.000000e+00 : f32
    %12 = vector.broadcast %cst_7 : f32 to vector<64x256xf32>
    %13 = arith.maximumf %12, %11 : vector<64x256xf32>
    %14 = vector.broadcast %cst_8 : f32 to vector<64x256xf32>
    %15 = arith.minimumf %14, %13 : vector<64x256xf32>
    %16 = math.roundeven %15 : vector<64x256xf32>
    %cst_9 = arith.constant 2.500000e-01 : f32
    %17 = vector.broadcast %cst_9 : f32 to vector<64x256xf32>
    %18 = arith.mulf %16, %17 : vector<64x256xf32>
    %19 = arith.truncf %18 : vector<64x256xf32> to vector<64x256xbf16>
    %c0_10 = arith.constant 0 : index
    %c0_11 = arith.constant 0 : index
    %20 = vector.load %arg3[%c0_10, %c0_11] : memref<64x64xbf16, #tpu.memory_space<vmem>>, vector<64x64xbf16>
    %cst_12 = arith.constant dense<0.000000e+00> : vector<256x64xf32>
    %21 = tpu.matmul %9, %20, %cst_12 {dimension_numbers = #tpu.dot_dimension_numbers<[1], [0], [0], [1], [0, 0, 1, 1], [], []>} : vector<256x64xbf16>, vector<64x64xbf16>, vector<256x64xf32> -> vector<256x64xf32>
    %c0_13 = arith.constant 0 : index
    %c0_14 = arith.constant 0 : index
    %22 = vector.load %arg4[%c0_13, %c0_14] : memref<1x64xf32, #tpu.memory_space<vmem>>, vector<1x64xf32>
    %23 = vector.broadcast %22 : vector<1x64xf32> to vector<256x64xf32>
    %24 = arith.mulf %21, %23 : vector<256x64xf32>
    %c0_15 = arith.constant 0 : index
    %c0_16 = arith.constant 0 : index
    %25 = vector.load %arg5[%c0_15, %c0_16] : memref<1x64xf32, #tpu.memory_space<vmem>>, vector<1x64xf32>
    %26 = vector.broadcast %25 : vector<1x64xf32> to vector<256x64xf32>
    %27 = arith.addf %24, %26 : vector<256x64xf32>
    %cst_17 = arith.constant 0.000000e+00 : f32
    %cst_18 = arith.constant 4.000000e+00 : f32
    %28 = vector.broadcast %cst_17 : f32 to vector<256x64xf32>
    %29 = arith.maximumf %28, %27 : vector<256x64xf32>
    %30 = vector.broadcast %cst_18 : f32 to vector<256x64xf32>
    %31 = arith.minimumf %30, %29 : vector<256x64xf32>
    %32 = math.roundeven %31 : vector<256x64xf32>
    %cst_19 = arith.constant 2.500000e-01 : f32
    %33 = vector.broadcast %cst_19 : f32 to vector<256x64xf32>
    %34 = arith.mulf %32, %33 : vector<256x64xf32>
    %35 = arith.truncf %34 : vector<256x64xf32> to vector<256x64xbf16>
    %c0_20 = arith.constant 0 : index
    %c0_21 = arith.constant 0 : index
    %36 = vector.load %arg6[%c0_20, %c0_21] : memref<64x64xbf16, #tpu.memory_space<vmem>>, vector<64x64xbf16>
    %cst_22 = arith.constant dense<0.000000e+00> : vector<64x256xf32>
    %37 = tpu.matmul %36, %19, %cst_22 {dimension_numbers = #tpu.dot_dimension_numbers<[1], [0], [0], [1], [0, 0, 1, 1], [], []>} : vector<64x64xbf16>, vector<64x256xbf16>, vector<64x256xf32> -> vector<64x256xf32>
    %c0_23 = arith.constant 0 : index
    %c0_24 = arith.constant 0 : index
    %38 = vector.load %arg7[%c0_23, %c0_24] : memref<64x1xf32, #tpu.memory_space<vmem>>, vector<64x1xf32>
    %39 = vector.broadcast %38 : vector<64x1xf32> to vector<64x256xf32>
    %40 = arith.mulf %37, %39 : vector<64x256xf32>
    %c0_25 = arith.constant 0 : index
    %c0_26 = arith.constant 0 : index
    %41 = vector.load %arg8[%c0_25, %c0_26] : memref<64x1xf32, #tpu.memory_space<vmem>>, vector<64x1xf32>
    %42 = vector.broadcast %41 : vector<64x1xf32> to vector<64x256xf32>
    %43 = arith.addf %40, %42 : vector<64x256xf32>
    %cst_27 = arith.constant 0.000000e+00 : f32
    %cst_28 = arith.constant 4.000000e+00 : f32
    %44 = vector.broadcast %cst_27 : f32 to vector<64x256xf32>
    %45 = arith.maximumf %44, %43 : vector<64x256xf32>
    %46 = vector.broadcast %cst_28 : f32 to vector<64x256xf32>
    %47 = arith.minimumf %46, %45 : vector<64x256xf32>
    %48 = math.roundeven %47 : vector<64x256xf32>
    %cst_29 = arith.constant 2.500000e-01 : f32
    %49 = vector.broadcast %cst_29 : f32 to vector<64x256xf32>
    %50 = arith.mulf %48, %49 : vector<64x256xf32>
    %51 = arith.truncf %50 : vector<64x256xf32> to vector<64x256xbf16>
    %c0_30 = arith.constant 0 : index
    %c0_31 = arith.constant 0 : index
    %52 = vector.load %arg9[%c0_30, %c0_31] : memref<64x256xbf16, #tpu.memory_space<vmem>>, vector<64x256xbf16>
    %cst_32 = arith.constant dense<0.000000e+00> : vector<256x256xf32>
    %53 = tpu.matmul %9, %52, %cst_32 {dimension_numbers = #tpu.dot_dimension_numbers<[1], [0], [0], [1], [0, 0, 1, 1], [], []>} : vector<256x64xbf16>, vector<64x256xbf16>, vector<256x256xf32> -> vector<256x256xf32>
    %c0_33 = arith.constant 0 : index
    %c0_34 = arith.constant 0 : index
    %54 = vector.load %arg10[%c0_33, %c0_34] : memref<1x256xf32, #tpu.memory_space<vmem>>, vector<1x256xf32>
    %55 = vector.broadcast %54 : vector<1x256xf32> to vector<256x256xf32>
    %56 = arith.mulf %53, %55 : vector<256x256xf32>
    %c0_35 = arith.constant 0 : index
    %c0_36 = arith.constant 0 : index
    %57 = vector.load %arg11[%c0_35, %c0_36] : memref<1x256xf32, #tpu.memory_space<vmem>>, vector<1x256xf32>
    %58 = vector.broadcast %57 : vector<1x256xf32> to vector<256x256xf32>
    %59 = arith.addf %56, %58 : vector<256x256xf32>
    %cst_37 = arith.constant 0.000000e+00 : f32
    %cst_38 = arith.constant 4.000000e+00 : f32
    %60 = vector.broadcast %cst_37 : f32 to vector<256x256xf32>
    %61 = arith.maximumf %60, %59 : vector<256x256xf32>
    %62 = vector.broadcast %cst_38 : f32 to vector<256x256xf32>
    %63 = arith.minimumf %62, %61 : vector<256x256xf32>
    %64 = math.roundeven %63 : vector<256x256xf32>
    %cst_39 = arith.constant 2.500000e-01 : f32
    %65 = vector.broadcast %cst_39 : f32 to vector<256x256xf32>
    %66 = arith.mulf %64, %65 : vector<256x256xf32>
    %67 = arith.truncf %66 : vector<256x256xf32> to vector<256x256xbf16>
    %c0_40 = arith.constant 0 : index
    %c0_41 = arith.constant 0 : index
    %68 = vector.load %arg12[%c0_40, %c0_41] : memref<256x64xbf16, #tpu.memory_space<vmem>>, vector<256x64xbf16>
    %cst_42 = arith.constant 0.000000e+00 : f32
    %69 = vector.broadcast %cst_42 : f32 to vector<256x64xf32>
    %70 = vector.extract_strided_slice %35 {offsets = [0, 0], sizes = [256, 16], strides = [1, 1]} : vector<256x64xbf16> to vector<256x16xbf16>
    %71 = vector.extract_strided_slice %51 {offsets = [0, 0], sizes = [16, 256], strides = [1, 1]} : vector<64x256xbf16> to vector<16x256xbf16>
    %72 = vector.extract_strided_slice %67 {offsets = [0, 0], sizes = [256, 64], strides = [1, 1]} : vector<256x256xbf16> to vector<256x64xbf16>
    %cst_43 = arith.constant dense<0.000000e+00> : vector<16x64xf32>
    %73 = tpu.matmul %71, %72, %cst_43 {dimension_numbers = #tpu.dot_dimension_numbers<[1], [0], [0], [1], [0, 0, 1, 1], [], []>} : vector<16x256xbf16>, vector<256x64xbf16>, vector<16x64xf32> -> vector<16x64xf32>
    %cst_44 = arith.constant 6.250000e-02 : f32
    %74 = vector.broadcast %cst_44 : f32 to vector<16x64xf32>
    %75 = arith.mulf %73, %74 : vector<16x64xf32>
    %76 = math.floor %75 : vector<16x64xf32>
    %cst_45 = arith.constant 1.600000e+01 : f32
    %77 = vector.broadcast %cst_45 : f32 to vector<16x64xf32>
    %78 = arith.mulf %76, %77 : vector<16x64xf32>
    %79 = arith.subf %73, %78 : vector<16x64xf32>
    %80 = arith.truncf %78 : vector<16x64xf32> to vector<16x64xbf16>
    %cst_46 = arith.constant dense<0.000000e+00> : vector<256x64xf32>
    %81 = tpu.matmul %70, %80, %cst_46 {dimension_numbers = #tpu.dot_dimension_numbers<[1], [0], [0], [1], [0, 0, 1, 1], [], []>} : vector<256x16xbf16>, vector<16x64xbf16>, vector<256x64xf32> -> vector<256x64xf32>
    %82 = arith.truncf %79 : vector<16x64xf32> to vector<16x64xbf16>
    %cst_47 = arith.constant dense<0.000000e+00> : vector<256x64xf32>
    %83 = tpu.matmul %70, %82, %cst_47 {dimension_numbers = #tpu.dot_dimension_numbers<[1], [0], [0], [1], [0, 0, 1, 1], [], []>} : vector<256x16xbf16>, vector<16x64xbf16>, vector<256x64xf32> -> vector<256x64xf32>
    %84 = arith.addf %81, %83 : vector<256x64xf32>
    %cst_48 = arith.constant 5.000000e-01 : f32
    %85 = vector.broadcast %cst_48 : f32 to vector<256x64xf32>
    %86 = arith.mulf %84, %85 : vector<256x64xf32>
    %cst_49 = arith.constant 0.000000e+00 : f32
    %cst_50 = arith.constant 4.000000e+00 : f32
    %87 = vector.broadcast %cst_49 : f32 to vector<256x64xf32>
    %88 = arith.maximumf %87, %86 : vector<256x64xf32>
    %89 = vector.broadcast %cst_50 : f32 to vector<256x64xf32>
    %90 = arith.minimumf %89, %88 : vector<256x64xf32>
    %91 = math.roundeven %90 : vector<256x64xf32>
    %cst_51 = arith.constant 2.500000e-01 : f32
    %92 = vector.broadcast %cst_51 : f32 to vector<256x64xf32>
    %93 = arith.mulf %91, %92 : vector<256x64xf32>
    %94 = arith.truncf %93 : vector<256x64xf32> to vector<256x64xbf16>
    %95 = vector.extract_strided_slice %68 {offsets = [0, 0], sizes = [64, 64], strides = [1, 1]} : vector<256x64xbf16> to vector<64x64xbf16>
    %cst_52 = arith.constant dense<0.000000e+00> : vector<256x64xf32>
    %96 = tpu.matmul %94, %95, %cst_52 {dimension_numbers = #tpu.dot_dimension_numbers<[1], [0], [0], [1], [0, 0, 1, 1], [], []>} : vector<256x64xbf16>, vector<64x64xbf16>, vector<256x64xf32> -> vector<256x64xf32>
    %97 = arith.addf %69, %96 : vector<256x64xf32>
    %98 = vector.extract_strided_slice %35 {offsets = [0, 16], sizes = [256, 16], strides = [1, 1]} : vector<256x64xbf16> to vector<256x16xbf16>
    %99 = vector.extract_strided_slice %51 {offsets = [16, 0], sizes = [16, 256], strides = [1, 1]} : vector<64x256xbf16> to vector<16x256xbf16>
    %100 = vector.extract_strided_slice %67 {offsets = [0, 64], sizes = [256, 64], strides = [1, 1]} : vector<256x256xbf16> to vector<256x64xbf16>
    %cst_53 = arith.constant dense<0.000000e+00> : vector<16x64xf32>
    %101 = tpu.matmul %99, %100, %cst_53 {dimension_numbers = #tpu.dot_dimension_numbers<[1], [0], [0], [1], [0, 0, 1, 1], [], []>} : vector<16x256xbf16>, vector<256x64xbf16>, vector<16x64xf32> -> vector<16x64xf32>
    %cst_54 = arith.constant 6.250000e-02 : f32
    %102 = vector.broadcast %cst_54 : f32 to vector<16x64xf32>
    %103 = arith.mulf %101, %102 : vector<16x64xf32>
    %104 = math.floor %103 : vector<16x64xf32>
    %cst_55 = arith.constant 1.600000e+01 : f32
    %105 = vector.broadcast %cst_55 : f32 to vector<16x64xf32>
    %106 = arith.mulf %104, %105 : vector<16x64xf32>
    %107 = arith.subf %101, %106 : vector<16x64xf32>
    %108 = arith.truncf %106 : vector<16x64xf32> to vector<16x64xbf16>
    %cst_56 = arith.constant dense<0.000000e+00> : vector<256x64xf32>
    %109 = tpu.matmul %98, %108, %cst_56 {dimension_numbers = #tpu.dot_dimension_numbers<[1], [0], [0], [1], [0, 0, 1, 1], [], []>} : vector<256x16xbf16>, vector<16x64xbf16>, vector<256x64xf32> -> vector<256x64xf32>
    %110 = arith.truncf %107 : vector<16x64xf32> to vector<16x64xbf16>
    %cst_57 = arith.constant dense<0.000000e+00> : vector<256x64xf32>
    %111 = tpu.matmul %98, %110, %cst_57 {dimension_numbers = #tpu.dot_dimension_numbers<[1], [0], [0], [1], [0, 0, 1, 1], [], []>} : vector<256x16xbf16>, vector<16x64xbf16>, vector<256x64xf32> -> vector<256x64xf32>
    %112 = arith.addf %109, %111 : vector<256x64xf32>
    %cst_58 = arith.constant 5.000000e-01 : f32
    %113 = vector.broadcast %cst_58 : f32 to vector<256x64xf32>
    %114 = arith.mulf %112, %113 : vector<256x64xf32>
    %cst_59 = arith.constant 0.000000e+00 : f32
    %cst_60 = arith.constant 4.000000e+00 : f32
    %115 = vector.broadcast %cst_59 : f32 to vector<256x64xf32>
    %116 = arith.maximumf %115, %114 : vector<256x64xf32>
    %117 = vector.broadcast %cst_60 : f32 to vector<256x64xf32>
    %118 = arith.minimumf %117, %116 : vector<256x64xf32>
    %119 = math.roundeven %118 : vector<256x64xf32>
    %cst_61 = arith.constant 2.500000e-01 : f32
    %120 = vector.broadcast %cst_61 : f32 to vector<256x64xf32>
    %121 = arith.mulf %119, %120 : vector<256x64xf32>
    %122 = arith.truncf %121 : vector<256x64xf32> to vector<256x64xbf16>
    %123 = vector.extract_strided_slice %68 {offsets = [64, 0], sizes = [64, 64], strides = [1, 1]} : vector<256x64xbf16> to vector<64x64xbf16>
    %cst_62 = arith.constant dense<0.000000e+00> : vector<256x64xf32>
    %124 = tpu.matmul %122, %123, %cst_62 {dimension_numbers = #tpu.dot_dimension_numbers<[1], [0], [0], [1], [0, 0, 1, 1], [], []>} : vector<256x64xbf16>, vector<64x64xbf16>, vector<256x64xf32> -> vector<256x64xf32>
    %125 = arith.addf %97, %124 : vector<256x64xf32>
    %126 = vector.extract_strided_slice %35 {offsets = [0, 32], sizes = [256, 16], strides = [1, 1]} : vector<256x64xbf16> to vector<256x16xbf16>
    %127 = vector.extract_strided_slice %51 {offsets = [32, 0], sizes = [16, 256], strides = [1, 1]} : vector<64x256xbf16> to vector<16x256xbf16>
    %128 = vector.extract_strided_slice %67 {offsets = [0, 128], sizes = [256, 64], strides = [1, 1]} : vector<256x256xbf16> to vector<256x64xbf16>
    %cst_63 = arith.constant dense<0.000000e+00> : vector<16x64xf32>
    %129 = tpu.matmul %127, %128, %cst_63 {dimension_numbers = #tpu.dot_dimension_numbers<[1], [0], [0], [1], [0, 0, 1, 1], [], []>} : vector<16x256xbf16>, vector<256x64xbf16>, vector<16x64xf32> -> vector<16x64xf32>
    %cst_64 = arith.constant 6.250000e-02 : f32
    %130 = vector.broadcast %cst_64 : f32 to vector<16x64xf32>
    %131 = arith.mulf %129, %130 : vector<16x64xf32>
    %132 = math.floor %131 : vector<16x64xf32>
    %cst_65 = arith.constant 1.600000e+01 : f32
    %133 = vector.broadcast %cst_65 : f32 to vector<16x64xf32>
    %134 = arith.mulf %132, %133 : vector<16x64xf32>
    %135 = arith.subf %129, %134 : vector<16x64xf32>
    %136 = arith.truncf %134 : vector<16x64xf32> to vector<16x64xbf16>
    %cst_66 = arith.constant dense<0.000000e+00> : vector<256x64xf32>
    %137 = tpu.matmul %126, %136, %cst_66 {dimension_numbers = #tpu.dot_dimension_numbers<[1], [0], [0], [1], [0, 0, 1, 1], [], []>} : vector<256x16xbf16>, vector<16x64xbf16>, vector<256x64xf32> -> vector<256x64xf32>
    %138 = arith.truncf %135 : vector<16x64xf32> to vector<16x64xbf16>
    %cst_67 = arith.constant dense<0.000000e+00> : vector<256x64xf32>
    %139 = tpu.matmul %126, %138, %cst_67 {dimension_numbers = #tpu.dot_dimension_numbers<[1], [0], [0], [1], [0, 0, 1, 1], [], []>} : vector<256x16xbf16>, vector<16x64xbf16>, vector<256x64xf32> -> vector<256x64xf32>
    %140 = arith.addf %137, %139 : vector<256x64xf32>
    %cst_68 = arith.constant 5.000000e-01 : f32
    %141 = vector.broadcast %cst_68 : f32 to vector<256x64xf32>
    %142 = arith.mulf %140, %141 : vector<256x64xf32>
    %cst_69 = arith.constant 0.000000e+00 : f32
    %cst_70 = arith.constant 4.000000e+00 : f32
    %143 = vector.broadcast %cst_69 : f32 to vector<256x64xf32>
    %144 = arith.maximumf %143, %142 : vector<256x64xf32>
    %145 = vector.broadcast %cst_70 : f32 to vector<256x64xf32>
    %146 = arith.minimumf %145, %144 : vector<256x64xf32>
    %147 = math.roundeven %146 : vector<256x64xf32>
    %cst_71 = arith.constant 2.500000e-01 : f32
    %148 = vector.broadcast %cst_71 : f32 to vector<256x64xf32>
    %149 = arith.mulf %147, %148 : vector<256x64xf32>
    %150 = arith.truncf %149 : vector<256x64xf32> to vector<256x64xbf16>
    %151 = vector.extract_strided_slice %68 {offsets = [128, 0], sizes = [64, 64], strides = [1, 1]} : vector<256x64xbf16> to vector<64x64xbf16>
    %cst_72 = arith.constant dense<0.000000e+00> : vector<256x64xf32>
    %152 = tpu.matmul %150, %151, %cst_72 {dimension_numbers = #tpu.dot_dimension_numbers<[1], [0], [0], [1], [0, 0, 1, 1], [], []>} : vector<256x64xbf16>, vector<64x64xbf16>, vector<256x64xf32> -> vector<256x64xf32>
    %153 = arith.addf %125, %152 : vector<256x64xf32>
    %154 = vector.extract_strided_slice %35 {offsets = [0, 48], sizes = [256, 16], strides = [1, 1]} : vector<256x64xbf16> to vector<256x16xbf16>
    %155 = vector.extract_strided_slice %51 {offsets = [48, 0], sizes = [16, 256], strides = [1, 1]} : vector<64x256xbf16> to vector<16x256xbf16>
    %156 = vector.extract_strided_slice %67 {offsets = [0, 192], sizes = [256, 64], strides = [1, 1]} : vector<256x256xbf16> to vector<256x64xbf16>
    %cst_73 = arith.constant dense<0.000000e+00> : vector<16x64xf32>
    %157 = tpu.matmul %155, %156, %cst_73 {dimension_numbers = #tpu.dot_dimension_numbers<[1], [0], [0], [1], [0, 0, 1, 1], [], []>} : vector<16x256xbf16>, vector<256x64xbf16>, vector<16x64xf32> -> vector<16x64xf32>
    %cst_74 = arith.constant 6.250000e-02 : f32
    %158 = vector.broadcast %cst_74 : f32 to vector<16x64xf32>
    %159 = arith.mulf %157, %158 : vector<16x64xf32>
    %160 = math.floor %159 : vector<16x64xf32>
    %cst_75 = arith.constant 1.600000e+01 : f32
    %161 = vector.broadcast %cst_75 : f32 to vector<16x64xf32>
    %162 = arith.mulf %160, %161 : vector<16x64xf32>
    %163 = arith.subf %157, %162 : vector<16x64xf32>
    %164 = arith.truncf %162 : vector<16x64xf32> to vector<16x64xbf16>
    %cst_76 = arith.constant dense<0.000000e+00> : vector<256x64xf32>
    %165 = tpu.matmul %154, %164, %cst_76 {dimension_numbers = #tpu.dot_dimension_numbers<[1], [0], [0], [1], [0, 0, 1, 1], [], []>} : vector<256x16xbf16>, vector<16x64xbf16>, vector<256x64xf32> -> vector<256x64xf32>
    %166 = arith.truncf %163 : vector<16x64xf32> to vector<16x64xbf16>
    %cst_77 = arith.constant dense<0.000000e+00> : vector<256x64xf32>
    %167 = tpu.matmul %154, %166, %cst_77 {dimension_numbers = #tpu.dot_dimension_numbers<[1], [0], [0], [1], [0, 0, 1, 1], [], []>} : vector<256x16xbf16>, vector<16x64xbf16>, vector<256x64xf32> -> vector<256x64xf32>
    %168 = arith.addf %165, %167 : vector<256x64xf32>
    %cst_78 = arith.constant 5.000000e-01 : f32
    %169 = vector.broadcast %cst_78 : f32 to vector<256x64xf32>
    %170 = arith.mulf %168, %169 : vector<256x64xf32>
    %cst_79 = arith.constant 0.000000e+00 : f32
    %cst_80 = arith.constant 4.000000e+00 : f32
    %171 = vector.broadcast %cst_79 : f32 to vector<256x64xf32>
    %172 = arith.maximumf %171, %170 : vector<256x64xf32>
    %173 = vector.broadcast %cst_80 : f32 to vector<256x64xf32>
    %174 = arith.minimumf %173, %172 : vector<256x64xf32>
    %175 = math.roundeven %174 : vector<256x64xf32>
    %cst_81 = arith.constant 2.500000e-01 : f32
    %176 = vector.broadcast %cst_81 : f32 to vector<256x64xf32>
    %177 = arith.mulf %175, %176 : vector<256x64xf32>
    %178 = arith.truncf %177 : vector<256x64xf32> to vector<256x64xbf16>
    %179 = vector.extract_strided_slice %68 {offsets = [192, 0], sizes = [64, 64], strides = [1, 1]} : vector<256x64xbf16> to vector<64x64xbf16>
    %cst_82 = arith.constant dense<0.000000e+00> : vector<256x64xf32>
    %180 = tpu.matmul %178, %179, %cst_82 {dimension_numbers = #tpu.dot_dimension_numbers<[1], [0], [0], [1], [0, 0, 1, 1], [], []>} : vector<256x64xbf16>, vector<64x64xbf16>, vector<256x64xf32> -> vector<256x64xf32>
    %181 = arith.addf %153, %180 : vector<256x64xf32>
    %c0_83 = arith.constant 0 : index
    %c0_84 = arith.constant 0 : index
    %182 = vector.load %arg13[%c0_83, %c0_84] : memref<1x64xf32, #tpu.memory_space<vmem>>, vector<1x64xf32>
    %183 = vector.broadcast %182 : vector<1x64xf32> to vector<256x64xf32>
    %184 = arith.mulf %181, %183 : vector<256x64xf32>
    %185 = arith.addf %1, %184 : vector<256x64xf32>
    %c0_85 = arith.constant 0 : index
    %c0_86 = arith.constant 0 : index
    %186 = vector.load %arg14[%c0_85, %c0_86] : memref<1x64xf32, #tpu.memory_space<vmem>>, vector<1x64xf32>
    %187 = vector.broadcast %186 : vector<1x64xf32> to vector<256x64xf32>
    %188 = arith.addf %185, %187 : vector<256x64xf32>
    %cst_87 = arith.constant 0.000000e+00 : f32
    %cst_88 = arith.constant 4.000000e+00 : f32
    %189 = vector.broadcast %cst_87 : f32 to vector<256x64xf32>
    %190 = arith.maximumf %189, %188 : vector<256x64xf32>
    %191 = vector.broadcast %cst_88 : f32 to vector<256x64xf32>
    %192 = arith.minimumf %191, %190 : vector<256x64xf32>
    %193 = math.roundeven %192 : vector<256x64xf32>
    %cst_89 = arith.constant 2.500000e-01 : f32
    %194 = vector.broadcast %cst_89 : f32 to vector<256x64xf32>
    %195 = arith.mulf %193, %194 : vector<256x64xf32>
    %196 = arith.truncf %195 : vector<256x64xf32> to vector<256x64xbf16>
    %c0_90 = arith.constant 0 : index
    %c0_91 = arith.constant 0 : index
    %197 = vector.load %arg15[%c0_90, %c0_91] : memref<64x256xbf16, #tpu.memory_space<vmem>>, vector<64x256xbf16>
    %cst_92 = arith.constant dense<0.000000e+00> : vector<256x256xf32>
    %198 = tpu.matmul %196, %197, %cst_92 {dimension_numbers = #tpu.dot_dimension_numbers<[1], [0], [0], [1], [0, 0, 1, 1], [], []>} : vector<256x64xbf16>, vector<64x256xbf16>, vector<256x256xf32> -> vector<256x256xf32>
    %c0_93 = arith.constant 0 : index
    %c0_94 = arith.constant 0 : index
    %199 = vector.load %arg16[%c0_93, %c0_94] : memref<1x256xf32, #tpu.memory_space<vmem>>, vector<1x256xf32>
    %200 = vector.broadcast %199 : vector<1x256xf32> to vector<256x256xf32>
    %201 = arith.mulf %198, %200 : vector<256x256xf32>
    %c0_95 = arith.constant 0 : index
    %c0_96 = arith.constant 0 : index
    %202 = vector.load %arg17[%c0_95, %c0_96] : memref<1x256xf32, #tpu.memory_space<vmem>>, vector<1x256xf32>
    %203 = vector.broadcast %202 : vector<1x256xf32> to vector<256x256xf32>
    %204 = arith.addf %201, %203 : vector<256x256xf32>
    %cst_97 = arith.constant 0.000000e+00 : f32
    %cst_98 = arith.constant 4.000000e+00 : f32
    %205 = vector.broadcast %cst_97 : f32 to vector<256x256xf32>
    %206 = arith.maximumf %205, %204 : vector<256x256xf32>
    %207 = vector.broadcast %cst_98 : f32 to vector<256x256xf32>
    %208 = arith.minimumf %207, %206 : vector<256x256xf32>
    %209 = math.roundeven %208 : vector<256x256xf32>
    %cst_99 = arith.constant 2.500000e-01 : f32
    %210 = vector.broadcast %cst_99 : f32 to vector<256x256xf32>
    %211 = arith.mulf %209, %210 : vector<256x256xf32>
    %212 = arith.truncf %211 : vector<256x256xf32> to vector<256x256xbf16>
    %c0_100 = arith.constant 0 : index
    %c0_101 = arith.constant 0 : index
    %213 = vector.load %arg18[%c0_100, %c0_101] : memref<256x64xbf16, #tpu.memory_space<vmem>>, vector<256x64xbf16>
    %cst_102 = arith.constant dense<0.000000e+00> : vector<256x64xf32>
    %214 = tpu.matmul %212, %213, %cst_102 {dimension_numbers = #tpu.dot_dimension_numbers<[1], [0], [0], [1], [0, 0, 1, 1], [], []>} : vector<256x256xbf16>, vector<256x64xbf16>, vector<256x64xf32> -> vector<256x64xf32>
    %c0_103 = arith.constant 0 : index
    %c0_104 = arith.constant 0 : index
    %215 = vector.load %arg19[%c0_103, %c0_104] : memref<1x64xf32, #tpu.memory_space<vmem>>, vector<1x64xf32>
    %216 = vector.broadcast %215 : vector<1x64xf32> to vector<256x64xf32>
    %217 = arith.mulf %214, %216 : vector<256x64xf32>
    %218 = arith.addf %188, %217 : vector<256x64xf32>
    %c0_105 = arith.constant 0 : index
    %c0_106 = arith.constant 0 : index
    %219 = vector.load %arg20[%c0_105, %c0_106] : memref<1x64xf32, #tpu.memory_space<vmem>>, vector<1x64xf32>
    %220 = vector.broadcast %219 : vector<1x64xf32> to vector<256x64xf32>
    %221 = arith.addf %218, %220 : vector<256x64xf32>
    %c0_107 = arith.constant 0 : index
    %c0_108 = arith.constant 0 : index
    %c0_109 = arith.constant 0 : index
    %222 = vector.load %arg21[%c0_107, %c0_108, %c0_109] : memref<1x256x64xf32, #tpu.memory_space<vmem>>, vector<1x256x64xf32>
    %223 = vector.shape_cast %222 : vector<1x256x64xf32> to vector<256x64xf32>
    %224 = vector.shape_cast %221 : vector<256x64xf32> to vector<1x256x64xf32>
    tpu.vector_store %arg21[%c0_107, %c0_108, %c0_109], %224 {strides = array<i32>} : memref<1x256x64xf32, #tpu.memory_space<vmem>>, vector<1x256x64xf32>,
    return
  }
  func.func @transform_0(%arg0: i32) -> (i32, i32, i32) {
    %c0_i32 = arith.constant 0 : i32
    %c0_i32_0 = arith.constant 0 : i32
    %c0_i32_1 = arith.constant 0 : i32
    return %arg0, %c0_i32, %c0_i32_0 : i32, i32, i32
  }
  func.func @transform_1(%arg0: i32) -> (i32, i32, i32) {
    %c0_i32 = arith.constant 0 : i32
    %c0_i32_0 = arith.constant 0 : i32
    %c0_i32_1 = arith.constant 0 : i32
    return %arg0, %c0_i32, %c0_i32_0 : i32, i32, i32
  }
  func.func @transform_2(%arg0: i32) -> (i32, i32) {
    %c0_i32 = arith.constant 0 : i32
    %c0_i32_0 = arith.constant 0 : i32
    %c0_i32_1 = arith.constant 0 : i32
    return %c0_i32, %c0_i32_0 : i32, i32
  }
  func.func @transform_3(%arg0: i32) -> (i32, i32) {
    %c0_i32 = arith.constant 0 : i32
    %c0_i32_0 = arith.constant 0 : i32
    %c0_i32_1 = arith.constant 0 : i32
    return %c0_i32, %c0_i32_0 : i32, i32
  }
  func.func @transform_4(%arg0: i32) -> (i32, i32) {
    %c0_i32 = arith.constant 0 : i32
    %c0_i32_0 = arith.constant 0 : i32
    %c0_i32_1 = arith.constant 0 : i32
    return %c0_i32, %c0_i32_0 : i32, i32
  }
  func.func @transform_5(%arg0: i32) -> (i32, i32) {
    %c0_i32 = arith.constant 0 : i32
    %c0_i32_0 = arith.constant 0 : i32
    %c0_i32_1 = arith.constant 0 : i32
    return %c0_i32, %c0_i32_0 : i32, i32
  }
  func.func @transform_6(%arg0: i32) -> (i32, i32) {
    %c0_i32 = arith.constant 0 : i32
    %c0_i32_0 = arith.constant 0 : i32
    %c0_i32_1 = arith.constant 0 : i32
    return %c0_i32, %c0_i32_0 : i32, i32
  }
  func.func @transform_7(%arg0: i32) -> (i32, i32) {
    %c0_i32 = arith.constant 0 : i32
    %c0_i32_0 = arith.constant 0 : i32
    %c0_i32_1 = arith.constant 0 : i32
    return %c0_i32, %c0_i32_0 : i32, i32
  }
  func.func @transform_8(%arg0: i32) -> (i32, i32) {
    %c0_i32 = arith.constant 0 : i32
    %c0_i32_0 = arith.constant 0 : i32
    %c0_i32_1 = arith.constant 0 : i32
    return %c0_i32, %c0_i32_0 : i32, i32
  }
  func.func @transform_9(%arg0: i32) -> (i32, i32) {
    %c0_i32 = arith.constant 0 : i32
    %c0_i32_0 = arith.constant 0 : i32
    %c0_i32_1 = arith.constant 0 : i32
    return %c0_i32, %c0_i32_0 : i32, i32
  }
  func.func @transform_10(%arg0: i32) -> (i32, i32) {
    %c0_i32 = arith.constant 0 : i32
    %c0_i32_0 = arith.constant 0 : i32
    %c0_i32_1 = arith.constant 0 : i32
    return %c0_i32, %c0_i32_0 : i32, i32
  }
  func.func @transform_11(%arg0: i32) -> (i32, i32) {
    %c0_i32 = arith.constant 0 : i32
    %c0_i32_0 = arith.constant 0 : i32
    %c0_i32_1 = arith.constant 0 : i32
    return %c0_i32, %c0_i32_0 : i32, i32
  }
  func.func @transform_12(%arg0: i32) -> (i32, i32) {
    %c0_i32 = arith.constant 0 : i32
    %c0_i32_0 = arith.constant 0 : i32
    %c0_i32_1 = arith.constant 0 : i32
    return %c0_i32, %c0_i32_0 : i32, i32
  }
  func.func @transform_13(%arg0: i32) -> (i32, i32) {
    %c0_i32 = arith.constant 0 : i32
    %c0_i32_0 = arith.constant 0 : i32
    %c0_i32_1 = arith.constant 0 : i32
    return %c0_i32, %c0_i32_0 : i32, i32
  }
  func.func @transform_14(%arg0: i32) -> (i32, i32) {
    %c0_i32 = arith.constant 0 : i32
    %c0_i32_0 = arith.constant 0 : i32
    %c0_i32_1 = arith.constant 0 : i32
    return %c0_i32, %c0_i32_0 : i32, i32
  }
  func.func @transform_15(%arg0: i32) -> (i32, i32) {
    %c0_i32 = arith.constant 0 : i32
    %c0_i32_0 = arith.constant 0 : i32
    %c0_i32_1 = arith.constant 0 : i32
    return %c0_i32, %c0_i32_0 : i32, i32
  }
  func.func @transform_16(%arg0: i32) -> (i32, i32) {
    %c0_i32 = arith.constant 0 : i32
    %c0_i32_0 = arith.constant 0 : i32
    %c0_i32_1 = arith.constant 0 : i32
    return %c0_i32, %c0_i32_0 : i32, i32
  }
  func.func @transform_17(%arg0: i32) -> (i32, i32) {
    %c0_i32 = arith.constant 0 : i32
    %c0_i32_0 = arith.constant 0 : i32
    %c0_i32_1 = arith.constant 0 : i32
    return %c0_i32, %c0_i32_0 : i32, i32
  }
  func.func @transform_18(%arg0: i32) -> (i32, i32) {
    %c0_i32 = arith.constant 0 : i32
    %c0_i32_0 = arith.constant 0 : i32
    %c0_i32_1 = arith.constant 0 : i32
    return %c0_i32, %c0_i32_0 : i32, i32
  }
  func.func @transform_19(%arg0: i32) -> (i32, i32) {
    %c0_i32 = arith.constant 0 : i32
    %c0_i32_0 = arith.constant 0 : i32
    %c0_i32_1 = arith.constant 0 : i32
    return %c0_i32, %c0_i32_0 : i32, i32
  }
  func.func @transform_20(%arg0: i32) -> (i32, i32, i32) {
    %c0_i32 = arith.constant 0 : i32
    %c0_i32_0 = arith.constant 0 : i32
    %c0_i32_1 = arith.constant 0 : i32
    return %arg0, %c0_i32, %c0_i32_0 : i32, i32, i32
  }
}

</mosaic_0001>

<bundles_post_ra>
// kernel: _lambda_.1
= control target key start
LH: loop header
LB: loop body
LE: loop exit
PB: predicated region body
PF: predicated region fallthrough
CT: control target
= control target key end

     0   :  { %s12271_s0 = inlined_call_operand.vmem [shape: f32[2,256,64], index: 0, kind: input, shape index: {}]   ;;  %s12272_s1 = inlined_call_operand.vmem [shape: f32[2,64,256], index: 1, kind: input, shape index: {}]   ;;  %s12273_s2 = inlined_call_operand.vmem [shape: bf16[64,64], index: 2, kind: input, shape index: {}]   ;;  %s12274_s3 = inlined_call_operand.hbm [shape: f32[1,64], index: 3, kind: input, shape index: {}]   ;;  %s12275_s4 = inlined_call_operand.hbm [shape: f32[1,64], index: 4, kind: input, shape index: {}]   ;;  %s12276_s5 = inlined_call_operand.vmem [shape: bf16[64,64], index: 5, kind: input, shape index: {}]   ;;  %s12277_s6 = inlined_call_operand.vmem [shape: f32[64,1], index: 6, kind: input, shape index: {}]   ;;  %s12278_s7 = inlined_call_operand.vmem [shape: f32[64,1], index: 7, kind: input, shape index: {}]   ;;  %s12279_s8 = inlined_call_operand.vmem [shape: bf16[64,256], index: 8, kind: input, shape index: {}]   ;;  %s12280_s9 = inlined_call_operand.vmem [shape: f32[1,256], index: 9, kind: input, shape index: {}]   ;;  %s12281_s10 = inlined_call_operand.vmem [shape: f32[1,256], index: 10, kind: input, shape index: {}]   ;;  %s12282_s11 = inlined_call_operand.vmem [shape: bf16[256,64], index: 11, kind: input, shape index: {}]   ;;  %s12283_s12 = inlined_call_operand.hbm [shape: f32[1,64], index: 12, kind: input, shape index: {}]   ;;  %s12284_s13 = inlined_call_operand.vmem [shape: f32[1,64], index: 13, kind: input, shape index: {}]   ;;  %s12285_s14 = inlined_call_operand.vmem [shape: bf16[64,256], index: 14, kind: input, shape index: {}]   ;;  %s12286_s15 = inlined_call_operand.vmem [shape: f32[1,256], index: 15, kind: input, shape index: {}]   ;;  %s12287_s16 = inlined_call_operand.vmem [shape: f32[1,256], index: 16, kind: input, shape index: {}]   ;;  %s12288_s17 = inlined_call_operand.vmem [shape: bf16[256,64], index: 17, kind: input, shape index: {}]   ;;  %s12289_s18 = inlined_call_operand.vmem [shape: f32[1,64], index: 18, kind: input, shape index: {}]   ;;  %s12290_s19 = inlined_call_operand.vmem [shape: f32[1,64], index: 19, kind: input, shape index: {}]   ;;  %s12291_s20 = inlined_call_operand.hbm [shape: f32[2,256,64], index: 20, kind: output, shape index: {}]  }
   0x1   :  { %12360 = sst [smem:[#allocation64_spill]] %s12271_s0 }
   0x2   :  { %12361 = sst [smem:[#allocation65_spill]] %s12272_s1 }
   0x3   :  { %12362 = sst [smem:[#allocation66_spill]] %s12273_s2 }
   0x4   :  { %12363 = sst [smem:[#allocation67_spill]] %s12274_s3 }
   0x5   :  { %12364 = sst [smem:[#allocation68_spill]] %s12275_s4 }
   0x6   :  { %12365 = sst [smem:[#allocation69_spill]] %s12289_s18 }
   0x7   :  { %12366 = sst [smem:[#allocation70_spill]] %s12290_s19 }
   0x8   :  { %12367 = sst [smem:[#allocation71_spill]] %s12291_s20 }
   0x9   :  { %25 = vsyncpa [#allocation3], 0 }
   0xa   :  { %26 = vsyncpa [#allocation6], 0 }
   0xb   :  { %27 = vsyncpa [#allocation4], 0 }
   0xc   :  { %29 = vsyncpa [#allocation4 + $0x1], 0  ;;  %s9899_s1 = smov 0   ;;  %s9901_s22 = smov 0  }
   0xd   :  { %s9903_s23 = smov 0   ;;  %s9905_s24 = smov 0  }
   0xe LB: > { %12368 = sst [smem:[#allocation12_spill]] %s9769_s1  ;;  %s9920_s2 = sadd.s32 4294967295, %s9781_s24   ;;  %s9781_s24 = sphi %s9905_s24, %s12557_s24   ;;  %s9777_s23 = sphi %s9903_s23, %s12560_s23   ;;  %s9773_s22 = sphi %s9901_s22, %s12559_s22   ;;  %s9769_s1 = sphi %s9899_s1, %s12558_s1  }
   0xf   : > { %12369 = sst [smem:[#allocation13_spill]] %s9773_s22  ;;  %s7599_s25 = sadd.s32 4294967294, %s9781_s24  }
  0x10   : > { %12370 = sst [smem:[#allocation14_spill]] %s9777_s23  ;;  %s9924_s3 = sadd.s32 1, %s9781_s24  }
  0x11   : > { %12371 = sst [smem:[#allocation15_spill]] %s9781_s24  ;;  %s472_s26 = sadd.s32 1, %s9777_s23 }
  0x12   : > { %12372 = sst [smem:[#allocation16_spill]] %s9924_s3  ;;  %s469_s27 = ssub.s32 %s9781_s24, %s9924_s3 }
  0x13   : > { %p482_p0 = scmp.ne.s32.totalorder %s9777_s23, %s9773_s22  ;;  %p470_p1 = scmp.eq.s32.totalorder %s469_s27, 0 }
  0x14   : > { %p483_p2 = scmp.eq.s32.totalorder %s9920_s2, 1  ;;  %p488_p3 = scmp.ne.s32.totalorder %s9773_s22, %s9769_s1 }
  0x15   : > { %p489_p4 = scmp.eq.s32.totalorder %s7599_s25, 1  ;;  %p7600_p7 = scmp.ge.s32.totalorder %s9781_s24, 1 }
  0x16   : > { %s9935_s28 = scalar_select %p470_p1, %s9777_s23, %s472_s26  }
  0x17   : > { %p9937_p5 = por %p483_p2, %p482_p0  ;;  %p9941_p6 = por %p489_p4, %p488_p3 }
  0x18   : > { %12373 = sst [smem:[#allocation17_spill]] %s9935_s28  ;;  %p496_p8 = scmp.lt.s32.totalorder %s9781_s24, 3 }
  0x19   : > { %s12374_s4 = scalar_select %p9937_p5, 1, 0 }
  0x1a   : > { %s12376_s29 = scalar_select %p9941_p6, 1, 0 }
  0x1b   : > { %12375 = sst [smem:[#allocation18_spill]] %s12374_s4  ;;  %p12304_p9 = scmp.eq.s32.totalorder %s9920_s2, 0 }
  0x1c   : > { %12377 = sst [smem:[#allocation19_spill]] %s12376_s29  ;;  %p9948_p10 = pnand %p7600_p7, %p496_p8 }
  0x1d   : > { %s9783_s0 = smov [#allocation5]   ;;  %s9784_s25 = smov [#allocation2]  }
  0x1e   : > { %s12378_s30 = scalar_select %p9948_p10, 1, 0 }
  0x1f   : > { %s523_s21 = sshll.u32 %s9783_s0, 4  ;;  %p9466_p11 = pneg %p9948_p10  ;;  %s524_s21 = int_to_ptr.vmem [resolvable:$true] %s523_s21 }
  0x20   : > { %s512_s26 = sshll.u32 %s9784_s25, 4  ;;  %s9785_s28 = smov [#allocation7]   ;;  %s9960_s26 = int_to_ptr.vmem [resolvable:$true] %s512_s26 }
  0x21   : > { %p9956_p12 = pnand %p12304_p9, %p9466_p11  ;;  %s555_s23 = sshll.u32 %s9785_s28, 4  ;;  %s9962_s23 = int_to_ptr.vmem [resolvable:$true] %s555_s23 }
  0x22   : > { %s12380_s0 = sld [smem:[#allocation68_spill]] }
  0x23   : > { %p9972_p0 = pneg %p9956_p12 }
  0x28   : > { %s9627_s1 = scalar_lea.hbm %s12380_s0, 16 }
  0x29   : > { %p9628_p13 = scmp.ne.s32.totalorder %s12380_s0, %s9627_s1  ;;  %p9634_p3 = scmp.lt.u32.totalorder %s9627_s1, %s12380_s0 }
  0x2b   : > { %p9630_p1 = pnand %p9972_p0, %p9628_p13 }
  0x2d   : > { %p9631_p2 = pneg %p9630_p1 }
  0x2f   : > { %p9636_p4 = pnand %p9634_p3, %p9631_p2 }
  0x31   : > { %9639 = shalt.err (!%p9636_p4)
}
  0x32   : > { %s9640_s3 = scalar_lea.vmem %s524_s21, 16  ;;  %s9647_s20 = scalar_lea.vmem %s524_s21, 32 }
  0x33   : > { %p9641_p7 = scmp.ne.s32.totalorder %s524_s21, %s9640_s3  ;;  %p9648_p9 = scmp.lt.s32.totalorder %s524_s21, %s524_s21 }
  0x34   : > { %p9649_p6 = scmp.lt.s32.totalorder %s9647_s20, %s9640_s3 }
  0x35   : > { %p9643_p8 = pnand %p9641_p7, %p9972_p0 }
  0x36   : > { %p9650_p5 = por %p9649_p6, %p9648_p9 }
  0x37   : > { %p9644_p11 = pneg %p9643_p8 }
  0x39   : > { %p9651_p10 = pnand %p9650_p5, %p9644_p11 }
  0x3b   : > { %9654 = shalt.err (!%p9651_p10)
}
  0x3c   : > { %9472 = dma.hbm_to_vmem [thread:$0]  (!%p9956_p12), %s12380_s0, 16, %s524_s21, [#allocation6]  }
  0x3d   : > { %s12382_s28 = sld [smem:[#allocation67_spill]] }
  0x43   : > { %s9655_s19 = scalar_lea.hbm %s12382_s28, 16 }
  0x44   : > { %p9656_p13 = scmp.ne.s32.totalorder %s12382_s28, %s9655_s19  ;;  %p9662_p5 = scmp.lt.u32.totalorder %s9655_s19, %s12382_s28 }
  0x46   : > { %p9658_p1 = pnand %p9656_p13, %p9972_p0 }
  0x48   : > { %p9659_p6 = pneg %p9658_p1 }
  0x4a   : > { %p9664_p9 = pnand %p9662_p5, %p9659_p6 }
  0x4c   : > { %9667 = shalt.err (!%p9664_p9)
}
  0x4d   : > { %s9668_s21 = scalar_lea.vmem %s9960_s26, 16  ;;  %s9675_s18 = scalar_lea.vmem %s9960_s26, 32 }
  0x4e   : > { %p9669_p10 = scmp.ne.s32.totalorder %s9960_s26, %s9668_s21  ;;  %p9676_p4 = scmp.lt.s32.totalorder %s9960_s26, %s9960_s26 }
  0x4f   : > { %p9677_p7 = scmp.lt.s32.totalorder %s9675_s18, %s9668_s21 }
  0x50   : > { %p9671_p2 = pnand %p9669_p10, %p9972_p0 }
  0x51   : > { %p9678_p8 = por %p9677_p7, %p9676_p4 }
  0x52   : > { %p9672_p3 = pneg %p9671_p2 }
  0x54   : > { %p9679_p11 = pnand %p9678_p8, %p9672_p3 }
  0x56   : > { %9682 = shalt.err (!%p9679_p11)
}
  0x57   : > { %9469 = dma.hbm_to_vmem [thread:$0]  (!%p9956_p12), %s12382_s28, 16, %s9960_s26, [#allocation3]  }
  0x58   : > { %s9683_s1 = scalar_lea.hbm %s12283_s12, 16 }
  0x59   : > { %p9684_p13 = scmp.ne.s32.totalorder %s12283_s12, %s9683_s1  ;;  %p9690_p5 = scmp.lt.u32.totalorder %s9683_s1, %s12283_s12 }
  0x5b   : > { %p9686_p1 = pnand %p9684_p13, %p9972_p0 }
  0x5d   : > { %p9687_p6 = pneg %p9686_p1 }
  0x5f   : > { %p9692_p9 = pnand %p9690_p5, %p9687_p6 }
  0x61   : > { %9695 = shalt.err (!%p9692_p9)
}
  0x62   : > { %s9696_s26 = scalar_lea.vmem %s9962_s23, 16  ;;  %s9703_s18 = scalar_lea.vmem %s9962_s23, 32 }
  0x63   : > { %p9697_p10 = scmp.ne.s32.totalorder %s9962_s23, %s9696_s26  ;;  %p9704_p4 = scmp.lt.s32.totalorder %s9962_s23, %s9962_s23 }
  0x64   : > { %p9705_p7 = scmp.lt.s32.totalorder %s9703_s18, %s9696_s26 }
  0x65   : > { %p9699_p2 = pnand %p9697_p10, %p9972_p0 }
  0x66   : > { %p9706_p8 = por %p9705_p7, %p9704_p4 }
  0x67   : > { %p9700_p3 = pneg %p9699_p2 }
  0x69   : > { %p9707_p11 = pnand %p9706_p8, %p9700_p3 }
  0x6b   : > { %9710 = shalt.err (!%p9707_p11)
}
  0x6c   : > { %9475 = dma.hbm_to_vmem [thread:$0]  (!%p9956_p12), %s12283_s12, 16, %s9962_s23, [#allocation6]  }
  0x6d   : > { %p12383_p13 = scmp.ne.s32.totalorder %s12378_s30, 0 }
  0x6f   : > { %605 = sbr.rel (%p12383_p13) target bundleno = 2947 (0xb83), region = 100 }
  0x76   : > { %p12384_p0 = scmp.eq.s32.totalorder %s9920_s2, 0 }
  0x78   : > { %9756 = dma.done.wait (%p12384_p0), [#allocation3], 16   ;;  %p12385_p1 = pmov %p12384_p0 }
  0x79   : > { %p12386_p6 = pmov %p12384_p0 }
  0x7a   : > { %9758 = vsyncadd (%p12385_p1), [#allocation3], 4294967280 }
  0x7b   : > { %9760 = dma.done.wait (%p12386_p6), [#allocation6], 32   ;;  %p12387_p5 = pmov %p12384_p0 }
  0x7c   : > { %p676_p9 = scmp.lt.s32.totalorder %s9920_s2, 1  ;;  %v12309_v0 = vmov 0   ;;  %s12388_s24 = sld [smem:[#allocation66_spill]]  ;;  %vm983_vm0 = vcmask 523264   ;;  %vm2492_vm1 = vcmask 130048  }
  0x7d   : > { %9762 = vsyncadd (%p12387_p5), [#allocation6], 4294967264  ;;  %1487 = vmatprep.mubr.bf16.mxu1 %v12309_v0  ;;  %9530 = vset.pattern.permute.xlu1 %v12309_v0  ;;  %s12390_s3 = sld [smem:[#allocation65_spill]]  ;;  %s12391_s25 = sld [smem:[#allocation64_spill]] }
  0x7e   : > { %s677_s23 = scalar_select %p676_p9, %s9920_s2, 1  ;;  %9529 = vset.pattern.permute.xlu0 %v12309_v0 }
  0x7f   : > { %s12548_s1 = sld [smem:[#allocation69_spill]]  ;;  %s7927_s26 = sshll.u32 %s9920_s2, 12 }
  0x80   : > { %s7926_s30 = sshll.u32 %s677_s23, 7  ;;  %s7925_s22 = sshll.u32 %s677_s23, 8 }
  0x81   : > { %s9788_s23 = smov 112  }
  0x82   : > { %s12389_s29 = smov %s12388_s24  ;;  %v9531_v1 = vld [vmem:[%s12388_s24] sm:$0xff]  }
  0x83   : > { %s10057_s20 = scalar_lea.vmem %s12390_s3, %s7926_s30  ;;  %v9532_v2 = vld [vmem:[%s12389_s29 + $0x8] sm:$0xff]   ;;  %8364 = vmatprep.subr.bf16.mxu0 %v9531_v1  ;;  %v9533_v3 = vld [vmem:[%s12389_s29 + $0x10] sm:$0xff]   ;;  %s10073_s24 = scalar_lea.vmem %s12391_s25, %s7925_s22  ;;  %v9534_v26 = vld [vmem:[%s12389_s29 + $0x18] sm:$0xff]  }
  0x84   : > { %8365 = vmatpush3.bf16.msra.mxu0 %v9531_v1  ;;  %v864_v4 = vld [vmem:[%s10057_s20 + $0x8] sm:$0xff]  ;;  %v866_v5 = vld [vmem:[%s10057_s20 + $0x18] sm:$0xff]  ;;  %v863_v6 = vld [vmem:[%s10057_s20] sm:$0xff]  ;;  %s9787_s30 = smov 64   ;;  %s9790_s3 = smov 80  }
  0x85   : > { %8366 = vmatprep.subr.bf16.mxu0 %v9532_v2  ;;  %v880_v7 = vmax.f32 %v864_v4, 0.0  ;;  %v882_v8 = vmax.f32 %v866_v5, 0.0  ;;  %v865_v9 = vld [vmem:[%s10057_s20 + $0x10] sm:$0xff]  ;;  %v879_v10 = vmax.f32 %v863_v6, 0.0  ;;  %v868_v12 = vld [vmem:[%s10057_s20 + $0x28] sm:$0xff]  ;;  %v870_v16 = vld [vmem:[%s10057_s20 + $0x38] sm:$0xff] }
  0x86   : > { %v881_v11 = vmax.f32 %v865_v9, 0.0  ;;  %v884_v17 = vmax.f32 %v868_v12, 0.0  ;;  %v867_v18 = vld [vmem:[%s10057_s20 + $0x20] sm:$0xff]  ;;  %v886_v20 = vmax.f32 %v870_v16, 0.0  ;;  %v869_v21 = vld [vmem:[%s10057_s20 + $0x30] sm:$0xff]  ;;  %v688_v33 = vld [vmem:[%s10073_s24 + $0x8] sm:$0xff] }
  0x87   : > { %v896_v13 = vmin.f32 %v880_v7, 4.0  ;;  %v898_v14 = vmin.f32 %v882_v8, 4.0  ;;  %v895_v15 = vmin.f32 %v879_v10, 4.0  ;;  %v883_v22 = vmax.f32 %v867_v18, 0.0  ;;  %v687_v32 = vld [vmem:[%s10073_s24] sm:$0xff]  ;;  %v689_v42 = vld [vmem:[%s10073_s24 + $0x10] sm:$0xff] }
  0x88   : > { %8367 = vmatpush3.bf16.msra.mxu0 %v9532_v2  ;;  %v897_v19 = vmin.f32 %v881_v11, 4.0  ;;  %v900_v27 = vmin.f32 %v884_v17, 4.0  ;;  %v902_v29 = vmin.f32 %v886_v20, 4.0  ;;  %v885_v30 = vmax.f32 %v869_v21, 0.0  ;;  %v690_v43 = vld [vmem:[%s10073_s24 + $0x18] sm:$0xff]  ;;  %v872_v48 = vld [vmem:[%s10057_s20 + $0x48] sm:$0xff] }
  0x89   : > { %8368 = vmatprep.subr.bf16.mxu0 %v9533_v3  ;;  %v9101_v23 = vround.rtne.f32 %v896_v13  ;;  %v9103_v24 = vround.rtne.f32 %v898_v14  ;;  %v9100_v25 = vround.rtne.f32 %v895_v15  ;;  %v899_v31 = vmin.f32 %v883_v22, 4.0  ;;  %v874_v49 = vld [vmem:[%s10057_s20 + $0x58] sm:$0xff]  ;;  %v871_v58 = vld [vmem:[%s10057_s20 + $0x40] sm:$0xff]  ;;  %v873_v63 = vld [vmem:[%s10057_s20 + $0x50] sm:$0xff]  ;;  %s12547_s22 = sld [smem:[#allocation13_spill]]  ;;  %s12551_s25 = sld [smem:[#allocation71_spill]] }
  0x8a   : > { %v9102_v28 = vround.rtne.f32 %v897_v19  ;;  %v9105_v37 = vround.rtne.f32 %v900_v27  ;;  %v9107_v39 = vround.rtne.f32 %v902_v29  ;;  %v901_v40 = vmin.f32 %v885_v30, 4.0  ;;  %v876_v9 = vld [vmem:[%s10057_s20 + $0x68] sm:$0xff]  ;;  %v878_v14 = vld [vmem:[%s10057_s20 + $0x78] sm:$0xff]  ;;  %v875_v15 = vld [vmem:[%s10057_s20 + $0x60] sm:$0xff] }
  0x8b   : > { %v928_v34 = vmul.f32 0.25, %v9101_v23  ;;  %v930_v35 = vmul.f32 0.25, %v9103_v24  ;;  %v927_v36 = vmul.f32 0.25, %v9100_v25  ;;  %v9104_v41 = vround.rtne.f32 %v899_v31  ;;  %v877_v24 = vld [vmem:[%s10057_s20 + $0x70] sm:$0xff]  ;;  %v691_v25 = vld [vmem:[%s10073_s24 + $0x20] sm:$0xff]  ;;  %s12549_s20 = sld [smem:[#allocation70_spill]] }
  0x8c   : > { %8369 = vmatpush3.bf16.msra.mxu0 %v9533_v3  ;;  %v929_v38 = vmul.f32 0.25, %v9102_v28  ;;  %v932_v45 = vmul.f32 0.25, %v9105_v37  ;;  %v719_v46 = vmax.f32 %v687_v32, 0.0  ;;  %v720_v47 = vmax.f32 %v688_v33, 0.0  ;;  %v10099_v30 = vld [vmem:[%s12279_s8 + $0x4] ss:$8 sps:$4 sm:$0xff]  }
  0x8d   : > { %v944_v44 = vpack.c.bf16 %v930_v35, %v928_v34  ;;  %8370 = vmatprep.subr.bf16.mxu0 %v9534_v26  ;;  %v934_v51 = vmul.f32 0.25, %v9107_v39  ;;  %v9106_v52 = vround.rtne.f32 %v901_v40  ;;  %v931_v53 = vmul.f32 0.25, %v9104_v41  ;;  %v692_v35 = vld [vmem:[%s10073_s24 + $0x28] sm:$0xff]  ;;  %v694_v37 = vld [vmem:[%s10073_s24 + $0x38] sm:$0xff] }
  0x8e   : > { %v943_v50 = vpack.c.bf16 %v929_v38, %v927_v36  ;;  %v751_v54 = vmin.f32 %v719_v46, 4.0  ;;  %v752_v55 = vmin.f32 %v720_v47, 4.0  ;;  %v721_v56 = vmax.f32 %v689_v42, 0.0  ;;  %v693_v36 = vld [vmem:[%s10073_s24 + $0x30] sm:$0xff]  ;;  %v10111_v42 = vld [vmem:[%s12279_s8] ss:$8 sps:$4 sm:$0xff]  }
  0x8f   : > { %1455 = vmatprep.subr.bf16.mxu1 %v944_v44  ;;  %v722_v57 = vmax.f32 %v690_v43, 0.0  ;;  %v946_v59 = vpack.c.bf16 %v934_v51, %v932_v45  ;;  %v933_v60 = vmul.f32 0.25, %v9106_v52  ;;  %v888_v61 = vmax.f32 %v872_v48, 0.0  ;;  %v10117_v43 = vld [vmem:[%s12279_s8 + $0x14] ss:$8 sps:$4 sm:$0xff]   ;;  %v695_v48 = vld [vmem:[%s10073_s24 + $0x40] sm:$0xff] }
  0x90   : > { %1456 = vmatpush1.bf16.msra.mxu1 %v943_v50  ;;  %8371 = vmatpush3.bf16.msra.mxu0 %v9534_v26  ;;  %v890_v62 = vmax.f32 %v874_v49, 0.0  ;;  %v9068_v1 = vround.rtne.f32 %v751_v54  ;;  %v9069_v2 = vround.rtne.f32 %v752_v55  ;;  %v753_v3 = vmin.f32 %v721_v56, 4.0  ;;  %s673_s27 = sand.u32 1, %s12547_s22  }
  0x91   : > { %v754_v4 = vmin.f32 %v722_v57, 4.0  ;;  %1457 = vmatprep.subr.bf16.mxu1 %v946_v59  ;;  %v945_v5 = vpack.c.bf16 %v933_v60, %v931_v53  ;;  %v904_v6 = vmin.f32 %v888_v61, 4.0  ;;  %v887_v8 = vmax.f32 %v871_v58, 0.0  ;;  %1776 = vmatprep.subr.bf16.mxu0 %v10099_v30  ;;  %v696_v57 = vld [vmem:[%s10073_s24 + $0x48] sm:$0xff]  ;;  %s7609_s4 = sshll.u32 %s673_s27, 8  ;;  %s12230_s2 = scalar_lea.sflag [#allocation4], %s673_s27 }
  0x92   : > { %v906_v7 = vmin.f32 %v890_v62, 4.0  ;;  %v815_v10 = vmul.f32 0.25, %v9068_v1  ;;  %v816_v11 = vmul.f32 0.25, %v9069_v2  ;;  %v9070_v12 = vround.rtne.f32 %v753_v3  ;;  %v10128_v62 = vld [vmem:[%s12279_s8 + $0x10] ss:$8 sps:$4 sm:$0xff]   ;;  %s12062_s21 = scalar_lea.vmem [#allocation8], %s7609_s4 }
  0x93   : > { %v9071_v13 = vround.rtne.f32 %v754_v4  ;;  %v9109_v16 = vround.rtne.f32 %v904_v6  ;;  %v889_v18 = vmax.f32 %v873_v63, 0.0  ;;  %v903_v19 = vmin.f32 %v887_v8, 4.0  ;;  %v10133_v63 = vld [vmem:[%s12279_s8 + $0x24] ss:$8 sps:$4 sm:$0xff]   ;;  %s7494_s18 = sshll.u32 %s12062_s21, 4  ;;  %s12221_s18 = int_to_ptr.vmem [resolvable:$true] %s7494_s18 }
  0x94   : > { %1458 = vmatpush1.bf16.msra.mxu1 %v945_v5  ;;  %v9111_v17 = vround.rtne.f32 %v906_v7  ;;  %v10092_v20 = vpack.c.bf16 %v816_v11, %v815_v10  ;;  %v817_v21 = vmul.f32 0.25, %v9070_v12  ;;  %v892_v23 = vmax.f32 %v876_v9, 0.0  ;;  %v697_v9 = vld [vmem:[%s10073_s24 + $0x50] sm:$0xff]  ;;  %v698_v10 = vld [vmem:[%s10073_s24 + $0x58] sm:$0xff]  ;;  %s9711_s4 = scalar_lea.vmem %s12221_s18, 4096 }
  0x95   : > { %v818_v22 = vmul.f32 0.25, %v9071_v13  ;;  %v936_v26 = vmul.f32 0.25, %v9109_v16  ;;  %v905_v28 = vmin.f32 %v889_v18, 4.0  ;;  %v9108_v29 = vround.rtne.f32 %v903_v19  ;;  %v699_v16 = vld [vmem:[%s10073_s24 + $0x60] sm:$0xff]  ;;  %p9712_p12 = scmp.ne.s32.totalorder %s12221_s18, %s9711_s4 }
  0x96   : > { %v938_v27 = vmul.f32 0.25, %v9111_v17  ;;  %8372 = vmatprep.mubr.msk.bf16.mxu0 %vm983_vm0, %v10092_v20  ;;  %v894_v32 = vmax.f32 %v878_v14, 0.0  ;;  %v908_v33 = vmin.f32 %v892_v23, 4.0  ;;  %v891_v34 = vmax.f32 %v875_v15, 0.0  ;;  %v9535_v14 = vld [vmem:[%s12276_s5] sm:$0xff]   ;;  %v701_v23 = vld [vmem:[%s10073_s24 + $0x70] sm:$0xff] }
  0x97   : > { %v10103_v31 = vpack.c.bf16 %v818_v22, %v817_v21  ;;  %v9110_v39 = vround.rtne.f32 %v905_v28  ;;  %v935_v40 = vmul.f32 0.25, %v9108_v29  ;;  %v893_v41 = vmax.f32 %v877_v24, 0.0  ;;  %v700_v22 = vld [vmem:[%s10073_s24 + $0x68] sm:$0xff]  ;;  %v10153_v29 = vld [vmem:[%s12279_s8 + $0x34] ss:$8 sps:$4 sm:$0xff]  }
  0x98   : > { %v948_v38 = vpack.c.bf16 %v938_v27, %v936_v26  ;;  %v910_v44 = vmin.f32 %v894_v32, 4.0  ;;  %v9113_v45 = vround.rtne.f32 %v908_v33  ;;  %v907_v46 = vmin.f32 %v891_v34, 4.0  ;;  %v10148_v24 = vld [vmem:[%s12279_s8 + $0x20] ss:$8 sps:$4 sm:$0xff]  }
  0x99   : > { %8373 = vmatmul.mubr.msk.bf16.vlgmr.msra.gmra.mrb[0].mxu0 %vm983_vm0, %v10103_v31  ;;  %v723_v47 = vmax.f32 %v691_v25, 0.0  ;;  %v937_v49 = vmul.f32 0.25, %v9110_v39  ;;  %v909_v50 = vmin.f32 %v893_v41, 4.0  ;;  %v724_v51 = vmax.f32 %v692_v35, 0.0 }
  0x9a   : > { %1459 = vmatprep.subr.bf16.mxu1 %v948_v38  ;;  %v725_v52 = vmax.f32 %v693_v36, 0.0  ;;  %1777 = vmatpush1.bf16.msra.mxu0 %v10111_v42  ;;  %v9115_v53 = vround.rtne.f32 %v910_v44  ;;  %v940_v54 = vmul.f32 0.25, %v9113_v45  ;;  %v9112_v55 = vround.rtne.f32 %v907_v46  ;;  %v702_v36 = vld [vmem:[%s10073_s24 + $0x78] sm:$0xff]  ;;  %v704_v44 = vld [vmem:[%s10073_s24 + $0x88] sm:$0xff] }
  0x9b   : > { %v755_v56 = vmin.f32 %v723_v47, 4.0  ;;  %1778 = vmatprep.subr.bf16.mxu0 %v10117_v43  ;;  %v947_v58 = vpack.c.bf16 %v937_v49, %v935_v40  ;;  %v9114_v59 = vround.rtne.f32 %v909_v50  ;;  %v756_v60 = vmin.f32 %v724_v51, 4.0  ;;  %v10165_v45 = vld [vmem:[%s12279_s8 + $0x30] ss:$8 sps:$4 sm:$0xff]  }
  0x9c   : > { %v726_v61 = vmax.f32 %v694_v37, 0.0  ;;  %v942_v1 = vmul.f32 0.25, %v9115_v53  ;;  %v939_v2 = vmul.f32 0.25, %v9112_v55  ;;  %v757_v4 = vmin.f32 %v725_v52, 4.0  ;;  %v703_v37 = vld [vmem:[%s10073_s24 + $0x80] sm:$0xff]  ;;  %v1531_v46 = vld [vmem:[%s12277_s6 + $0x18] sm:$0xff] }
  0x9d   : > { %v9072_v3 = vround.rtne.f32 %v755_v56  ;;  %1460 = vmatpush1.bf16.msra.mxu1 %v947_v58  ;;  %v941_v5 = vmul.f32 0.25, %v9114_v59  ;;  %v9073_v6 = vround.rtne.f32 %v756_v60  ;;  %v727_v8 = vmax.f32 %v695_v48, 0.0  ;;  %v1530_v47 = vld [vmem:[%s12277_s6 + $0x10] sm:$0xff]  ;;  %1553 = vperm.xlu1 %9530, %v1531_v46  }
  0x9e   : > { %v758_v7 = vmin.f32 %v726_v61, 4.0  ;;  %1779 = vmatpush1.bf16.msra.mxu0 %v10128_v62  ;;  %v950_v11 = vpack.c.bf16 %v942_v1, %v940_v54  ;;  %v9074_v13 = vround.rtne.f32 %v757_v4  ;;  %v728_v15 = vmax.f32 %v696_v57, 0.0  ;;  %v705_v52 = vld [vmem:[%s10073_s24 + $0x90] sm:$0xff]  ;;  %v706_v57 = vld [vmem:[%s10073_s24 + $0x98] sm:$0xff]  ;;  %1548 = vperm.xlu0 %9529, %v1530_v47   ;;  %v707_v1 = vld [vmem:[%s10073_s24 + $0xa0] sm:$0xff] }
  0x9f   : > { %v819_v12 = vmul.f32 0.25, %v9072_v3  ;;  %1780 = vmatprep.subr.bf16.mxu0 %v10133_v63  ;;  %v949_v17 = vpack.c.bf16 %v941_v5, %v939_v2  ;;  %v820_v18 = vmul.f32 0.25, %v9073_v6  ;;  %v759_v21 = vmin.f32 %v727_v8, 4.0  ;;  %v9536_v5 = vld [vmem:[%s12276_s5 + $0x8] sm:$0xff]   ;;  %v9537_v47 = vld [vmem:[%s12276_s5 + $0x10] sm:$0xff]  }
  0xa0   : > { %v9075_v19 = vround.rtne.f32 %v758_v7  ;;  %1461 = vmatprep.subr.bf16.mxu1 %v950_v11  ;;  %v821_v25 = vmul.f32 0.25, %v9074_v13  ;;  %v760_v26 = vmin.f32 %v728_v15, 4.0  ;;  %v729_v27 = vmax.f32 %v697_v9, 0.0  ;;  %v708_v7 = vld [vmem:[%s10073_s24 + $0xa8] sm:$0xff] }
  0xa1   : > { %v730_v28 = vmax.f32 %v698_v10, 0.0  ;;  %1462 = vmatpush1.bf16.msra.mxu1 %v949_v17  ;;  %v10155_v32 = vpack.c.bf16 %v820_v18, %v819_v12  ;;  %v9076_v34 = vround.rtne.f32 %v759_v21  ;;  %v731_v35 = vmax.f32 %v699_v16, 0.0  ;;  %v709_v12 = vld [vmem:[%s10073_s24 + $0xb0] sm:$0xff] }
  0xa2   : > { %v822_v33 = vmul.f32 0.25, %v9075_v19  ;;  %1781 = vmatpush1.bf16.msra.mxu0 %v10148_v24  ;;  %v9077_v38 = vround.rtne.f32 %v760_v26  ;;  %v761_v39 = vmin.f32 %v729_v27, 4.0  ;;  %v732_v41 = vmax.f32 %v700_v22, 0.0  ;;  %8836 = vmatprep.subr.bf16.mxu1 %v10099_v30  ;;  %v1594_v30 = vld [vmem:[%s12278_s7 + $0x10] sm:$0xff]  ;;  %v710_v19 = vld [vmem:[%s10073_s24 + $0xb8] sm:$0xff] }
  0xa3   : > { %v762_v40 = vmin.f32 %v730_v28, 4.0  ;;  %1782 = vmatprep.subr.bf16.mxu0 %v10153_v29  ;;  %8376 = vmatprep.mubr.msk.bf16.mxu0 %vm983_vm0, %v10155_v32  ;;  %v823_v49 = vmul.f32 0.25, %v9076_v34  ;;  %v763_v50 = vmin.f32 %v731_v35, 4.0  ;;  %v733_v51 = vmax.f32 %v701_v23, 0.0  ;;  %v711_v23 = vld [vmem:[%s10073_s24 + $0xc0] sm:$0xff] }
  0xa4   : > { %v10179_v48 = vpack.c.bf16 %v822_v33, %v821_v25  ;;  %7640 = vmatmul.mubr.msk.bf16.vlgmr.msra.gmra.mrb[0].mxu1 %vm983_vm0, %v9535_v14  ;;  %v824_v53 = vmul.f32 0.25, %v9077_v38  ;;  %v9078_v54 = vround.rtne.f32 %v761_v39  ;;  %v764_v56 = vmin.f32 %v732_v41, 4.0  ;;  %1612 = vperm.xlu1 %9530, %v1594_v30   ;;  %v712_v33 = vld [vmem:[%s10073_s24 + $0xc8] sm:$0xff] }
  0xa5   : > { %v9079_v55 = vround.rtne.f32 %v762_v40  ;;  %1497 = vmatprep.mubr.bf16.mxu1 %v12309_v0  ;;  %v9080_v58 = vround.rtne.f32 %v763_v50  ;;  %v734_v59 = vmax.f32 %v702_v36, 0.0  ;;  %v765_v60 = vmin.f32 %v733_v51, 4.0  ;;  %8840 = vmatpush1.bf16.msra.mxu1 %v10111_v42 }
  0xa6   : > { %8377 = vmatmul.mubr.msk.bf16.gmra.mrb[4].mxu0 %vm983_vm0, %v10179_v48  ;;  %v735_v61 = vmax.f32 %v703_v37, 0.0  ;;  %v10188_v2 = vpack.c.bf16 %v824_v53, %v823_v49  ;;  %v825_v3 = vmul.f32 0.25, %v9078_v54  ;;  %v9081_v6 = vround.rtne.f32 %v764_v56  ;;  %8837 = vmatprep.subr.bf16.mxu1 %v10117_v43  ;;  %v713_v37 = vld [vmem:[%s10073_s24 + $0xd0] sm:$0xff]  ;;  %v714_v53 = vld [vmem:[%s10073_s24 + $0xd8] sm:$0xff] }
  0xa7   : > { %v826_v4 = vmul.f32 0.25, %v9079_v55  ;;  %1783 = vmatpush1.bf16.msra.mxu0 %v10165_v45  ;;  %v827_v8 = vmul.f32 0.25, %v9080_v58  ;;  %v766_v9 = vmin.f32 %v734_v59, 4.0  ;;  %v9082_v10 = vround.rtne.f32 %v765_v60  ;;  %v715_v59 = vld [vmem:[%s10073_s24 + $0xe0] sm:$0xff] }
  0xa8   : > { %v736_v11 = vmax.f32 %v704_v44, 0.0  ;;  %8380 = vmatprep.mubr.msk.bf16.mxu0 %vm983_vm0, %v10188_v2  ;;  %v828_v13 = vmul.f32 0.25, %v9081_v6  ;;  %v767_v14 = vmin.f32 %v735_v61, 4.0  ;;  %v737_v15 = vmax.f32 %v705_v52, 0.0  ;;  %v717_v6 = vld [vmem:[%s10073_s24 + $0xf0] sm:$0xff] }
  0xa9   : > { %v10200_v42 = vpack.c.bf16 %v826_v4, %v825_v3  ;;  %v9083_v16 = vround.rtne.f32 %v766_v9  ;;  %v738_v18 = vmax.f32 %v706_v57, 0.0  ;;  %8841 = vmatpush1.bf16.msra.mxu1 %v10128_v62  ;;  %v739_v22 = vmax.f32 %v707_v1, 0.0  ;;  %v716_v1 = vld [vmem:[%s10073_s24 + $0xe8] sm:$0xff] }
  0xaa   : > { %v768_v17 = vmin.f32 %v736_v11, 4.0  ;;  %v10203_v21 = vpack.c.bf16 %v828_v13, %v827_v8  ;;  %v9084_v43 = vround.rtne.f32 %v767_v14  ;;  %v829_v25 = vmul.f32 0.25, %v9082_v10  ;;  %8838 = vmatprep.subr.bf16.mxu1 %v10133_v63  ;;  %v9544_v10 = vld [vmem:[%s12276_s5 + $0x18] sm:$0xff]  }
  0xab   : > { %v769_v27 = vmin.f32 %v737_v15, 4.0  ;;  %v740_v28 = vmax.f32 %v708_v7, 0.0  ;;  %v830_v34 = vmul.f32 0.25, %v9083_v16  ;;  %v770_v35 = vmin.f32 %v738_v18, 4.0  ;;  %v718_v16 = vld [vmem:[%s10073_s24 + $0xf8] sm:$0xff] }
  0xac   : > { %v9085_v26 = vround.rtne.f32 %v768_v17  ;;  %7641 = vmatmul.mubr.msk.bf16.gmra.mrb[4].mxu1 %vm983_vm0, %v9536_v5  ;;  %v741_v36 = vmax.f32 %v709_v12, 0.0  ;;  %v831_v62 = vmul.f32 0.25, %v9084_v43  ;;  %v771_v38 = vmin.f32 %v739_v22, 4.0 }
  0xad   : > { %1507 = vmatprep.mubr.bf16.mxu1 %v12309_v0  ;;  %8842 = vmatpush1.bf16.msra.mxu1 %v10148_v24  ;;  %v772_v39 = vmin.f32 %v740_v28, 4.0  ;;  %v742_v40 = vmax.f32 %v710_v19, 0.0  ;;  %v743_v44 = vmax.f32 %v711_v23, 0.0  ;;  %v10218_v46 = vpack.c.bf16 %v830_v34, %v829_v25 }
  0xae   : > { %8381 = vmatmul.mubr.msk.bf16.gmra.mrb[8].mxu0 %vm983_vm0, %v10200_v42  ;;  %v832_v63 = vmul.f32 0.25, %v9085_v26  ;;  %8839 = vmatprep.subr.bf16.mxu1 %v10153_v29  ;;  %v773_v41 = vmin.f32 %v741_v36, 4.0  ;;  %v9086_v30 = vround.rtne.f32 %v769_v27  ;;  %v744_v50 = vmax.f32 %v712_v33, 0.0 }
  0xaf   : > { %8384 = vmatprep.mubr.msk.bf16.mxu0 %vm983_vm0, %v10203_v21  ;;  %v774_v49 = vmin.f32 %v742_v40, 4.0  ;;  %v9087_v51 = vround.rtne.f32 %v770_v35  ;;  %v9088_v52 = vround.rtne.f32 %v771_v38  ;;  %v775_v24 = vmin.f32 %v743_v44, 4.0 }
  0xb0   : > { %v745_v54 = vmax.f32 %v713_v37, 0.0  ;;  %v10224_v55 = vpack.c.bf16 %v832_v63, %v831_v62  ;;  %v9089_v29 = vround.rtne.f32 %v772_v39  ;;  %v776_v56 = vmin.f32 %v744_v50, 4.0 }
  0xb1   : > { %8843 = vmatpush1.bf16.msra.mxu1 %v10165_v45  ;;  %v9090_v57 = vround.rtne.f32 %v773_v41  ;;  %v9091_v60 = vround.rtne.f32 %v774_v49  ;;  %v746_v61 = vmax.f32 %v714_v53, 0.0  ;;  %v833_v3 = vmul.f32 0.25, %v9086_v30 }
  0xb2   : > { %v777_v58 = vmin.f32 %v745_v54, 4.0  ;;  %v834_v4 = vmul.f32 0.25, %v9087_v51  ;;  %v835_v45 = vmul.f32 0.25, %v9088_v52  ;;  %v9092_v5 = vround.rtne.f32 %v775_v24 }
  0xb3   : > { %v836_v7 = vmul.f32 0.25, %v9089_v29  ;;  %v9093_v8 = vround.rtne.f32 %v776_v56  ;;  %v747_v9 = vmax.f32 %v715_v59, 0.0  ;;  %v837_v11 = vmul.f32 0.25, %v9090_v57 }
  0xb4   : > { %7642 = vmatmul.mubr.msk.bf16.gmra.mrb[8].mxu1 %vm983_vm0, %v9537_v47  ;;  %v9094_v12 = vround.rtne.f32 %v777_v58  ;;  %v748_v13 = vmax.f32 %v716_v1, 0.0  ;;  %v838_v14 = vmul.f32 0.25, %v9091_v60  ;;  %v778_v15 = vmin.f32 %v746_v61, 4.0 }
  0xb5   : > { %1517 = vmatprep.mubr.bf16.mxu1 %v12309_v0  ;;  %v856_v17 = vpack.c.bf16 %v834_v4, %v833_v3  ;;  %v839_v18 = vmul.f32 0.25, %v9092_v5  ;;  %v749_v19 = vmax.f32 %v717_v6, 0.0  ;;  %v857_v43 = vpack.c.bf16 %v836_v7, %v835_v45 }
  0xb6   : > { %8385 = vmatmul.mubr.msk.bf16.gmra.mrb[12].mxu0 %vm983_vm0, %v10218_v46  ;;  %v840_v22 = vmul.f32 0.25, %v9093_v8  ;;  %v779_v23 = vmin.f32 %v747_v9, 4.0  ;;  %v841_v25 = vmul.f32 0.25, %v9094_v12  ;;  %v780_v26 = vmin.f32 %v748_v13, 4.0 }
  0xb7   : > { %8388 = vmatprep.mubr.msk.bf16.mxu0 %vm983_vm0, %v10224_v55  ;;  %v750_v27 = vmax.f32 %v718_v16, 0.0  ;;  %v781_v28 = vmin.f32 %v749_v19, 4.0  ;;  %v858_v33 = vpack.c.bf16 %v838_v14, %v837_v11  ;;  %v9095_v34 = vround.rtne.f32 %v778_v15 }
  0xb8   : > { %v859_v35 = vpack.c.bf16 %v840_v22, %v839_v18  ;;  %v9096_v36 = vround.rtne.f32 %v779_v23  ;;  %v9097_v37 = vround.rtne.f32 %v780_v26 }
  0xb9   : > { %v842_v62 = vmul.f32 0.25, %v9095_v34  ;;  %v782_v38 = vmin.f32 %v750_v27, 4.0  ;;  %v9098_v41 = vround.rtne.f32 %v781_v28 }
  0xba   : > { %v843_v63 = vmul.f32 0.25, %v9096_v36  ;;  %v844_v39 = vmul.f32 0.25, %v9097_v37 }
  0xbb   : > { %v860_v40 = vpack.c.bf16 %v842_v62, %v841_v25  ;;  %v9099_v44 = vround.rtne.f32 %v782_v38 }
  0xbc   : > { %7643 = vmatmul.mubr.msk.bf16.gmra.mrb[12].mxu1 %vm983_vm0, %v9544_v10  ;;  %v861_v47 = vpack.c.bf16 %v844_v39, %v843_v63 }
  0xbd   : > { %1868 = vmatprep.mubr.bf16.mxu1 %v12309_v0  ;;  %v846_v30 = vmul.f32 0.25, %v9099_v44 }
  0xbe   : > { %8389 = vmatmul.mubr.msk.bf16.gmra.mrb[16].mxu0 %vm983_vm0, %v856_v17 }
  0xbf   : > { %8392 = vmatprep.mubr.msk.bf16.mxu0 %vm983_vm0, %v857_v43 }
  0xc4   : > { %7658 = vmatmul.mubr.msk.bf16.vlgmr.msra.gmra.mrb[16].mxu1 %vm983_vm0, %v10203_v21  ;;  %v845_v21 = vmul.f32 0.25, %v9098_v41 }
  0xc5   : > { %1878 = vmatprep.mubr.bf16.mxu1 %v12309_v0 }
  0xc6   : > { %8393 = vmatmul.mubr.msk.bf16.gmra.mrb[20].mxu0 %vm983_vm0, %v858_v33  ;;  %v862_v49 = vpack.c.bf16 %v846_v30, %v845_v21 }
  0xc7   : > { %8396 = vmatprep.mubr.msk.bf16.mxu0 %vm983_vm0, %v859_v35 }
  0xcc   : > { %7659 = vmatmul.mubr.msk.bf16.gmra.mrb[20].mxu1 %vm983_vm0, %v10218_v46 }
  0xcd   : > { %1888 = vmatprep.mubr.bf16.mxu1 %v12309_v0 }
  0xce   : > { %8397 = vmatmul.mubr.msk.bf16.gmra.mrb[24].mxu0 %vm983_vm0, %v860_v40 }
  0xcf   : > { %8400 = vmatprep.mubr.msk.bf16.mxu0 %vm983_vm0, %v861_v47 }
  0xd4   : > { %7660 = vmatmul.mubr.msk.bf16.gmra.mrb[24].mxu1 %vm983_vm0, %v10224_v55 }
  0xd5   : > { %1898 = vmatprep.mubr.bf16.mxu1 %v12309_v0 }
  0xd6   : > { %8401 = vmatmul.mubr.msk.bf16.gmra.mrb[28].mxu0 %vm983_vm0, %v862_v49 }
  0xd7   : > { %1808 = vmatprep.mubr.bf16.mxu0 %v12309_v0 }
  0xdc   : > { %7661 = vmatmul.mubr.msk.bf16.gmra.mrb[28].mxu1 %vm983_vm0, %v856_v17 }
  0xdd   : > { %1908 = vmatprep.mubr.bf16.mxu1 %v12309_v0 }
  0xde   : > { %7652 = vmatmul.mubr.msk.bf16.vlgmr.msra.gmra.mrb[32].mxu0 %vm983_vm0, %v10092_v20  ;;  %v10289_v20 = vld [vmem:[#allocation2] ss:$0 sm:$0xff] }
  0xdf   : > { %1818 = vmatprep.mubr.bf16.mxu0 %v12309_v0 }
  0xe4   : > { %7662 = vmatmul.mubr.msk.bf16.gmra.mrb[32].mxu1 %vm983_vm0, %v857_v43 }
  0xe5   : > { %1918 = vmatprep.mubr.bf16.mxu1 %v12309_v0 }
  0xe6   : > { %7653 = vmatmul.mubr.msk.bf16.gmra.mrb[36].mxu0 %vm983_vm0, %v10103_v31 }
  0xe7   : > { %1828 = vmatprep.mubr.bf16.mxu0 %v12309_v0 }
  0xec   : > { %7663 = vmatmul.mubr.msk.bf16.gmra.mrb[36].mxu1 %vm983_vm0, %v858_v33 }
  0xed   : > { %1928 = vmatprep.mubr.bf16.mxu1 %v12309_v0 }
  0xee   : > { %7654 = vmatmul.mubr.msk.bf16.gmra.mrb[40].mxu0 %vm983_vm0, %v10155_v32  ;;  %v10291_v32 = vld [vmem:[#allocation5] ss:$0 sm:$0xff] }
  0xef   : > { %1838 = vmatprep.mubr.bf16.mxu0 %v12309_v0 }
  0xf4   : > { %7664 = vmatmul.mubr.msk.bf16.gmra.mrb[40].mxu1 %vm983_vm0, %v859_v35 }
  0xf5   : > { %1938 = vmatprep.mubr.bf16.mxu1 %v12309_v0 }
  0xf6   : > { %7655 = vmatmul.mubr.msk.bf16.gmra.mrb[44].mxu0 %vm983_vm0, %v10179_v48 }
  0xf7   : > { %1848 = vmatprep.mubr.bf16.mxu0 %v12309_v0 }
  0xfc   : > { %7665 = vmatmul.mubr.msk.bf16.gmra.mrb[44].mxu1 %vm983_vm0, %v860_v40 }
  0xfd   : > { %1948 = vmatprep.mubr.bf16.mxu1 %v12309_v0 }
  0xfe   : > { %7656 = vmatmul.mubr.msk.bf16.gmra.mrb[48].mxu0 %vm983_vm0, %v10188_v2 }
  0xff   : > { %1858 = vmatprep.mubr.bf16.mxu0 %v12309_v0 }
 0x104   : > { %7666 = vmatmul.mubr.msk.bf16.gmra.mrb[48].mxu1 %vm983_vm0, %v861_v47 }
 0x105   : > { %1958 = vmatprep.mubr.bf16.mxu1 %v12309_v0 }
 0x106   : > { %7657 = vmatmul.mubr.msk.bf16.gmra.mrb[52].mxu0 %vm983_vm0, %v10200_v42 }
 0x10c   : > { %7667 = vmatmul.mubr.msk.bf16.gmra.mrb[52].mxu1 %vm983_vm0, %v862_v49 }
 0x16c   : > { %v8374_v31 = vpop.f32.mrb[0].mxu0 }
 0x16d   : > { %v1202_v48 = vmul.f32 %v8374_v31, %v10289_v20  ;;  %v1066_v2 = vpop.f32.mrb[1].mxu0 }
 0x16e   : > { %v1200_v46 = vmul.f32 %v10289_v20, %v1066_v2  ;;  %v8375_v50 = vpop.f32.mrb[2].mxu0 }
 0x16f   : > { %v1241_v51 = vadd.f32 %v10291_v32, %v1202_v48  ;;  %v1203_v52 = vmul.f32 %v8375_v50, %v10289_v20  ;;  %v1069_v42 = vpop.f32.mrb[3].mxu0 }
 0x170   : > { %v1239_v24 = vadd.f32 %v10291_v32, %v1200_v46  ;;  %v1201_v53 = vmul.f32 %v10289_v20, %v1069_v42 }
 0x171   : > { %v1273_v54 = vmax.f32 %v1241_v51, 0.0  ;;  %v1242_v55 = vadd.f32 %v10291_v32, %v1203_v52 }
 0x172   : > { %v1271_v29 = vmax.f32 %v1239_v24, 0.0  ;;  %v1240_v56 = vadd.f32 %v10291_v32, %v1201_v53 }
 0x173   : > { %v1305_v57 = vmin.f32 %v1273_v54, 4.0  ;;  %v1274_v58 = vmax.f32 %v1242_v55, 0.0 }
 0x174   : > { %v1303_v59 = vmin.f32 %v1271_v29, 4.0  ;;  %v1272_v60 = vmax.f32 %v1240_v56, 0.0  ;;  %v1971_v29 = vlaneseq }
 0x175   : > { %v9118_v61 = vround.rtne.f32 %v1305_v57  ;;  %v1306_v1 = vmin.f32 %v1274_v58, 4.0 }
 0x176   : > { %v9116_v3 = vround.rtne.f32 %v1303_v59  ;;  %v1304_v4 = vmin.f32 %v1272_v60, 4.0 }
 0x177   : > { %v1369_v45 = vmul.f32 0.25, %v9118_v61  ;;  %v9119_v5 = vround.rtne.f32 %v1306_v1  ;;  %v10301_v8 = vpop.f32.mrb[0].mxu1 }
 0x178   : > { %v1367_v6 = vmul.f32 0.25, %v9116_v3  ;;  %v9117_v7 = vround.rtne.f32 %v1304_v4  ;;  %12392 = vst [vmem:[#allocation20_spill] sm:$0xff] %v10301_v8  ;;  %v10303_v11 = vpop.f32.mrb[1].mxu1 }
 0x179   : > { %v1370_v9 = vmul.f32 0.25, %v9119_v5  ;;  %v8378_v10 = vpop.f32.mrb[4].mxu0  ;;  %12393 = vst [vmem:[#allocation21_spill] sm:$0xff] %v10303_v11  ;;  %v10306_v15 = vpop.f32.mrb[2].mxu1 }
 0x17a   : > { %v1368_v12 = vmul.f32 0.25, %v9117_v7  ;;  %v1206_v13 = vmul.f32 %v8378_v10, %v10289_v20  ;;  %v1082_v14 = vpop.f32.mrb[5].mxu0  ;;  %12394 = vst [vmem:[#allocation22_spill] sm:$0xff] %v10306_v15  ;;  %v10311_v19 = vpop.f32.mrb[3].mxu1 }
 0x17b   : > { %v10308_v16 = vpack.c.bf16 %v1370_v9, %v1369_v45  ;;  %v1204_v17 = vmul.f32 %v10289_v20, %v1082_v14  ;;  %v8379_v18 = vpop.f32.mrb[6].mxu0  ;;  %12396 = vst [vmem:[#allocation24_spill] sm:$0xff] %v10311_v19 }
 0x17c   : > { %v10313_v43 = vpack.c.bf16 %v1368_v12, %v1367_v6  ;;  %v1245_v22 = vadd.f32 %v10291_v32, %v1206_v13  ;;  %v1207_v23 = vmul.f32 %v8379_v18, %v10289_v20  ;;  %v1085_v25 = vpop.f32.mrb[7].mxu0  ;;  %v1972_v12 = vshrl.u32 %v1971_v29, 7 }
 0x17d   : > { %12395 = vst [vmem:[#allocation23_spill] sm:$0xff] %v10308_v16  ;;  %v1243_v26 = vadd.f32 %v10291_v32, %v1204_v17  ;;  %v1205_v27 = vmul.f32 %v10289_v20, %v1085_v25 }
 0x17e   : > { %12397 = vst [vmem:[#allocation25_spill] sm:$0xff] %v10313_v43  ;;  %v1277_v28 = vmax.f32 %v1245_v22, 0.0  ;;  %v1246_v33 = vadd.f32 %v10291_v32, %v1207_v23 }
 0x17f   : > { %v1275_v34 = vmax.f32 %v1243_v26, 0.0  ;;  %v1244_v35 = vadd.f32 %v10291_v32, %v1205_v27  ;;  %v10321_v62 = vpop.f32.mrb[4].mxu1 }
 0x180   : > { %v1309_v36 = vmin.f32 %v1277_v28, 4.0  ;;  %v1278_v37 = vmax.f32 %v1246_v33, 0.0  ;;  %12398 = vst [vmem:[#allocation26_spill] sm:$0xff] %v10321_v62  ;;  %v10323_v40 = vpop.f32.mrb[5].mxu1 }
 0x181   : > { %v1307_v38 = vmin.f32 %v1275_v34, 4.0  ;;  %v1276_v63 = vmax.f32 %v1244_v35, 0.0  ;;  %v8382_v39 = vpop.f32.mrb[8].mxu0  ;;  %12399 = vst [vmem:[#allocation27_spill] sm:$0xff] %v10323_v40  ;;  %v10326_v30 = vpop.f32.mrb[6].mxu1 }
 0x182   : > { %v9122_v41 = vround.rtne.f32 %v1309_v36  ;;  %v1310_v44 = vmin.f32 %v1278_v37, 4.0  ;;  %v1210_v47 = vmul.f32 %v8382_v39, %v10289_v20  ;;  %v1098_v21 = vpop.f32.mrb[9].mxu0  ;;  %12400 = vst [vmem:[#allocation28_spill] sm:$0xff] %v10326_v30  ;;  %v10329_v46 = vpop.f32.mrb[7].mxu1 }
 0x183   : > { %v9120_v49 = vround.rtne.f32 %v1307_v38  ;;  %v1308_v31 = vmin.f32 %v1276_v63, 4.0  ;;  %v1208_v48 = vmul.f32 %v10289_v20, %v1098_v21  ;;  %v8383_v2 = vpop.f32.mrb[10].mxu0  ;;  %12401 = vst [vmem:[#allocation29_spill] sm:$0xff] %v10329_v46  ;;  %v10352_v38 = vsub.s32 0, %v1972_v12 }
 0x184   : > { %v1373_v50 = vmul.f32 0.25, %v9122_v41  ;;  %v9123_v51 = vround.rtne.f32 %v1310_v44  ;;  %v1249_v52 = vadd.f32 %v10291_v32, %v1210_v47  ;;  %v1211_v42 = vmul.f32 %v8383_v2, %v10289_v20  ;;  %v1101_v24 = vpop.f32.mrb[11].mxu0  ;;  %v1969_v44 = vld [vmem:[%s12280_s9] sm:$0x3] }
 0x185   : > { %v1371_v53 = vmul.f32 0.25, %v9120_v49  ;;  %v9121_v54 = vround.rtne.f32 %v1308_v31  ;;  %v1247_v55 = vadd.f32 %v10291_v32, %v1208_v48  ;;  %v1209_v61 = vmul.f32 %v10289_v20, %v1101_v24  ;;  %12408 = vst [vmem:[#allocation36_spill] sm:$0xff] %v10352_v38 }
 0x186   : > { %v1374_v56 = vmul.f32 0.25, %v9123_v51  ;;  %v1281_v57 = vmax.f32 %v1249_v52, 0.0  ;;  %v1250_v58 = vadd.f32 %v10291_v32, %v1211_v42  ;;  %v10359_v47 = vsub.s32 1, %v1972_v12 }
 0x187   : > { %v1372_v59 = vmul.f32 0.25, %v9121_v54  ;;  %v1279_v60 = vmax.f32 %v1247_v55, 0.0  ;;  %v10338_v45 = vpop.f32.mrb[8].mxu1  ;;  %v1248_v7 = vadd.f32 %v10291_v32, %v1209_v61  ;;  %v10371_v29 = vrot.slane %v1969_v44, %v10352_v38  ;;  %v2045_v61 = vld [vmem:[%s12281_s10] sm:$0x3] }
 0x188   : > { %v10336_v1 = vpack.c.bf16 %v1374_v56, %v1373_v50  ;;  %v1313_v3 = vmin.f32 %v1281_v57, 4.0  ;;  %v1282_v4 = vmax.f32 %v1250_v58, 0.0  ;;  %12403 = vst [vmem:[#allocation31_spill] sm:$0xff] %v10338_v45  ;;  %v10343_v10 = vpop.f32.mrb[9].mxu1  ;;  %12409 = vst [vmem:[#allocation37_spill] sm:$0xff] %v10359_v47 }
 0x189   : > { %v10340_v5 = vpack.c.bf16 %v1372_v59, %v1371_v53  ;;  %v1311_v6 = vmin.f32 %v1279_v60, 4.0  ;;  %v8386_v9 = vpop.f32.mrb[12].mxu0  ;;  %12405 = vst [vmem:[#allocation33_spill] sm:$0xff] %v10343_v10  ;;  %v10345_v18 = vpop.f32.mrb[10].mxu1  ;;  %v1280_v23 = vmax.f32 %v1248_v7, 0.0 }
 0x18a   : > { %12402 = vst [vmem:[#allocation30_spill] sm:$0xff] %v10336_v1  ;;  %v9126_v13 = vround.rtne.f32 %v1313_v3  ;;  %v1314_v14 = vmin.f32 %v1282_v4, 4.0  ;;  %v1114_v17 = vpop.f32.mrb[13].mxu0  ;;  %12406 = vst [vmem:[#allocation34_spill] sm:$0xff] %v10345_v18  ;;  %v1214_v25 = vmul.f32 %v8386_v9, %v10289_v20  ;;  %v10348_v27 = vpop.f32.mrb[11].mxu1  ;;  %v10380_v3 = vrot.slane %v1969_v44, %v10359_v47 }
 0x18b   : > { %12404 = vst [vmem:[#allocation32_spill] sm:$0xff] %v10340_v5  ;;  %v9124_v22 = vround.rtne.f32 %v1311_v6  ;;  %v8387_v26 = vpop.f32.mrb[14].mxu0  ;;  %12407 = vst [vmem:[#allocation35_spill] sm:$0xff] %v10348_v27  ;;  %v1212_v34 = vmul.f32 %v10289_v20, %v1114_v17  ;;  %v1312_v36 = vmin.f32 %v1280_v23, 4.0 }
 0x18c   : > { %v1377_v28 = vmul.f32 0.25, %v9126_v13  ;;  %v9127_v33 = vround.rtne.f32 %v1314_v14  ;;  %v1117_v35 = vpop.f32.mrb[15].mxu0  ;;  %v1253_v37 = vadd.f32 %v10291_v32, %v1214_v25  ;;  %v1215_v41 = vmul.f32 %v8387_v26, %v10289_v20 }
 0x18d   : > { %v1251_v39 = vadd.f32 %v10291_v32, %v1212_v34  ;;  %v1375_v21 = vmul.f32 0.25, %v9124_v22  ;;  %v9125_v49 = vround.rtne.f32 %v1312_v36  ;;  %v1213_v48 = vmul.f32 %v10289_v20, %v1117_v35 }
 0x18e   : > { %v1378_v63 = vmul.f32 0.25, %v9127_v33  ;;  %v1285_v31 = vmax.f32 %v1253_v37, 0.0  ;;  %v1254_v51 = vadd.f32 %v10291_v32, %v1215_v41  ;;  %v10392_v34 = vrot.slane %v2045_v61, %v10352_v38 }
 0x18f   : > { %v1283_v50 = vmax.f32 %v1251_v39, 0.0  ;;  %v10365_v52 = vpop.f32.mrb[12].mxu1  ;;  %v1376_v42 = vmul.f32 0.25, %v9125_v49  ;;  %v1252_v53 = vadd.f32 %v10291_v32, %v1213_v48 }
 0x190   : > { %v10362_v2 = vpack.c.bf16 %v1378_v63, %v1377_v28  ;;  %12411 = vst [vmem:[#allocation39_spill] sm:$0xff] %v10365_v52  ;;  %v1317_v24 = vmin.f32 %v1285_v31, 4.0  ;;  %v10368_v55 = vpop.f32.mrb[13].mxu1  ;;  %v1286_v57 = vmax.f32 %v1254_v51, 0.0  ;;  %v10397_v51 = vrot.slane %v2045_v61, %v10359_v47 }
 0x191   : > { %v8390_v54 = vpop.f32.mrb[16].mxu0  ;;  %12412 = vst [vmem:[#allocation40_spill] sm:$0xff] %v10368_v55  ;;  %v1315_v56 = vmin.f32 %v1283_v50, 4.0  ;;  %v10374_v60 = vpop.f32.mrb[14].mxu1  ;;  %v10382_v4 = vpack.c.bf16 %v1376_v42, %v1375_v21  ;;  %v1284_v7 = vmax.f32 %v1252_v53, 0.0 }
 0x192   : > { %12410 = vst [vmem:[#allocation38_spill] sm:$0xff] %v10362_v2  ;;  %v1218_v58 = vmul.f32 %v8390_v54, %v10289_v20  ;;  %v1130_v59 = vpop.f32.mrb[17].mxu0  ;;  %12413 = vst [vmem:[#allocation41_spill] sm:$0xff] %v10374_v60  ;;  %v9130_v6 = vround.rtne.f32 %v1317_v24  ;;  %v10385_v13 = vpop.f32.mrb[15].mxu1  ;;  %v1318_v17 = vmin.f32 %v1286_v57, 4.0 }
 0x193   : > { %12414 = vst [vmem:[#allocation42_spill] sm:$0xff] %v10382_v4  ;;  %v1216_v9 = vmul.f32 %v10289_v20, %v1130_v59  ;;  %v8391_v12 = vpop.f32.mrb[18].mxu0  ;;  %12415 = vst [vmem:[#allocation43_spill] sm:$0xff] %v10385_v13  ;;  %v9128_v14 = vround.rtne.f32 %v1315_v56  ;;  %v1316_v26 = vmin.f32 %v1284_v7, 4.0 }
 0x194   : > { %v1257_v22 = vadd.f32 %v10291_v32, %v1218_v58  ;;  %v1219_v23 = vmul.f32 %v8391_v12, %v10289_v20  ;;  %v1133_v25 = vpop.f32.mrb[19].mxu0  ;;  %v1381_v35 = vmul.f32 0.25, %v9130_v6  ;;  %v9131_v36 = vround.rtne.f32 %v1318_v17 }
 0x195   : > { %v1255_v28 = vadd.f32 %v10291_v32, %v1216_v9  ;;  %v1217_v33 = vmul.f32 %v10289_v20, %v1133_v25  ;;  %v1379_v39 = vmul.f32 0.25, %v9128_v14  ;;  %v9129_v41 = vround.rtne.f32 %v1316_v26 }
 0x196   : > { %v1289_v37 = vmax.f32 %v1257_v22, 0.0  ;;  %v1258_v63 = vadd.f32 %v10291_v32, %v1219_v23  ;;  %v1382_v49 = vmul.f32 0.25, %v9131_v36 }
 0x197   : > { %v1287_v44 = vmax.f32 %v1255_v28, 0.0  ;;  %v1256_v21 = vadd.f32 %v10291_v32, %v1217_v33  ;;  %v1870_v50 = vpop.f32.mrb[16].mxu1  ;;  %v1380_v42 = vmul.f32 0.25, %v9129_v41 }
 0x198   : > { %v1321_v31 = vmin.f32 %v1289_v37, 4.0  ;;  %v1290_v48 = vmax.f32 %v1258_v63, 0.0  ;;  %v2005_v56 = vmul.f32 %v10371_v29, %v1870_v50  ;;  %v1872_v57 = vpop.f32.mrb[17].mxu1  ;;  %v10400_v58 = vpack.c.bf16 %v1382_v49, %v1381_v35 }
 0x199   : > { %v1319_v24 = vmin.f32 %v1287_v44, 4.0  ;;  %v1288_v53 = vmax.f32 %v1256_v21, 0.0  ;;  %v8394_v54 = vpop.f32.mrb[20].mxu0  ;;  %v1874_v12 = vpop.f32.mrb[18].mxu1  ;;  %v10403_v14 = vpack.c.bf16 %v1380_v42, %v1379_v39  ;;  %v2006_v44 = vmul.f32 %v10380_v3, %v1872_v57 }
 0x19a   : > { %12416 = vst [vmem:[#allocation44_spill] sm:$0xff] %v10400_v58  ;;  %v9134_v59 = vround.rtne.f32 %v1321_v31  ;;  %v1322_v6 = vmin.f32 %v1290_v48, 4.0  ;;  %v1222_v7 = vmul.f32 %v8394_v54, %v10289_v20  ;;  %v1146_v9 = vpop.f32.mrb[21].mxu0  ;;  %v2081_v22 = vadd.f32 %v10392_v34, %v2005_v56  ;;  %v1876_v25 = vpop.f32.mrb[19].mxu1 }
 0x19b   : > { %12417 = vst [vmem:[#allocation45_spill] sm:$0xff] %v10403_v14  ;;  %v9132_v17 = vround.rtne.f32 %v1319_v24  ;;  %v1320_v61 = vmin.f32 %v1288_v53, 4.0  ;;  %v8395_v23 = vpop.f32.mrb[22].mxu0  ;;  %v1220_v35 = vmul.f32 %v10289_v20, %v1146_v9  ;;  %v2082_v42 = vadd.f32 %v10397_v51, %v2006_v44 }
 0x19c   : > { %v1385_v26 = vmul.f32 0.25, %v9134_v59  ;;  %v9135_v28 = vround.rtne.f32 %v1322_v6  ;;  %v1261_v33 = vadd.f32 %v10291_v32, %v1222_v7  ;;  %v1149_v36 = vpop.f32.mrb[23].mxu0  ;;  %v2145_v41 = vmax.f32 %v2081_v22, 0.0 }
 0x19d   : > { %v1383_v37 = vmul.f32 0.25, %v9132_v17  ;;  %v9133_v63 = vround.rtne.f32 %v1320_v61  ;;  %v1259_v49 = vadd.f32 %v10291_v32, %v1220_v35  ;;  %v1223_v31 = vmul.f32 %v8395_v23, %v10289_v20 }
 0x19e   : > { %v1386_v39 = vmul.f32 0.25, %v9135_v28  ;;  %v1293_v21 = vmax.f32 %v1261_v33, 0.0  ;;  %v2209_v50 = vmin.f32 %v2145_v41, 4.0  ;;  %v2007_v24 = vmul.f32 %v10371_v29, %v1874_v12 }
 0x19f   : > { %v1384_v48 = vmul.f32 0.25, %v9133_v63  ;;  %v1291_v56 = vmax.f32 %v1259_v49, 0.0  ;;  %v1262_v59 = vadd.f32 %v10291_v32, %v1223_v31  ;;  %v1880_v6 = vpop.f32.mrb[20].mxu1  ;;  %v2146_v9 = vmax.f32 %v2082_v42, 0.0 }
 0x1a0   : > { %v10413_v53 = vpack.c.bf16 %v1386_v39, %v1385_v26  ;;  %v1325_v54 = vmin.f32 %v1293_v21, 4.0  ;;  %v9188_v7 = vround.rtne.f32 %v2209_v50  ;;  %v2083_v17 = vadd.f32 %v10392_v34, %v2007_v24  ;;  %v1882_v22 = vpop.f32.mrb[21].mxu1 }
 0x1a1   : > { %v10416_v57 = vpack.c.bf16 %v1384_v48, %v1383_v37  ;;  %v8398_v61 = vpop.f32.mrb[24].mxu0  ;;  %v1323_v28 = vmin.f32 %v1291_v56, 4.0  ;;  %v1294_v33 = vmax.f32 %v1262_v59, 0.0  ;;  %v1221_v12 = vmul.f32 %v10289_v20, %v1149_v36  ;;  %v1884_v35 = vpop.f32.mrb[22].mxu1 }
 0x1a2   : > { %12418 = vst [vmem:[#allocation46_spill] sm:$0xff] %v10413_v53  ;;  %v9138_v23 = vround.rtne.f32 %v1325_v54  ;;  %v1162_v26 = vpop.f32.mrb[25].mxu0  ;;  %v2210_v63 = vmin.f32 %v2146_v9, 4.0  ;;  %v2147_v41 = vmax.f32 %v2083_v17, 0.0  ;;  %v2008_v44 = vmul.f32 %v10380_v3, %v1876_v25  ;;  %v1886_v37 = vpop.f32.mrb[23].mxu1 }
 0x1a3   : > { %12419 = vst [vmem:[#allocation47_spill] sm:$0xff] %v10416_v57  ;;  %v8399_v39 = vpop.f32.mrb[26].mxu0  ;;  %v9136_v21 = vround.rtne.f32 %v1323_v28  ;;  %v1326_v49 = vmin.f32 %v1294_v33, 4.0  ;;  %v1260_v31 = vadd.f32 %v10291_v32, %v1221_v12  ;;  %v10422_v50 = vmul.f32 0.25, %v9188_v7 }
 0x1a4   : > { %v1165_v48 = vpop.f32.mrb[27].mxu0  ;;  %v2211_v42 = vmin.f32 %v2147_v41, 4.0  ;;  %v2084_v24 = vadd.f32 %v10397_v51, %v2008_v44  ;;  %v1226_v36 = vmul.f32 %v8398_v61, %v10289_v20  ;;  %v1389_v54 = vmul.f32 0.25, %v9138_v23 }
 0x1a5   : > { %v9139_v56 = vround.rtne.f32 %v1326_v49  ;;  %v1292_v59 = vmax.f32 %v1260_v31, 0.0  ;;  %v2009_v9 = vmul.f32 %v10371_v29, %v1880_v6  ;;  %v1387_v25 = vmul.f32 0.25, %v9136_v21 }
 0x1a6   : > { %v9189_v17 = vround.rtne.f32 %v2210_v63  ;;  %v2148_v0 = vmax.f32 %v2084_v24, 0.0  ;;  %v1265_v28 = vadd.f32 %v10291_v32, %v1226_v36  ;;  %v1224_v41 = vmul.f32 %v10289_v20, %v1162_v26 }
 0x1a7   : > { %v1390_v33 = vmul.f32 0.25, %v9139_v56  ;;  %v1324_v12 = vmin.f32 %v1292_v59, 4.0  ;;  %v2085_v7 = vadd.f32 %v10392_v34, %v2009_v9  ;;  %v1890_v47 = vpop.f32.mrb[24].mxu1  ;;  %v9190_v44 = vround.rtne.f32 %v2211_v42 }
 0x1a8   : > { %v2212_v38 = vmin.f32 %v2148_v0, 4.0  ;;  %v1297_v61 = vmax.f32 %v1265_v28, 0.0  ;;  %v2010_v23 = vmul.f32 %v10380_v3, %v1882_v22  ;;  %v1892_v31 = vpop.f32.mrb[25].mxu1  ;;  %v1263_v24 = vadd.f32 %v10291_v32, %v1224_v41 }
 0x1a9   : > { %v8402_v49 = vpop.f32.mrb[28].mxu0  ;;  %v10431_v6 = vpack.c.bf16 %v1390_v33, %v1389_v54  ;;  %v9137_v63 = vround.rtne.f32 %v1324_v12  ;;  %v2149_v21 = vmax.f32 %v2085_v7, 0.0  ;;  %v10434_v56 = vpop.f32.mrb[26].mxu1  ;;  %v1227_v0 = vmul.f32 %v8399_v39, %v10289_v20 }
 0x1aa   : > { %v1178_v36 = vpop.f32.mrb[29].mxu0  ;;  %v9191_v59 = vround.rtne.f32 %v2212_v38  ;;  %v1329_v9 = vmin.f32 %v1297_v61, 4.0  ;;  %v2086_v26 = vadd.f32 %v10397_v51, %v2010_v23  ;;  %v10438_v28 = vpop.f32.mrb[27].mxu1  ;;  %v1295_v54 = vmax.f32 %v1263_v24, 0.0 }
 0x1ab   : > { %12420 = vst [vmem:[#allocation48_spill] sm:$0xff] %v10431_v6  ;;  %v8403_v42 = vpop.f32.mrb[30].mxu0  ;;  %v1388_v22 = vmul.f32 0.25, %v9137_v63  ;;  %v2213_v13 = vmin.f32 %v2149_v21, 4.0  ;;  %v2011_v33 = vmul.f32 %v10371_v29, %v1884_v35  ;;  %v10443_v7 = vmul.f32 0.25, %v9189_v17 }
 0x1ac   : > { %v10441_v12 = vpop.f32.mrb[31].mxu0  ;;  %v9142_v41 = vround.rtne.f32 %v1329_v9  ;;  %v2150_v60 = vmax.f32 %v2086_v26, 0.0  ;;  %v1266_v38 = vadd.f32 %v10291_v32, %v1227_v0  ;;  %v1327_v39 = vmin.f32 %v1295_v54, 4.0 }
 0x1ad   : > { %12421 = vst [vmem:[#allocation49_spill] sm:$0xff] %v10443_v7  ;;  %v10446_v61 = vpack.c.bf16 %v1388_v22, %v1387_v25  ;;  %v9192_v23 = vround.rtne.f32 %v2213_v13  ;;  %v2087_v55 = vadd.f32 %v10392_v34, %v2011_v33  ;;  %v10449_v52 = vmul.f32 0.25, %v9190_v44 }
 0x1ae   : > { %v2214_v63 = vmin.f32 %v2150_v60, 4.0  ;;  %v1298_v21 = vmax.f32 %v1266_v38, 0.0  ;;  %v1225_v35 = vmul.f32 %v10289_v20, %v1165_v48  ;;  %v10452_v24 = vmul.f32 0.25, %v9191_v59 }
 0x1af   : > { %12422 = vst [vmem:[#allocation50_spill] sm:$0xff] %v10446_v61  ;;  %v9140_v17 = vround.rtne.f32 %v1327_v39  ;;  %v2151_v27 = vmax.f32 %v2087_v55, 0.0  ;;  %v2012_v9 = vmul.f32 %v10380_v3, %v1886_v37  ;;  %v10455_v26 = vpop.f32.mrb[28].mxu1  ;;  %v1393_v25 = vmul.f32 0.25, %v9142_v41 }
 0x1b0   : > { %12423 = vst [vmem:[#allocation51_spill] sm:$0xff] %v10452_v24  ;;  %v1330_v0 = vmin.f32 %v1298_v21, 4.0  ;;  %v1264_v13 = vadd.f32 %v10291_v32, %v1225_v35  ;;  %v1230_v22 = vmul.f32 %v8402_v49, %v10289_v20  ;;  %v10459_v54 = vpop.f32.mrb[29].mxu1  ;;  %v10461_v60 = vmul.f32 0.25, %v9192_v23 }
 0x1b1   : > { %v1810_v44 = vpop.f32.mrb[32].mxu0  ;;  %v2215_v48 = vmin.f32 %v2151_v27, 4.0  ;;  %v2088_v59 = vadd.f32 %v10397_v51, %v2012_v9  ;;  %v2013_v55 = vmul.f32 %v10371_v29, %v1890_v47  ;;  %v10467_v37 = vpop.f32.mrb[30].mxu1  ;;  %v9193_v41 = vround.rtne.f32 %v2214_v63 }
 0x1b2   : > { %v10465_v33 = vpop.f32.mrb[33].mxu0  ;;  %v9143_v38 = vround.rtne.f32 %v1330_v0  ;;  %v1296_v39 = vmax.f32 %v1264_v13, 0.0  ;;  %v1269_v21 = vadd.f32 %v10291_v32, %v1230_v22  ;;  %v10472_v35 = vpop.f32.mrb[31].mxu1  ;;  %v1391_v23 = vmul.f32 0.25, %v9140_v17 }
 0x1b3   : > { %v10470_v49 = vpop.f32.mrb[34].mxu0  ;;  %v2152_v18 = vmax.f32 %v2088_v59, 0.0  ;;  %v2089_v27 = vadd.f32 %v10392_v34, %v2013_v55  ;;  %v1228_v9 = vmul.f32 %v10289_v20, %v1178_v36  ;;  %v2014_v63 = vmul.f32 %v10380_v3, %v1892_v31 }
 0x1b4   : > { %v10476_v47 = vpop.f32.mrb[35].mxu0  ;;  %v1394_v10 = vmul.f32 0.25, %v9143_v38  ;;  %v1328_v45 = vmin.f32 %v1296_v39, 4.0  ;;  %v1301_v19 = vmax.f32 %v1269_v21, 0.0  ;;  %v9194_v0 = vround.rtne.f32 %v2215_v48 }
 0x1b5   : > { %v2216_v13 = vmin.f32 %v2152_v18, 4.0  ;;  %v2153_v22 = vmax.f32 %v2089_v27, 0.0  ;;  %v1267_v15 = vadd.f32 %v10291_v32, %v1228_v9  ;;  %v2090_v55 = vadd.f32 %v10397_v51, %v2014_v63 }
 0x1b6   : > { %v10480_v11 = vpack.c.bf16 %v1394_v10, %v1393_v25  ;;  %v9141_v17 = vround.rtne.f32 %v1328_v45  ;;  %v1333_v59 = vmin.f32 %v1301_v19, 4.0  ;;  %v1231_v38 = vmul.f32 %v8403_v42, %v10289_v20 }
 0x1b7   : > { %v9195_v8 = vround.rtne.f32 %v2216_v13  ;;  %v2217_v36 = vmin.f32 %v2153_v22, 4.0  ;;  %v1299_v46 = vmax.f32 %v1267_v15, 0.0  ;;  %v10484_v39 = vpop.f32.mrb[32].mxu1  ;;  %v2154_v48 = vmax.f32 %v2090_v55, 0.0 }
 0x1b8   : > { %12424 = vst [vmem:[#allocation52_spill] sm:$0xff] %v10480_v11  ;;  %v1392_v21 = vmul.f32 0.25, %v9141_v17  ;;  %v9146_v31 = vround.rtne.f32 %v1333_v59  ;;  %v2015_v18 = vmul.f32 %v10371_v29, %v10434_v56  ;;  %v10490_v10 = vpop.f32.mrb[33].mxu1  ;;  %v10492_v19 = vmul.f32 0.25, %v9193_v41 }
 0x1b9   : > { %v10488_v27 = vpop.f32.mrb[36].mxu0  ;;  %v9196_v45 = vround.rtne.f32 %v2217_v36  ;;  %v1331_v25 = vmin.f32 %v1299_v46, 4.0  ;;  %v1270_v15 = vadd.f32 %v10291_v32, %v1231_v38  ;;  %v10497_v42 = vpop.f32.mrb[34].mxu1  ;;  %v10499_v63 = vmul.f32 0.25, %v9194_v0 }
 0x1ba   : > { %12425 = vst [vmem:[#allocation53_spill] sm:$0xff] %v10492_v19  ;;  %v10495_v9 = vpop.f32.mrb[37].mxu0  ;;  %v10501_v13 = vpack.c.bf16 %v1392_v21, %v1391_v23  ;;  %v2218_v22 = vmin.f32 %v2154_v48, 4.0  ;;  %v2091_v56 = vadd.f32 %v10392_v34, %v2015_v18  ;;  %v10506_v59 = vpop.f32.mrb[35].mxu1  ;;  %v10508_v41 = vmul.f32 0.25, %v9195_v8 }
 0x1bb   : > { %v10504_v17 = vpop.f32.mrb[38].mxu0  ;;  %v1397_v46 = vmul.f32 0.25, %v9146_v31  ;;  %v1302_v55 = vmax.f32 %v1270_v15, 0.0  ;;  %v1229_v36 = vmul.f32 %v10289_v20, %v10441_v12  ;;  %v9144_v0 = vround.rtne.f32 %v1331_v25 }
 0x1bc   : > { %12426 = vst [vmem:[#allocation54_spill] sm:$0xff] %v10501_v13  ;;  %12427 = vst [vmem:[#allocation55_spill] sm:$0xff] %v10508_v41  ;;  %v10512_v38 = vpop.f32.mrb[39].mxu0  ;;  %v2155_v30 = vmax.f32 %v2091_v56, 0.0  ;;  %v2016_v23 = vmul.f32 %v10380_v3, %v10438_v28  ;;  %v1981_v21 = vmul.f32 %v10371_v29, %v1810_v44  ;;  %v10517_v48 = vmul.f32 0.25, %v9196_v45 }
 0x1bd   : > { %v1334_v18 = vmin.f32 %v1302_v55, 4.0  ;;  %v1268_v8 = vadd.f32 %v10291_v32, %v1229_v36  ;;  %v2017_v31 = vmul.f32 %v10371_v29, %v10455_v26  ;;  %v9197_v15 = vround.rtne.f32 %v2218_v22 }
 0x1be   : > { %v2219_v40 = vmin.f32 %v2155_v30, 4.0  ;;  %v2092_v20 = vadd.f32 %v10397_v51, %v2016_v23  ;;  %v2057_v12 = vadd.f32 %v10392_v34, %v1981_v21  ;;  %v1982_v44 = vmul.f32 %v10380_v3, %v10465_v33 }
 0x1bf   : > { %v9147_v25 = vround.rtne.f32 %v1334_v18  ;;  %v1300_v56 = vmax.f32 %v1268_v8, 0.0  ;;  %v2093_v28 = vadd.f32 %v10392_v34, %v2017_v31  ;;  %v10527_v45 = vpop.f32.mrb[36].mxu1  ;;  %v1395_v55 = vmul.f32 0.25, %v9144_v0 }
 0x1c0   : > { %v2156_v32 = vmax.f32 %v2092_v20, 0.0  ;;  %v2121_v36 = vmax.f32 %v2057_v12, 0.0  ;;  %v2018_v26 = vmul.f32 %v10380_v3, %v10459_v54  ;;  %v10533_v22 = vpop.f32.mrb[37].mxu1  ;;  %v2058_v8 = vadd.f32 %v10397_v51, %v1982_v44 }
 0x1c1   : > { %v10531_v30 = vpop.f32.mrb[40].mxu0  ;;  %v1398_v23 = vmul.f32 0.25, %v9147_v25  ;;  %v1332_v21 = vmin.f32 %v1300_v56, 4.0  ;;  %v2157_v18 = vmax.f32 %v2093_v28, 0.0  ;;  %v10538_v33 = vpop.f32.mrb[38].mxu1  ;;  %v9198_v62 = vround.rtne.f32 %v2219_v40 }
 0x1c2   : > { %v10536_v31 = vpop.f32.mrb[41].mxu0  ;;  %v2220_v0 = vmin.f32 %v2156_v32, 4.0  ;;  %v2185_v20 = vmin.f32 %v2121_v36, 4.0  ;;  %v2094_v12 = vadd.f32 %v10397_v51, %v2018_v26  ;;  %v10543_v54 = vpop.f32.mrb[39].mxu1  ;;  %v2122_v28 = vmax.f32 %v2058_v8, 0.0 }
 0x1c3   : > { %v10541_v11 = vpop.f32.mrb[42].mxu0  ;;  %v10545_v13 = vpack.c.bf16 %v1398_v23, %v1397_v46  ;;  %v9145_v25 = vround.rtne.f32 %v1332_v21  ;;  %v2221_v56 = vmin.f32 %v2157_v18, 4.0  ;;  %v1983_v40 = vmul.f32 %v10371_v29, %v10470_v49 }
 0x1c4   : > { %v10547_v6 = vpop.f32.mrb[43].mxu0  ;;  %v9199_v44 = vround.rtne.f32 %v2220_v0  ;;  %v9164_v61 = vround.rtne.f32 %v2185_v20  ;;  %v2158_v53 = vmax.f32 %v2094_v12, 0.0  ;;  %v10551_v26 = vmin.f32 %v2122_v28, 4.0 }
 0x1c5   : > { %12428 = vst [vmem:[#allocation56_spill] sm:$0xff] %v10545_v13  ;;  %v1396_v32 = vmul.f32 0.25, %v9145_v25  ;;  %v9200_v36 = vround.rtne.f32 %v2221_v56  ;;  %v2019_v57 = vmul.f32 %v10371_v29, %v10467_v37  ;;  %v10555_v46 = vmul.f32 0.25, %v9197_v15 }
 0x1c6   : > { %v2347_v23 = vmul.f32 0.25, %v9198_v62  ;;  %v10557_v21 = vmin.f32 %v2158_v53, 4.0  ;;  %v2059_v18 = vadd.f32 %v10392_v34, %v1983_v40  ;;  %v10562_v0 = vmul.f32 0.25, %v9199_v44 }
 0x1c7   : > { %12429 = vst [vmem:[#allocation57_spill] sm:$0xff] %v10555_v46  ;;  %v10560_v8 = vpack.c.bf16 %v1396_v32, %v1395_v55  ;;  %v10564_v20 = vmul.f32 0.25, %v9164_v61  ;;  %v2095_v49 = vadd.f32 %v10392_v34, %v2019_v57  ;;  %v10567_v12 = vpop.f32.mrb[40].mxu1  ;;  %v10569_v25 = vmul.f32 0.25, %v9200_v36 }
 0x1c8   : > { %12431 = vst [vmem:[#allocation59_spill] sm:$0xff] %v10562_v0  ;;  %v2123_v37 = vmax.f32 %v2059_v18, 0.0  ;;  %v1984_v62 = vmul.f32 %v10380_v3, %v10476_v47  ;;  %v2020_v53 = vmul.f32 %v10380_v3, %v10472_v35  ;;  %v10577_v55 = vpop.f32.mrb[41].mxu1  ;;  %v9165_v61 = vround.rtne.f32 %v10551_v26 }
 0x1c9   : > { %12430 = vst [vmem:[#allocation58_spill] sm:$0xff] %v10560_v8  ;;  %v10575_v15 = vpop.f32.mrb[44].mxu0  ;;  %v2159_v56 = vmax.f32 %v2095_v49, 0.0  ;;  %v1985_v57 = vmul.f32 %v10371_v29, %v10488_v27  ;;  %v2021_v28 = vmul.f32 %v10371_v29, %v10484_v39  ;;  %v10586_v40 = vpop.f32.mrb[42].mxu1  ;;  %v9201_v47 = vround.rtne.f32 %v10557_v21 }
 0x1ca   : > { %v10584_v44 = vpop.f32.mrb[45].mxu0  ;;  %v2187_v35 = vmin.f32 %v2123_v37, 4.0  ;;  %v2060_v32 = vadd.f32 %v10397_v51, %v1984_v62  ;;  %v2096_v36 = vadd.f32 %v10397_v51, %v2020_v53  ;;  %v10593_v26 = vpop.f32.mrb[43].mxu1  ;;  %v2393_v13 = vpack.c.bf16 %v2347_v23, %v10517_v48 }
 0x1cb   : > { %v10591_v18 = vpop.f32.mrb[46].mxu0  ;;  %v2223_v49 = vmin.f32 %v2159_v56, 4.0  ;;  %v2061_v27 = vadd.f32 %v10392_v34, %v1985_v57  ;;  %v2097_v39 = vadd.f32 %v10392_v34, %v2021_v28  ;;  %v1986_v62 = vmul.f32 %v10380_v3, %v10495_v9 }
 0x1cc   : > { %v10598_v8 = vpop.f32.mrb[47].mxu0  ;;  %v9166_v58 = vround.rtne.f32 %v2187_v35  ;;  %v2124_v21 = vmax.f32 %v2060_v32, 0.0  ;;  %v2160_v37 = vmax.f32 %v2096_v36, 0.0  ;;  %3071 = vrot.lane.b32.xlu0 %v2393_v13, %s9787_s30  ;;  %v2022_v56 = vmul.f32 %v10380_v3, %v10490_v10  ;;  %7948 = vmatprep.subr.bf16.mxu0 %v2393_v13 }
 0x1cd   : > { %v9202_v53 = vround.rtne.f32 %v2223_v49  ;;  %v2125_v14 = vmax.f32 %v2061_v27, 0.0  ;;  %v2161_v2 = vmax.f32 %v2097_v39, 0.0  ;;  %v2062_v28 = vadd.f32 %v10397_v51, %v1986_v62 }
 0x1ce   : > { %v2315_v57 = vmul.f32 0.25, %v9166_v58  ;;  %v2188_v48 = vmin.f32 %v2124_v21, 4.0  ;;  %v2224_v23 = vmin.f32 %v2160_v37, 4.0  ;;  %v2098_v9 = vadd.f32 %v10397_v51, %v2022_v56 }
 0x1cf   : > { %v2351_v35 = vmul.f32 0.25, %v9202_v53  ;;  %v2189_v32 = vmin.f32 %v2125_v14, 4.0  ;;  %v2225_v36 = vmin.f32 %v2161_v2, 4.0  ;;  %v10607_v49 = vpop.f32.mrb[44].mxu1  ;;  %v2126_v4 = vmax.f32 %v2062_v28, 0.0 }
 0x1d0   : > { %v9167_v27 = vround.rtne.f32 %v2188_v48  ;;  %v9203_v39 = vround.rtne.f32 %v2224_v23  ;;  %v1987_v1 = vmul.f32 %v10371_v29, %v10504_v17  ;;  %v10613_v58 = vpop.f32.mrb[45].mxu1  ;;  %v2162_v37 = vmax.f32 %v2098_v9, 0.0 }
 0x1d1   : > { %v10611_v10 = vpop.f32.mrb[48].mxu0  ;;  %v9168_v13 = vround.rtne.f32 %v2189_v32  ;;  %v9204_v21 = vround.rtne.f32 %v2225_v36  ;;  %v2023_v2 = vmul.f32 %v10371_v29, %v10497_v42  ;;  %v10619_v62 = vpop.f32.mrb[46].mxu1  ;;  %v10621_v53 = vmul.f32 0.25, %v9165_v61 }
 0x1d2   : > { %v10617_v14 = vpop.f32.mrb[49].mxu0  ;;  %v10623_v56 = vmul.f32 0.25, %v9201_v47  ;;  %v2190_v48 = vmin.f32 %v2126_v4, 4.0  ;;  %v2063_v17 = vadd.f32 %v10392_v34, %v1987_v1  ;;  %v10628_v28 = vpop.f32.mrb[47].mxu1  ;;  %v10630_v32 = vmul.f32 0.25, %v9167_v27 }
 0x1d3   : > { %v10626_v23 = vpop.f32.mrb[50].mxu0  ;;  %v10632_v36 = vmul.f32 0.25, %v9203_v39  ;;  %v2226_v42 = vmin.f32 %v2162_v37, 4.0  ;;  %v2099_v9 = vadd.f32 %v10392_v34, %v2023_v2  ;;  %v2317_v61 = vmul.f32 0.25, %v9168_v13 }
 0x1d4   : > { %12432 = vst [vmem:[#allocation60_spill] sm:$0xff] %v10623_v56  ;;  %12433 = vst [vmem:[#allocation61_spill] sm:$0xff] %v10630_v32  ;;  %v10635_v5 = vpop.f32.mrb[51].mxu0  ;;  %v2127_v16 = vmax.f32 %v2063_v17, 0.0  ;;  %v1988_v4 = vmul.f32 %v10380_v3, %v10512_v38  ;;  %v2024_v1 = vmul.f32 %v10380_v3, %v10506_v59  ;;  %v2353_v47 = vmul.f32 0.25, %v9204_v21 }
 0x1d5   : > { %12434 = vst [vmem:[#allocation62_spill] sm:$0xff] %v10632_v36  ;;  %v2163_v43 = vmax.f32 %v2099_v9, 0.0  ;;  %v2395_v27 = vpack.c.bf16 %v2351_v35, %v10569_v25  ;;  %v2377_v39 = vpack.c.bf16 %v2315_v57, %v10564_v20  ;;  %v9169_v41 = vround.rtne.f32 %v2190_v48 }
 0x1d6   : > { %v2191_v37 = vmin.f32 %v2127_v16, 4.0  ;;  %v2064_v2 = vadd.f32 %v10397_v51, %v1988_v4  ;;  %v2100_v19 = vadd.f32 %v10397_v51, %v2024_v1  ;;  %v9205_v13 = vround.rtne.f32 %v2226_v42 }
 0x1d7   : > { %v2227_v17 = vmin.f32 %v2163_v43, 4.0  ;;  %3073 = vrot.lane.b32.xlu1 %v2395_v27, %s9787_s30  ;;  %3055 = vrot.lane.b32.xlu0 %v2377_v39, %s9787_s30  ;;  %v1989_v59 = vmul.f32 %v10371_v29, %v10531_v30  ;;  %v1990_v38 = vmul.f32 %v10380_v3, %v10536_v31  ;;  %v10651_v25 = vpop.f32.mrb[48].mxu1  ;;  %v1991_v35 = vmul.f32 %v10371_v29, %v10541_v11 }
 0x1d8   : > { %v9170_v20 = vround.rtne.f32 %v2191_v37  ;;  %v2128_v16 = vmax.f32 %v2064_v2, 0.0  ;;  %v2164_v57 = vmax.f32 %v2100_v19, 0.0  ;;  %7949 = vmatpush3.bf16.msra.mxu0 %v2377_v39  ;;  %v10657_v21 = vpop.f32.mrb[49].mxu1  ;;  %v1992_v31 = vmul.f32 %v10380_v3, %v10547_v6 }
 0x1d9   : > { %v10655_v43 = vpop.f32.mrb[52].mxu0  ;;  %v9206_v48 = vround.rtne.f32 %v2227_v17  ;;  %v2065_v42 = vadd.f32 %v10392_v34, %v1989_v59  ;;  %v2066_v30 = vadd.f32 %v10397_v51, %v1990_v38  ;;  %7950 = vmatprep.subr.bf16.mxu0 %v2395_v27  ;;  %v10665_v19 = vpop.f32.mrb[50].mxu1  ;;  %v2067_v39 = vadd.f32 %v10392_v34, %v1991_v35 }
 0x1da   : > { %v10663_v9 = vpop.f32.mrb[53].mxu0  ;;  %v2319_v4 = vmul.f32 0.25, %v9170_v20  ;;  %v2192_v1 = vmin.f32 %v2128_v16, 4.0  ;;  %v2228_v11 = vmin.f32 %v2164_v57, 4.0  ;;  %v10670_v2 = vpop.f32.mrb[51].mxu1  ;;  %v2068_v27 = vadd.f32 %v10397_v51, %v1992_v31 }
 0x1db   : > { %v10668_v37 = vpop.f32.mrb[54].mxu0  ;;  %v2355_v17 = vmul.f32 0.25, %v9206_v48  ;;  %v2129_v59 = vmax.f32 %v2065_v42, 0.0  ;;  %v2130_v38 = vmax.f32 %v2066_v30, 0.0  ;;  %v2131_v36 = vmax.f32 %v2067_v39, 0.0 }
 0x1dc   : > { %v10673_v24 = vpop.f32.mrb[55].mxu0  ;;  %v9171_v6 = vround.rtne.f32 %v2192_v1  ;;  %v9207_v7 = vround.rtne.f32 %v2228_v11  ;;  %v2379_v56 = vpack.c.bf16 %v2319_v4, %v2317_v61  ;;  %v2132_v57 = vmax.f32 %v2068_v27, 0.0 }
 0x1dd   : > { %v2193_v20 = vmin.f32 %v2129_v59, 4.0  ;;  %v2194_v16 = vmin.f32 %v2130_v38, 4.0  ;;  %v2397_v0 = vpack.c.bf16 %v2355_v17, %v2353_v47  ;;  %v10675_v35 = vmul.f32 0.25, %v9169_v41 }
 0x1de   : > { %v10677_v46 = vmul.f32 0.25, %v9205_v13  ;;  %v2195_v32 = vmin.f32 %v2131_v36, 4.0  ;;  %3057 = vrot.lane.b32.xlu1 %v2379_v56, %s9787_s30  ;;  %7951 = vmatpush3.bf16.msra.mxu0 %v2379_v56  ;;  %v2025_v48 = vmul.f32 %v10371_v29, %v10527_v45  ;;  %v10682_v42 = vmul.f32 0.25, %v9171_v6  ;;  %v1595_v13 = vld [vmem:[%s12278_s7 + $0x18] sm:$0xff] }
 0x1df   : > { %v9172_v30 = vround.rtne.f32 %v2193_v20  ;;  %v2196_v31 = vmin.f32 %v2132_v57, 4.0  ;;  %3075 = vrot.lane.b32.xlu0 %v2397_v0, %s9787_s30  ;;  %7952 = vmatprep.subr.bf16.mxu0 %v2397_v0  ;;  %v1993_v41 = vmul.f32 %v10371_v29, %v10575_v15  ;;  %v10687_v61 = vpop.f32.mrb[52].mxu1  ;;  %v2026_v56 = vmul.f32 %v10380_v3, %v10533_v22 }
 0x1e0   : > { %v9174_v47 = vround.rtne.f32 %v2195_v32  ;;  %v2101_v36 = vadd.f32 %v10392_v34, %v2025_v48  ;;  %v1994_v45 = vmul.f32 %v10380_v3, %v10584_v44  ;;  %v10697_v4 = vpop.f32.mrb[53].mxu1  ;;  %v10699_v0 = vmul.f32 0.25, %v9207_v7 }
 0x1e1   : > { %v2321_v15 = vmul.f32 0.25, %v9172_v30  ;;  %v9173_v1 = vround.rtne.f32 %v2194_v16  ;;  %v2069_v32 = vadd.f32 %v10392_v34, %v1993_v41  ;;  %v10702_v11 = vpop.f32.mrb[54].mxu1  ;;  %v9175_v39 = vround.rtne.f32 %v2196_v31 }
 0x1e2   : > { %12435 = vst [vmem:[#allocation63_spill] sm:$0xff] %v10699_v0  ;;  %v2165_v17 = vmax.f32 %v2101_v36, 0.0  ;;  %v2102_v22 = vadd.f32 %v10397_v51, %v2026_v56  ;;  %v2070_v44 = vadd.f32 %v10397_v51, %v1994_v45  ;;  %v10706_v59 = vpop.f32.mrb[55].mxu1  ;;  %v2323_v38 = vmul.f32 0.25, %v9174_v47 }
 0x1e3   : > { %v2133_v27 = vmax.f32 %v2069_v32, 0.0  ;;  %v2027_v7 = vmul.f32 %v10371_v29, %v10538_v33  ;;  %v2028_v6 = vmul.f32 %v10380_v3, %v10543_v54  ;;  %1617 = vperm.xlu0 %9529, %v1595_v13   ;;  %v1995_v48 = vmul.f32 %v10371_v29, %v10591_v18 }
 0x1e4   : > { %v2229_v20 = vmin.f32 %v2165_v17, 4.0  ;;  %v2166_v16 = vmax.f32 %v2102_v22, 0.0  ;;  %v2134_v57 = vmax.f32 %v2070_v44, 0.0  ;;  %v1996_v47 = vmul.f32 %v10380_v3, %v10598_v8 }
 0x1e5   : > { %v2197_v30 = vmin.f32 %v2133_v27, 4.0  ;;  %v2103_v31 = vadd.f32 %v10392_v34, %v2027_v7  ;;  %v2104_v41 = vadd.f32 %v10397_v51, %v2028_v6  ;;  %v2071_v54 = vadd.f32 %v10392_v34, %v1995_v48 }
 0x1e6   : > { %v9208_v36 = vround.rtne.f32 %v2229_v20  ;;  %v2230_v33 = vmin.f32 %v2166_v16, 4.0  ;;  %v2198_v56 = vmin.f32 %v2134_v57, 4.0  ;;  %v2072_v17 = vadd.f32 %v10397_v51, %v1996_v47 }
 0x1e7   : > { %v9176_v45 = vround.rtne.f32 %v2197_v30  ;;  %v2167_v13 = vmax.f32 %v2103_v31, 0.0  ;;  %v2168_v32 = vmax.f32 %v2104_v41, 0.0  ;;  %v10720_v22 = vmul.f32 0.25, %v9173_v1 }
 0x1e8   : > { %v10722_v18 = vmul.f32 0.25, %v9175_v39  ;;  %v9209_v44 = vround.rtne.f32 %v2230_v33  ;;  %v2135_v27 = vmax.f32 %v2071_v54, 0.0  ;;  %v9177_v7 = vround.rtne.f32 %v2198_v56 }
 0x1e9   : > { %v2231_v6 = vmin.f32 %v2167_v13, 4.0  ;;  %v2232_v0 = vmin.f32 %v2168_v32, 4.0  ;;  %v2136_v8 = vmax.f32 %v2072_v17, 0.0  ;;  %v10724_v20 = vmul.f32 0.25, %v9208_v36 }
 0x1ea   : > { %v10726_v16 = vmul.f32 0.25, %v9176_v45  ;;  %v2199_v57 = vmin.f32 %v2135_v27, 4.0  ;;  %v2029_v48 = vmul.f32 %v10371_v29, %v10567_v12  ;;  %v2381_v41 = vpack.c.bf16 %v2323_v38, %v2321_v15 }
 0x1eb   : > { %v9210_v30 = vround.rtne.f32 %v2231_v6  ;;  %v9211_v31 = vround.rtne.f32 %v2232_v0  ;;  %v2200_v1 = vmin.f32 %v2136_v8, 4.0  ;;  %v10730_v39 = vmul.f32 0.25, %v9209_v44 }
 0x1ec   : > { %v2105_v47 = vadd.f32 %v10392_v34, %v2029_v48  ;;  %v1997_v33 = vmul.f32 %v10371_v29, %v10611_v10  ;;  %v2030_v36 = vmul.f32 %v10380_v3, %v10577_v55  ;;  %v10737_v56 = vmul.f32 0.25, %v9177_v7  ;;  %3059 = vrot.lane.b32.xlu1 %v2381_v41, %s9787_s30  ;;  %7953 = vmatpush3.bf16.msra.mxu0 %v2381_v41 }
 0x1ed   : > { %v10739_v54 = vmul.f32 0.25, %v9210_v30  ;;  %v9178_v45 = vround.rtne.f32 %v2199_v57  ;;  %v1998_v12 = vmul.f32 %v10380_v3, %v10617_v14  ;;  %v10744_v0 = vmul.f32 0.25, %v9211_v31 }
 0x1ee   : > { %v2169_v15 = vmax.f32 %v2105_v47, 0.0  ;;  %v2073_v38 = vadd.f32 %v10392_v34, %v1997_v33  ;;  %v2106_v10 = vadd.f32 %v10397_v51, %v2030_v36  ;;  %v9179_v13 = vround.rtne.f32 %v2200_v1 }
 0x1ef   : > { %v2074_v55 = vadd.f32 %v10397_v51, %v1998_v12  ;;  %v2031_v32 = vmul.f32 %v10371_v29, %v10586_v40  ;;  %v1999_v17 = vmul.f32 %v10371_v29, %v10626_v23  ;;  %v2032_v14 = vmul.f32 %v10380_v3, %v10593_v26 }
 0x1f0   : > { %v2233_v44 = vmin.f32 %v2169_v15, 4.0  ;;  %v2137_v27 = vmax.f32 %v2073_v38, 0.0  ;;  %v2170_v7 = vmax.f32 %v2106_v10, 0.0  ;;  %v2000_v48 = vmul.f32 %v10380_v3, %v10635_v5 }
 0x1f1   : > { %v2138_v6 = vmax.f32 %v2074_v55, 0.0  ;;  %v2107_v8 = vadd.f32 %v10392_v34, %v2031_v32  ;;  %v2075_v57 = vadd.f32 %v10392_v34, %v1999_v17  ;;  %v2108_v1 = vadd.f32 %v10397_v51, %v2032_v14 }
 0x1f2   : > { %v9212_v30 = vround.rtne.f32 %v2233_v44  ;;  %v2201_v31 = vmin.f32 %v2137_v27, 4.0  ;;  %v2234_v40 = vmin.f32 %v2170_v7, 4.0  ;;  %v2076_v33 = vadd.f32 %v10397_v51, %v2000_v48 }
 0x1f3   : > { %v2202_v23 = vmin.f32 %v2138_v6, 4.0  ;;  %v2171_v41 = vmax.f32 %v2107_v8, 0.0  ;;  %v2139_v47 = vmax.f32 %v2075_v57, 0.0  ;;  %v10761_v36 = vmul.f32 0.25, %v9178_v45 }
 0x1f4   : > { %v9180_v26 = vround.rtne.f32 %v2201_v31  ;;  %v9213_v12 = vround.rtne.f32 %v2234_v40  ;;  %v2172_v15 = vmax.f32 %v2108_v1, 0.0  ;;  %v2140_v32 = vmax.f32 %v2076_v33, 0.0 }
 0x1f5   : > { %v9181_v38 = vround.rtne.f32 %v2202_v23  ;;  %v2235_v10 = vmin.f32 %v2171_v41, 4.0  ;;  %v2203_v55 = vmin.f32 %v2139_v47, 4.0  ;;  %v10763_v5 = vmul.f32 0.25, %v9179_v13 }
 0x1f6   : > { %v10765_v17 = vmul.f32 0.25, %v9212_v30  ;;  %v2236_v44 = vmin.f32 %v2172_v15, 4.0  ;;  %v2033_v27 = vmul.f32 %v10371_v29, %v10607_v49  ;;  %v10769_v7 = vmul.f32 0.25, %v9180_v26 }
 0x1f7   : > { %v9214_v14 = vround.rtne.f32 %v2235_v10  ;;  %v9182_v45 = vround.rtne.f32 %v2203_v55  ;;  %v2204_v6 = vmin.f32 %v2140_v32, 4.0  ;;  %v10771_v8 = vmul.f32 0.25, %v9213_v12 }
 0x1f8   : > { %v2109_v57 = vadd.f32 %v10392_v34, %v2033_v27  ;;  %v2001_v48 = vmul.f32 %v10371_v29, %v10655_v43  ;;  %v2034_v13 = vmul.f32 %v10380_v3, %v10613_v58  ;;  %v10778_v30 = vmul.f32 0.25, %v9181_v38 }
 0x1f9   : > { %v10780_v31 = vmul.f32 0.25, %v9214_v14  ;;  %v9215_v49 = vround.rtne.f32 %v2236_v44  ;;  %v2002_v40 = vmul.f32 %v10380_v3, %v10663_v9  ;;  %v10784_v1 = vmul.f32 0.25, %v9182_v45 }
 0x1fa   : > { %v2173_v23 = vmax.f32 %v2109_v57, 0.0  ;;  %v2077_v41 = vadd.f32 %v10392_v34, %v2001_v48  ;;  %v2110_v47 = vadd.f32 %v10397_v51, %v2034_v13  ;;  %v9183_v33 = vround.rtne.f32 %v2204_v6 }
 0x1fb   : > { %v2078_v43 = vadd.f32 %v10397_v51, %v2002_v40  ;;  %v2035_v58 = vmul.f32 %v10371_v29, %v10619_v62  ;;  %v2003_v26 = vmul.f32 %v10371_v29, %v10668_v37  ;;  %v2036_v9 = vmul.f32 %v10380_v3, %v10628_v28 }
 0x1fc   : > { %v2237_v12 = vmin.f32 %v2173_v23, 4.0  ;;  %v2141_v15 = vmax.f32 %v2077_v41, 0.0  ;;  %v2174_v38 = vmax.f32 %v2110_v47, 0.0  ;;  %v2037_v44 = vmul.f32 %v10371_v29, %v10651_v25 }
 0x1fd   : > { %v2142_v10 = vmax.f32 %v2078_v43, 0.0  ;;  %v2111_v55 = vadd.f32 %v10392_v34, %v2035_v58  ;;  %v2079_v32 = vadd.f32 %v10392_v34, %v2003_v26  ;;  %v2112_v45 = vadd.f32 %v10397_v51, %v2036_v9 }
 0x1fe   : > { %v9216_v27 = vround.rtne.f32 %v2237_v12  ;;  %v2205_v14 = vmin.f32 %v2141_v15, 4.0  ;;  %v2238_v62 = vmin.f32 %v2174_v38, 4.0  ;;  %v2113_v48 = vadd.f32 %v10392_v34, %v2037_v44 }
 0x1ff   : > { %v2206_v37 = vmin.f32 %v2142_v10, 4.0  ;;  %v2175_v6 = vmax.f32 %v2111_v55, 0.0  ;;  %v2143_v57 = vmax.f32 %v2079_v32, 0.0  ;;  %v10801_v13 = vmul.f32 0.25, %v9215_v49 }
 0x200   : > { %v9184_v28 = vround.rtne.f32 %v2205_v14  ;;  %v9217_v40 = vround.rtne.f32 %v2238_v62  ;;  %v2176_v23 = vmax.f32 %v2112_v45, 0.0  ;;  %v2177_v58 = vmax.f32 %v2113_v48, 0.0 }
 0x201   : > { %v9185_v41 = vround.rtne.f32 %v2206_v37  ;;  %v2239_v47 = vmin.f32 %v2175_v6, 4.0  ;;  %v2207_v43 = vmin.f32 %v2143_v57, 4.0  ;;  %v10803_v25 = vmul.f32 0.25, %v9183_v33 }
 0x202   : > { %v2365_v26 = vmul.f32 0.25, %v9216_v27  ;;  %v2240_v12 = vmin.f32 %v2176_v23, 4.0  ;;  %v2038_v15 = vmul.f32 %v10380_v3, %v10657_v21  ;;  %v2333_v38 = vmul.f32 0.25, %v9184_v28 }
 0x203   : > { %v9218_v9 = vround.rtne.f32 %v2239_v47  ;;  %v9186_v10 = vround.rtne.f32 %v2207_v43  ;;  %v2241_v55 = vmin.f32 %v2177_v58, 4.0  ;;  %v10807_v49 = vmul.f32 0.25, %v9217_v40 }
 0x204   : > { %v2114_v32 = vadd.f32 %v10397_v51, %v2038_v15  ;;  %v2399_v44 = vpack.c.bf16 %v10739_v54, %v10724_v20  ;;  %v2039_v33 = vmul.f32 %v10371_v29, %v10665_v19  ;;  %v10814_v14 = vmul.f32 0.25, %v9185_v41 }
 0x205   : > { %v2367_v27 = vmul.f32 0.25, %v9218_v9  ;;  %v9219_v62 = vround.rtne.f32 %v2240_v12  ;;  %v2383_v21 = vpack.c.bf16 %v10761_v36, %v10726_v16  ;;  %v2335_v45 = vmul.f32 0.25, %v9186_v10 }
 0x206   : > { %v2178_v37 = vmax.f32 %v2114_v32, 0.0  ;;  %3077 = vrot.lane.b32.xlu1 %v2399_v44, %s9787_s30  ;;  %7954 = vmatprep.subr.bf16.mxu0 %v2399_v44  ;;  %v2115_v6 = vadd.f32 %v10392_v34, %v2039_v33  ;;  %v2040_v20 = vmul.f32 %v10380_v3, %v10670_v2  ;;  %v9220_v54 = vround.rtne.f32 %v2241_v55 }
 0x207   : > { %3061 = vrot.lane.b32.xlu0 %v2383_v21, %s9787_s30  ;;  %7955 = vmatpush3.bf16.msra.mxu0 %v2383_v21  ;;  %v2041_v19 = vmul.f32 %v10371_v29, %v10687_v61  ;;  %v2042_v16 = vmul.f32 %v10380_v3, %v10697_v4  ;;  %v2004_v36 = vmul.f32 %v10380_v3, %v10673_v24  ;;  %v2368_v4 = vmul.f32 0.25, %v9219_v62 }
 0x208   : > { %v2242_v57 = vmin.f32 %v2178_v37, 4.0  ;;  %v2179_v48 = vmax.f32 %v2115_v6, 0.0  ;;  %v2116_v28 = vadd.f32 %v10397_v51, %v2040_v20  ;;  %v2043_v2 = vmul.f32 %v10371_v29, %v10702_v11 }
 0x209   : > { %v2117_v40 = vadd.f32 %v10392_v34, %v2041_v19  ;;  %v2118_v23 = vadd.f32 %v10397_v51, %v2042_v16  ;;  %v2080_v41 = vadd.f32 %v10397_v51, %v2004_v36  ;;  %v2401_v61 = vpack.c.bf16 %v10780_v31, %v10765_v17 }
 0x20a   : > { %v2243_v47 = vmin.f32 %v2179_v48, 4.0  ;;  %v2180_v43 = vmax.f32 %v2116_v28, 0.0  ;;  %v2119_v24 = vadd.f32 %v10392_v34, %v2043_v2  ;;  %v9221_v58 = vround.rtne.f32 %v2242_v57  ;;  %v12436_v57 = vld [vmem:[#allocation61_spill] sm:$0xff]  ;;  %v12438_v48 = vld [vmem:[#allocation59_spill] sm:$0xff]  ;;  %v12439_v2 = vld [vmem:[#allocation60_spill] sm:$0xff] }
 0x20b   : > { %v2181_v12 = vmax.f32 %v2117_v40, 0.0  ;;  %v2144_v15 = vmax.f32 %v2080_v41, 0.0  ;;  %3079 = vrot.lane.b32.xlu1 %v2401_v61, %s9787_s30  ;;  %7956 = vmatprep.subr.bf16.mxu0 %v2401_v61  ;;  %v2385_v29 = vpack.c.bf16 %v10784_v1, %v10769_v7  ;;  %v2182_v10 = vmax.f32 %v2118_v23, 0.0  ;;  %v12441_v40 = vld [vmem:[#allocation63_spill] sm:$0xff] }
 0x20c   : > { %v9222_v11 = vround.rtne.f32 %v2243_v47  ;;  %v2244_v9 = vmin.f32 %v2180_v43, 4.0  ;;  %v2183_v55 = vmax.f32 %v2119_v24, 0.0  ;;  %v2369_v32 = vmul.f32 0.25, %v9220_v54  ;;  %v12446_v61 = vld [vmem:[#allocation55_spill] sm:$0xff] }
 0x20d   : > { %v2245_v17 = vmin.f32 %v2181_v12, 4.0  ;;  %v2208_v31 = vmin.f32 %v2144_v15, 4.0  ;;  %3063 = vrot.lane.b32.xlu0 %v2385_v29, %s9787_s30  ;;  %7957 = vmatpush3.bf16.msra.mxu0 %v2385_v29  ;;  %v2403_v34 = vpack.c.bf16 %v2367_v27, %v2365_v26  ;;  %v2387_v21 = vpack.c.bf16 %v2335_v45, %v2333_v38  ;;  %v12449_v24 = vld [vmem:[#allocation23_spill] sm:$0xff]  ;;  %v12451_v12 = vld [vmem:[#allocation32_spill] sm:$0xff]  ;;  %v12452_v15 = vld [vmem:[#allocation30_spill] sm:$0xff] }
 0x20e   : > { %v2371_v44 = vmul.f32 0.25, %v9222_v11  ;;  %v9223_v33 = vround.rtne.f32 %v2244_v9  ;;  %v2247_v62 = vmin.f32 %v2183_v55, 4.0  ;;  %v2370_v37 = vmul.f32 0.25, %v9221_v58  ;;  %v12453_v29 = vld [vmem:[#allocation42_spill] sm:$0xff]  ;;  %v12455_v9 = vld [vmem:[#allocation45_spill] sm:$0xff]  ;;  %v12457_v55 = vld [vmem:[#allocation47_spill] sm:$0xff] }
 0x20f   : > { %v9224_v6 = vround.rtne.f32 %v2245_v17  ;;  %v9187_v20 = vround.rtne.f32 %v2208_v31  ;;  %3081 = vrot.lane.b32.xlu1 %v2403_v34, %s9787_s30  ;;  %7958 = vmatprep.subr.bf16.mxu0 %v2403_v34  ;;  %v2389_v7 = vpack.c.bf16 %v10449_v52, %v10422_v50  ;;  %v2246_v1 = vmin.f32 %v2182_v10, 4.0  ;;  %v12437_v50 = vld [vmem:[#allocation57_spill] sm:$0xff]  ;;  %v12454_v11 = vld [vmem:[#allocation38_spill] sm:$0xff]  ;;  %v12456_v10 = vld [vmem:[#allocation44_spill] sm:$0xff] }
 0x210   : > { %v9226_v54 = vround.rtne.f32 %v2247_v62  ;;  %v2405_v19 = vpack.c.bf16 %v2371_v44, %v2369_v32  ;;  %v2391_v16 = vpack.c.bf16 %v10499_v63, %v10461_v60  ;;  %v2372_v26 = vmul.f32 0.25, %v9223_v33  ;;  %v12458_v32 = vld [vmem:[#allocation46_spill] sm:$0xff]  ;;  %v1528_v31 = vld [vmem:[%s12277_s6] sm:$0xff]  ;;  %v1529_v44 = vld [vmem:[%s12277_s6 + $0x8] sm:$0xff] }
 0x211   : > { %v2373_v27 = vmul.f32 0.25, %v9224_v6  ;;  %v2336_v36 = vmul.f32 0.25, %v9187_v20  ;;  %3065 = vrot.lane.b32.xlu0 %v2387_v21, %s9787_s30  ;;  %7959 = vmatpush3.bf16.msra.mxu0 %v2387_v21  ;;  %v2044_v38 = vmul.f32 %v10380_v3, %v10706_v59  ;;  %v10852_v52 = vpack.c.bf16 %v12436_v57, %v10621_v53  ;;  %v12440_v3 = vld [vmem:[#allocation62_spill] sm:$0xff]  ;;  %v12460_v34 = vld [vmem:[#allocation48_spill] sm:$0xff]  ;;  %v1549_v21 = vpop.permute.xlu0 %1548  ;;  %v1554_v20 = vpop.permute.xlu1 %1553 }
 0x212   : > { %v2375_v45 = vmul.f32 0.25, %v9226_v54  ;;  %7960 = vmatprep.subr.bf16.mxu0 %v2405_v19  ;;  %v10856_v28 = vpack.c.bf16 %v12438_v48, %v12437_v50  ;;  %v10860_v60 = vpack.c.bf16 %v10682_v42, %v10675_v35  ;;  %v10866_v59 = vpack.c.bf16 %v12440_v3, %v12439_v2  ;;  %v12459_v17 = vld [vmem:[#allocation50_spill] sm:$0xff]  ;;  %v1592_v33 = vld [vmem:[%s12278_s7] sm:$0xff]  ;;  %v1593_v62 = vld [vmem:[%s12278_s7 + $0x8] sm:$0xff] }
 0x213   : > { %3083 = vrot.lane.b32.xlu1 %v2405_v19, %s9787_s30  ;;  %v2120_v63 = vadd.f32 %v10397_v51, %v2044_v38  ;;  %v10870_v53 = vpack.c.bf16 %v10722_v18, %v10720_v22  ;;  %v10874_v23 = vpack.c.bf16 %v12441_v40, %v10677_v46  ;;  %v10878_v35 = vpack.c.bf16 %v10763_v5, %v10737_v56  ;;  %v12462_v6 = vld [vmem:[#allocation52_spill] sm:$0xff]  ;;  %v12465_v48 = vld [vmem:[#allocation26_spill] sm:$0xff]  ;;  %v12466_v2 = vld [vmem:[#allocation27_spill] sm:$0xff] }
 0x214   : > { %v2407_v41 = vpack.c.bf16 %v2375_v45, %v2373_v27  ;;  %v10882_v51 = vpack.c.bf16 %v10744_v0, %v10730_v39  ;;  %v10886_v42 = vpack.c.bf16 %v10803_v25, %v10778_v30  ;;  %v10891_v46 = vpack.c.bf16 %v10801_v13, %v10771_v8  ;;  %v12442_v39 = vld [vmem:[#allocation49_spill] sm:$0xff]  ;;  %v12443_v0 = vld [vmem:[#allocation51_spill] sm:$0xff]  ;;  %v12464_v19 = vld [vmem:[#allocation56_spill] sm:$0xff] }
 0x215   : > { %3067 = vrot.lane.b32.xlu0 %v2389_v7, %s9787_s30  ;;  %7961 = vmatpush3.bf16.msra.mxu0 %v2389_v7  ;;  %v2184_v22 = vmax.f32 %v2120_v63, 0.0  ;;  %v10894_v18 = vpack.c.bf16 %v2336_v36, %v10814_v14  ;;  %v10897_v56 = vpack.c.bf16 %v2368_v4, %v10807_v49  ;;  %v10901_v5 = vpack.c.bf16 %v12443_v0, %v12442_v39  ;;  %v12445_v25 = vld [vmem:[#allocation53_spill] sm:$0xff]  ;;  %v12463_v7 = vld [vmem:[#allocation58_spill] sm:$0xff]  ;;  %v1532_v54 = vld [vmem:[%s12277_s6 + $0x20] sm:$0xff]  ;;  %v1613_v27 = vpop.permute.xlu1 %1612 }
 0x216   : > { %7962 = vmatprep.subr.bf16.mxu0 %v2407_v41  ;;  %v10903_v30 = vpack.c.bf16 %v2372_v26, %v2370_v37  ;;  %v10907_v47 = vpack.c.bf16 %v12446_v61, %v12445_v25  ;;  %v9225_v43 = vround.rtne.f32 %v2246_v1  ;;  %v12448_v4 = vld [vmem:[#allocation25_spill] sm:$0xff]  ;;  %v12461_v37 = vld [vmem:[#allocation54_spill] sm:$0xff]  ;;  %v1596_v26 = vld [vmem:[%s12278_s7 + $0x20] sm:$0xff]  ;;  %v1580_v63 = vmul.f32 %v1549_v21, %v12465_v48 }
 0x217   : > { %12444 = vst [vmem:[#allocation61_spill] sm:$0xff] %v10901_v5  ;;  %3085 = vrot.lane.b32.xlu1 %v2407_v41, %s9787_s30  ;;  %v2248_v8 = vmin.f32 %v2184_v22, 4.0  ;;  %v1597_v36 = vld [vmem:[%s12278_s7 + $0x28] sm:$0xff]  ;;  %v1581_v3 = vmul.f32 %v1549_v21, %v12466_v2  ;;  %v1534_v48 = vld [vmem:[%s12277_s6 + $0x30] sm:$0xff] }
 0x218   : > { %12447 = vst [vmem:[#allocation57_spill] sm:$0xff] %v10907_v47  ;;  %v2374_v49 = vmul.f32 0.25, %v9225_v43  ;;  %v1644_v40 = vadd.f32 %v1613_v27, %v1580_v63  ;;  %v12467_v25 = vld [vmem:[#allocation28_spill] sm:$0xff]  ;;  %v12468_v43 = vld [vmem:[#allocation29_spill] sm:$0xff]  ;;  %v1535_v63 = vld [vmem:[%s12277_s6 + $0x38] sm:$0xff] }
 0x219   : > { %3069 = vrot.lane.b32.xlu0 %v2391_v16, %s9787_s30  ;;  %7963 = vmatpush3.bf16.msra.mxu0 %v2391_v16  ;;  %v9227_v13 = vround.rtne.f32 %v2248_v8  ;;  %v1533_v16 = vld [vmem:[%s12277_s6 + $0x28] sm:$0xff]  ;;  %v1645_v41 = vadd.f32 %v1613_v27, %v1581_v3  ;;  %v1582_v61 = vmul.f32 %v1554_v20, %v12467_v25  ;;  %v1583_v8 = vmul.f32 %v1554_v20, %v12468_v43  ;;  %v1598_v3 = vld [vmem:[%s12278_s7 + $0x30] sm:$0xff] }
 0x21a   : > { %v1660_v22 = vmax.f32 %v1644_v40, 0.0 }
 0x21b   : > { %v2376_v14 = vmul.f32 0.25, %v9227_v13  ;;  %3170 = vrot.lane.b32.xlu1 %v12448_v4, %s9788_s23  ;;  %v1661_v39 = vmax.f32 %v1645_v41, 0.0  ;;  %v1599_v41 = vld [vmem:[%s12278_s7 + $0x38] sm:$0xff] }
 0x21d   : > { %3172 = vrot.lane.b32.xlu0 %v12449_v24, %s9788_s23  ;;  %v10913_v58 = vpack.c.bf16 %v2376_v14, %v2374_v49  ;;  %v1676_v49 = vmin.f32 %v1660_v22, 4.0  ;;  %v1677_v14 = vmin.f32 %v1661_v39, 4.0 }
 0x21f   : > { %12450 = vst [vmem:[#allocation59_spill] sm:$0xff] %v10913_v58  ;;  %3174 = vrot.lane.b32.xlu1 %v12451_v12, %s9788_s23  ;;  %v9152_v21 = vround.rtne.f32 %v1676_v49 }
 0x221   : > { %3176 = vrot.lane.b32.xlu0 %v12452_v15, %s9788_s23  ;;  %v1708_v27 = vmul.f32 0.25, %v9152_v21 }
 0x223   : > { %3178 = vrot.lane.b32.xlu1 %v12453_v29, %s9788_s23 }
 0x225   : > { %3180 = vrot.lane.b32.xlu0 %v12454_v11, %s9788_s23 }
 0x227   : > { %3182 = vrot.lane.b32.xlu1 %v12455_v9, %s9788_s23 }
 0x229   : > { %3184 = vrot.lane.b32.xlu0 %v12456_v10, %s9788_s23 }
 0x22b   : > { %3186 = vrot.lane.b32.xlu1 %v12457_v55, %s9788_s23 }
 0x22d   : > { %3188 = vrot.lane.b32.xlu0 %v12458_v32, %s9788_s23 }
 0x22f   : > { %3190 = vrot.lane.b32.xlu1 %v12459_v17, %s9788_s23 }
 0x231   : > { %3192 = vrot.lane.b32.xlu0 %v12460_v34, %s9788_s23 }
 0x233   : > { %1538 = vperm.xlu1 %9530, %v1528_v31  }
 0x235   : > { %1543 = vperm.xlu0 %9529, %v1529_v44  }
 0x237   : > { %1602 = vperm.xlu1 %9530, %v1592_v33  }
 0x239   : > { %1607 = vperm.xlu0 %9529, %v1593_v62  }
 0x23b   : > { %3194 = vrot.lane.b32.xlu1 %v12461_v37, %s9788_s23 }
 0x23d   : > { %3196 = vrot.lane.b32.xlu0 %v12462_v6, %s9788_s23 }
 0x23e   : > { %v3072_v1 = vpop.permute.xlu0 %3071 }
 0x23f   : > { %3198 = vrot.lane.b32.xlu1 %v12463_v7, %s9788_s23  ;;  %8004 = vmatprep.subr.bf16.mxu1 %v3072_v1  ;;  %v9153_v1 = vround.rtne.f32 %v1677_v14 }
 0x241   : > { %3200 = vrot.lane.b32.xlu0 %v12464_v19, %s9788_s23  ;;  %s9789_s23 = smov 96  }
 0x243   : > { %1558 = vperm.xlu1 %9530, %v1532_v54  }
 0x245   : > { %1563 = vperm.xlu0 %9529, %v1533_v16  }
 0x247   : > { %1622 = vperm.xlu1 %9530, %v1596_v26  }
 0x249   : > { %1627 = vperm.xlu0 %9529, %v1597_v36   ;;  %v3074_v38 = vpop.permute.xlu1 %3073  ;;  %v3056_v45 = vpop.permute.xlu0 %3055  ;;  %v1709_v36 = vmul.f32 0.25, %v9153_v1 }
 0x24a   : > { %8005 = vmatpush3.bf16.msra.mxu1 %v3056_v45 }
 0x24b   : > { %4265 = vrot.lane.b32.xlu1 %v12448_v4, %s9789_s23  ;;  %8006 = vmatprep.subr.bf16.mxu1 %v3074_v38 }
 0x24d   : > { %4267 = vrot.lane.b32.xlu0 %v12449_v24, %s9789_s23 }
 0x24f   : > { %4269 = vrot.lane.b32.xlu1 %v12451_v12, %s9789_s23 }
 0x250   : > { %v3058_v57 = vpop.permute.xlu1 %3057 }
 0x251   : > { %4271 = vrot.lane.b32.xlu0 %v12452_v15, %s9789_s23  ;;  %v3076_v50 = vpop.permute.xlu0 %3075  ;;  %8007 = vmatpush3.bf16.msra.mxu1 %v3058_v57 }
 0x252   : > { %8008 = vmatprep.subr.bf16.mxu1 %v3076_v50 }
 0x253   : > { %4273 = vrot.lane.b32.xlu1 %v12453_v29, %s9789_s23 }
 0x255   : > { %4275 = vrot.lane.b32.xlu0 %v12454_v11, %s9789_s23 }
 0x257   : > { %4277 = vrot.lane.b32.xlu1 %v12455_v9, %s9789_s23 }
 0x259   : > { %4279 = vrot.lane.b32.xlu0 %v12456_v10, %s9789_s23 }
 0x25b   : > { %4281 = vrot.lane.b32.xlu1 %v12457_v55, %s9789_s23 }
 0x25d   : > { %4283 = vrot.lane.b32.xlu0 %v12458_v32, %s9789_s23 }
 0x25e   : > { %v3060_v0 = vpop.permute.xlu1 %3059 }
 0x25f   : > { %4285 = vrot.lane.b32.xlu1 %v12459_v17, %s9789_s23  ;;  %8009 = vmatpush3.bf16.msra.mxu1 %v3060_v0 }
 0x261   : > { %4287 = vrot.lane.b32.xlu0 %v12460_v34, %s9789_s23 }
 0x262   : > { %v1618_v13 = vpop.permute.xlu0 %1617 }
 0x263   : > { %4289 = vrot.lane.b32.xlu1 %v12461_v37, %s9789_s23  ;;  %v1646_v31 = vadd.f32 %v1618_v13, %v1582_v61  ;;  %v1647_v44 = vadd.f32 %v1618_v13, %v1583_v8 }
 0x265   : > { %4291 = vrot.lane.b32.xlu0 %v12462_v6, %s9789_s23  ;;  %v1662_v33 = vmax.f32 %v1646_v31, 0.0  ;;  %v1663_v62 = vmax.f32 %v1647_v44, 0.0 }
 0x267   : > { %4293 = vrot.lane.b32.xlu1 %v12463_v7, %s9789_s23  ;;  %v1678_v20 = vmin.f32 %v1662_v33, 4.0  ;;  %v1679_v54 = vmin.f32 %v1663_v62, 4.0 }
 0x269   : > { %4295 = vrot.lane.b32.xlu0 %v12464_v19, %s9789_s23  ;;  %v9154_v16 = vround.rtne.f32 %v1678_v20  ;;  %v9155_v26 = vround.rtne.f32 %v1679_v54  ;;  %s12550_s23 = sld [smem:[#allocation18_spill]] }
 0x26b   : > { %5140 = vrot.lane.b32.xlu1 %v10856_v28, %s9787_s30  ;;  %v1710_v38 = vmul.f32 0.25, %v9154_v16  ;;  %v1711_v45 = vmul.f32 0.25, %v9155_v26 }
 0x26d   : > { %5124 = vrot.lane.b32.xlu0 %v10852_v52, %s9787_s30  ;;  %v1722_v57 = vpack.c.bf16 %v1710_v38, %v1708_v27  ;;  %v1723_v50 = vpack.c.bf16 %v1711_v45, %v1709_v36  ;;  %v12469_v38 = vld [vmem:[#allocation20_spill] sm:$0xff] }
 0x26f   : > { %5142 = vrot.lane.b32.xlu1 %v10866_v59, %s9787_s30  ;;  %3135 = vmatprep.mubr.bf16.mxu1 %v1723_v50  ;;  %p12552_p10 = scmp.ne.s32.totalorder %s12550_s23, 0 }
 0x271   : > { %5126 = vrot.lane.b32.xlu0 %v10860_v60, %s9787_s30  ;;  %p9713_p2 = pnand %p9712_p12, %p12552_p10 }
 0x273   : > { %5144 = vrot.lane.b32.xlu1 %v10874_v23, %s9787_s30  ;;  %p9714_p3 = pneg %p9713_p2 }
 0x275   : > { %5128 = vrot.lane.b32.xlu0 %v10870_v53, %s9787_s30 }
 0x277   : > { %1568 = vperm.xlu1 %9530, %v1534_v48  }
 0x278   : > { %v3078_v2 = vpop.permute.xlu1 %3077 }
 0x279   : > { %8010 = vmatprep.subr.bf16.mxu1 %v3078_v2  ;;  %v3062_v40 = vpop.permute.xlu0 %3061  ;;  %1573 = vperm.xlu0 %9529, %v1535_v63   ;;  %v12471_v63 = vld [vmem:[#allocation22_spill] sm:$0xff] }
 0x27a   : > { %8011 = vmatpush3.bf16.msra.mxu1 %v3062_v40 }
 0x27b   : > { %1632 = vperm.xlu1 %9530, %v1598_v3   ;;  %v12472_v3 = vld [vmem:[#allocation24_spill] sm:$0xff] }
 0x27d   : > { %1637 = vperm.xlu0 %9529, %v1599_v41   ;;  %v3080_v22 = vpop.permute.xlu1 %3079 }
 0x27e   : > { %8012 = vmatprep.subr.bf16.mxu1 %v3080_v22 }
 0x27f   : > { %v3064_v39 = vpop.permute.xlu0 %3063  ;;  %5146 = vrot.lane.b32.xlu1 %v10882_v51, %s9787_s30 }
 0x280   : > { %8013 = vmatpush3.bf16.msra.mxu1 %v3064_v39 }
 0x281   : > { %5130 = vrot.lane.b32.xlu0 %v10878_v35, %s9787_s30  ;;  %v3082_v0 = vpop.permute.xlu1 %3081 }
 0x282   : > { %8014 = vmatprep.subr.bf16.mxu1 %v3082_v0 }
 0x283   : > { %v3066_v25 = vpop.permute.xlu0 %3065  ;;  %5148 = vrot.lane.b32.xlu1 %v10891_v46, %s9787_s30 }
 0x284   : > { %8015 = vmatpush3.bf16.msra.mxu1 %v3066_v25 }
 0x285   : > { %5132 = vrot.lane.b32.xlu0 %v10886_v42, %s9787_s30  ;;  %v3084_v61 = vpop.permute.xlu1 %3083 }
 0x286   : > { %8016 = vmatprep.subr.bf16.mxu1 %v3084_v61 }
 0x287   : > { %v3068_v43 = vpop.permute.xlu0 %3067  ;;  %5150 = vrot.lane.b32.xlu1 %v10897_v56, %s9787_s30 }
 0x288   : > { %8017 = vmatpush3.bf16.msra.mxu1 %v3068_v43 }
 0x289   : > { %5134 = vrot.lane.b32.xlu0 %v10894_v18, %s9787_s30  ;;  %v3086_v8 = vpop.permute.xlu1 %3085 }
 0x28a   : > { %8018 = vmatprep.subr.bf16.mxu1 %v3086_v8 }
 0x28b   : > { %v3070_v13 = vpop.permute.xlu0 %3069  ;;  %5152 = vrot.lane.b32.xlu1 %v10903_v30, %s9787_s30 }
 0x28c   : > { %8019 = vmatpush3.bf16.msra.mxu1 %v3070_v13 }
 0x28d   : > { %5136 = vrot.lane.b32.xlu0 %v10901_v5, %s9787_s30  ;;  %v11029_v49 = vpop.permute.xlu1 %3170 }
 0x28f   : > { %3136 = vmatmul.mubr.bf16.vlgmr.msra.gmra.mrb[56].mxu1 %v1722_v57  ;;  %5154 = vrot.lane.b32.xlu1 %v10913_v58, %s9787_s30  ;;  %v11037_v14 = vpop.permute.xlu0 %3172  ;;  %v12470_v57 = vld [vmem:[#allocation21_spill] sm:$0xff] }
 0x290   : > { %8474 = vmatprep.mubr.msk.bf16.mxu1 %vm2492_vm1, %v11029_v49 }
 0x291   : > { %5138 = vrot.lane.b32.xlu0 %v10907_v47, %s9787_s30  ;;  %v11041_v31 = vpop.permute.xlu1 %3174 }
 0x293   : > { %5223 = vrot.lane.b32.xlu1 %v12448_v4, %s9790_s3  ;;  %v11044_v44 = vpop.permute.xlu0 %3176 }
 0x295   : > { %5225 = vrot.lane.b32.xlu0 %v12449_v24, %s9790_s3  ;;  %v11048_v33 = vpop.permute.xlu1 %3178 }
 0x297   : > { %5227 = vrot.lane.b32.xlu1 %v12451_v12, %s9790_s3  ;;  %v11051_v62 = vpop.permute.xlu0 %3180 }
 0x299   : > { %5229 = vrot.lane.b32.xlu0 %v12452_v15, %s9790_s3  ;;  %v11055_v21 = vpop.permute.xlu1 %3182 }
 0x29b   : > { %5231 = vrot.lane.b32.xlu1 %v12453_v29, %s9790_s3  ;;  %v11058_v1 = vpop.permute.xlu0 %3184 }
 0x29d   : > { %5233 = vrot.lane.b32.xlu0 %v12454_v11, %s9790_s3  ;;  %v11062_v20 = vpop.permute.xlu1 %3186 }
 0x29f   : > { %5235 = vrot.lane.b32.xlu1 %v12455_v9, %s9790_s3  ;;  %v11065_v54 = vpop.permute.xlu0 %3188 }
 0x2a1   : > { %5237 = vrot.lane.b32.xlu0 %v12456_v10, %s9790_s3  ;;  %v11069_v16 = vpop.permute.xlu1 %3190 }
 0x2a3   : > { %5239 = vrot.lane.b32.xlu1 %v12457_v55, %s9790_s3  ;;  %v11072_v26 = vpop.permute.xlu0 %3192 }
 0x2a5   : > { %5241 = vrot.lane.b32.xlu0 %v12458_v32, %s9790_s3 }
 0x2a7   : > { %5243 = vrot.lane.b32.xlu1 %v12459_v17, %s9790_s3 }
 0x2a9   : > { %5245 = vrot.lane.b32.xlu0 %v12460_v34, %s9790_s3 }
 0x2ab   : > { %5247 = vrot.lane.b32.xlu1 %v12461_v37, %s9790_s3 }
 0x2ad   : > { %5249 = vrot.lane.b32.xlu0 %v12462_v6, %s9790_s3 }
 0x2af   : > { %5251 = vrot.lane.b32.xlu1 %v12463_v7, %s9790_s3 }
 0x2b1   : > { %5253 = vrot.lane.b32.xlu0 %v12464_v19, %s9790_s3  ;;  %s9791_s3 = smov [#allocation8]  }
 0x2b2   : > { %v1539_v27 = vpop.permute.xlu1 %1538  ;;  %s9715_s30 = sshll.u32 %s9791_s3, 4  ;;  %s9716_s30 = int_to_ptr.vmem [resolvable:$false] %s9715_s30 }
 0x2b3   : > { %v1576_v45 = vmul.f32 %v1539_v27, %v12469_v38  ;;  %v1577_v50 = vmul.f32 %v1539_v27, %v12470_v57  ;;  %p9718_p4 = scmp.lt.s32.totalorder %s12221_s18, %s9716_s30 }
 0x2b4   : > { %v1544_v36 = vpop.permute.xlu0 %1543 }
 0x2b5   : > { %v1578_v2 = vmul.f32 %v1544_v36, %v12471_v63  ;;  %v1579_v40 = vmul.f32 %v1544_v36, %v12472_v3 }
 0x2b6   : > { %v1603_v48 = vpop.permute.xlu1 %1602 }
 0x2b7   : > { %v1640_v41 = vadd.f32 %v1603_v48, %v1576_v45  ;;  %v1641_v22 = vadd.f32 %v1603_v48, %v1577_v50 }
 0x2b8   : > { %v1608_v39 = vpop.permute.xlu0 %1607 }
 0x2b9   : > { %v1656_v0 = vmax.f32 %v1640_v41, 0.0  ;;  %v1657_v25 = vmax.f32 %v1641_v22, 0.0  ;;  %v1642_v61 = vadd.f32 %v1608_v39, %v1578_v2  ;;  %v1643_v43 = vadd.f32 %v1608_v39, %v1579_v40 }
 0x2ba   : > { %v11079_v8 = vpop.permute.xlu1 %3194 }
 0x2bb   : > { %v1672_v13 = vmin.f32 %v1656_v0, 4.0  ;;  %v1673_v19 = vmin.f32 %v1657_v25, 4.0  ;;  %v1658_v7 = vmax.f32 %v1642_v61, 0.0  ;;  %v1659_v38 = vmax.f32 %v1643_v43, 0.0  ;;  %v12473_v61 = vld [vmem:[#allocation31_spill] sm:$0xff] }
 0x2bc   : > { %v11081_v6 = vpop.permute.xlu0 %3196 }
 0x2bd   : > { %v9148_v27 = vround.rtne.f32 %v1672_v13  ;;  %v9149_v57 = vround.rtne.f32 %v1673_v19  ;;  %v1674_v63 = vmin.f32 %v1658_v7, 4.0  ;;  %v1675_v37 = vmin.f32 %v1659_v38, 4.0  ;;  %v12474_v13 = vld [vmem:[#allocation33_spill] sm:$0xff]  ;;  %v12475_v38 = vld [vmem:[#allocation34_spill] sm:$0xff] }
 0x2be   : > { %v11083_v36 = vpop.permute.xlu1 %3198 }
 0x2bf   : > { %v1704_v45 = vmul.f32 0.25, %v9148_v27  ;;  %v1705_v50 = vmul.f32 0.25, %v9149_v57  ;;  %v9150_v48 = vround.rtne.f32 %v1674_v63  ;;  %v9151_v3 = vround.rtne.f32 %v1675_v37  ;;  %v12476_v57 = vld [vmem:[#allocation35_spill] sm:$0xff] }
 0x2c0   : > { %v11085_v2 = vpop.permute.xlu0 %3200 }
 0x2c1   : > { %v1706_v40 = vmul.f32 0.25, %v9150_v48  ;;  %v1707_v41 = vmul.f32 0.25, %v9151_v3 }
 0x2c2   : > { %v1559_v22 = vpop.permute.xlu1 %1558 }
 0x2c3   : > { %v1720_v39 = vpack.c.bf16 %v1706_v40, %v1704_v45  ;;  %v1721_v0 = vpack.c.bf16 %v1707_v41, %v1705_v50  ;;  %v1584_v43 = vmul.f32 %v1559_v22, %v12473_v61  ;;  %v1585_v19 = vmul.f32 %v1559_v22, %v12474_v13 }
 0x2c4   : > { %v1564_v25 = vpop.permute.xlu0 %1563 }
 0x2c5   : > { %2473 = vmatprep.mubr.bf16.mxu0 %v1721_v0  ;;  %v1586_v27 = vmul.f32 %v1564_v25, %v12475_v38  ;;  %v1587_v63 = vmul.f32 %v1564_v25, %v12476_v57 }
 0x2c6   : > { %2474 = vmatmul.mubr.bf16.vlgmr.msra.gmra.mrb[56].mxu0 %v1720_v39  ;;  %v1623_v7 = vpop.permute.xlu1 %1622 }
 0x2c7   : > { %8406 = vmatprep.mubr.msk.bf16.mxu0 %vm2492_vm1, %v12448_v4  ;;  %v1648_v37 = vadd.f32 %v1623_v7, %v1584_v43  ;;  %v1649_v48 = vadd.f32 %v1623_v7, %v1585_v19 }
 0x2c8   : > { %v1628_v3 = vpop.permute.xlu0 %1627 }
 0x2c9   : > { %v1650_v45 = vadd.f32 %v1628_v3, %v1586_v27  ;;  %v1651_v50 = vadd.f32 %v1628_v3, %v1587_v63  ;;  %v1664_v40 = vmax.f32 %v1648_v37, 0.0  ;;  %v1665_v41 = vmax.f32 %v1649_v48, 0.0 }
 0x2ca   : > { %v11093_v61 = vpop.permute.xlu1 %4265 }
 0x2cb   : > { %12477 = vst [vmem:[#allocation60_spill] sm:$0xff] %v11093_v61  ;;  %v1666_v22 = vmax.f32 %v1650_v45, 0.0  ;;  %v1667_v0 = vmax.f32 %v1651_v50, 0.0  ;;  %v1680_v39 = vmin.f32 %v1664_v40, 4.0  ;;  %v1681_v13 = vmin.f32 %v1665_v41, 4.0 }
 0x2cc   : > { %v11095_v34 = vpop.permute.xlu0 %4267 }
 0x2cd   : > { %12478 = vst [vmem:[#allocation62_spill] sm:$0xff] %v11095_v34  ;;  %v1682_v38 = vmin.f32 %v1666_v22, 4.0  ;;  %v1683_v25 = vmin.f32 %v1667_v0, 4.0  ;;  %v9156_v57 = vround.rtne.f32 %v1680_v39  ;;  %v9157_v47 = vround.rtne.f32 %v1681_v13 }
 0x2ce   : > { %v11097_v4 = vpop.permute.xlu1 %4269 }
 0x2cf   : > { %12479 = vst [vmem:[#allocation63_spill] sm:$0xff] %v11097_v4  ;;  %v9158_v43 = vround.rtne.f32 %v1682_v38  ;;  %v9159_v19 = vround.rtne.f32 %v1683_v25  ;;  %v11099_v7 = vmul.f32 0.25, %v9156_v57  ;;  %v11101_v27 = vmul.f32 0.25, %v9157_v47 }
 0x2d0   : > { %v11103_v63 = vpop.permute.xlu0 %4271 }
 0x2d1   : > { %12480 = vst [vmem:[#allocation49_spill] sm:$0xff] %v11099_v7  ;;  %12481 = vst [vmem:[#allocation51_spill] sm:$0xff] %v11101_v27  ;;  %v11105_v37 = vmul.f32 0.25, %v9158_v43  ;;  %v11107_v48 = vmul.f32 0.25, %v9159_v19 }
 0x2d2   : > { %12482 = vst [vmem:[#allocation53_spill] sm:$0xff] %v11103_v63  ;;  %v11109_v3 = vpop.permute.xlu1 %4273 }
 0x2d3   : > { %12483 = vst [vmem:[#allocation55_spill] sm:$0xff] %v11105_v37  ;;  %12484 = vst [vmem:[#allocation23_spill] sm:$0xff] %v11107_v48 }
 0x2d4   : > { %12485 = vst [vmem:[#allocation32_spill] sm:$0xff] %v11109_v3  ;;  %v11115_v40 = vpop.permute.xlu0 %4275 }
 0x2d5   : > { %12486 = vst [vmem:[#allocation30_spill] sm:$0xff] %v11115_v40 }
 0x2d6   : > { %v11117_v41 = vpop.permute.xlu1 %4277 }
 0x2d7   : > { %12487 = vst [vmem:[#allocation42_spill] sm:$0xff] %v11117_v41  ;;  %v12504_v41 = vld [vmem:[#allocation40_spill] sm:$0xff] }
 0x2d8   : > { %v11119_v47 = vpop.permute.xlu0 %4279 }
 0x2d9   : > { %12488 = vst [vmem:[#allocation38_spill] sm:$0xff] %v11119_v47  ;;  %v12503_v47 = vld [vmem:[#allocation39_spill] sm:$0xff] }
 0x2da   : > { %v11121_v22 = vpop.permute.xlu1 %4281 }
 0x2db   : > { %12489 = vst [vmem:[#allocation45_spill] sm:$0xff] %v11121_v22 }
 0x2dc   : > { %v11123_v0 = vpop.permute.xlu0 %4283 }
 0x2dd   : > { %12490 = vst [vmem:[#allocation44_spill] sm:$0xff] %v11123_v0 }
 0x2de   : > { %v11125_v39 = vpop.permute.xlu1 %4285 }
 0x2df   : > { %12491 = vst [vmem:[#allocation47_spill] sm:$0xff] %v11125_v39 }
 0x2e0   : > { %v11127_v13 = vpop.permute.xlu0 %4287 }
 0x2e1   : > { %12492 = vst [vmem:[#allocation46_spill] sm:$0xff] %v11127_v13 }
 0x2e2   : > { %v11129_v38 = vpop.permute.xlu1 %4289 }
 0x2e3   : > { %12493 = vst [vmem:[#allocation50_spill] sm:$0xff] %v11129_v38 }
 0x2e4   : > { %v11131_v25 = vpop.permute.xlu0 %4291 }
 0x2e5   : > { %12494 = vst [vmem:[#allocation26_spill] sm:$0xff] %v11131_v25 }
 0x2e6   : > { %v11133_v57 = vpop.permute.xlu1 %4293 }
 0x2e7   : > { %12495 = vst [vmem:[#allocation27_spill] sm:$0xff] %v11133_v57 }
 0x2e8   : > { %v11135_v43 = vpop.permute.xlu0 %4295 }
 0x2e9   : > { %12496 = vst [vmem:[#allocation28_spill] sm:$0xff] %v11135_v43  ;;  %v12505_v43 = vld [vmem:[#allocation41_spill] sm:$0xff] }
 0x2ea   : > { %v11137_v19 = vpop.permute.xlu1 %5140 }
 0x2eb   : > { %12497 = vst [vmem:[#allocation29_spill] sm:$0xff] %v11137_v19  ;;  %v12506_v19 = vld [vmem:[#allocation43_spill] sm:$0xff] }
 0x2ec   : > { %v11139_v45 = vpop.permute.xlu0 %5124 }
 0x2ed   : > { %12498 = vst [vmem:[#allocation20_spill] sm:$0xff] %v11139_v45 }
 0x2ee   : > { %v11141_v50 = vpop.permute.xlu1 %5142 }
 0x2ef   : > { %12499 = vst [vmem:[#allocation21_spill] sm:$0xff] %v11141_v50 }
 0x2f0   : > { %v11143_v22 = vpop.permute.xlu0 %5126 }
 0x2f1   : > { %12500 = vst [vmem:[#allocation22_spill] sm:$0xff] %v11143_v22 }
 0x2f2   : > { %v11145_v0 = vpop.permute.xlu1 %5144 }
 0x2f3   : > { %12501 = vst [vmem:[#allocation24_spill] sm:$0xff] %v11145_v0 }
 0x2f4   : > { %v11147_v39 = vpop.permute.xlu0 %5128 }
 0x2f5   : > { %12502 = vst [vmem:[#allocation31_spill] sm:$0xff] %v11147_v39 }
 0x2f6   : > { %v1569_v13 = vpop.permute.xlu1 %1568 }
 0x2f7   : > { %v1588_v25 = vmul.f32 %v1569_v13, %v12503_v47  ;;  %v1589_v57 = vmul.f32 %v1569_v13, %v12504_v41 }
 0x2f8   : > { %v1574_v38 = vpop.permute.xlu0 %1573 }
 0x2f9   : > { %v1590_v3 = vmul.f32 %v1574_v38, %v12505_v43  ;;  %v1591_v63 = vmul.f32 %v1574_v38, %v12506_v19 }
 0x2fa   : > { %v1633_v40 = vpop.permute.xlu1 %1632 }
 0x2fb   : > { %v1652_v45 = vadd.f32 %v1633_v40, %v1588_v25  ;;  %v1653_v4 = vadd.f32 %v1633_v40, %v1589_v57 }
 0x2fc   : > { %v1638_v50 = vpop.permute.xlu0 %1637 }
 0x2fd   : > { %v1654_v34 = vadd.f32 %v1638_v50, %v1590_v3  ;;  %v1655_v22 = vadd.f32 %v1638_v50, %v1591_v63  ;;  %v1668_v61 = vmax.f32 %v1652_v45, 0.0  ;;  %v1669_v0 = vmax.f32 %v1653_v4, 0.0 }
 0x2ff   : > { %v1670_v7 = vmax.f32 %v1654_v34, 0.0  ;;  %v1671_v39 = vmax.f32 %v1655_v22, 0.0  ;;  %v1684_v37 = vmin.f32 %v1668_v61, 4.0  ;;  %v1685_v27 = vmin.f32 %v1669_v0, 4.0 }
 0x301   : > { %v1686_v48 = vmin.f32 %v1670_v7, 4.0  ;;  %v1687_v47 = vmin.f32 %v1671_v39, 4.0  ;;  %v9160_v58 = vround.rtne.f32 %v1684_v37  ;;  %v9161_v41 = vround.rtne.f32 %v1685_v27 }
 0x303   : > { %v9162_v13 = vround.rtne.f32 %v1686_v48  ;;  %v9163_v5 = vround.rtne.f32 %v1687_v47  ;;  %v11153_v43 = vmul.f32 0.25, %v9160_v58  ;;  %v11155_v38 = vmul.f32 0.25, %v9161_v41 }
 0x305   : > { %v11157_v40 = vmul.f32 0.25, %v9162_v13  ;;  %v11159_v3 = vmul.f32 0.25, %v9163_v5 }
 0x307   : > { %v1726_v4 = vpack.c.bf16 %v11157_v40, %v11153_v43  ;;  %v1727_v34 = vpack.c.bf16 %v11159_v3, %v11155_v38  ;;  %v9563_v43 = vld [vmem:[%s12282_s11 + $0x60] sm:$0xff]  }
 0x362   : > { %v8020_v61 = vpop.f32.mrb[56].mxu1 }
 0x363   : > { %v8021_v7 = vpop.f32.mrb[57].mxu1 }
 0x364   : > { %v8022_v63 = vadd.f32 %v8021_v7, %v8020_v61  ;;  %v8023_v27 = vpop.f32.mrb[58].mxu1 }
 0x365   : > { %v8024_v37 = vpop.f32.mrb[59].mxu1 }
 0x366   : > { %v3144_v48 = vmul.f32 0.0625, %v8022_v63  ;;  %v8025_v58 = vadd.f32 %v8024_v37, %v8023_v27 }
 0x368   : > { %v3146_v45 = vfloor.f32 %v3144_v48  ;;  %v3145_v50 = vmul.f32 0.0625, %v8025_v58 }
 0x36a   : > { %v3148_v22 = vmul.f32 16.0, %v3146_v45  ;;  %v3147_v0 = vfloor.f32 %v3145_v50 }
 0x36c   : > { %v3149_v39 = vmul.f32 16.0, %v3147_v0  ;;  %v3150_v5 = vsub.f32 %v8022_v63, %v3148_v22 }
 0x36e   : > { %v3151_v25 = vsub.f32 %v8025_v58, %v3149_v39  ;;  %v3152_v57 = vpack.c.bf16 %v3149_v39, %v3148_v22 }
 0x370   : > { %v3153_v19 = vpack.c.bf16 %v3151_v25, %v3150_v5 }
 0x372   : > { %8472 = vmatprep.subr.bf16.mxu1 %v3153_v19 }
 0x373   : > { %8473 = vmatpush3.bf16.msra.mxu1 %v3153_v19 }
 0x374   : > { %8506 = vmatprep.subr.bf16.mxu1 %v3152_v57 }
 0x376   : > { %8475 = vmatmul.mubr.msk.bf16.vlgmr.msra.gmra.mrb[60].mxu1 %vm2492_vm1, %v11037_v14 }
 0x377   : > { %8478 = vmatprep.mubr.msk.bf16.mxu1 %vm2492_vm1, %v11041_v31  ;;  %8507 = vmatpush3.bf16.msra.mxu1 %v3152_v57 }
 0x378   : > { %8100 = vmatprep.subr.bf16.mxu1 %v10856_v28 }
 0x37e   : > { %8479 = vmatmul.mubr.msk.bf16.gmra.mrb[64].mxu1 %vm2492_vm1, %v11044_v44 }
 0x37f   : > { %8482 = vmatprep.mubr.msk.bf16.mxu1 %vm2492_vm1, %v11048_v33 }
 0x386   : > { %8483 = vmatmul.mubr.msk.bf16.gmra.mrb[68].mxu1 %vm2492_vm1, %v11051_v62 }
 0x387   : > { %8486 = vmatprep.mubr.msk.bf16.mxu1 %vm2492_vm1, %v11055_v21 }
 0x38e   : > { %8487 = vmatmul.mubr.msk.bf16.gmra.mrb[72].mxu1 %vm2492_vm1, %v11058_v1 }
 0x38f   : > { %8490 = vmatprep.mubr.msk.bf16.mxu1 %vm2492_vm1, %v11062_v20 }
 0x396   : > { %8491 = vmatmul.mubr.msk.bf16.gmra.mrb[76].mxu1 %vm2492_vm1, %v11065_v54 }
 0x397   : > { %8494 = vmatprep.mubr.msk.bf16.mxu1 %vm2492_vm1, %v11069_v16 }
 0x399   : > { %v7964_v28 = vpop.f32.mrb[56].mxu0 }
 0x39a   : > { %v7965_v47 = vpop.f32.mrb[57].mxu0 }
 0x39b   : > { %v7966_v41 = vadd.f32 %v7965_v47, %v7964_v28  ;;  %v7967_v13 = vpop.f32.mrb[58].mxu0 }
 0x39c   : > { %v7968_v61 = vpop.f32.mrb[59].mxu0 }
 0x39d   : > { %v2482_v7 = vmul.f32 0.0625, %v7966_v41  ;;  %v7969_v63 = vadd.f32 %v7968_v61, %v7967_v13 }
 0x39e   : > { %8495 = vmatmul.mubr.msk.bf16.gmra.mrb[80].mxu1 %vm2492_vm1, %v11072_v26 }
 0x39f   : > { %v2484_v27 = vfloor.f32 %v2482_v7  ;;  %v2483_v37 = vmul.f32 0.0625, %v7969_v63  ;;  %8498 = vmatprep.mubr.msk.bf16.mxu1 %vm2492_vm1, %v11079_v8 }
 0x3a1   : > { %v2486_v48 = vmul.f32 16.0, %v2484_v27  ;;  %v2485_v58 = vfloor.f32 %v2483_v37 }
 0x3a3   : > { %v2487_v45 = vmul.f32 16.0, %v2485_v58  ;;  %v2488_v50 = vsub.f32 %v7966_v41, %v2486_v48 }
 0x3a5   : > { %v2489_v22 = vsub.f32 %v7969_v63, %v2487_v45  ;;  %v2490_v0 = vpack.c.bf16 %v2487_v45, %v2486_v48 }
 0x3a6   : > { %8499 = vmatmul.mubr.msk.bf16.gmra.mrb[84].mxu1 %vm2492_vm1, %v11081_v6 }
 0x3a7   : > { %8502 = vmatprep.mubr.msk.bf16.mxu1 %vm2492_vm1, %v11083_v36  ;;  %v2491_v39 = vpack.c.bf16 %v2489_v22, %v2488_v50 }
 0x3a9   : > { %8404 = vmatprep.subr.bf16.mxu0 %v2491_v39 }
 0x3aa   : > { %8405 = vmatpush3.bf16.msra.mxu0 %v2491_v39 }
 0x3ab   : > { %8438 = vmatprep.subr.bf16.mxu0 %v2490_v0 }
 0x3ad   : > { %8407 = vmatmul.mubr.msk.bf16.vlgmr.msra.gmra.mrb[60].mxu0 %vm2492_vm1, %v12449_v24 }
 0x3ae   : > { %8410 = vmatprep.mubr.msk.bf16.mxu0 %vm2492_vm1, %v12451_v12  ;;  %8439 = vmatpush3.bf16.msra.mxu0 %v2490_v0 }
 0x3af   : > { %8503 = vmatmul.mubr.msk.bf16.gmra.mrb[88].mxu1 %vm2492_vm1, %v11085_v2 }
 0x3b0   : > { %8508 = vmatprep.mubr.msk.bf16.mxu1 %vm2492_vm1, %v11029_v49  ;;  %v12520_v49 = vld [vmem:[#allocation49_spill] sm:$0xff] }
 0x3b5   : > { %8411 = vmatmul.mubr.msk.bf16.gmra.mrb[64].mxu0 %vm2492_vm1, %v12452_v15 }
 0x3b6   : > { %8414 = vmatprep.mubr.msk.bf16.mxu0 %vm2492_vm1, %v12453_v29 }
 0x3b7   : > { %8509 = vmatmul.mubr.msk.bf16.vlgmr.msra.gmra.mrb[60].mxu1 %vm2492_vm1, %v11037_v14 }
 0x3b8   : > { %8101 = vmatpush3.bf16.msra.mxu1 %v10852_v52  ;;  %8512 = vmatprep.mubr.msk.bf16.mxu1 %vm2492_vm1, %v11041_v31  ;;  %v12507_v52 = vld [vmem:[#allocation61_spill] sm:$0xff] }
 0x3b9   : > { %8102 = vmatprep.subr.bf16.mxu1 %v10866_v59  ;;  %v12509_v59 = vld [vmem:[#allocation57_spill] sm:$0xff] }
 0x3bc   : > { %8103 = vmatpush3.bf16.msra.mxu1 %v10860_v60  ;;  %v12508_v60 = vld [vmem:[#allocation59_spill] sm:$0xff] }
 0x3bd   : > { %8104 = vmatprep.subr.bf16.mxu1 %v10874_v23  ;;  %8415 = vmatmul.mubr.msk.bf16.gmra.mrb[68].mxu0 %vm2492_vm1, %v12454_v11  ;;  %v12511_v23 = vld [vmem:[#allocation54_spill] sm:$0xff] }
 0x3be   : > { %8418 = vmatprep.mubr.msk.bf16.mxu0 %vm2492_vm1, %v12455_v9 }
 0x3bf   : > { %8513 = vmatmul.mubr.msk.bf16.gmra.mrb[64].mxu1 %vm2492_vm1, %v11044_v44 }
 0x3c0   : > { %8105 = vmatpush3.bf16.msra.mxu1 %v10870_v53  ;;  %8516 = vmatprep.mubr.msk.bf16.mxu1 %vm2492_vm1, %v11048_v33  ;;  %v12510_v53 = vld [vmem:[#allocation48_spill] sm:$0xff] }
 0x3c1   : > { %8106 = vmatprep.subr.bf16.mxu1 %v10882_v51  ;;  %v12513_v51 = vld [vmem:[#allocation58_spill] sm:$0xff] }
 0x3c4   : > { %8107 = vmatpush3.bf16.msra.mxu1 %v10878_v35  ;;  %v12512_v35 = vld [vmem:[#allocation52_spill] sm:$0xff] }
 0x3c5   : > { %8108 = vmatprep.subr.bf16.mxu1 %v10891_v46  ;;  %8419 = vmatmul.mubr.msk.bf16.gmra.mrb[72].mxu0 %vm2492_vm1, %v12456_v10  ;;  %v12515_v46 = vld [vmem:[#allocation25_spill] sm:$0xff] }
 0x3c6   : > { %8422 = vmatprep.mubr.msk.bf16.mxu0 %vm2492_vm1, %v12457_v55 }
 0x3c7   : > { %8517 = vmatmul.mubr.msk.bf16.gmra.mrb[68].mxu1 %vm2492_vm1, %v11051_v62 }
 0x3c8   : > { %8109 = vmatpush3.bf16.msra.mxu1 %v10886_v42  ;;  %8520 = vmatprep.mubr.msk.bf16.mxu1 %vm2492_vm1, %v11055_v21  ;;  %v12514_v42 = vld [vmem:[#allocation56_spill] sm:$0xff] }
 0x3c9   : > { %8110 = vmatprep.subr.bf16.mxu1 %v10897_v56  ;;  %v12517_v56 = vld [vmem:[#allocation51_spill] sm:$0xff] }
 0x3cc   : > { %8111 = vmatpush3.bf16.msra.mxu1 %v10894_v18  ;;  %v12516_v18 = vld [vmem:[#allocation23_spill] sm:$0xff] }
 0x3cd   : > { %8112 = vmatprep.subr.bf16.mxu1 %v10903_v30  ;;  %8423 = vmatmul.mubr.msk.bf16.gmra.mrb[76].mxu0 %vm2492_vm1, %v12458_v32  ;;  %v12518_v30 = vpack.c.bf16 %v12516_v18, %v12517_v56 }
 0x3ce   : > { %8426 = vmatprep.mubr.msk.bf16.mxu0 %vm2492_vm1, %v12459_v17 }
 0x3cf   : > { %8521 = vmatmul.mubr.msk.bf16.gmra.mrb[72].mxu1 %vm2492_vm1, %v11058_v1 }
 0x3d0   : > { %8113 = vmatpush3.bf16.msra.mxu1 %v12507_v52  ;;  %8524 = vmatprep.mubr.msk.bf16.mxu1 %vm2492_vm1, %v11062_v20 }
 0x3d1   : > { %8114 = vmatprep.subr.bf16.mxu1 %v12508_v60 }
 0x3d4   : > { %8115 = vmatpush3.bf16.msra.mxu1 %v12509_v59 }
 0x3d5   : > { %8427 = vmatmul.mubr.msk.bf16.gmra.mrb[80].mxu0 %vm2492_vm1, %v12510_v53 }
 0x3d6   : > { %8430 = vmatprep.mubr.msk.bf16.mxu0 %vm2492_vm1, %v12511_v23 }
 0x3d7   : > { %8525 = vmatmul.mubr.msk.bf16.gmra.mrb[76].mxu1 %vm2492_vm1, %v11065_v54 }
 0x3d8   : > { %8528 = vmatprep.mubr.msk.bf16.mxu1 %vm2492_vm1, %v11069_v16 }
 0x3dd   : > { %8431 = vmatmul.mubr.msk.bf16.gmra.mrb[84].mxu0 %vm2492_vm1, %v12512_v35 }
 0x3de   : > { %8434 = vmatprep.mubr.msk.bf16.mxu0 %vm2492_vm1, %v12513_v51 }
 0x3df   : > { %8529 = vmatmul.mubr.msk.bf16.gmra.mrb[80].mxu1 %vm2492_vm1, %v11072_v26 }
 0x3e0   : > { %8532 = vmatprep.mubr.msk.bf16.mxu1 %vm2492_vm1, %v11079_v8 }
 0x3e5   : > { %8435 = vmatmul.mubr.msk.bf16.gmra.mrb[88].mxu0 %vm2492_vm1, %v12514_v42 }
 0x3e6   : > { %8440 = vmatprep.mubr.msk.bf16.mxu0 %vm2492_vm1, %v12515_v46 }
 0x3e7   : > { %8533 = vmatmul.mubr.msk.bf16.gmra.mrb[84].mxu1 %vm2492_vm1, %v11081_v6  ;;  %v12519_v6 = vld [vmem:[#allocation55_spill] sm:$0xff] }
 0x3e8   : > { %8536 = vmatprep.mubr.msk.bf16.mxu1 %vm2492_vm1, %v11083_v36  ;;  %v12521_v14 = vpack.c.bf16 %v12519_v6, %v12520_v49 }
 0x3ed   : > { %8441 = vmatmul.mubr.msk.bf16.vlgmr.msra.gmra.mrb[60].mxu0 %vm2492_vm1, %v12449_v24  ;;  %v12522_v24 = vld [vmem:[#allocation60_spill] sm:$0xff] }
 0x3ee   : > { %8444 = vmatprep.mubr.msk.bf16.mxu0 %vm2492_vm1, %v12451_v12  ;;  %v9551_v12 = vld [vmem:[%s12282_s11 + $0x20] sm:$0xff]  }
 0x3ef   : > { %8537 = vmatmul.mubr.msk.bf16.gmra.mrb[88].mxu1 %vm2492_vm1, %v11085_v2  ;;  %8540 = vmatprep.subr.bf16.mxu0 %v9551_v12 }
 0x3f0   : > { %4246 = vmatprep.mubr.bf16.mxu1 %v12518_v30  ;;  %8541 = vmatpush3.bf16.msra.mxu0 %v9551_v12 }
 0x3f5   : > { %8445 = vmatmul.mubr.msk.bf16.gmra.mrb[64].mxu0 %vm2492_vm1, %v12452_v15  ;;  %v9552_v15 = vld [vmem:[%s12282_s11 + $0x28] sm:$0xff]  }
 0x3f6   : > { %8448 = vmatprep.mubr.msk.bf16.mxu0 %vm2492_vm1, %v12453_v29  ;;  %8542 = vmatprep.subr.bf16.mxu0 %v9552_v15  ;;  %v9553_v29 = vld [vmem:[%s12282_s11 + $0x30] sm:$0xff]  }
 0x3f7   : > { %4247 = vmatmul.mubr.bf16.vlgmr.msra.gmra.mrb[92].mxu1 %v12521_v14  ;;  %8543 = vmatpush3.bf16.msra.mxu0 %v9552_v15 }
 0x3f8   : > { %8622 = vmatprep.mubr.msk.bf16.mxu1 %vm2492_vm1, %v12522_v24  ;;  %8544 = vmatprep.subr.bf16.mxu0 %v9553_v29 }
 0x3fb   : > { %8545 = vmatpush3.bf16.msra.mxu0 %v9553_v29 }
 0x3fd   : > { %8449 = vmatmul.mubr.msk.bf16.gmra.mrb[68].mxu0 %vm2492_vm1, %v12454_v11  ;;  %v9554_v11 = vld [vmem:[%s12282_s11 + $0x38] sm:$0xff]  }
 0x3fe   : > { %8452 = vmatprep.mubr.msk.bf16.mxu0 %vm2492_vm1, %v12455_v9  ;;  %8546 = vmatprep.subr.bf16.mxu0 %v9554_v11  ;;  %v9555_v9 = vld [vmem:[%s12282_s11] sm:$0xff]  }
 0x3ff   : > { %8547 = vmatpush3.bf16.msra.mxu0 %v9554_v11 }
 0x400   : > { %8580 = vmatprep.subr.bf16.mxu0 %v9555_v9 }
 0x405   : > { %8453 = vmatmul.mubr.msk.bf16.gmra.mrb[72].mxu0 %vm2492_vm1, %v12456_v10 }
 0x406   : > { %8456 = vmatprep.mubr.msk.bf16.mxu0 %vm2492_vm1, %v12457_v55 }
 0x40d   : > { %8457 = vmatmul.mubr.msk.bf16.gmra.mrb[76].mxu0 %vm2492_vm1, %v12458_v32 }
 0x40e   : > { %8460 = vmatprep.mubr.msk.bf16.mxu0 %vm2492_vm1, %v12459_v17 }
 0x415   : > { %8461 = vmatmul.mubr.msk.bf16.gmra.mrb[80].mxu0 %vm2492_vm1, %v12510_v53 }
 0x416   : > { %8464 = vmatprep.mubr.msk.bf16.mxu0 %vm2492_vm1, %v12511_v23 }
 0x41d   : > { %8465 = vmatmul.mubr.msk.bf16.gmra.mrb[84].mxu0 %vm2492_vm1, %v12512_v35  ;;  %v9556_v35 = vld [vmem:[%s12282_s11 + $0x8] sm:$0xff]  }
 0x41e   : > { %8468 = vmatprep.mubr.msk.bf16.mxu0 %vm2492_vm1, %v12513_v51 }
 0x425   : > { %8469 = vmatmul.mubr.msk.bf16.gmra.mrb[88].mxu0 %vm2492_vm1, %v12514_v42 }
 0x48a   : > { %v8510_v10 = vpop.f32.mrb[60].mxu1 }
 0x48b   : > { %v3574_v55 = vmul.f32 0.5, %v8510_v10  ;;  %v3445_v32 = vpop.f32.mrb[61].mxu1 }
 0x48c   : > { %v3572_v17 = vmul.f32 0.5, %v3445_v32  ;;  %v8511_v31 = vpop.f32.mrb[62].mxu1 }
 0x48d   : > { %v3606_v44 = vmax.f32 %v3574_v55, 0.0  ;;  %v3575_v33 = vmul.f32 0.5, %v8511_v31  ;;  %v3448_v62 = vpop.f32.mrb[63].mxu1  ;;  %v9557_v55 = vld [vmem:[%s12282_s11 + $0x10] sm:$0xff]  }
 0x48e   : > { %v3604_v21 = vmax.f32 %v3572_v17, 0.0  ;;  %v3573_v1 = vmul.f32 0.5, %v3448_v62 }
 0x48f   : > { %v3638_v20 = vmin.f32 %v3606_v44, 4.0  ;;  %v3607_v54 = vmax.f32 %v3575_v33, 0.0 }
 0x490   : > { %v3636_v16 = vmin.f32 %v3604_v21, 4.0  ;;  %v3605_v26 = vmax.f32 %v3573_v1, 0.0 }
 0x491   : > { %v9262_v8 = vround.rtne.f32 %v3638_v20  ;;  %v3639_v36 = vmin.f32 %v3607_v54, 4.0 }
 0x492   : > { %v9260_v2 = vround.rtne.f32 %v3636_v16  ;;  %v3637_v5 = vmin.f32 %v3605_v26, 4.0  ;;  %v8514_v25 = vpop.f32.mrb[64].mxu1  ;;  %v9558_v26 = vld [vmem:[%s12282_s11 + $0x18] sm:$0xff]  }
 0x493   : > { %v9263_v57 = vround.rtne.f32 %v3639_v36  ;;  %v3578_v19 = vmul.f32 0.5, %v8514_v25  ;;  %v3461_v28 = vpop.f32.mrb[65].mxu1  ;;  %v3702_v61 = vmul.f32 0.25, %v9262_v8 }
 0x494   : > { %v9261_v47 = vround.rtne.f32 %v3637_v5  ;;  %v3576_v41 = vmul.f32 0.5, %v3461_v28  ;;  %v8515_v13 = vpop.f32.mrb[66].mxu1  ;;  %v3700_v48 = vmul.f32 0.25, %v9260_v2 }
 0x495   : > { %v3703_v7 = vmul.f32 0.25, %v9263_v57  ;;  %v3610_v63 = vmax.f32 %v3578_v19, 0.0  ;;  %v3579_v27 = vmul.f32 0.5, %v8515_v13  ;;  %v3464_v37 = vpop.f32.mrb[67].mxu1 }
 0x496   : > { %v3701_v58 = vmul.f32 0.25, %v9261_v47  ;;  %v3608_v45 = vmax.f32 %v3576_v41, 0.0  ;;  %v3577_v50 = vmul.f32 0.5, %v3464_v37 }
 0x497   : > { %v3733_v22 = vpack.c.bf16 %v3703_v7, %v3702_v61  ;;  %v3642_v0 = vmin.f32 %v3610_v63, 4.0  ;;  %v3611_v39 = vmax.f32 %v3579_v27, 0.0  ;;  %v11344_v27 = vld [vmem:[%s12282_s11 + $0x40] sm:$0xff]  }
 0x498   : > { %v3732_v52 = vpack.c.bf16 %v3701_v58, %v3700_v48  ;;  %v3640_v60 = vmin.f32 %v3608_v45, 4.0  ;;  %v3609_v59 = vmax.f32 %v3577_v50, 0.0 }
 0x499   : > { %v9266_v53 = vround.rtne.f32 %v3642_v0  ;;  %v3643_v23 = vmin.f32 %v3611_v39, 4.0 }
 0x49a   : > { %v9264_v51 = vround.rtne.f32 %v3640_v60  ;;  %v3641_v42 = vmin.f32 %v3609_v59, 4.0  ;;  %v8518_v46 = vpop.f32.mrb[68].mxu1  ;;  %8548 = vmatprep.mubr.msk.bf16.mxu0 %vm983_vm0, %v3732_v52 }
 0x49b   : > { %v9267_v18 = vround.rtne.f32 %v3643_v23  ;;  %v3582_v56 = vmul.f32 0.5, %v8518_v46  ;;  %v3477_v30 = vpop.f32.mrb[69].mxu1  ;;  %8549 = vmatmul.mubr.msk.bf16.vlgmr.msra.gmra.mrb[92].mxu0 %vm983_vm0, %v3733_v22  ;;  %v3706_v12 = vmul.f32 0.25, %v9266_v53 }
 0x49c   : > { %v9265_v6 = vround.rtne.f32 %v3641_v42  ;;  %v3580_v49 = vmul.f32 0.5, %v3477_v30  ;;  %v8519_v14 = vpop.f32.mrb[70].mxu1  ;;  %8581 = vmatpush3.bf16.msra.mxu0 %v9555_v9  ;;  %v3704_v32 = vmul.f32 0.25, %v9264_v51 }
 0x49d   : > { %v3707_v15 = vmul.f32 0.25, %v9267_v18  ;;  %v3614_v29 = vmax.f32 %v3582_v56, 0.0  ;;  %v3583_v11 = vmul.f32 0.5, %v8519_v14  ;;  %v3480_v10 = vpop.f32.mrb[71].mxu1  ;;  %8582 = vmatprep.subr.bf16.mxu0 %v9556_v35 }
 0x49e   : > { %v3705_v17 = vmul.f32 0.25, %v9265_v6  ;;  %v3612_v31 = vmax.f32 %v3580_v49, 0.0  ;;  %v3581_v44 = vmul.f32 0.5, %v3480_v10 }
 0x49f   : > { %v3735_v33 = vpack.c.bf16 %v3707_v15, %v3706_v12  ;;  %v3646_v62 = vmin.f32 %v3614_v29, 4.0  ;;  %v3615_v21 = vmax.f32 %v3583_v11, 0.0 }
 0x4a0   : > { %v3734_v1 = vpack.c.bf16 %v3705_v17, %v3704_v32  ;;  %v3644_v20 = vmin.f32 %v3612_v31, 4.0  ;;  %v3613_v9 = vmax.f32 %v3581_v44, 0.0  ;;  %8583 = vmatpush3.bf16.msra.mxu0 %v9556_v35 }
 0x4a1   : > { %v9270_v54 = vround.rtne.f32 %v3646_v62  ;;  %v3647_v16 = vmin.f32 %v3615_v21, 4.0  ;;  %8584 = vmatprep.subr.bf16.mxu0 %v9557_v55 }
 0x4a2   : > { %v9268_v8 = vround.rtne.f32 %v3644_v20  ;;  %v3645_v36 = vmin.f32 %v3613_v9, 4.0  ;;  %v8522_v2 = vpop.f32.mrb[72].mxu1  ;;  %8552 = vmatprep.mubr.msk.bf16.mxu0 %vm983_vm0, %v3734_v1 }
 0x4a3   : > { %v9271_v5 = vround.rtne.f32 %v3647_v16  ;;  %v3586_v25 = vmul.f32 0.5, %v8522_v2  ;;  %v3493_v57 = vpop.f32.mrb[73].mxu1  ;;  %8553 = vmatmul.mubr.msk.bf16.gmra.mrb[96].mxu0 %vm983_vm0, %v3735_v33  ;;  %v3710_v41 = vmul.f32 0.25, %v9270_v54 }
 0x4a4   : > { %v9269_v19 = vround.rtne.f32 %v3645_v36  ;;  %v3584_v28 = vmul.f32 0.5, %v3493_v57  ;;  %v8523_v47 = vpop.f32.mrb[74].mxu1  ;;  %8585 = vmatpush3.bf16.msra.mxu0 %v9557_v55  ;;  %v3708_v37 = vmul.f32 0.25, %v9268_v8 }
 0x4a5   : > { %v3711_v13 = vmul.f32 0.25, %v9271_v5  ;;  %v3618_v61 = vmax.f32 %v3586_v25, 0.0  ;;  %v3587_v7 = vmul.f32 0.5, %v8523_v47  ;;  %v3496_v63 = vpop.f32.mrb[75].mxu1  ;;  %8586 = vmatprep.subr.bf16.mxu0 %v9558_v26 }
 0x4a6   : > { %v3709_v48 = vmul.f32 0.25, %v9269_v19  ;;  %v3616_v58 = vmax.f32 %v3584_v28, 0.0  ;;  %v3585_v45 = vmul.f32 0.5, %v3496_v63 }
 0x4a7   : > { %v3737_v50 = vpack.c.bf16 %v3711_v13, %v3710_v41  ;;  %v3650_v22 = vmin.f32 %v3618_v61, 4.0  ;;  %v3619_v0 = vmax.f32 %v3587_v7, 0.0 }
 0x4a8   : > { %v3736_v39 = vpack.c.bf16 %v3709_v48, %v3708_v37  ;;  %v3648_v52 = vmin.f32 %v3616_v58, 4.0  ;;  %v3617_v60 = vmax.f32 %v3585_v45, 0.0  ;;  %8587 = vmatpush3.bf16.msra.mxu0 %v9558_v26 }
 0x4a9   : > { %v9274_v59 = vround.rtne.f32 %v3650_v22  ;;  %v3651_v53 = vmin.f32 %v3619_v0, 4.0  ;;  %8688 = vmatprep.subr.bf16.mxu0 %v11344_v27 }
 0x4aa   : > { %v9272_v23 = vround.rtne.f32 %v3648_v52  ;;  %v3649_v35 = vmin.f32 %v3617_v60, 4.0  ;;  %v8526_v51 = vpop.f32.mrb[76].mxu1  ;;  %8556 = vmatprep.mubr.msk.bf16.mxu0 %vm983_vm0, %v3736_v39 }
 0x4ab   : > { %v9275_v42 = vround.rtne.f32 %v3651_v53  ;;  %v3590_v46 = vmul.f32 0.5, %v8526_v51  ;;  %v3509_v18 = vpop.f32.mrb[77].mxu1  ;;  %8557 = vmatmul.mubr.msk.bf16.gmra.mrb[100].mxu0 %vm983_vm0, %v3737_v50  ;;  %v3714_v49 = vmul.f32 0.25, %v9274_v59 }
 0x4ac   : > { %v9273_v56 = vround.rtne.f32 %v3649_v35  ;;  %v3588_v30 = vmul.f32 0.5, %v3509_v18  ;;  %v8527_v6 = vpop.f32.mrb[78].mxu1  ;;  %v3712_v11 = vmul.f32 0.25, %v9272_v23 }
 0x4ad   : > { %v3715_v14 = vmul.f32 0.25, %v9275_v42  ;;  %v3622_v12 = vmax.f32 %v3590_v46, 0.0  ;;  %v3591_v15 = vmul.f32 0.5, %v8527_v6  ;;  %v3512_v29 = vpop.f32.mrb[79].mxu1 }
 0x4ae   : > { %v3713_v10 = vmul.f32 0.25, %v9273_v56  ;;  %v3620_v55 = vmax.f32 %v3588_v30, 0.0  ;;  %v3589_v32 = vmul.f32 0.5, %v3512_v29 }
 0x4af   : > { %v3739_v17 = vpack.c.bf16 %v3715_v14, %v3714_v49  ;;  %v3654_v31 = vmin.f32 %v3622_v12, 4.0  ;;  %v3623_v44 = vmax.f32 %v3591_v15, 0.0 }
 0x4b0   : > { %v3738_v33 = vpack.c.bf16 %v3713_v10, %v3712_v11  ;;  %v3652_v62 = vmin.f32 %v3620_v55, 4.0  ;;  %v3621_v21 = vmax.f32 %v3589_v32, 0.0 }
 0x4b1   : > { %v9278_v1 = vround.rtne.f32 %v3654_v31  ;;  %v3655_v20 = vmin.f32 %v3623_v44, 4.0 }
 0x4b2   : > { %v9276_v9 = vround.rtne.f32 %v3652_v62  ;;  %v3653_v54 = vmin.f32 %v3621_v21, 4.0  ;;  %v8530_v16 = vpop.f32.mrb[80].mxu1  ;;  %8560 = vmatprep.mubr.msk.bf16.mxu0 %vm983_vm0, %v3738_v33 }
 0x4b3   : > { %v9279_v26 = vround.rtne.f32 %v3655_v20  ;;  %v3594_v8 = vmul.f32 0.5, %v8530_v16  ;;  %v3525_v36 = vpop.f32.mrb[81].mxu1  ;;  %8561 = vmatmul.mubr.msk.bf16.gmra.mrb[104].mxu0 %vm983_vm0, %v3739_v17  ;;  %v3718_v57 = vmul.f32 0.25, %v9278_v1 }
 0x4b4   : > { %v9277_v2 = vround.rtne.f32 %v3653_v54  ;;  %v3592_v5 = vmul.f32 0.5, %v3525_v36  ;;  %v8531_v25 = vpop.f32.mrb[82].mxu1  ;;  %v3716_v13 = vmul.f32 0.25, %v9276_v9 }
 0x4b5   : > { %v3719_v19 = vmul.f32 0.25, %v9279_v26  ;;  %v3626_v28 = vmax.f32 %v3594_v8, 0.0  ;;  %v3595_v47 = vmul.f32 0.5, %v8531_v25  ;;  %v3528_v41 = vpop.f32.mrb[83].mxu1 }
 0x4b6   : > { %v3717_v61 = vmul.f32 0.25, %v9277_v2  ;;  %v3624_v7 = vmax.f32 %v3592_v5, 0.0  ;;  %v3593_v63 = vmul.f32 0.5, %v3528_v41 }
 0x4b7   : > { %v3741_v37 = vpack.c.bf16 %v3719_v19, %v3718_v57  ;;  %v3658_v48 = vmin.f32 %v3626_v28, 4.0  ;;  %v3627_v58 = vmax.f32 %v3595_v47, 0.0 }
 0x4b8   : > { %v3740_v45 = vpack.c.bf16 %v3717_v61, %v3716_v13  ;;  %v3656_v50 = vmin.f32 %v3624_v7, 4.0  ;;  %v3625_v22 = vmax.f32 %v3593_v63, 0.0 }
 0x4b9   : > { %v9282_v0 = vround.rtne.f32 %v3658_v48  ;;  %v3659_v39 = vmin.f32 %v3627_v58, 4.0 }
 0x4ba   : > { %v9280_v52 = vround.rtne.f32 %v3656_v50  ;;  %v3657_v60 = vmin.f32 %v3625_v22, 4.0  ;;  %v8534_v59 = vpop.f32.mrb[84].mxu1  ;;  %8564 = vmatprep.mubr.msk.bf16.mxu0 %vm983_vm0, %v3740_v45 }
 0x4bb   : > { %v9283_v53 = vround.rtne.f32 %v3659_v39  ;;  %v3598_v23 = vmul.f32 0.5, %v8534_v59  ;;  %v3541_v35 = vpop.f32.mrb[85].mxu1  ;;  %8565 = vmatmul.mubr.msk.bf16.gmra.mrb[108].mxu0 %vm983_vm0, %v3741_v37  ;;  %v3722_v18 = vmul.f32 0.25, %v9282_v0 }
 0x4bc   : > { %v9281_v51 = vround.rtne.f32 %v3657_v60  ;;  %v3596_v42 = vmul.f32 0.5, %v3541_v35  ;;  %v8535_v46 = vpop.f32.mrb[86].mxu1  ;;  %v3720_v14 = vmul.f32 0.25, %v9280_v52 }
 0x4bd   : > { %v3723_v56 = vmul.f32 0.25, %v9283_v53  ;;  %v3630_v30 = vmax.f32 %v3598_v23, 0.0  ;;  %v3599_v6 = vmul.f32 0.5, %v8535_v46  ;;  %v3544_v49 = vpop.f32.mrb[87].mxu1 }
 0x4be   : > { %v3721_v12 = vmul.f32 0.25, %v9281_v51  ;;  %v3628_v15 = vmax.f32 %v3596_v42, 0.0  ;;  %v3597_v29 = vmul.f32 0.5, %v3544_v49 }
 0x4bf   : > { %v3743_v11 = vpack.c.bf16 %v3723_v56, %v3722_v18  ;;  %v3662_v10 = vmin.f32 %v3630_v30, 4.0  ;;  %v3631_v55 = vmax.f32 %v3599_v6, 0.0 }
 0x4c0   : > { %v3742_v32 = vpack.c.bf16 %v3721_v12, %v3720_v14  ;;  %v3660_v17 = vmin.f32 %v3628_v15, 4.0  ;;  %v3629_v31 = vmax.f32 %v3597_v29, 0.0  ;;  %v8442_v44 = vpop.f32.mrb[60].mxu0 }
 0x4c1   : > { %v9286_v33 = vround.rtne.f32 %v3662_v10  ;;  %v3663_v62 = vmin.f32 %v3631_v55, 4.0  ;;  %v2865_v21 = vmul.f32 0.5, %v8442_v44  ;;  %v2736_v1 = vpop.f32.mrb[61].mxu0 }
 0x4c2   : > { %v9284_v20 = vround.rtne.f32 %v3660_v17  ;;  %v3661_v9 = vmin.f32 %v3629_v31, 4.0  ;;  %v2863_v54 = vmul.f32 0.5, %v2736_v1  ;;  %v8443_v16 = vpop.f32.mrb[62].mxu0  ;;  %v8538_v26 = vpop.f32.mrb[88].mxu1  ;;  %8568 = vmatprep.mubr.msk.bf16.mxu0 %vm983_vm0, %v3742_v32 }
 0x4c3   : > { %v3726_v8 = vmul.f32 0.25, %v9286_v33  ;;  %v9287_v36 = vround.rtne.f32 %v3663_v62  ;;  %v2897_v2 = vmax.f32 %v2865_v21, 0.0  ;;  %v2866_v5 = vmul.f32 0.5, %v8443_v16  ;;  %v2739_v25 = vpop.f32.mrb[63].mxu0  ;;  %v3557_v57 = vpop.f32.mrb[89].mxu1  ;;  %8569 = vmatmul.mubr.msk.bf16.gmra.mrb[112].mxu0 %vm983_vm0, %v3743_v11 }
 0x4c4   : > { %v3724_v19 = vmul.f32 0.25, %v9284_v20  ;;  %v9285_v28 = vround.rtne.f32 %v3661_v9  ;;  %v2895_v47 = vmax.f32 %v2863_v54, 0.0  ;;  %v3602_v41 = vmul.f32 0.5, %v8538_v26  ;;  %v8539_v13 = vpop.f32.mrb[90].mxu1 }
 0x4c5   : > { %v3727_v61 = vmul.f32 0.25, %v9287_v36  ;;  %v2929_v7 = vmin.f32 %v2897_v2, 4.0  ;;  %v2898_v63 = vmax.f32 %v2866_v5, 0.0  ;;  %v2864_v37 = vmul.f32 0.5, %v2739_v25  ;;  %v3560_v48 = vpop.f32.mrb[91].mxu1 }
 0x4c6   : > { %v3725_v58 = vmul.f32 0.25, %v9285_v28  ;;  %v2927_v45 = vmin.f32 %v2895_v47, 4.0  ;;  %v3634_v50 = vmax.f32 %v3602_v41, 0.0  ;;  %v3600_v22 = vmul.f32 0.5, %v3557_v57 }
 0x4c7   : > { %v3745_v0 = vpack.c.bf16 %v3727_v61, %v3726_v8  ;;  %v9230_v39 = vround.rtne.f32 %v2929_v7  ;;  %v2930_v52 = vmin.f32 %v2898_v63, 4.0  ;;  %v2896_v60 = vmax.f32 %v2864_v37, 0.0 }
 0x4c8   : > { %v3744_v59 = vpack.c.bf16 %v3725_v58, %v3724_v19  ;;  %v9228_v53 = vround.rtne.f32 %v2927_v45  ;;  %v3666_v23 = vmin.f32 %v3634_v50, 4.0  ;;  %v3632_v35 = vmax.f32 %v3600_v22, 0.0  ;;  %v8446_v51 = vpop.f32.mrb[64].mxu0 }
 0x4c9   : > { %v11355_v42 = vmul.f32 0.25, %v9230_v39  ;;  %v9231_v46 = vround.rtne.f32 %v2930_v52  ;;  %v2928_v18 = vmin.f32 %v2896_v60, 4.0  ;;  %v3603_v56 = vmul.f32 0.5, %v8539_v13  ;;  %v2752_v30 = vpop.f32.mrb[65].mxu0 }
 0x4ca   : > { %v11357_v6 = vmul.f32 0.25, %v9228_v53  ;;  %v9290_v49 = vround.rtne.f32 %v3666_v23  ;;  %v3664_v14 = vmin.f32 %v3632_v35, 4.0  ;;  %v3601_v12 = vmul.f32 0.5, %v3560_v48  ;;  %v8447_v15 = vpop.f32.mrb[66].mxu0  ;;  %8572 = vmatprep.mubr.msk.bf16.mxu0 %vm983_vm0, %v3744_v59  ;;  %v8116_v29 = vpop.f32.mrb[92].mxu1 }
 0x4cb   : > { %v11360_v11 = vmul.f32 0.25, %v9231_v46  ;;  %v9229_v10 = vround.rtne.f32 %v2928_v18  ;;  %v3635_v55 = vmax.f32 %v3603_v56, 0.0  ;;  %v2869_v32 = vmul.f32 0.5, %v8446_v51  ;;  %v2755_v17 = vpop.f32.mrb[67].mxu0  ;;  %8573 = vmatmul.mubr.msk.bf16.gmra.mrb[116].mxu0 %vm983_vm0, %v3745_v0  ;;  %v8117_v31 = vpop.f32.mrb[93].mxu1 }
 0x4cc   : > { %v3730_v44 = vmul.f32 0.25, %v9290_v49  ;;  %v9288_v33 = vround.rtne.f32 %v3664_v14  ;;  %v3633_v62 = vmax.f32 %v3601_v12, 0.0  ;;  %v2867_v21 = vmul.f32 0.5, %v2752_v30  ;;  %v8119_v1 = vpop.f32.mrb[94].mxu1 }
 0x4cd   : > { %v3024_v20 = vpack.c.bf16 %v11360_v11, %v11355_v42  ;;  %v2992_v9 = vmul.f32 0.25, %v9229_v10  ;;  %v3667_v54 = vmin.f32 %v3635_v55, 4.0  ;;  %v2901_v16 = vmax.f32 %v2869_v32, 0.0  ;;  %v8120_v26 = vpop.f32.mrb[95].mxu1 }
 0x4ce   : > { %v3728_v8 = vmul.f32 0.25, %v9288_v33  ;;  %v3665_v36 = vmin.f32 %v3633_v62, 4.0  ;;  %v2899_v2 = vmax.f32 %v2867_v21, 0.0  ;;  %v2870_v5 = vmul.f32 0.5, %v8447_v15 }
 0x4cf   : > { %v3023_v25 = vpack.c.bf16 %v2992_v9, %v11357_v6  ;;  %v9291_v57 = vround.rtne.f32 %v3667_v54  ;;  %v2933_v19 = vmin.f32 %v2901_v16, 4.0  ;;  %v2868_v28 = vmul.f32 0.5, %v2755_v17 }
 0x4d0   : > { %v9289_v47 = vround.rtne.f32 %v3665_v36  ;;  %v2931_v41 = vmin.f32 %v2899_v2, 4.0  ;;  %v2902_v13 = vmax.f32 %v2870_v5, 0.0  ;;  %v8118_v61 = vadd.f32 %v8117_v31, %v8116_v29  ;;  %v8450_v7 = vpop.f32.mrb[68].mxu0 }
 0x4d1   : > { %v3731_v63 = vmul.f32 0.25, %v9291_v57  ;;  %v9234_v37 = vround.rtne.f32 %v2933_v19  ;;  %v2900_v48 = vmax.f32 %v2868_v28, 0.0  ;;  %v8121_v58 = vadd.f32 %v8120_v26, %v8119_v1  ;;  %v2768_v45 = vpop.f32.mrb[69].mxu0 }
 0x4d2   : > { %v3729_v50 = vmul.f32 0.25, %v9289_v47  ;;  %v9232_v22 = vround.rtne.f32 %v2931_v41  ;;  %v2934_v0 = vmin.f32 %v2902_v13, 4.0  ;;  %v4255_v39 = vmul.f32 0.0625, %v8118_v61  ;;  %v8451_v52 = vpop.f32.mrb[70].mxu0 }
 0x4d3   : > { %v3747_v60 = vpack.c.bf16 %v3731_v63, %v3730_v44  ;;  %v11366_v59 = vmul.f32 0.25, %v9234_v37  ;;  %v2932_v53 = vmin.f32 %v2900_v48, 4.0  ;;  %v4256_v23 = vmul.f32 0.0625, %v8121_v58  ;;  %v2771_v35 = vpop.f32.mrb[71].mxu0 }
 0x4d4   : > { %v3746_v51 = vpack.c.bf16 %v3729_v50, %v3728_v8  ;;  %v11368_v46 = vmul.f32 0.25, %v9232_v22  ;;  %v9235_v18 = vround.rtne.f32 %v2934_v0  ;;  %v4257_v56 = vfloor.f32 %v4255_v39 }
 0x4d5   : > { %v9233_v30 = vround.rtne.f32 %v2932_v53  ;;  %v4258_v6 = vfloor.f32 %v4256_v23  ;;  %v2873_v49 = vmul.f32 0.5, %v8450_v7  ;;  %v2871_v14 = vmul.f32 0.5, %v2768_v45 }
 0x4d6   : > { %v11370_v12 = vmul.f32 0.25, %v9235_v18  ;;  %v4259_v15 = vmul.f32 16.0, %v4257_v56  ;;  %v2874_v29 = vmul.f32 0.5, %v8451_v52  ;;  %8576 = vmatprep.mubr.msk.bf16.mxu0 %vm983_vm0, %v3746_v51  ;;  %v2872_v10 = vmul.f32 0.5, %v2771_v35 }
 0x4d7   : > { %v2996_v55 = vmul.f32 0.25, %v9233_v30  ;;  %v4260_v32 = vmul.f32 16.0, %v4258_v6  ;;  %v2905_v17 = vmax.f32 %v2873_v49, 0.0  ;;  %v2903_v31 = vmax.f32 %v2871_v14, 0.0  ;;  %8577 = vmatmul.mubr.msk.bf16.gmra.mrb[120].mxu0 %vm983_vm0, %v3747_v60  ;;  %v9560_v60 = vld [vmem:[%s12282_s11 + $0x48] sm:$0xff]   ;;  %v12523_v14 = vld [vmem:[#allocation62_spill] sm:$0xff] }
 0x4d8   : > { %v3026_v44 = vpack.c.bf16 %v11370_v12, %v11366_v59  ;;  %v4261_v33 = vsub.f32 %v8118_v61, %v4259_v15  ;;  %v2906_v62 = vmax.f32 %v2874_v29, 0.0  ;;  %v2904_v21 = vmax.f32 %v2872_v10, 0.0  ;;  %8588 = vmatprep.mubr.msk.bf16.mxu0 %vm983_vm0, %v3023_v25  ;;  %v8454_v1 = vpop.f32.mrb[72].mxu0  ;;  %v12524_v29 = vld [vmem:[#allocation63_spill] sm:$0xff] }
 0x4d9   : > { %v3025_v9 = vpack.c.bf16 %v2996_v55, %v11368_v46  ;;  %v4262_v54 = vsub.f32 %v8121_v58, %v4260_v32  ;;  %v2937_v16 = vmin.f32 %v2905_v17, 4.0  ;;  %v2935_v26 = vmin.f32 %v2903_v31, 4.0  ;;  %v2784_v8 = vpop.f32.mrb[73].mxu0 }
 0x4da   : > { %v2938_v36 = vmin.f32 %v2906_v62, 4.0  ;;  %v2936_v2 = vmin.f32 %v2904_v21, 4.0  ;;  %v2877_v5 = vmul.f32 0.5, %v8454_v1  ;;  %v2875_v57 = vmul.f32 0.5, %v2784_v8  ;;  %v8455_v19 = vpop.f32.mrb[74].mxu0  ;;  %v9562_v8 = vld [vmem:[%s12282_s11 + $0x58] sm:$0xff]  }
 0x4db   : > { %v9238_v28 = vround.rtne.f32 %v2937_v16  ;;  %v9236_v47 = vround.rtne.f32 %v2935_v26  ;;  %v2878_v41 = vmul.f32 0.5, %v8455_v19  ;;  %v4264_v13 = vpack.c.bf16 %v4262_v54, %v4261_v33  ;;  %v2787_v61 = vpop.f32.mrb[75].mxu0 }
 0x4dc   : > { %v9239_v7 = vround.rtne.f32 %v2938_v36  ;;  %v9237_v63 = vround.rtne.f32 %v2936_v2  ;;  %v2909_v25 = vmax.f32 %v2877_v5, 0.0  ;;  %v2907_v37 = vmax.f32 %v2875_v57, 0.0 }
 0x4dd   : > { %v11378_v48 = vmul.f32 0.25, %v9238_v28  ;;  %v2999_v58 = vmul.f32 0.25, %v9236_v47  ;;  %v2910_v45 = vmax.f32 %v2878_v41, 0.0  ;;  %8620 = vmatprep.subr.bf16.mxu1 %v4264_v13  ;;  %v2876_v50 = vmul.f32 0.5, %v2787_v61  ;;  %v12525_v61 = vld [vmem:[#allocation53_spill] sm:$0xff] }
 0x4de   : > { %v11380_v22 = vmul.f32 0.25, %v9239_v7  ;;  %v3000_v0 = vmul.f32 0.25, %v9237_v63  ;;  %v2941_v39 = vmin.f32 %v2909_v25, 4.0  ;;  %v2939_v52 = vmin.f32 %v2907_v37, 4.0  ;;  %8621 = vmatpush3.bf16.msra.mxu1 %v4264_v13  ;;  %v12526_v37 = vld [vmem:[#allocation32_spill] sm:$0xff] }
 0x4df   : > { %v2942_v53 = vmin.f32 %v2910_v45, 4.0  ;;  %v2908_v23 = vmax.f32 %v2876_v50, 0.0  ;;  %8589 = vmatmul.mubr.msk.bf16.vlgmr.msra.gmra.mrb[92].mxu0 %vm983_vm0, %v3024_v20  ;;  %v4263_v35 = vpack.c.bf16 %v4260_v32, %v4259_v15  ;;  %v9561_v20 = vld [vmem:[%s12282_s11 + $0x50] sm:$0xff]  }
 0x4e0   : > { %v3028_v51 = vpack.c.bf16 %v11380_v22, %v11378_v48  ;;  %v3027_v46 = vpack.c.bf16 %v3000_v0, %v2999_v58  ;;  %v9242_v18 = vround.rtne.f32 %v2941_v39  ;;  %v9240_v56 = vround.rtne.f32 %v2939_v52  ;;  %8689 = vmatpush3.bf16.msra.mxu0 %v11344_v27  ;;  %8592 = vmatprep.mubr.msk.bf16.mxu0 %vm983_vm0, %v3025_v9  ;;  %v8458_v30 = vpop.f32.mrb[76].mxu0 }
 0x4e1   : > { %v9243_v6 = vround.rtne.f32 %v2942_v53  ;;  %v2940_v49 = vmin.f32 %v2908_v23, 4.0  ;;  %8654 = vmatprep.subr.bf16.mxu1 %v4263_v35  ;;  %8623 = vmatmul.mubr.msk.bf16.vlgmr.msra.gmra.mrb[96].mxu1 %vm2492_vm1, %v12523_v14  ;;  %v2881_v42 = vmul.f32 0.5, %v8458_v30  ;;  %v2800_v11 = vpop.f32.mrb[77].mxu0 }
 0x4e2   : > { %v11398_v15 = vmul.f32 0.25, %v9242_v18  ;;  %8690 = vmatprep.subr.bf16.mxu0 %v9560_v60  ;;  %8626 = vmatprep.mubr.msk.bf16.mxu1 %vm2492_vm1, %v12524_v29  ;;  %v2879_v27 = vmul.f32 0.5, %v2800_v11  ;;  %v8459_v10 = vpop.f32.mrb[78].mxu0  ;;  %v3003_v62 = vmul.f32 0.25, %v9240_v56 }
 0x4e3   : > { %v11402_v55 = vmul.f32 0.25, %v9243_v6  ;;  %v9241_v32 = vround.rtne.f32 %v2940_v49  ;;  %8655 = vmatpush3.bf16.msra.mxu1 %v4263_v35  ;;  %v2913_v17 = vmax.f32 %v2881_v42, 0.0  ;;  %v2882_v31 = vmul.f32 0.5, %v8459_v10  ;;  %v2803_v33 = vpop.f32.mrb[79].mxu0 }
 0x4e4   : > { %8691 = vmatpush3.bf16.msra.mxu0 %v9560_v60  ;;  %v2911_v21 = vmax.f32 %v2879_v27, 0.0  ;;  %v2880_v1 = vmul.f32 0.5, %v2803_v33 }
 0x4e5   : > { %v3030_v9 = vpack.c.bf16 %v11402_v55, %v11398_v15  ;;  %v3004_v54 = vmul.f32 0.25, %v9241_v32  ;;  %v2945_v16 = vmin.f32 %v2913_v17, 4.0  ;;  %v2914_v26 = vmax.f32 %v2882_v31, 0.0  ;;  %8692 = vmatprep.subr.bf16.mxu0 %v9561_v20  ;;  %v12528_v32 = vld [vmem:[#allocation30_spill] sm:$0xff] }
 0x4e6   : > { %v2943_v36 = vmin.f32 %v2911_v21, 4.0  ;;  %v2912_v2 = vmax.f32 %v2880_v1, 0.0 }
 0x4e7   : > { %v3029_v5 = vpack.c.bf16 %v3004_v54, %v3003_v62  ;;  %v9246_v57 = vround.rtne.f32 %v2945_v16  ;;  %v2946_v19 = vmin.f32 %v2914_v26, 4.0  ;;  %8593 = vmatmul.mubr.msk.bf16.gmra.mrb[96].mxu0 %vm983_vm0, %v3026_v44  ;;  %v12529_v62 = vld [vmem:[#allocation42_spill] sm:$0xff] }
 0x4e8   : > { %v9244_v28 = vround.rtne.f32 %v2943_v36  ;;  %v2944_v47 = vmin.f32 %v2912_v2, 4.0  ;;  %8693 = vmatpush3.bf16.msra.mxu0 %v9561_v20  ;;  %8596 = vmatprep.mubr.msk.bf16.mxu0 %vm983_vm0, %v3027_v46  ;;  %v8462_v41 = vpop.f32.mrb[80].mxu0  ;;  %v12527_v46 = vld [vmem:[#allocation29_spill] sm:$0xff] }
 0x4e9   : > { %v9247_v13 = vround.rtne.f32 %v2946_v19  ;;  %8627 = vmatmul.mubr.msk.bf16.gmra.mrb[100].mxu1 %vm2492_vm1, %v12525_v61  ;;  %8694 = vmatprep.subr.bf16.mxu0 %v9562_v8  ;;  %v2885_v7 = vmul.f32 0.5, %v8462_v41  ;;  %v2816_v63 = vpop.f32.mrb[81].mxu0  ;;  %v11418_v44 = vmul.f32 0.25, %v9246_v57 }
 0x4ea   : > { %v9245_v25 = vround.rtne.f32 %v2944_v47  ;;  %8630 = vmatprep.mubr.msk.bf16.mxu1 %vm2492_vm1, %v12526_v37  ;;  %v2883_v59 = vmul.f32 0.5, %v2816_v63  ;;  %v8463_v12 = vpop.f32.mrb[82].mxu0  ;;  %v3007_v39 = vmul.f32 0.25, %v9244_v28 }
 0x4eb   : > { %v11420_v58 = vmul.f32 0.25, %v9247_v13  ;;  %v2917_v45 = vmax.f32 %v2885_v7, 0.0  ;;  %v2886_v50 = vmul.f32 0.5, %v8463_v12  ;;  %v2819_v0 = vpop.f32.mrb[83].mxu0 }
 0x4ec   : > { %v3008_v52 = vmul.f32 0.25, %v9245_v25  ;;  %8695 = vmatpush3.bf16.msra.mxu0 %v9562_v8  ;;  %v2915_v60 = vmax.f32 %v2883_v59, 0.0  ;;  %v2884_v53 = vmul.f32 0.5, %v2819_v0 }
 0x4ed   : > { %v3032_v23 = vpack.c.bf16 %v11420_v58, %v11418_v44  ;;  %v2949_v35 = vmin.f32 %v2917_v45, 4.0  ;;  %8176 = vmatprep.subr.bf16.mxu0 %v12527_v46  ;;  %v2918_v18 = vmax.f32 %v2886_v50, 0.0  ;;  %v12530_v45 = vld [vmem:[#allocation38_spill] sm:$0xff] }
 0x4ee   : > { %v3031_v56 = vpack.c.bf16 %v3008_v52, %v3007_v39  ;;  %v2947_v30 = vmin.f32 %v2915_v60, 4.0  ;;  %v2916_v6 = vmax.f32 %v2884_v53, 0.0  ;;  %v12531_v52 = vld [vmem:[#allocation45_spill] sm:$0xff]  ;;  %v12534_v58 = vld [vmem:[#allocation46_spill] sm:$0xff] }
 0x4ef   : > { %v9250_v49 = vround.rtne.f32 %v2949_v35  ;;  %v2950_v42 = vmin.f32 %v2918_v18, 4.0  ;;  %8597 = vmatmul.mubr.msk.bf16.gmra.mrb[100].mxu0 %vm983_vm0, %v3028_v51 }
 0x4f0   : > { %v9248_v11 = vround.rtne.f32 %v2947_v30  ;;  %v2948_v20 = vmin.f32 %v2916_v6, 4.0  ;;  %8600 = vmatprep.mubr.msk.bf16.mxu0 %vm983_vm0, %v3029_v5  ;;  %v8466_v27 = vpop.f32.mrb[84].mxu0 }
 0x4f1   : > { %v9251_v10 = vround.rtne.f32 %v2950_v42  ;;  %8631 = vmatmul.mubr.msk.bf16.gmra.mrb[104].mxu1 %vm2492_vm1, %v12528_v32  ;;  %v2889_v17 = vmul.f32 0.5, %v8466_v27  ;;  %v2832_v31 = vpop.f32.mrb[85].mxu0  ;;  %v3013_v48 = vmul.f32 0.25, %v9250_v49 }
 0x4f2   : > { %v9249_v33 = vround.rtne.f32 %v2948_v20  ;;  %8634 = vmatprep.mubr.msk.bf16.mxu1 %vm2492_vm1, %v12529_v62  ;;  %v2887_v21 = vmul.f32 0.5, %v2832_v31  ;;  %v8467_v1 = vpop.f32.mrb[86].mxu0  ;;  %v3011_v26 = vmul.f32 0.25, %v9248_v11 }
 0x4f3   : > { %v3014_v22 = vmul.f32 0.25, %v9251_v10  ;;  %v2921_v51 = vmax.f32 %v2889_v17, 0.0  ;;  %v2890_v54 = vmul.f32 0.5, %v8467_v1  ;;  %v2835_v16 = vpop.f32.mrb[87].mxu0 }
 0x4f4   : > { %v3012_v8 = vmul.f32 0.25, %v9249_v33  ;;  %v2919_v36 = vmax.f32 %v2887_v21, 0.0  ;;  %v2888_v2 = vmul.f32 0.5, %v2835_v16 }
 0x4f5   : > { %v3034_v5 = vpack.c.bf16 %v3014_v22, %v3013_v48  ;;  %v2953_v57 = vmin.f32 %v2921_v51, 4.0  ;;  %v2922_v19 = vmax.f32 %v2890_v54, 0.0  ;;  %v12532_v48 = vld [vmem:[#allocation44_spill] sm:$0xff]  ;;  %v12533_v51 = vld [vmem:[#allocation47_spill] sm:$0xff] }
 0x4f6   : > { %v3033_v28 = vpack.c.bf16 %v3012_v8, %v3011_v26  ;;  %v2951_v47 = vmin.f32 %v2919_v36, 4.0  ;;  %v2920_v41 = vmax.f32 %v2888_v2, 0.0  ;;  %v12536_v2 = vld [vmem:[#allocation26_spill] sm:$0xff] }
 0x4f7   : > { %v9254_v13 = vround.rtne.f32 %v2953_v57  ;;  %v2954_v7 = vmin.f32 %v2922_v19, 4.0  ;;  %8601 = vmatmul.mubr.msk.bf16.gmra.mrb[104].mxu0 %vm983_vm0, %v3030_v9  ;;  %v12537_v57 = vld [vmem:[#allocation27_spill] sm:$0xff] }
 0x4f8   : > { %v9252_v63 = vround.rtne.f32 %v2951_v47  ;;  %v2952_v25 = vmin.f32 %v2920_v41, 4.0  ;;  %8604 = vmatprep.mubr.msk.bf16.mxu0 %vm983_vm0, %v3031_v56  ;;  %v8470_v59 = vpop.f32.mrb[88].mxu0 }
 0x4f9   : > { %v9255_v12 = vround.rtne.f32 %v2954_v7  ;;  %8635 = vmatmul.mubr.msk.bf16.gmra.mrb[108].mxu1 %vm2492_vm1, %v12530_v45  ;;  %v2893_v50 = vmul.f32 0.5, %v8470_v59  ;;  %v2848_v0 = vpop.f32.mrb[89].mxu0  ;;  %v3017_v15 = vmul.f32 0.25, %v9254_v13 }
 0x4fa   : > { %v9253_v39 = vround.rtne.f32 %v2952_v25  ;;  %8638 = vmatprep.mubr.msk.bf16.mxu1 %vm2492_vm1, %v12531_v52  ;;  %v2891_v60 = vmul.f32 0.5, %v2848_v0  ;;  %v8471_v53 = vpop.f32.mrb[90].mxu0  ;;  %v3015_v18 = vmul.f32 0.25, %v9252_v63 }
 0x4fb   : > { %v3018_v55 = vmul.f32 0.25, %v9255_v12  ;;  %v2925_v9 = vmax.f32 %v2893_v50, 0.0  ;;  %v2894_v35 = vmul.f32 0.5, %v8471_v53  ;;  %v2851_v46 = vpop.f32.mrb[91].mxu0 }
 0x4fc   : > { %v3016_v56 = vmul.f32 0.25, %v9253_v39  ;;  %v2923_v30 = vmax.f32 %v2891_v60, 0.0  ;;  %v2892_v6 = vmul.f32 0.5, %v2851_v46 }
 0x4fd   : > { %v3036_v49 = vpack.c.bf16 %v3018_v55, %v3017_v15  ;;  %v2957_v42 = vmin.f32 %v2925_v9, 4.0  ;;  %v2926_v11 = vmax.f32 %v2894_v35, 0.0 }
 0x4fe   : > { %v3035_v20 = vpack.c.bf16 %v3016_v56, %v3015_v18  ;;  %v2955_v27 = vmin.f32 %v2923_v30, 4.0  ;;  %v2924_v10 = vmax.f32 %v2892_v6, 0.0 }
 0x4ff   : > { %v9258_v17 = vround.rtne.f32 %v2957_v42  ;;  %v2958_v31 = vmin.f32 %v2926_v11, 4.0  ;;  %8605 = vmatmul.mubr.msk.bf16.gmra.mrb[108].mxu0 %vm983_vm0, %v3032_v23  ;;  %v12535_v23 = vld [vmem:[#allocation50_spill] sm:$0xff] }
 0x500   : > { %v9256_v33 = vround.rtne.f32 %v2955_v27  ;;  %v2956_v21 = vmin.f32 %v2924_v10, 4.0  ;;  %8608 = vmatprep.mubr.msk.bf16.mxu0 %vm983_vm0, %v3033_v28 }
 0x501   : > { %v9259_v1 = vround.rtne.f32 %v2958_v31  ;;  %8639 = vmatmul.mubr.msk.bf16.gmra.mrb[112].mxu1 %vm2492_vm1, %v12532_v48  ;;  %v3021_v54 = vmul.f32 0.25, %v9258_v17 }
 0x502   : > { %v9257_v22 = vround.rtne.f32 %v2956_v21  ;;  %8642 = vmatprep.mubr.msk.bf16.mxu1 %vm2492_vm1, %v12533_v51  ;;  %v3019_v26 = vmul.f32 0.25, %v9256_v33 }
 0x503   : > { %v3022_v16 = vmul.f32 0.25, %v9259_v1 }
 0x504   : > { %v3020_v8 = vmul.f32 0.25, %v9257_v22 }
 0x505   : > { %v3038_v36 = vpack.c.bf16 %v3022_v16, %v3021_v54 }
 0x506   : > { %v3037_v44 = vpack.c.bf16 %v3020_v8, %v3019_v26  ;;  %v5147_v26 = vpop.permute.xlu1 %5146 }
 0x507   : > { %8609 = vmatmul.mubr.msk.bf16.gmra.mrb[112].mxu0 %vm983_vm0, %v3034_v5  ;;  %v12538_v5 = vld [vmem:[#allocation28_spill] sm:$0xff] }
 0x508   : > { %8612 = vmatprep.mubr.msk.bf16.mxu0 %vm983_vm0, %v3035_v20 }
 0x509   : > { %8643 = vmatmul.mubr.msk.bf16.gmra.mrb[116].mxu1 %vm2492_vm1, %v12534_v58 }
 0x50a   : > { %8646 = vmatprep.mubr.msk.bf16.mxu1 %vm2492_vm1, %v12535_v23 }
 0x50f   : > { %8613 = vmatmul.mubr.msk.bf16.gmra.mrb[116].mxu0 %vm983_vm0, %v3036_v49 }
 0x510   : > { %8616 = vmatprep.mubr.msk.bf16.mxu0 %vm983_vm0, %v3037_v44  ;;  %v12540_v44 = vld [vmem:[#allocation20_spill] sm:$0xff] }
 0x511   : > { %8647 = vmatmul.mubr.msk.bf16.gmra.mrb[120].mxu1 %vm2492_vm1, %v12536_v2 }
 0x512   : > { %8650 = vmatprep.mubr.msk.bf16.mxu1 %vm2492_vm1, %v12537_v57 }
 0x517   : > { %8617 = vmatmul.mubr.msk.bf16.gmra.mrb[120].mxu0 %vm983_vm0, %v3038_v36 }
 0x519   : > { %8651 = vmatmul.mubr.msk.bf16.gmra.mrb[124].mxu1 %vm2492_vm1, %v12538_v5 }
 0x51a   : > { %8656 = vmatprep.mubr.msk.bf16.mxu1 %vm2492_vm1, %v12522_v24  ;;  %v12539_v24 = vmov 0  }
 0x521   : > { %8657 = vmatmul.mubr.msk.bf16.vlgmr.msra.gmra.mrb[96].mxu1 %vm2492_vm1, %v12523_v14 }
 0x522   : > { %8660 = vmatprep.mubr.msk.bf16.mxu1 %vm2492_vm1, %v12524_v29 }
 0x529   : > { %8661 = vmatmul.mubr.msk.bf16.gmra.mrb[100].mxu1 %vm2492_vm1, %v12525_v61 }
 0x52a   : > { %8664 = vmatprep.mubr.msk.bf16.mxu1 %vm2492_vm1, %v12526_v37 }
 0x531   : > { %8665 = vmatmul.mubr.msk.bf16.gmra.mrb[104].mxu1 %vm2492_vm1, %v12528_v32 }
 0x532   : > { %8668 = vmatprep.mubr.msk.bf16.mxu1 %vm2492_vm1, %v12529_v62 }
 0x539   : > { %8669 = vmatmul.mubr.msk.bf16.gmra.mrb[108].mxu1 %vm2492_vm1, %v12530_v45 }
 0x53a   : > { %8672 = vmatprep.mubr.msk.bf16.mxu1 %vm2492_vm1, %v12531_v52 }
 0x541   : > { %8673 = vmatmul.mubr.msk.bf16.gmra.mrb[112].mxu1 %vm2492_vm1, %v12532_v48 }
 0x542   : > { %8676 = vmatprep.mubr.msk.bf16.mxu1 %vm2492_vm1, %v12533_v51 }
 0x549   : > { %8677 = vmatmul.mubr.msk.bf16.gmra.mrb[116].mxu1 %vm2492_vm1, %v12534_v58 }
 0x54a   : > { %8680 = vmatprep.mubr.msk.bf16.mxu1 %vm2492_vm1, %v12535_v23 }
 0x551   : > { %8681 = vmatmul.mubr.msk.bf16.gmra.mrb[120].mxu1 %vm2492_vm1, %v12536_v2 }
 0x552   : > { %8684 = vmatprep.mubr.msk.bf16.mxu1 %vm2492_vm1, %v12537_v57 }
 0x559   : > { %8685 = vmatmul.mubr.msk.bf16.gmra.mrb[124].mxu1 %vm2492_vm1, %v12538_v5 }
 0x55a   : > { %6448 = vmatprep.mubr.bf16.mxu1 %v12539_v24 }
 0x5f4   : > { %v8658_v14 = vpop.f32.mrb[96].mxu1 }
 0x5f5   : > { %v4669_v29 = vmul.f32 0.5, %v8658_v14  ;;  %v4540_v61 = vpop.f32.mrb[97].mxu1  ;;  %v12541_v14 = vld [vmem:[#allocation21_spill] sm:$0xff] }
 0x5f6   : > { %v4667_v37 = vmul.f32 0.5, %v4540_v61  ;;  %v8659_v32 = vpop.f32.mrb[98].mxu1 }
 0x5f7   : > { %v4701_v62 = vmax.f32 %v4669_v29, 0.0  ;;  %v4670_v19 = vmul.f32 0.5, %v8659_v32  ;;  %v4543_v28 = vpop.f32.mrb[99].mxu1 }
 0x5f8   : > { %v4699_v47 = vmax.f32 %v4667_v37, 0.0  ;;  %v4668_v41 = vmul.f32 0.5, %v4543_v28 }
 0x5f9   : > { %v4733_v13 = vmin.f32 %v4701_v62, 4.0  ;;  %v4702_v7 = vmax.f32 %v4670_v19, 0.0  ;;  %v5131_v19 = vpop.permute.xlu0 %5130 }
 0x5fa   : > { %v4731_v63 = vmin.f32 %v4699_v47, 4.0  ;;  %v4700_v25 = vmax.f32 %v4668_v41, 0.0 }
 0x5fb   : > { %v9294_v59 = vround.rtne.f32 %v4733_v13  ;;  %v4734_v12 = vmin.f32 %v4702_v7, 4.0 }
 0x5fc   : > { %v9292_v45 = vround.rtne.f32 %v4731_v63  ;;  %v4732_v50 = vmin.f32 %v4700_v25, 4.0  ;;  %v8662_v0 = vpop.f32.mrb[100].mxu1  ;;  %v12542_v25 = vld [vmem:[#allocation22_spill] sm:$0xff] }
 0x5fd   : > { %v9295_v39 = vround.rtne.f32 %v4734_v12  ;;  %v4673_v52 = vmul.f32 0.5, %v8662_v0  ;;  %v4556_v60 = vpop.f32.mrb[101].mxu1  ;;  %v4797_v9 = vmul.f32 0.25, %v9294_v59 }
 0x5fe   : > { %v9293_v53 = vround.rtne.f32 %v4732_v50  ;;  %v4671_v15 = vmul.f32 0.5, %v4556_v60  ;;  %v8663_v55 = vpop.f32.mrb[102].mxu1  ;;  %v4795_v30 = vmul.f32 0.25, %v9292_v45  ;;  %v12543_v45 = vld [vmem:[#allocation24_spill] sm:$0xff]  ;;  %v5149_v50 = vpop.permute.xlu1 %5148 }
 0x5ff   : > { %v4798_v35 = vmul.f32 0.25, %v9295_v39  ;;  %v4705_v46 = vmax.f32 %v4673_v52, 0.0  ;;  %v4674_v18 = vmul.f32 0.5, %v8663_v55  ;;  %v4559_v56 = vpop.f32.mrb[103].mxu1 }
 0x600   : > { %v4796_v6 = vmul.f32 0.25, %v9293_v53  ;;  %v4703_v49 = vmax.f32 %v4671_v15, 0.0  ;;  %v4672_v42 = vmul.f32 0.5, %v4559_v56 }
 0x601   : > { %v4828_v11 = vpack.c.bf16 %v4798_v35, %v4797_v9  ;;  %v4737_v20 = vmin.f32 %v4705_v46, 4.0  ;;  %v4706_v27 = vmax.f32 %v4674_v18, 0.0  ;;  %v12544_v35 = vld [vmem:[#allocation31_spill] sm:$0xff]  ;;  %v5133_v18 = vpop.permute.xlu0 %5132 }
 0x602   : > { %v4827_v10 = vpack.c.bf16 %v4796_v6, %v4795_v30  ;;  %v4735_v17 = vmin.f32 %v4703_v49, 4.0  ;;  %v4704_v31 = vmax.f32 %v4672_v42, 0.0 }
 0x603   : > { %v9298_v33 = vround.rtne.f32 %v4737_v20  ;;  %v4738_v21 = vmin.f32 %v4706_v27, 4.0 }
 0x604   : > { %v9296_v1 = vround.rtne.f32 %v4735_v17  ;;  %v4736_v48 = vmin.f32 %v4704_v31, 4.0  ;;  %v8666_v22 = vpop.f32.mrb[104].mxu1  ;;  %8696 = vmatprep.mubr.msk.bf16.mxu0 %vm983_vm0, %v4827_v10 }
 0x605   : > { %v9299_v51 = vround.rtne.f32 %v4738_v21  ;;  %v4677_v54 = vmul.f32 0.5, %v8666_v22  ;;  %v4572_v16 = vpop.f32.mrb[105].mxu1  ;;  %8697 = vmatmul.mubr.msk.bf16.vlgmr.msra.gmra.mrb[92].mxu0 %vm983_vm0, %v4828_v11  ;;  %v4801_v23 = vmul.f32 0.25, %v9298_v33  ;;  %v5151_v21 = vpop.permute.xlu1 %5150 }
 0x606   : > { %v9297_v8 = vround.rtne.f32 %v4736_v48  ;;  %v4675_v36 = vmul.f32 0.5, %v4572_v16  ;;  %8177 = vmatpush3.bf16.msra.mxu0 %v12540_v44  ;;  %v8667_v58 = vpop.f32.mrb[106].mxu1  ;;  %v4799_v61 = vmul.f32 0.25, %v9296_v1 }
 0x607   : > { %v4802_v2 = vmul.f32 0.25, %v9299_v51  ;;  %v4709_v57 = vmax.f32 %v4677_v54, 0.0  ;;  %v4678_v5 = vmul.f32 0.5, %v8667_v58  ;;  %8178 = vmatprep.subr.bf16.mxu0 %v12541_v14  ;;  %v4575_v29 = vpop.f32.mrb[107].mxu1 }
 0x608   : > { %v4800_v37 = vmul.f32 0.25, %v9297_v8  ;;  %v4707_v32 = vmax.f32 %v4675_v36, 0.0  ;;  %v4676_v62 = vmul.f32 0.5, %v4575_v29 }
 0x609   : > { %v4830_v28 = vpack.c.bf16 %v4802_v2, %v4801_v23  ;;  %v4741_v47 = vmin.f32 %v4709_v57, 4.0  ;;  %v4710_v41 = vmax.f32 %v4678_v5, 0.0 }
 0x60a   : > { %v4829_v13 = vpack.c.bf16 %v4800_v37, %v4799_v61  ;;  %v4739_v7 = vmin.f32 %v4707_v32, 4.0  ;;  %v4708_v63 = vmax.f32 %v4676_v62, 0.0  ;;  %8179 = vmatpush3.bf16.msra.mxu0 %v12542_v25  ;;  %v5153_v62 = vpop.permute.xlu1 %5152 }
 0x60b   : > { %v9302_v59 = vround.rtne.f32 %v4741_v47  ;;  %v4742_v12 = vmin.f32 %v4710_v41, 4.0  ;;  %8180 = vmatprep.subr.bf16.mxu0 %v12543_v45 }
 0x60c   : > { %v9300_v0 = vround.rtne.f32 %v4739_v7  ;;  %v4740_v39 = vmin.f32 %v4708_v63, 4.0  ;;  %v8670_v52 = vpop.f32.mrb[108].mxu1  ;;  %8700 = vmatprep.mubr.msk.bf16.mxu0 %vm983_vm0, %v4829_v13 }
 0x60d   : > { %v9303_v60 = vround.rtne.f32 %v4742_v12  ;;  %v4681_v53 = vmul.f32 0.5, %v8670_v52  ;;  %v4588_v15 = vpop.f32.mrb[109].mxu1  ;;  %8701 = vmatmul.mubr.msk.bf16.gmra.mrb[96].mxu0 %vm983_vm0, %v4830_v28  ;;  %v4805_v56 = vmul.f32 0.25, %v9302_v59 }
 0x60e   : > { %v9301_v55 = vround.rtne.f32 %v4740_v39  ;;  %v4679_v9 = vmul.f32 0.5, %v4588_v15  ;;  %8181 = vmatpush3.bf16.msra.mxu0 %v12544_v35  ;;  %v8671_v46 = vpop.f32.mrb[110].mxu1  ;;  %v4803_v11 = vmul.f32 0.25, %v9300_v0 }
 0x60f   : > { %v4806_v30 = vmul.f32 0.25, %v9303_v60  ;;  %v4713_v6 = vmax.f32 %v4681_v53, 0.0  ;;  %v4682_v49 = vmul.f32 0.5, %v8671_v46  ;;  %8182 = vmatprep.subr.bf16.mxu0 %v5147_v26  ;;  %v4591_v42 = vpop.f32.mrb[111].mxu1  ;;  %v5135_v26 = vpop.permute.xlu0 %5134 }
 0x610   : > { %v4804_v20 = vmul.f32 0.25, %v9301_v55  ;;  %v4711_v27 = vmax.f32 %v4679_v9, 0.0  ;;  %v4680_v10 = vmul.f32 0.5, %v4591_v42  ;;  %v5155_v9 = vpop.permute.xlu1 %5154 }
 0x611   : > { %v4832_v17 = vpack.c.bf16 %v4806_v30, %v4805_v56  ;;  %v4745_v31 = vmin.f32 %v4713_v6, 4.0  ;;  %v4714_v33 = vmax.f32 %v4682_v49, 0.0 }
 0x612   : > { %v4831_v1 = vpack.c.bf16 %v4804_v20, %v4803_v11  ;;  %v4743_v48 = vmin.f32 %v4711_v27, 4.0  ;;  %v4712_v22 = vmax.f32 %v4680_v10, 0.0  ;;  %8183 = vmatpush3.bf16.msra.mxu0 %v5131_v19 }
 0x613   : > { %v9306_v51 = vround.rtne.f32 %v4745_v31  ;;  %v4746_v54 = vmin.f32 %v4714_v33, 4.0  ;;  %8184 = vmatprep.subr.bf16.mxu0 %v5149_v50  ;;  %v5137_v45 = vpop.permute.xlu0 %5136 }
 0x614   : > { %v9304_v16 = vround.rtne.f32 %v4743_v48  ;;  %v4744_v8 = vmin.f32 %v4712_v22, 4.0  ;;  %v8674_v36 = vpop.f32.mrb[112].mxu1  ;;  %8704 = vmatprep.mubr.msk.bf16.mxu0 %vm983_vm0, %v4831_v1 }
 0x615   : > { %v9307_v44 = vround.rtne.f32 %v4746_v54  ;;  %v4685_v58 = vmul.f32 0.5, %v8674_v36  ;;  %v4604_v23 = vpop.f32.mrb[113].mxu1  ;;  %8705 = vmatmul.mubr.msk.bf16.gmra.mrb[100].mxu0 %vm983_vm0, %v4832_v17  ;;  %v4809_v14 = vmul.f32 0.25, %v9306_v51 }
 0x616   : > { %v9305_v2 = vround.rtne.f32 %v4744_v8  ;;  %v4683_v57 = vmul.f32 0.5, %v4604_v23  ;;  %8185 = vmatpush3.bf16.msra.mxu0 %v5133_v18  ;;  %v8675_v5 = vpop.f32.mrb[114].mxu1  ;;  %v4807_v19 = vmul.f32 0.25, %v9304_v16 }
 0x617   : > { %v4810_v29 = vmul.f32 0.25, %v9307_v44  ;;  %v4717_v61 = vmax.f32 %v4685_v58, 0.0  ;;  %v4686_v37 = vmul.f32 0.5, %v8675_v5  ;;  %8186 = vmatprep.subr.bf16.mxu0 %v5151_v21  ;;  %v4607_v32 = vpop.f32.mrb[115].mxu1  ;;  %v5139_v17 = vpop.permute.xlu0 %5138 }
 0x618   : > { %v4808_v28 = vmul.f32 0.25, %v9305_v2  ;;  %v4715_v47 = vmax.f32 %v4683_v57, 0.0  ;;  %v4684_v41 = vmul.f32 0.5, %v4607_v32 }
 0x619   : > { %v4834_v13 = vpack.c.bf16 %v4810_v29, %v4809_v14  ;;  %v4749_v7 = vmin.f32 %v4717_v61, 4.0  ;;  %v4718_v63 = vmax.f32 %v4686_v37, 0.0 }
 0x61a   : > { %v4833_v25 = vpack.c.bf16 %v4808_v28, %v4807_v19  ;;  %v4747_v59 = vmin.f32 %v4715_v47, 4.0  ;;  %v4716_v12 = vmax.f32 %v4684_v41, 0.0  ;;  %8187 = vmatpush3.bf16.msra.mxu0 %v5135_v26 }
 0x61b   : > { %v9310_v50 = vround.rtne.f32 %v4749_v7  ;;  %v4750_v0 = vmin.f32 %v4718_v63, 4.0  ;;  %8188 = vmatprep.subr.bf16.mxu0 %v5153_v62  ;;  %v5226_v40 = vpop.permute.xlu0 %5225 }
 0x61c   : > { %v9308_v39 = vround.rtne.f32 %v4747_v59  ;;  %v4748_v52 = vmin.f32 %v4716_v12, 4.0  ;;  %v8678_v60 = vpop.f32.mrb[116].mxu1  ;;  %8708 = vmatprep.mubr.msk.bf16.mxu0 %vm983_vm0, %v4833_v25 }
 0x61d   : > { %v9311_v53 = vround.rtne.f32 %v4750_v0  ;;  %v4689_v15 = vmul.f32 0.5, %v8678_v60  ;;  %v4620_v55 = vpop.f32.mrb[117].mxu1  ;;  %8709 = vmatmul.mubr.msk.bf16.gmra.mrb[104].mxu0 %vm983_vm0, %v4834_v13  ;;  %v4813_v56 = vmul.f32 0.25, %v9310_v50 }
 0x61e   : > { %v9309_v35 = vround.rtne.f32 %v4748_v52  ;;  %v4687_v46 = vmul.f32 0.5, %v4620_v55  ;;  %8189 = vmatpush3.bf16.msra.mxu0 %v5137_v45  ;;  %v8679_v18 = vpop.f32.mrb[118].mxu1  ;;  %v4811_v11 = vmul.f32 0.25, %v9308_v39 }
 0x61f   : > { %v4814_v30 = vmul.f32 0.25, %v9311_v53  ;;  %v4721_v6 = vmax.f32 %v4689_v15, 0.0  ;;  %v4690_v49 = vmul.f32 0.5, %v8679_v18  ;;  %8190 = vmatprep.subr.bf16.mxu0 %v5155_v9  ;;  %v4623_v42 = vpop.f32.mrb[119].mxu1 }
 0x620   : > { %v4812_v20 = vmul.f32 0.25, %v9309_v35  ;;  %v4719_v27 = vmax.f32 %v4687_v46, 0.0  ;;  %v4688_v10 = vmul.f32 0.5, %v4623_v42 }
 0x621   : > { %v4836_v31 = vpack.c.bf16 %v4814_v30, %v4813_v56  ;;  %v4753_v33 = vmin.f32 %v4721_v6, 4.0  ;;  %v4722_v21 = vmax.f32 %v4690_v49, 0.0 }
 0x622   : > { %v4835_v1 = vpack.c.bf16 %v4812_v20, %v4811_v11  ;;  %v4751_v48 = vmin.f32 %v4719_v27, 4.0  ;;  %v4720_v22 = vmax.f32 %v4688_v10, 0.0  ;;  %8191 = vmatpush3.bf16.msra.mxu0 %v5139_v17 }
 0x623   : > { %v9314_v51 = vround.rtne.f32 %v4753_v33  ;;  %v4754_v54 = vmin.f32 %v4722_v21, 4.0 }
 0x624   : > { %v9312_v16 = vround.rtne.f32 %v4751_v48  ;;  %v4752_v8 = vmin.f32 %v4720_v22, 4.0  ;;  %v8682_v36 = vpop.f32.mrb[120].mxu1  ;;  %8712 = vmatprep.mubr.msk.bf16.mxu0 %vm983_vm0, %v4835_v1 }
 0x625   : > { %v9315_v26 = vround.rtne.f32 %v4754_v54  ;;  %v4693_v44 = vmul.f32 0.5, %v8682_v36  ;;  %v4636_v58 = vpop.f32.mrb[121].mxu1  ;;  %8713 = vmatmul.mubr.msk.bf16.gmra.mrb[108].mxu0 %vm983_vm0, %v4836_v31  ;;  %v4817_v5 = vmul.f32 0.25, %v9314_v51 }
 0x626   : > { %v9313_v23 = vround.rtne.f32 %v4752_v8  ;;  %v4691_v2 = vmul.f32 0.5, %v4636_v58  ;;  %v8683_v57 = vpop.f32.mrb[122].mxu1  ;;  %v4815_v32 = vmul.f32 0.25, %v9312_v16  ;;  %v5224_v58 = vpop.permute.xlu1 %5223 }
 0x627   : > { %v4818_v14 = vmul.f32 0.25, %v9315_v26  ;;  %v4725_v29 = vmax.f32 %v4693_v44, 0.0  ;;  %v4694_v61 = vmul.f32 0.5, %v8683_v57  ;;  %v4639_v37 = vpop.f32.mrb[123].mxu1 }
 0x628   : > { %v4816_v62 = vmul.f32 0.25, %v9313_v23  ;;  %v4723_v19 = vmax.f32 %v4691_v2, 0.0  ;;  %v4692_v28 = vmul.f32 0.5, %v4639_v37 }
 0x629   : > { %v4838_v47 = vpack.c.bf16 %v4818_v14, %v4817_v5  ;;  %v4757_v41 = vmin.f32 %v4725_v29, 4.0  ;;  %v4726_v13 = vmax.f32 %v4694_v61, 0.0 }
 0x62a   : > { %v4837_v7 = vpack.c.bf16 %v4816_v62, %v4815_v32  ;;  %v4755_v63 = vmin.f32 %v4723_v19, 4.0  ;;  %v4724_v25 = vmax.f32 %v4692_v28, 0.0 }
 0x62b   : > { %v9318_v59 = vround.rtne.f32 %v4757_v41  ;;  %v4758_v12 = vmin.f32 %v4726_v13, 4.0  ;;  %v5230_v41 = vpop.permute.xlu0 %5229 }
 0x62c   : > { %v9316_v45 = vround.rtne.f32 %v4755_v63  ;;  %v4756_v50 = vmin.f32 %v4724_v25, 4.0  ;;  %v8686_v0 = vpop.f32.mrb[124].mxu1  ;;  %8716 = vmatprep.mubr.msk.bf16.mxu0 %vm983_vm0, %v4837_v7 }
 0x62d   : > { %v9319_v39 = vround.rtne.f32 %v4758_v12  ;;  %v4697_v52 = vmul.f32 0.5, %v8686_v0  ;;  %v4652_v60 = vpop.f32.mrb[125].mxu1  ;;  %8717 = vmatmul.mubr.msk.bf16.gmra.mrb[112].mxu0 %vm983_vm0, %v4838_v47  ;;  %v4821_v9 = vmul.f32 0.25, %v9318_v59 }
 0x62e   : > { %v9317_v53 = vround.rtne.f32 %v4756_v50  ;;  %v4695_v15 = vmul.f32 0.5, %v4652_v60  ;;  %v8687_v55 = vpop.f32.mrb[126].mxu1  ;;  %v4819_v30 = vmul.f32 0.25, %v9316_v45 }
 0x62f   : > { %v4822_v35 = vmul.f32 0.25, %v9319_v39  ;;  %v4729_v46 = vmax.f32 %v4697_v52, 0.0  ;;  %v4698_v18 = vmul.f32 0.5, %v8687_v55  ;;  %v4655_v56 = vpop.f32.mrb[127].mxu1  ;;  %v5234_v7 = vpop.permute.xlu0 %5233  ;;  %v9566_v55 = vld [vmem:[%s12282_s11 + $0x78] sm:$0xff]  }
 0x630   : > { %v4820_v6 = vmul.f32 0.25, %v9317_v53  ;;  %v4727_v49 = vmax.f32 %v4695_v15, 0.0  ;;  %v4696_v42 = vmul.f32 0.5, %v4655_v56  ;;  %v9564_v53 = vld [vmem:[%s12282_s11 + $0x68] sm:$0xff]   ;;  %v9565_v15 = vld [vmem:[%s12282_s11 + $0x70] sm:$0xff]  }
 0x631   : > { %v4840_v11 = vpack.c.bf16 %v4822_v35, %v4821_v9  ;;  %v4761_v20 = vmin.f32 %v4729_v46, 4.0  ;;  %v4730_v27 = vmax.f32 %v4698_v18, 0.0  ;;  %v9567_v9 = vld [vmem:[%s12285_s14] ss:$8 sps:$4 sm:$0xff]   ;;  %v9569_v35 = vld [vmem:[%s12285_s14 + $0x4] ss:$8 sps:$4 sm:$0xff]  }
 0x632   : > { %v4839_v10 = vpack.c.bf16 %v4820_v6, %v4819_v30  ;;  %v4759_v17 = vmin.f32 %v4727_v49, 4.0  ;;  %v4728_v31 = vmax.f32 %v4696_v42, 0.0  ;;  %v9572_v46 = vld [vmem:[%s12285_s14 + $0x14] ss:$8 sps:$4 sm:$0xff]   ;;  %6416 = vmatprep.subr.bf16.mxu1 %v9569_v35  ;;  %v9570_v18 = vld [vmem:[%s12285_s14 + $0x10] ss:$8 sps:$4 sm:$0xff]  }
 0x633   : > { %v9322_v33 = vround.rtne.f32 %v4761_v20  ;;  %v4762_v21 = vmin.f32 %v4730_v27, 4.0  ;;  %v5238_v25 = vpop.permute.xlu0 %5237  ;;  %6417 = vmatpush1.bf16.msra.mxu1 %v9567_v9 }
 0x634   : > { %v9320_v1 = vround.rtne.f32 %v4759_v17  ;;  %v4760_v48 = vmin.f32 %v4728_v31, 4.0  ;;  %8720 = vmatprep.mubr.msk.bf16.mxu0 %vm983_vm0, %v4839_v10  ;;  %6418 = vmatprep.subr.bf16.mxu1 %v9572_v46 }
 0x635   : > { %v9323_v22 = vround.rtne.f32 %v4762_v21  ;;  %8721 = vmatmul.mubr.msk.bf16.gmra.mrb[116].mxu0 %vm983_vm0, %v4840_v11  ;;  %v4825_v54 = vmul.f32 0.25, %v9322_v33 }
 0x636   : > { %v9321_v51 = vround.rtne.f32 %v4760_v48  ;;  %v4823_v8 = vmul.f32 0.25, %v9320_v1 }
 0x637   : > { %v4826_v16 = vmul.f32 0.25, %v9323_v22  ;;  %v5242_v12 = vpop.permute.xlu0 %5241  ;;  %6419 = vmatpush1.bf16.msra.mxu1 %v9570_v18 }
 0x638   : > { %v4824_v36 = vmul.f32 0.25, %v9321_v51 }
 0x639   : > { %v4842_v26 = vpack.c.bf16 %v4826_v16, %v4825_v54 }
 0x63a   : > { %v4841_v44 = vpack.c.bf16 %v4824_v36, %v4823_v8 }
 0x63b   : > { %v5246_v50 = vpop.permute.xlu0 %5245 }
 0x63c   : > { %8724 = vmatprep.mubr.msk.bf16.mxu0 %vm983_vm0, %v4841_v44 }
 0x63d   : > { %8725 = vmatmul.mubr.msk.bf16.gmra.mrb[120].mxu0 %vm983_vm0, %v4842_v26 }
 0x63e   : > { %5204 = vmatprep.mubr.bf16.mxu0 %v1727_v34 }
 0x63f   : > { %v5250_v39 = vpop.permute.xlu0 %5249 }
 0x643   : > { %v5254_v60 = vpop.permute.xlu0 %5253 }
 0x645   : > { %5205 = vmatmul.mubr.bf16.vlgmr.msra.gmra.mrb[124].mxu0 %v1726_v4  ;;  %v5228_v4 = vpop.permute.xlu1 %5227 }
 0x646   : > { %8730 = vmatprep.mubr.msk.bf16.mxu0 %vm2492_vm1, %v5224_v58 }
 0x649   : > { %v5232_v13 = vpop.permute.xlu1 %5231 }
 0x64d   : > { %v5236_v63 = vpop.permute.xlu1 %5235 }
 0x651   : > { %v5240_v59 = vpop.permute.xlu1 %5239 }
 0x655   : > { %v5244_v45 = vpop.permute.xlu1 %5243 }
 0x659   : > { %v5248_v0 = vpop.permute.xlu1 %5247 }
 0x65d   : > { %v5252_v52 = vpop.permute.xlu1 %5251 }
 0x718   : > { %v8192_v23 = vpop.f32.mrb[124].mxu0 }
 0x719   : > { %v8193_v2 = vpop.f32.mrb[125].mxu0 }
 0x71a   : > { %v8194_v57 = vadd.f32 %v8193_v2, %v8192_v23  ;;  %v8195_v5 = vpop.f32.mrb[126].mxu0 }
 0x71b   : > { %v8196_v14 = vpop.f32.mrb[127].mxu0 }
 0x71c   : > { %v5213_v29 = vmul.f32 0.0625, %v8194_v57  ;;  %v8197_v61 = vadd.f32 %v8196_v14, %v8195_v5 }
 0x71e   : > { %v5215_v37 = vfloor.f32 %v5213_v29  ;;  %v5214_v32 = vmul.f32 0.0625, %v8197_v61 }
 0x720   : > { %v5217_v62 = vmul.f32 16.0, %v5215_v37  ;;  %v5216_v19 = vfloor.f32 %v5214_v32 }
 0x722   : > { %v5218_v38 = vmul.f32 16.0, %v5216_v19  ;;  %v5219_v3 = vsub.f32 %v8194_v57, %v5217_v62 }
 0x724   : > { %v5220_v34 = vsub.f32 %v8197_v61, %v5218_v38  ;;  %v5221_v28 = vpack.c.bf16 %v5218_v38, %v5217_v62 }
 0x726   : > { %v5222_v47 = vpack.c.bf16 %v5220_v34, %v5219_v3 }
 0x728   : > { %8728 = vmatprep.subr.bf16.mxu0 %v5222_v47 }
 0x729   : > { %8729 = vmatpush3.bf16.msra.mxu0 %v5222_v47 }
 0x72a   : > { %8762 = vmatprep.subr.bf16.mxu0 %v5221_v28 }
 0x72c   : > { %8731 = vmatmul.mubr.msk.bf16.vlgmr.msra.gmra.mrb[128].mxu0 %vm2492_vm1, %v5226_v40 }
 0x72d   : > { %8734 = vmatprep.mubr.msk.bf16.mxu0 %vm2492_vm1, %v5228_v4  ;;  %8763 = vmatpush3.bf16.msra.mxu0 %v5221_v28 }
 0x72e   : > { %8796 = vmatprep.subr.bf16.mxu0 %v9563_v43 }
 0x734   : > { %8735 = vmatmul.mubr.msk.bf16.gmra.mrb[132].mxu0 %vm2492_vm1, %v5230_v41 }
 0x735   : > { %8738 = vmatprep.mubr.msk.bf16.mxu0 %vm2492_vm1, %v5232_v13 }
 0x73c   : > { %8739 = vmatmul.mubr.msk.bf16.gmra.mrb[136].mxu0 %vm2492_vm1, %v5234_v7 }
 0x73d   : > { %8742 = vmatprep.mubr.msk.bf16.mxu0 %vm2492_vm1, %v5236_v63 }
 0x744   : > { %8743 = vmatmul.mubr.msk.bf16.gmra.mrb[140].mxu0 %vm2492_vm1, %v5238_v25 }
 0x745   : > { %8746 = vmatprep.mubr.msk.bf16.mxu0 %vm2492_vm1, %v5240_v59 }
 0x74c   : > { %8747 = vmatmul.mubr.msk.bf16.gmra.mrb[144].mxu0 %vm2492_vm1, %v5242_v12 }
 0x74d   : > { %8750 = vmatprep.mubr.msk.bf16.mxu0 %vm2492_vm1, %v5244_v45 }
 0x754   : > { %8751 = vmatmul.mubr.msk.bf16.gmra.mrb[148].mxu0 %vm2492_vm1, %v5246_v50 }
 0x755   : > { %8754 = vmatprep.mubr.msk.bf16.mxu0 %vm2492_vm1, %v5248_v0 }
 0x75c   : > { %8755 = vmatmul.mubr.msk.bf16.gmra.mrb[152].mxu0 %vm2492_vm1, %v5250_v39 }
 0x75d   : > { %8758 = vmatprep.mubr.msk.bf16.mxu0 %vm2492_vm1, %v5252_v52 }
 0x764   : > { %8759 = vmatmul.mubr.msk.bf16.gmra.mrb[156].mxu0 %vm2492_vm1, %v5254_v60 }
 0x765   : > { %8764 = vmatprep.mubr.msk.bf16.mxu0 %vm2492_vm1, %v5224_v58 }
 0x76c   : > { %8765 = vmatmul.mubr.msk.bf16.vlgmr.msra.gmra.mrb[128].mxu0 %vm2492_vm1, %v5226_v40 }
 0x76d   : > { %8768 = vmatprep.mubr.msk.bf16.mxu0 %vm2492_vm1, %v5228_v4  ;;  %8797 = vmatpush3.bf16.msra.mxu0 %v9563_v43 }
 0x76e   : > { %8798 = vmatprep.subr.bf16.mxu0 %v9564_v53 }
 0x771   : > { %8799 = vmatpush3.bf16.msra.mxu0 %v9564_v53 }
 0x772   : > { %8800 = vmatprep.subr.bf16.mxu0 %v9565_v15 }
 0x774   : > { %8769 = vmatmul.mubr.msk.bf16.gmra.mrb[132].mxu0 %vm2492_vm1, %v5230_v41 }
 0x775   : > { %8772 = vmatprep.mubr.msk.bf16.mxu0 %vm2492_vm1, %v5232_v13  ;;  %8801 = vmatpush3.bf16.msra.mxu0 %v9565_v15 }
 0x776   : > { %8802 = vmatprep.subr.bf16.mxu0 %v9566_v55 }
 0x779   : > { %8803 = vmatpush3.bf16.msra.mxu0 %v9566_v55 }
 0x77c   : > { %8773 = vmatmul.mubr.msk.bf16.gmra.mrb[136].mxu0 %vm2492_vm1, %v5234_v7 }
 0x77d   : > { %8776 = vmatprep.mubr.msk.bf16.mxu0 %vm2492_vm1, %v5236_v63 }
 0x784   : > { %8777 = vmatmul.mubr.msk.bf16.gmra.mrb[140].mxu0 %vm2492_vm1, %v5238_v25 }
 0x785   : > { %8780 = vmatprep.mubr.msk.bf16.mxu0 %vm2492_vm1, %v5240_v59 }
 0x78c   : > { %8781 = vmatmul.mubr.msk.bf16.gmra.mrb[144].mxu0 %vm2492_vm1, %v5242_v12 }
 0x78d   : > { %8784 = vmatprep.mubr.msk.bf16.mxu0 %vm2492_vm1, %v5244_v45 }
 0x794   : > { %8785 = vmatmul.mubr.msk.bf16.gmra.mrb[148].mxu0 %vm2492_vm1, %v5246_v50 }
 0x795   : > { %8788 = vmatprep.mubr.msk.bf16.mxu0 %vm2492_vm1, %v5248_v0 }
 0x79c   : > { %8789 = vmatmul.mubr.msk.bf16.gmra.mrb[152].mxu0 %vm2492_vm1, %v5250_v39 }
 0x79d   : > { %8792 = vmatprep.mubr.msk.bf16.mxu0 %vm2492_vm1, %v5252_v52 }
 0x7a4   : > { %8793 = vmatmul.mubr.msk.bf16.gmra.mrb[156].mxu0 %vm2492_vm1, %v5254_v60 }
 0x83f   : > { %v8766_v56 = vpop.f32.mrb[128].mxu0 }
 0x840   : > { %v5627_v30 = vmul.f32 0.5, %v8766_v56  ;;  %v5498_v6 = vpop.f32.mrb[129].mxu0 }
 0x841   : > { %v5625_v49 = vmul.f32 0.5, %v5498_v6  ;;  %v8767_v42 = vpop.f32.mrb[130].mxu0 }
 0x842   : > { %v5659_v11 = vmax.f32 %v5627_v30, 0.0  ;;  %v5628_v20 = vmul.f32 0.5, %v8767_v42  ;;  %v5501_v27 = vpop.f32.mrb[131].mxu0 }
 0x843   : > { %v5657_v10 = vmax.f32 %v5625_v49, 0.0  ;;  %v5626_v17 = vmul.f32 0.5, %v5501_v27 }
 0x844   : > { %v5691_v31 = vmin.f32 %v5659_v11, 4.0  ;;  %v5660_v33 = vmax.f32 %v5628_v20, 0.0 }
 0x845   : > { %v5689_v21 = vmin.f32 %v5657_v10, 4.0  ;;  %v5658_v1 = vmax.f32 %v5626_v17, 0.0 }
 0x846   : > { %v9326_v48 = vround.rtne.f32 %v5691_v31  ;;  %v5692_v22 = vmin.f32 %v5660_v33, 4.0 }
 0x847   : > { %v9324_v51 = vround.rtne.f32 %v5689_v21  ;;  %v5690_v54 = vmin.f32 %v5658_v1, 4.0  ;;  %v8770_v16 = vpop.f32.mrb[132].mxu0 }
 0x848   : > { %v9327_v8 = vround.rtne.f32 %v5692_v22  ;;  %v5631_v36 = vmul.f32 0.5, %v8770_v16  ;;  %v5514_v26 = vpop.f32.mrb[133].mxu0  ;;  %v5755_v2 = vmul.f32 0.25, %v9326_v48 }
 0x849   : > { %v9325_v44 = vround.rtne.f32 %v5690_v54  ;;  %v5629_v58 = vmul.f32 0.5, %v5514_v26  ;;  %v8771_v23 = vpop.f32.mrb[134].mxu0  ;;  %v5753_v61 = vmul.f32 0.25, %v9324_v51 }
 0x84a   : > { %v5756_v57 = vmul.f32 0.25, %v9327_v8  ;;  %v5663_v5 = vmax.f32 %v5631_v36, 0.0  ;;  %v5632_v14 = vmul.f32 0.5, %v8771_v23  ;;  %v5517_v29 = vpop.f32.mrb[135].mxu0 }
 0x84b   : > { %v5754_v37 = vmul.f32 0.25, %v9325_v44  ;;  %v5661_v32 = vmax.f32 %v5629_v58, 0.0  ;;  %v5630_v62 = vmul.f32 0.5, %v5517_v29 }
 0x84c   : > { %v5786_v19 = vpack.c.bf16 %v5756_v57, %v5755_v2  ;;  %v5695_v38 = vmin.f32 %v5663_v5, 4.0  ;;  %v5664_v3 = vmax.f32 %v5632_v14, 0.0 }
 0x84d   : > { %v5785_v34 = vpack.c.bf16 %v5754_v37, %v5753_v61  ;;  %v5693_v28 = vmin.f32 %v5661_v32, 4.0  ;;  %v5662_v47 = vmax.f32 %v5630_v62, 0.0 }
 0x84e   : > { %v9330_v43 = vround.rtne.f32 %v5695_v38  ;;  %v5696_v40 = vmin.f32 %v5664_v3, 4.0 }
 0x84f   : > { %v9328_v4 = vround.rtne.f32 %v5693_v28  ;;  %v5694_v41 = vmin.f32 %v5662_v47, 4.0  ;;  %v8774_v13 = vpop.f32.mrb[136].mxu0  ;;  %8804 = vmatprep.mubr.msk.bf16.mxu0 %vm983_vm0, %v5785_v34 }
 0x850   : > { %v9331_v7 = vround.rtne.f32 %v5696_v40  ;;  %v5635_v63 = vmul.f32 0.5, %v8774_v13  ;;  %v5530_v25 = vpop.f32.mrb[137].mxu0  ;;  %8805 = vmatmul.mubr.msk.bf16.vlgmr.msra.gmra.mrb[92].mxu0 %vm983_vm0, %v5786_v19  ;;  %v5759_v50 = vmul.f32 0.25, %v9330_v43 }
 0x851   : > { %v9329_v59 = vround.rtne.f32 %v5694_v41  ;;  %v5633_v12 = vmul.f32 0.5, %v5530_v25  ;;  %v8775_v45 = vpop.f32.mrb[138].mxu0  ;;  %v5757_v53 = vmul.f32 0.25, %v9328_v4 }
 0x852   : > { %v5760_v0 = vmul.f32 0.25, %v9331_v7  ;;  %v5667_v39 = vmax.f32 %v5635_v63, 0.0  ;;  %v5636_v52 = vmul.f32 0.5, %v8775_v45  ;;  %v5533_v60 = vpop.f32.mrb[139].mxu0 }
 0x853   : > { %v5758_v15 = vmul.f32 0.25, %v9329_v59  ;;  %v5665_v55 = vmax.f32 %v5633_v12, 0.0  ;;  %v5634_v9 = vmul.f32 0.5, %v5533_v60 }
 0x854   : > { %v5788_v35 = vpack.c.bf16 %v5760_v0, %v5759_v50  ;;  %v5699_v46 = vmin.f32 %v5667_v39, 4.0  ;;  %v5668_v18 = vmax.f32 %v5636_v52, 0.0 }
 0x855   : > { %v5787_v56 = vpack.c.bf16 %v5758_v15, %v5757_v53  ;;  %v5697_v30 = vmin.f32 %v5665_v55, 4.0  ;;  %v5666_v6 = vmax.f32 %v5634_v9, 0.0 }
 0x856   : > { %v9334_v49 = vround.rtne.f32 %v5699_v46  ;;  %v5700_v42 = vmin.f32 %v5668_v18, 4.0 }
 0x857   : > { %v9332_v11 = vround.rtne.f32 %v5697_v30  ;;  %v5698_v20 = vmin.f32 %v5666_v6, 4.0  ;;  %v8778_v27 = vpop.f32.mrb[140].mxu0  ;;  %8808 = vmatprep.mubr.msk.bf16.mxu0 %vm983_vm0, %v5787_v56 }
 0x858   : > { %v9335_v10 = vround.rtne.f32 %v5700_v42  ;;  %v5639_v17 = vmul.f32 0.5, %v8778_v27  ;;  %v5546_v31 = vpop.f32.mrb[141].mxu0  ;;  %8809 = vmatmul.mubr.msk.bf16.gmra.mrb[96].mxu0 %vm983_vm0, %v5788_v35  ;;  %v5763_v48 = vmul.f32 0.25, %v9334_v49 }
 0x859   : > { %v9333_v33 = vround.rtne.f32 %v5698_v20  ;;  %v5637_v21 = vmul.f32 0.5, %v5546_v31  ;;  %v8779_v1 = vpop.f32.mrb[142].mxu0  ;;  %v5761_v8 = vmul.f32 0.25, %v9332_v11 }
 0x85a   : > { %v5764_v22 = vmul.f32 0.25, %v9335_v10  ;;  %v5671_v51 = vmax.f32 %v5639_v17, 0.0  ;;  %v5640_v54 = vmul.f32 0.5, %v8779_v1  ;;  %v5549_v16 = vpop.f32.mrb[143].mxu0 }
 0x85b   : > { %v5762_v36 = vmul.f32 0.25, %v9333_v33  ;;  %v5669_v26 = vmax.f32 %v5637_v21, 0.0  ;;  %v5638_v44 = vmul.f32 0.5, %v5549_v16 }
 0x85c   : > { %v5790_v58 = vpack.c.bf16 %v5764_v22, %v5763_v48  ;;  %v5703_v23 = vmin.f32 %v5671_v51, 4.0  ;;  %v5672_v2 = vmax.f32 %v5640_v54, 0.0 }
 0x85d   : > { %v5789_v57 = vpack.c.bf16 %v5762_v36, %v5761_v8  ;;  %v5701_v5 = vmin.f32 %v5669_v26, 4.0  ;;  %v5670_v14 = vmax.f32 %v5638_v44, 0.0 }
 0x85e   : > { %v9338_v29 = vround.rtne.f32 %v5703_v23  ;;  %v5704_v61 = vmin.f32 %v5672_v2, 4.0 }
 0x85f   : > { %v9336_v37 = vround.rtne.f32 %v5701_v5  ;;  %v5702_v32 = vmin.f32 %v5670_v14, 4.0  ;;  %v8782_v62 = vpop.f32.mrb[144].mxu0  ;;  %8812 = vmatprep.mubr.msk.bf16.mxu0 %vm983_vm0, %v5789_v57 }
 0x860   : > { %v9339_v19 = vround.rtne.f32 %v5704_v61  ;;  %v5643_v38 = vmul.f32 0.5, %v8782_v62  ;;  %v5562_v3 = vpop.f32.mrb[145].mxu0  ;;  %8813 = vmatmul.mubr.msk.bf16.gmra.mrb[100].mxu0 %vm983_vm0, %v5790_v58  ;;  %v5767_v43 = vmul.f32 0.25, %v9338_v29 }
 0x861   : > { %v9337_v34 = vround.rtne.f32 %v5702_v32  ;;  %v5641_v28 = vmul.f32 0.5, %v5562_v3  ;;  %v8783_v47 = vpop.f32.mrb[146].mxu0  ;;  %v5765_v7 = vmul.f32 0.25, %v9336_v37 }
 0x862   : > { %v5768_v40 = vmul.f32 0.25, %v9339_v19  ;;  %v5675_v4 = vmax.f32 %v5643_v38, 0.0  ;;  %v5644_v41 = vmul.f32 0.5, %v8783_v47  ;;  %v5565_v13 = vpop.f32.mrb[147].mxu0 }
 0x863   : > { %v5766_v63 = vmul.f32 0.25, %v9337_v34  ;;  %v5673_v25 = vmax.f32 %v5641_v28, 0.0  ;;  %v5642_v59 = vmul.f32 0.5, %v5565_v13 }
 0x864   : > { %v5792_v12 = vpack.c.bf16 %v5768_v40, %v5767_v43  ;;  %v5707_v45 = vmin.f32 %v5675_v4, 4.0  ;;  %v5676_v50 = vmax.f32 %v5644_v41, 0.0 }
 0x865   : > { %v5791_v0 = vpack.c.bf16 %v5766_v63, %v5765_v7  ;;  %v5705_v39 = vmin.f32 %v5673_v25, 4.0  ;;  %v5674_v52 = vmax.f32 %v5642_v59, 0.0 }
 0x866   : > { %v9342_v60 = vround.rtne.f32 %v5707_v45  ;;  %v5708_v53 = vmin.f32 %v5676_v50, 4.0 }
 0x867   : > { %v9340_v15 = vround.rtne.f32 %v5705_v39  ;;  %v5706_v55 = vmin.f32 %v5674_v52, 4.0  ;;  %v8786_v9 = vpop.f32.mrb[148].mxu0  ;;  %8816 = vmatprep.mubr.msk.bf16.mxu0 %vm983_vm0, %v5791_v0 }
 0x868   : > { %v9343_v35 = vround.rtne.f32 %v5708_v53  ;;  %v5647_v46 = vmul.f32 0.5, %v8786_v9  ;;  %v5578_v18 = vpop.f32.mrb[149].mxu0  ;;  %8817 = vmatmul.mubr.msk.bf16.gmra.mrb[104].mxu0 %vm983_vm0, %v5792_v12  ;;  %v5771_v49 = vmul.f32 0.25, %v9342_v60 }
 0x869   : > { %v9341_v56 = vround.rtne.f32 %v5706_v55  ;;  %v5645_v30 = vmul.f32 0.5, %v5578_v18  ;;  %v8787_v6 = vpop.f32.mrb[150].mxu0  ;;  %v5769_v10 = vmul.f32 0.25, %v9340_v15 }
 0x86a   : > { %v5772_v42 = vmul.f32 0.25, %v9343_v35  ;;  %v5679_v11 = vmax.f32 %v5647_v46, 0.0  ;;  %v5648_v20 = vmul.f32 0.5, %v8787_v6  ;;  %v5581_v27 = vpop.f32.mrb[151].mxu0 }
 0x86b   : > { %v5770_v17 = vmul.f32 0.25, %v9341_v56  ;;  %v5677_v31 = vmax.f32 %v5645_v30, 0.0  ;;  %v5646_v33 = vmul.f32 0.5, %v5581_v27 }
 0x86c   : > { %v5794_v21 = vpack.c.bf16 %v5772_v42, %v5771_v49  ;;  %v5711_v1 = vmin.f32 %v5679_v11, 4.0  ;;  %v5680_v48 = vmax.f32 %v5648_v20, 0.0 }
 0x86d   : > { %v5793_v22 = vpack.c.bf16 %v5770_v17, %v5769_v10  ;;  %v5709_v51 = vmin.f32 %v5677_v31, 4.0  ;;  %v5678_v54 = vmax.f32 %v5646_v33, 0.0 }
 0x86e   : > { %v9346_v16 = vround.rtne.f32 %v5711_v1  ;;  %v5712_v8 = vmin.f32 %v5680_v48, 4.0 }
 0x86f   : > { %v9344_v36 = vround.rtne.f32 %v5709_v51  ;;  %v5710_v26 = vmin.f32 %v5678_v54, 4.0  ;;  %v8790_v44 = vpop.f32.mrb[152].mxu0  ;;  %8820 = vmatprep.mubr.msk.bf16.mxu0 %vm983_vm0, %v5793_v22 }
 0x870   : > { %v9347_v58 = vround.rtne.f32 %v5712_v8  ;;  %v5651_v23 = vmul.f32 0.5, %v8790_v44  ;;  %v5594_v2 = vpop.f32.mrb[153].mxu0  ;;  %8821 = vmatmul.mubr.msk.bf16.gmra.mrb[108].mxu0 %vm983_vm0, %v5794_v21  ;;  %v5775_v29 = vmul.f32 0.25, %v9346_v16  ;;  %v9573_v8 = vld [vmem:[%s12285_s14 + $0x20] ss:$8 sps:$4 sm:$0xff]  }
 0x871   : > { %v9345_v57 = vround.rtne.f32 %v5710_v26  ;;  %v5649_v5 = vmul.f32 0.5, %v5594_v2  ;;  %v8791_v14 = vpop.f32.mrb[154].mxu0  ;;  %v5773_v19 = vmul.f32 0.25, %v9344_v36  ;;  %v9575_v36 = vld [vmem:[%s12285_s14 + $0x24] ss:$8 sps:$4 sm:$0xff]  }
 0x872   : > { %v5776_v61 = vmul.f32 0.25, %v9347_v58  ;;  %v5683_v37 = vmax.f32 %v5651_v23, 0.0  ;;  %v5652_v32 = vmul.f32 0.5, %v8791_v14  ;;  %v5597_v62 = vpop.f32.mrb[155].mxu0  ;;  %6420 = vmatprep.subr.bf16.mxu1 %v9575_v36  ;;  %v9576_v26 = vld [vmem:[%s12285_s14 + $0x30] ss:$8 sps:$4 sm:$0xff]  }
 0x873   : > { %v5774_v38 = vmul.f32 0.25, %v9345_v57  ;;  %v5681_v3 = vmax.f32 %v5649_v5, 0.0  ;;  %v5650_v34 = vmul.f32 0.5, %v5597_v62  ;;  %6421 = vmatpush1.bf16.msra.mxu1 %v9573_v8  ;;  %v9578_v44 = vld [vmem:[%s12285_s14 + $0x34] ss:$8 sps:$4 sm:$0xff]  }
 0x874   : > { %v5796_v28 = vpack.c.bf16 %v5776_v61, %v5775_v29  ;;  %v5715_v47 = vmin.f32 %v5683_v37, 4.0  ;;  %v5684_v43 = vmax.f32 %v5652_v32, 0.0  ;;  %6422 = vmatprep.subr.bf16.mxu1 %v9578_v44  ;;  %v11611_v58 = vld [vmem:[#allocation7] ss:$0 sm:$0xff]  ;;  %v9595_v29 = vld [vmem:[%s10073_s24 + $0x10] sm:$0xff] }
 0x875   : > { %v5795_v40 = vpack.c.bf16 %v5774_v38, %v5773_v19  ;;  %v5713_v4 = vmin.f32 %v5681_v3, 4.0  ;;  %v5682_v41 = vmax.f32 %v5650_v34, 0.0  ;;  %v11619_v37 = vld [vmem:[%s12284_s13] ss:$0 sm:$0xff]  ;;  %v9597_v34 = vld [vmem:[%s10073_s24 + $0x18] sm:$0xff] }
 0x876   : > { %v9350_v13 = vround.rtne.f32 %v5715_v47  ;;  %v5716_v7 = vmin.f32 %v5684_v43, 4.0  ;;  %v9596_v19 = vld [vmem:[%s10073_s24] sm:$0xff]  ;;  %v9598_v43 = vld [vmem:[%s10073_s24 + $0x8] sm:$0xff] }
 0x877   : > { %v9348_v63 = vround.rtne.f32 %v5713_v4  ;;  %v5714_v25 = vmin.f32 %v5682_v41, 4.0  ;;  %v8794_v59 = vpop.f32.mrb[156].mxu0  ;;  %8824 = vmatprep.mubr.msk.bf16.mxu0 %vm983_vm0, %v5795_v40  ;;  %6423 = vmatpush1.bf16.msra.mxu1 %v9576_v26  ;;  %v9602_v26 = vld [vmem:[%s10073_s24 + $0x30] sm:$0xff] }
 0x878   : > { %v9351_v12 = vround.rtne.f32 %v5716_v7  ;;  %v5655_v45 = vmul.f32 0.5, %v8794_v59  ;;  %v5610_v50 = vpop.f32.mrb[157].mxu0  ;;  %8825 = vmatmul.mubr.msk.bf16.gmra.mrb[112].mxu0 %vm983_vm0, %v5796_v28  ;;  %v5779_v60 = vmul.f32 0.25, %v9350_v13 }
 0x879   : > { %v9349_v0 = vround.rtne.f32 %v5714_v25  ;;  %v5653_v39 = vmul.f32 0.5, %v5610_v50  ;;  %v8795_v52 = vpop.f32.mrb[158].mxu0  ;;  %v5777_v35 = vmul.f32 0.25, %v9348_v63 }
 0x87a   : > { %v5780_v53 = vmul.f32 0.25, %v9351_v12  ;;  %v5687_v15 = vmax.f32 %v5655_v45, 0.0  ;;  %v5656_v55 = vmul.f32 0.5, %v8795_v52  ;;  %v5613_v9 = vpop.f32.mrb[159].mxu0 }
 0x87b   : > { %v5778_v46 = vmul.f32 0.25, %v9349_v0  ;;  %v5685_v18 = vmax.f32 %v5653_v39, 0.0  ;;  %v5654_v56 = vmul.f32 0.5, %v5613_v9 }
 0x87c   : > { %v5798_v30 = vpack.c.bf16 %v5780_v53, %v5779_v60  ;;  %v5719_v6 = vmin.f32 %v5687_v15, 4.0  ;;  %v5688_v49 = vmax.f32 %v5656_v55, 0.0  ;;  %v9599_v15 = vld [vmem:[%s10073_s24 + $0x20] sm:$0xff] }
 0x87d   : > { %v5797_v42 = vpack.c.bf16 %v5778_v46, %v5777_v35  ;;  %v5717_v11 = vmin.f32 %v5685_v18, 4.0  ;;  %v5686_v20 = vmax.f32 %v5654_v56, 0.0  ;;  %v9579_v35 = vld [vmem:[%s12288_s17 + $0x40] sm:$0xff]  }
 0x87e   : > { %v9354_v27 = vround.rtne.f32 %v5719_v6  ;;  %v5720_v10 = vmin.f32 %v5688_v49, 4.0  ;;  %8252 = vmatprep.subr.bf16.mxu1 %v9579_v35  ;;  %v9587_v35 = vld [vmem:[%s12288_s17 + $0x60] sm:$0xff]  }
 0x87f   : > { %v9352_v17 = vround.rtne.f32 %v5717_v11  ;;  %v5718_v31 = vmin.f32 %v5686_v20, 4.0  ;;  %8828 = vmatprep.mubr.msk.bf16.mxu0 %vm983_vm0, %v5797_v42 }
 0x880   : > { %v9355_v33 = vround.rtne.f32 %v5720_v10  ;;  %8829 = vmatmul.mubr.msk.bf16.gmra.mrb[116].mxu0 %vm983_vm0, %v5798_v30  ;;  %v5783_v1 = vmul.f32 0.25, %v9354_v27  ;;  %v9600_v30 = vld [vmem:[%s10073_s24 + $0x28] sm:$0xff] }
 0x881   : > { %v9353_v21 = vround.rtne.f32 %v5718_v31  ;;  %v5781_v22 = vmul.f32 0.25, %v9352_v17  ;;  %v9601_v31 = vld [vmem:[%s10073_s24 + $0x38] sm:$0xff] }
 0x882   : > { %v5784_v48 = vmul.f32 0.25, %v9355_v33 }
 0x883   : > { %v5782_v51 = vmul.f32 0.25, %v9353_v21 }
 0x884   : > { %v5800_v54 = vpack.c.bf16 %v5784_v48, %v5783_v1  ;;  %v9580_v1 = vld [vmem:[%s12288_s17] sm:$0xff]  }
 0x885   : > { %v5799_v16 = vpack.c.bf16 %v5782_v51, %v5781_v22 }
 0x887   : > { %8832 = vmatprep.mubr.msk.bf16.mxu0 %vm983_vm0, %v5799_v16  ;;  %v9581_v16 = vld [vmem:[%s12288_s17 + $0x48] sm:$0xff]  }
 0x888   : > { %8833 = vmatmul.mubr.msk.bf16.gmra.mrb[120].mxu0 %vm983_vm0, %v5800_v54 }
 0x923   : > { %v8806_v23 = vpop.f32.mrb[92].mxu0 }
 0x924   : > { %v6075_v2 = vmul.f32 %v8806_v23, %v11611_v58  ;;  %v5907_v57 = vpop.f32.mrb[93].mxu0 }
 0x925   : > { %v6073_v5 = vmul.f32 %v11611_v58, %v5907_v57  ;;  %v8807_v14 = vpop.f32.mrb[94].mxu0  ;;  %v9582_v57 = vld [vmem:[%s12288_s17 + $0x8] sm:$0xff]  }
 0x926   : > { %v6107_v61 = vadd.f32 %v9595_v29, %v6075_v2  ;;  %v6076_v32 = vmul.f32 %v8807_v14, %v11611_v58  ;;  %v5910_v62 = vpop.f32.mrb[95].mxu0 }
 0x927   : > { %v6105_v38 = vadd.f32 %v9596_v19, %v6073_v5  ;;  %v6074_v3 = vmul.f32 %v11611_v58, %v5910_v62 }
 0x928   : > { %v6108_v28 = vadd.f32 %v9597_v34, %v6076_v32  ;;  %v11630_v4 = vadd.f32 %v11619_v37, %v6107_v61  ;;  %v9583_v61 = vld [vmem:[%s12288_s17 + $0x50] sm:$0xff]  }
 0x929   : > { %v11626_v47 = vadd.f32 %v11619_v37, %v6105_v38  ;;  %v6106_v40 = vadd.f32 %v9598_v43, %v6074_v3  ;;  %v9584_v43 = vld [vmem:[%s12288_s17 + $0x10] sm:$0xff]  }
 0x92a   : > { %v11633_v41 = vadd.f32 %v11619_v37, %v6108_v28  ;;  %v6178_v39 = vmax.f32 %v11630_v4, 0.0 }
 0x92b   : > { %v6176_v13 = vmax.f32 %v11626_v47, 0.0  ;;  %v11637_v7 = vadd.f32 %v11619_v37, %v6106_v40  ;;  %v8810_v63 = vpop.f32.mrb[96].mxu0 }
 0x92c   : > { %v5923_v25 = vpop.f32.mrb[97].mxu0  ;;  %v6179_v12 = vmax.f32 %v11633_v41, 0.0  ;;  %v6210_v49 = vmin.f32 %v6178_v39, 4.0  ;;  %v6079_v42 = vmul.f32 %v8810_v63, %v11611_v58  ;;  %v9604_v39 = vld [vmem:[%s10073_s24 + $0x40] sm:$0xff] }
 0x92d   : > { %v6208_v59 = vmin.f32 %v6176_v13, 4.0  ;;  %v6177_v45 = vmax.f32 %v11637_v7, 0.0  ;;  %v6077_v50 = vmul.f32 %v11611_v58, %v5923_v25  ;;  %v8811_v0 = vpop.f32.mrb[98].mxu0  ;;  %v9603_v13 = vld [vmem:[%s10073_s24 + $0x48] sm:$0xff] }
 0x92e   : > { %v5926_v52 = vpop.f32.mrb[99].mxu0  ;;  %v6080_v46 = vmul.f32 %v8811_v0, %v11611_v58  ;;  %v6211_v18 = vmin.f32 %v6179_v12, 4.0  ;;  %v9358_v36 = vround.rtne.f32 %v6210_v49  ;;  %v6111_v44 = vadd.f32 %v9602_v26, %v6079_v42  ;;  %v9585_v12 = vld [vmem:[%s12288_s17 + $0x58] sm:$0xff]  }
 0x92f   : > { %v9356_v60 = vround.rtne.f32 %v6208_v59  ;;  %v6209_v53 = vmin.f32 %v6177_v45, 4.0  ;;  %v6109_v55 = vadd.f32 %v9599_v15, %v6077_v50  ;;  %v6078_v9 = vmul.f32 %v11611_v58, %v5926_v52  ;;  %v9586_v15 = vld [vmem:[%s12288_s17 + $0x18] sm:$0xff]  }
 0x930   : > { %v6112_v33 = vadd.f32 %v9601_v31, %v6080_v46  ;;  %v9359_v48 = vround.rtne.f32 %v6211_v18  ;;  %v6274_v32 = vmul.f32 0.25, %v9358_v36  ;;  %v11680_v62 = vadd.f32 %v11619_v37, %v6111_v44  ;;  %v9605_v42 = vld [vmem:[%s10073_s24 + $0x58] sm:$0xff] }
 0x931   : > { %v9357_v56 = vround.rtne.f32 %v6209_v53  ;;  %v6110_v6 = vadd.f32 %v9600_v30, %v6078_v9  ;;  %v6272_v11 = vmul.f32 0.25, %v9356_v60  ;;  %v11652_v27 = vadd.f32 %v11619_v37, %v6109_v55 }
 0x932   : > { %v11669_v2 = vadd.f32 %v11619_v37, %v6112_v33  ;;  %v6275_v5 = vmul.f32 0.25, %v9359_v48  ;;  %v6182_v50 = vmax.f32 %v11680_v62, 0.0 }
 0x933   : > { %v6273_v20 = vmul.f32 0.25, %v9357_v56  ;;  %v11655_v10 = vadd.f32 %v11619_v37, %v6110_v6  ;;  %v8814_v17 = vpop.f32.mrb[100].mxu0  ;;  %v6180_v23 = vmax.f32 %v11652_v27, 0.0 }
 0x934   : > { %v5939_v21 = vpop.f32.mrb[101].mxu0  ;;  %v6183_v34 = vmax.f32 %v11669_v2, 0.0  ;;  %v6305_v59 = vpack.c.bf16 %v6275_v5, %v6274_v32  ;;  %v6083_v46 = vmul.f32 %v8814_v17, %v11611_v58  ;;  %v6214_v18 = vmin.f32 %v6182_v50, 4.0  ;;  %v9588_v17 = vld [vmem:[%s12288_s17 + $0x20] sm:$0xff]  }
 0x935   : > { %v6304_v22 = vpack.c.bf16 %v6273_v20, %v6272_v11  ;;  %v6181_v51 = vmax.f32 %v11655_v10, 0.0  ;;  %v8815_v54 = vpop.f32.mrb[102].mxu0  ;;  %v6212_v19 = vmin.f32 %v6180_v23, 4.0  ;;  %v6081_v38 = vmul.f32 %v11611_v58, %v5939_v21 }
 0x936   : > { %v5942_v8 = vpop.f32.mrb[103].mxu0  ;;  %v6215_v60 = vmin.f32 %v6183_v34, 4.0  ;;  %v6084_v53 = vmul.f32 %v8815_v54, %v11611_v58  ;;  %v9362_v44 = vround.rtne.f32 %v6214_v18  ;;  %v9590_v34 = vld [vmem:[%s12288_s17 + $0x28] sm:$0xff]  }
 0x937   : > { %7886 = vmatmul.mubr.msk.bf16.vlgmr.msra.gmra.mrb[128].mxu1 %vm983_vm0, %v6304_v22  ;;  %v6213_v14 = vmin.f32 %v6181_v51, 4.0  ;;  %v6082_v29 = vmul.f32 %v11611_v58, %v5942_v8  ;;  %v9360_v0 = vround.rtne.f32 %v6212_v19  ;;  %v6113_v52 = vadd.f32 %v9604_v39, %v6081_v38  ;;  %v9589_v22 = vld [vmem:[%s12288_s17 + $0x68] sm:$0xff]   ;;  %v9606_v51 = vld [vmem:[%s10073_s24 + $0x50] sm:$0xff]  ;;  %v9609_v19 = vld [vmem:[%s10073_s24 + $0x98] sm:$0xff] }
 0x938   : > { %6458 = vmatprep.mubr.bf16.mxu1 %v12539_v24  ;;  %8253 = vmatpush3.bf16.msra.mxu1 %v9580_v1  ;;  %v9363_v49 = vround.rtne.f32 %v6215_v60  ;;  %v6116_v11 = vadd.f32 %v9605_v42, %v6084_v53  ;;  %v6115_v54 = vadd.f32 %v9606_v51, %v6083_v46  ;;  %v9611_v46 = vld [vmem:[%s10073_s24 + $0x68] sm:$0xff]  ;;  %v9612_v42 = vld [vmem:[%s10073_s24 + $0xb0] sm:$0xff] }
 0x939   : > { %8254 = vmatprep.subr.bf16.mxu1 %v9581_v16  ;;  %v9361_v40 = vround.rtne.f32 %v6213_v14  ;;  %v6114_v63 = vadd.f32 %v9603_v13, %v6082_v29  ;;  %v6276_v56 = vmul.f32 0.25, %v9360_v0  ;;  %v11713_v30 = vadd.f32 %v11619_v37, %v6113_v52  ;;  %v9607_v16 = vld [vmem:[%s10073_s24 + $0x90] sm:$0xff] }
 0x93a   : > { %v6279_v29 = vmul.f32 0.25, %v9363_v49  ;;  %v6278_v0 = vmul.f32 0.25, %v9362_v44 }
 0x93b   : > { %v11683_v3 = vpop.f32.mrb[104].mxu0  ;;  %v6277_v55 = vmul.f32 0.25, %v9361_v40  ;;  %v11706_v9 = vadd.f32 %v11619_v37, %v6114_v63  ;;  %v6184_v23 = vmax.f32 %v11713_v30, 0.0  ;;  %v9610_v63 = vld [vmem:[%s10073_s24 + $0x88] sm:$0xff] }
 0x93c   : > { %v11686_v28 = vpop.f32.mrb[105].mxu0  ;;  %8255 = vmatpush3.bf16.msra.mxu1 %v9582_v57  ;;  %v9608_v57 = vld [vmem:[%s10073_s24 + $0x80] sm:$0xff]  ;;  %v6307_v49 = vpack.c.bf16 %v6279_v29, %v6278_v0  ;;  %v9617_v0 = vld [vmem:[%s10073_s24 + $0x78] sm:$0xff] }
 0x93d   : > { %v11692_v25 = vpop.f32.mrb[106].mxu0  ;;  %8256 = vmatprep.subr.bf16.mxu1 %v9583_v61  ;;  %v6185_v33 = vmax.f32 %v11706_v9, 0.0  ;;  %v6306_v48 = vpack.c.bf16 %v6277_v55, %v6276_v56  ;;  %v11733_v61 = vadd.f32 %v11619_v37, %v6116_v11  ;;  %v6216_v39 = vmin.f32 %v6184_v23, 4.0 }
 0x93e   : > { %v5958_v45 = vpop.f32.mrb[107].mxu0  ;;  %v6085_v52 = vmul.f32 %v11611_v58, %v11686_v28 }
 0x93f   : > { %7887 = vmatmul.mubr.msk.bf16.gmra.mrb[132].mxu1 %vm983_vm0, %v6305_v59  ;;  %v6086_v40 = vmul.f32 %v11611_v58, %v5958_v45  ;;  %v6187_v53 = vmax.f32 %v11733_v61, 0.0 }
 0x940   : > { %6468 = vmatprep.mubr.bf16.mxu1 %v12539_v24  ;;  %8257 = vmatpush3.bf16.msra.mxu1 %v9584_v43  ;;  %v6217_v43 = vmin.f32 %v6185_v33, 4.0  ;;  %v9613_v33 = vld [vmem:[%s10073_s24 + $0x60] sm:$0xff] }
 0x941   : > { %8258 = vmatprep.subr.bf16.mxu1 %v9585_v12  ;;  %v11749_v12 = vadd.f32 %v11619_v37, %v6115_v54  ;;  %v6118_v18 = vadd.f32 %v9611_v46, %v6086_v40  ;;  %v6219_v51 = vmin.f32 %v6187_v53, 4.0  ;;  %v6088_v54 = vmul.f32 %v11692_v25, %v11611_v58 }
 0x943   : > { %v8822_v6 = vpop.f32.mrb[108].mxu0  ;;  %v6186_v28 = vmax.f32 %v11749_v12, 0.0  ;;  %v11778_v44 = vadd.f32 %v11619_v37, %v6118_v18  ;;  %v9367_v40 = vround.rtne.f32 %v6219_v51 }
 0x944   : > { %v6091_v20 = vmul.f32 %v8822_v6, %v11611_v58  ;;  %v5971_v31 = vpop.f32.mrb[109].mxu0  ;;  %8259 = vmatpush3.bf16.msra.mxu1 %v9586_v15 }
 0x945   : > { %v6089_v21 = vmul.f32 %v11611_v58, %v5971_v31  ;;  %v8823_v1 = vpop.f32.mrb[110].mxu0  ;;  %8260 = vmatprep.subr.bf16.mxu1 %v9587_v35  ;;  %v9365_v35 = vround.rtne.f32 %v6217_v43 }
 0x946   : > { %v6123_v8 = vadd.f32 %v9607_v16, %v6091_v20  ;;  %v6092_v36 = vmul.f32 %v8823_v1, %v11611_v58  ;;  %v5974_v26 = vpop.f32.mrb[111].mxu0  ;;  %v9614_v1 = vld [vmem:[%s10073_s24 + $0xa0] sm:$0xff] }
 0x947   : > { %v6121_v5 = vadd.f32 %v9608_v57, %v6089_v21  ;;  %v6090_v14 = vmul.f32 %v11611_v58, %v5974_v26  ;;  %7888 = vmatmul.mubr.msk.bf16.gmra.mrb[136].mxu1 %vm983_vm0, %v6306_v48  ;;  %v6117_v21 = vadd.f32 %v9613_v33, %v6085_v52  ;;  %v6281_v26 = vmul.f32 0.25, %v9365_v35  ;;  %v9616_v57 = vld [vmem:[%s10073_s24 + $0xa8] sm:$0xff] }
 0x948   : > { %v11736_v32 = vadd.f32 %v11619_v37, %v6123_v8  ;;  %v6124_v38 = vadd.f32 %v9609_v19, %v6092_v36  ;;  %6478 = vmatprep.mubr.bf16.mxu1 %v12539_v24  ;;  %8261 = vmatpush3.bf16.msra.mxu1 %v9588_v17  ;;  %v9364_v17 = vround.rtne.f32 %v6216_v39  ;;  %v9615_v8 = vld [vmem:[%s10073_s24 + $0xb8] sm:$0xff]  ;;  %v6087_v19 = vmul.f32 %v11683_v3, %v11611_v58 }
 0x949   : > { %v11745_v13 = vadd.f32 %v11619_v37, %v6121_v5  ;;  %v6122_v59 = vadd.f32 %v9610_v63, %v6090_v14  ;;  %8262 = vmatprep.subr.bf16.mxu1 %v9589_v22  ;;  %v6218_v14 = vmin.f32 %v6186_v28, 4.0  ;;  %v6120_v39 = vadd.f32 %v9617_v0, %v6088_v54  ;;  %v9620_v28 = vld [vmem:[%s10073_s24 + $0xc0] sm:$0xff]  ;;  %v9623_v0 = vld [vmem:[%s10073_s24 + $0xf0] sm:$0xff] }
 0x94a   : > { %v11752_v50 = vadd.f32 %v11619_v37, %v6124_v38  ;;  %v6280_v29 = vmul.f32 0.25, %v9364_v17  ;;  %v11790_v38 = vadd.f32 %v11619_v37, %v6117_v21  ;;  %v6189_v52 = vmax.f32 %v11778_v44, 0.0  ;;  %v9621_v17 = vld [vmem:[%s10073_s24 + $0xd8] sm:$0xff] }
 0x94b   : > { %v11757_v45 = vadd.f32 %v11619_v37, %v6122_v59  ;;  %v8826_v60 = vpop.f32.mrb[112].mxu0  ;;  %v11812_v21 = vadd.f32 %v11619_v37, %v6120_v39 }
 0x94c   : > { %v6095_v15 = vmul.f32 %v8826_v60, %v11611_v58  ;;  %v5987_v55 = vpop.f32.mrb[113].mxu0  ;;  %8263 = vmatpush3.bf16.msra.mxu1 %v9590_v34  ;;  %v6308_v53 = vpack.c.bf16 %v6281_v26, %v6280_v29 }
 0x94d   : > { %v6093_v56 = vmul.f32 %v11611_v58, %v5987_v55  ;;  %v8827_v6 = vpop.f32.mrb[114].mxu0  ;;  %v9618_v55 = vld [vmem:[%s10073_s24 + $0xd0] sm:$0xff] }
 0x94e   : > { %v6127_v11 = vadd.f32 %v9612_v42, %v6095_v15  ;;  %v6096_v20 = vmul.f32 %v8827_v6, %v11611_v58  ;;  %v5990_v31 = vpop.f32.mrb[115].mxu0  ;;  %v9366_v15 = vround.rtne.f32 %v6218_v14 }
 0x94f   : > { %v6125_v48 = vadd.f32 %v9614_v1, %v6093_v56  ;;  %v6094_v22 = vmul.f32 %v11611_v58, %v5990_v31  ;;  %7889 = vmatmul.mubr.msk.bf16.gmra.mrb[140].mxu1 %vm983_vm0, %v6307_v49  ;;  %v9619_v56 = vld [vmem:[%s10073_s24 + $0x70] sm:$0xff]  ;;  %v6188_v49 = vmax.f32 %v11790_v38, 0.0  ;;  %v6221_v1 = vmin.f32 %v6189_v52, 4.0 }
 0x950   : > { %v11773_v16 = vadd.f32 %v11619_v37, %v6127_v11  ;;  %v6128_v36 = vadd.f32 %v9615_v8, %v6096_v20  ;;  %6488 = vmatprep.mubr.bf16.mxu1 %v12539_v24  ;;  %v6119_v6 = vadd.f32 %v9619_v56, %v6087_v19  ;;  %v6283_v20 = vmul.f32 0.25, %v9367_v40 }
 0x951   : > { %v11781_v23 = vadd.f32 %v11619_v37, %v6125_v48  ;;  %v6126_v5 = vadd.f32 %v9616_v57, %v6094_v22  ;;  %v9622_v22 = vld [vmem:[%s10073_s24 + $0xc8] sm:$0xff]  ;;  %v6282_v8 = vmul.f32 0.25, %v9366_v15  ;;  %v6220_v26 = vmin.f32 %v6188_v49, 4.0  ;;  %v9624_v15 = vld [vmem:[%s10073_s24 + $0xe0] sm:$0xff] }
 0x952   : > { %v11785_v25 = vadd.f32 %v11619_v37, %v6128_v36  ;;  %v11822_v36 = vadd.f32 %v11619_v37, %v6119_v6  ;;  %v6191_v19 = vmax.f32 %v11812_v21, 0.0 }
 0x953   : > { %v11793_v34 = vadd.f32 %v11619_v37, %v6126_v5  ;;  %v8830_v43 = vpop.f32.mrb[116].mxu0 }
 0x954   : > { %v6099_v63 = vmul.f32 %v8830_v43, %v11611_v58  ;;  %v6003_v59 = vpop.f32.mrb[117].mxu0  ;;  %v9369_v43 = vround.rtne.f32 %v6221_v1  ;;  %v6223_v6 = vmin.f32 %v6191_v19, 4.0 }
 0x955   : > { %v6097_v60 = vmul.f32 %v11611_v58, %v6003_v59  ;;  %v8831_v3 = vpop.f32.mrb[118].mxu0  ;;  %v6309_v59 = vpack.c.bf16 %v6283_v20, %v6282_v8 }
 0x956   : > { %v6131_v35 = vadd.f32 %v9618_v55, %v6099_v63  ;;  %v6100_v46 = vmul.f32 %v8831_v3, %v11611_v58  ;;  %v6006_v18 = vpop.f32.mrb[119].mxu0  ;;  %v6190_v3 = vmax.f32 %v11822_v36, 0.0  ;;  %v6285_v49 = vmul.f32 0.25, %v9369_v43 }
 0x957   : > { %v6129_v42 = vadd.f32 %v9620_v28, %v6097_v60  ;;  %v6098_v11 = vmul.f32 %v11611_v58, %v6006_v18  ;;  %7890 = vmatmul.mubr.msk.bf16.gmra.mrb[144].mxu1 %vm983_vm0, %v6308_v53  ;;  %v9368_v53 = vround.rtne.f32 %v6220_v26  ;;  %v9625_v18 = vld [vmem:[%s10073_s24 + $0xf8] sm:$0xff]  ;;  %v9371_v1 = vround.rtne.f32 %v6223_v6 }
 0x958   : > { %v11807_v31 = vadd.f32 %v11619_v37, %v6131_v35  ;;  %v6132_v33 = vadd.f32 %v9621_v17, %v6100_v46  ;;  %6498 = vmatprep.mubr.bf16.mxu1 %v12539_v24  ;;  %v6192_v26 = vmax.f32 %v11745_v13, 0.0  ;;  %v6195_v43 = vmax.f32 %v11752_v50, 0.0 }
 0x959   : > { %v11815_v48 = vadd.f32 %v11619_v37, %v6129_v42  ;;  %v6130_v51 = vadd.f32 %v9622_v22, %v6098_v11  ;;  %v9626_v42 = vld [vmem:[%s10073_s24 + $0xe8] sm:$0xff]  ;;  %v6284_v17 = vmul.f32 0.25, %v9368_v53  ;;  %v6193_v22 = vmax.f32 %v11757_v45, 0.0 }
 0x95a   : > { %v11819_v54 = vadd.f32 %v11619_v37, %v6132_v33  ;;  %v6224_v19 = vmin.f32 %v6192_v26, 4.0  ;;  %v6197_v53 = vmax.f32 %v11793_v34, 0.0 }
 0x95b   : > { %v11825_v57 = vadd.f32 %v11619_v37, %v6130_v51  ;;  %v8834_v5 = vpop.f32.mrb[120].mxu0  ;;  %v6310_v51 = vpack.c.bf16 %v6285_v49, %v6284_v17  ;;  %v6198_v17 = vmax.f32 %v11773_v16, 0.0 }
 0x95c   : > { %v6103_v14 = vmul.f32 %v8834_v5, %v11611_v58  ;;  %v6019_v29 = vpop.f32.mrb[121].mxu0  ;;  %v6287_v5 = vmul.f32 0.25, %v9371_v1 }
 0x95d   : > { %v6101_v40 = vmul.f32 %v11611_v58, %v6019_v29  ;;  %v8835_v63 = vpop.f32.mrb[122].mxu0 }
 0x95e   : > { %v6135_v39 = vadd.f32 %v9623_v0, %v6103_v14  ;;  %v6104_v52 = vmul.f32 %v8835_v63, %v11611_v58  ;;  %v6022_v60 = vpop.f32.mrb[123].mxu0  ;;  %v6225_v14 = vmin.f32 %v6193_v22, 4.0  ;;  %v6194_v63 = vmax.f32 %v11736_v32, 0.0 }
 0x95f   : > { %v6133_v55 = vadd.f32 %v9624_v15, %v6101_v40  ;;  %v6102_v35 = vmul.f32 %v11611_v58, %v6022_v60  ;;  %7891 = vmatmul.mubr.msk.bf16.gmra.mrb[148].mxu1 %vm983_vm0, %v6309_v59  ;;  %v6222_v58 = vmin.f32 %v6190_v3, 4.0  ;;  %v9372_v59 = vround.rtne.f32 %v6224_v19 }
 0x960   : > { %v11837_v46 = vadd.f32 %v11619_v37, %v6135_v39  ;;  %v6136_v56 = vadd.f32 %v9625_v18, %v6104_v52  ;;  %6508 = vmatprep.mubr.bf16.mxu1 %v12539_v24  ;;  %v9373_v40 = vround.rtne.f32 %v6225_v14  ;;  %v6227_v0 = vmin.f32 %v6195_v43, 4.0 }
 0x961   : > { %v11842_v28 = vadd.f32 %v11619_v37, %v6133_v55  ;;  %v6134_v11 = vadd.f32 %v9626_v42, %v6102_v35  ;;  %v9370_v8 = vround.rtne.f32 %v6222_v58  ;;  %v6226_v52 = vmin.f32 %v6194_v63, 4.0 }
 0x962   : > { %v11846_v20 = vadd.f32 %v11619_v37, %v6136_v56  ;;  %v6289_v39 = vmul.f32 0.25, %v9373_v40  ;;  %v6288_v60 = vmul.f32 0.25, %v9372_v59  ;;  %v9375_v3 = vround.rtne.f32 %v6227_v0 }
 0x963   : > { %v11849_v33 = vadd.f32 %v11619_v37, %v6134_v11  ;;  %v6286_v29 = vmul.f32 0.25, %v9370_v8  ;;  %v9374_v55 = vround.rtne.f32 %v6226_v52  ;;  %v6196_v35 = vmax.f32 %v11781_v23, 0.0 }
 0x964   : > { %v6312_v15 = vpack.c.bf16 %v6289_v39, %v6288_v60  ;;  %v6291_v18 = vmul.f32 0.25, %v9375_v3  ;;  %v6229_v56 = vmin.f32 %v6197_v53, 4.0  ;;  %v6199_v42 = vmax.f32 %v11785_v25, 0.0 }
 0x965   : > { %v6311_v37 = vpack.c.bf16 %v6287_v5, %v6286_v29  ;;  %v6290_v6 = vmul.f32 0.25, %v9374_v55  ;;  %v6228_v49 = vmin.f32 %v6196_v35, 4.0  ;;  %v6230_v8 = vmin.f32 %v6198_v17, 4.0 }
 0x966   : > { %v9377_v11 = vround.rtne.f32 %v6229_v56  ;;  %v6231_v22 = vmin.f32 %v6199_v42, 4.0  ;;  %v6201_v14 = vmax.f32 %v11825_v57, 0.0  ;;  %v6200_v43 = vmax.f32 %v11815_v48, 0.0 }
 0x967   : > { %7892 = vmatmul.mubr.msk.bf16.gmra.mrb[152].mxu1 %vm983_vm0, %v6310_v51  ;;  %v6313_v58 = vpack.c.bf16 %v6291_v18, %v6290_v6  ;;  %v9376_v1 = vround.rtne.f32 %v6228_v49  ;;  %v9378_v19 = vround.rtne.f32 %v6230_v8  ;;  %v6203_v0 = vmax.f32 %v11819_v54, 0.0 }
 0x968   : > { %6518 = vmatprep.mubr.bf16.mxu1 %v12539_v24  ;;  %v6293_v51 = vmul.f32 0.25, %v9377_v11  ;;  %v9379_v5 = vround.rtne.f32 %v6231_v22  ;;  %v6232_v59 = vmin.f32 %v6200_v43, 4.0  ;;  %v6202_v60 = vmax.f32 %v11807_v31, 0.0 }
 0x969   : > { %v6292_v26 = vmul.f32 0.25, %v9376_v1  ;;  %v6294_v63 = vmul.f32 0.25, %v9378_v19  ;;  %v6235_v53 = vmin.f32 %v6203_v0, 4.0  ;;  %v6205_v56 = vmax.f32 %v11849_v33, 0.0  ;;  %v9593_v19 = vld [vmem:[%s12288_s17 + $0x78] sm:$0xff]  }
 0x96a   : > { %v6295_v40 = vmul.f32 0.25, %v9379_v5  ;;  %v9380_v3 = vround.rtne.f32 %v6232_v59  ;;  %v6234_v55 = vmin.f32 %v6202_v60, 4.0  ;;  %v6204_v42 = vmax.f32 %v11842_v28, 0.0 }
 0x96b   : > { %v6314_v29 = vpack.c.bf16 %v6293_v51, %v6292_v26  ;;  %v9383_v18 = vround.rtne.f32 %v6235_v53  ;;  %v6207_v22 = vmax.f32 %v11846_v20, 0.0  ;;  %v6206_v26 = vmax.f32 %v11837_v46, 0.0 }
 0x96c   : > { %v6315_v52 = vpack.c.bf16 %v6295_v40, %v6294_v63  ;;  %v6296_v35 = vmul.f32 0.25, %v9380_v3  ;;  %v9382_v49 = vround.rtne.f32 %v6234_v55  ;;  %v6236_v1 = vmin.f32 %v6204_v42, 4.0  ;;  %v6685_v55 = vld [vmem:[%s12287_s16] sm:$0x3] }
 0x96d   : > { %v6299_v11 = vmul.f32 0.25, %v9383_v18  ;;  %v6239_v43 = vmin.f32 %v6207_v22, 4.0 }
 0x96e   : > { %v6298_v17 = vmul.f32 0.25, %v9382_v49  ;;  %v9384_v5 = vround.rtne.f32 %v6236_v1 }
 0x96f   : > { %7893 = vmatmul.mubr.msk.bf16.gmra.mrb[156].mxu1 %vm983_vm0, %v6311_v37  ;;  %v6233_v37 = vmin.f32 %v6201_v14, 4.0  ;;  %v9591_v14 = vld [vmem:[%s12288_s17 + $0x70] sm:$0xff]   ;;  %v9387_v59 = vround.rtne.f32 %v6239_v43 }
 0x970   : > { %6528 = vmatprep.mubr.bf16.mxu1 %v12539_v24  ;;  %v6317_v8 = vpack.c.bf16 %v6299_v11, %v6298_v17  ;;  %8264 = vmatprep.subr.bf16.mxu1 %v9591_v14  ;;  %v6300_v63 = vmul.f32 0.25, %v9384_v5 }
 0x971   : > { %v9381_v39 = vround.rtne.f32 %v6233_v37  ;;  %v6238_v37 = vmin.f32 %v6206_v26, 4.0  ;;  %v6303_v60 = vmul.f32 0.25, %v9387_v59 }
 0x977   : > { %7894 = vmatmul.mubr.msk.bf16.gmra.mrb[160].mxu1 %vm983_vm0, %v6312_v15  ;;  %v6297_v15 = vmul.f32 0.25, %v9381_v39  ;;  %v9594_v39 = vld [vmem:[%s12288_s17 + $0x38] sm:$0xff]  }
 0x978   : > { %6538 = vmatprep.mubr.bf16.mxu1 %v12539_v24 }
 0x979   : > { %v6316_v6 = vpack.c.bf16 %v6297_v15, %v6296_v35  ;;  %v6609_v15 = vld [vmem:[%s12286_s15] sm:$0x3]  ;;  %v12545_v35 = vld [vmem:[#allocation36_spill] sm:$0xff] }
 0x97a   : > { %v11905_v18 = vrot.slane %v6609_v15, %v12545_v35 }
 0x97f   : > { %7895 = vmatmul.mubr.msk.bf16.gmra.mrb[164].mxu1 %vm983_vm0, %v6313_v58  ;;  %v6237_v58 = vmin.f32 %v6205_v56, 4.0  ;;  %v12546_v56 = vld [vmem:[#allocation37_spill] sm:$0xff] }
 0x980   : > { %6548 = vmatprep.mubr.bf16.mxu1 %v12539_v24  ;;  %v11914_v42 = vrot.slane %v6685_v55, %v12546_v56 }
 0x981   : > { %v9385_v51 = vround.rtne.f32 %v6237_v58 }
 0x983   : > { %v6301_v40 = vmul.f32 0.25, %v9385_v51 }
 0x985   : > { %v6318_v0 = vpack.c.bf16 %v6301_v40, %v6300_v63 }
 0x987   : > { %7896 = vmatmul.mubr.msk.bf16.gmra.mrb[168].mxu1 %vm983_vm0, %v6314_v29  ;;  %v9592_v29 = vld [vmem:[%s12288_s17 + $0x30] sm:$0xff]  }
 0x988   : > { %6558 = vmatprep.mubr.bf16.mxu1 %v12539_v24  ;;  %8265 = vmatpush3.bf16.msra.mxu1 %v9592_v29 }
 0x989   : > { %8266 = vmatprep.subr.bf16.mxu1 %v9593_v19 }
 0x98c   : > { %8267 = vmatpush3.bf16.msra.mxu1 %v9594_v39 }
 0x98f   : > { %7897 = vmatmul.mubr.msk.bf16.gmra.mrb[172].mxu1 %vm983_vm0, %v6315_v52  ;;  %v9386_v52 = vround.rtne.f32 %v6238_v37 }
 0x990   : > { %6568 = vmatprep.mubr.bf16.mxu1 %v12539_v24 }
 0x991   : > { %v6302_v3 = vmul.f32 0.25, %v9386_v52 }
 0x993   : > { %v6319_v53 = vpack.c.bf16 %v6303_v60, %v6302_v3 }
 0x997   : > { %7898 = vmatmul.mubr.msk.bf16.gmra.mrb[176].mxu1 %vm983_vm0, %v6316_v6  ;;  %v11908_v6 = vrot.slane %v6609_v15, %v12546_v56 }
 0x998   : > { %6578 = vmatprep.mubr.bf16.mxu1 %v12539_v24 }
 0x99f   : > { %7899 = vmatmul.mubr.msk.bf16.gmra.mrb[180].mxu1 %vm983_vm0, %v6317_v8 }
 0x9a0   : > { %6588 = vmatprep.mubr.bf16.mxu1 %v12539_v24 }
 0x9a7   : > { %7900 = vmatmul.mubr.msk.bf16.gmra.mrb[184].mxu1 %vm983_vm0, %v6318_v0 }
 0x9a8   : > { %6598 = vmatprep.mubr.bf16.mxu1 %v12539_v24  ;;  %v11911_v24 = vrot.slane %v6685_v55, %v12545_v35 }
 0x9af   : > { %7901 = vmatmul.mubr.msk.bf16.gmra.mrb[188].mxu1 %vm983_vm0, %v6319_v53 }
 0xa0a   : > { %v6450_v49 = vpop.f32.mrb[128].mxu1 }
 0xa0b   : > { %v6621_v11 = vmul.f32 %v11905_v18, %v6450_v49  ;;  %v6452_v58 = vpop.f32.mrb[129].mxu1 }
 0xa0c   : > { %v6622_v17 = vmul.f32 %v11908_v6, %v6452_v58  ;;  %v6454_v1 = vpop.f32.mrb[130].mxu1 }
 0xa0d   : > { %v6697_v22 = vadd.f32 %v11911_v24, %v6621_v11  ;;  %v6623_v51 = vmul.f32 %v11905_v18, %v6454_v1  ;;  %v6456_v8 = vpop.f32.mrb[131].mxu1 }
 0xa0e   : > { %v6698_v26 = vadd.f32 %v11914_v42, %v6622_v17  ;;  %v6624_v5 = vmul.f32 %v11908_v6, %v6456_v8 }
 0xa0f   : > { %v6761_v14 = vmax.f32 %v6697_v22, 0.0  ;;  %v6699_v29 = vadd.f32 %v11911_v24, %v6623_v51 }
 0xa10   : > { %v6762_v19 = vmax.f32 %v6698_v26, 0.0  ;;  %v6700_v43 = vadd.f32 %v11914_v42, %v6624_v5 }
 0xa11   : > { %v6825_v40 = vmin.f32 %v6761_v14, 4.0  ;;  %v6763_v37 = vmax.f32 %v6699_v29, 0.0 }
 0xa12   : > { %v6826_v63 = vmin.f32 %v6762_v19, 4.0  ;;  %v6764_v59 = vmax.f32 %v6700_v43, 0.0  ;;  %v6460_v0 = vpop.f32.mrb[132].mxu1 }
 0xa13   : > { %v9388_v39 = vround.rtne.f32 %v6825_v40  ;;  %v6827_v52 = vmin.f32 %v6763_v37, 4.0  ;;  %v6625_v60 = vmul.f32 %v11905_v18, %v6460_v0  ;;  %v6462_v3 = vpop.f32.mrb[133].mxu1 }
 0xa14   : > { %v9389_v53 = vround.rtne.f32 %v6826_v63  ;;  %v6828_v15 = vmin.f32 %v6764_v59, 4.0  ;;  %v6626_v55 = vmul.f32 %v11908_v6, %v6462_v3  ;;  %v6464_v35 = vpop.f32.mrb[134].mxu1 }
 0xa15   : > { %v9390_v56 = vround.rtne.f32 %v6827_v52  ;;  %v6701_v49 = vadd.f32 %v11911_v24, %v6625_v60  ;;  %v6627_v11 = vmul.f32 %v11905_v18, %v6464_v35  ;;  %v6466_v58 = vpop.f32.mrb[135].mxu1  ;;  %v6953_v51 = vmul.f32 0.25, %v9388_v39 }
 0xa16   : > { %v9391_v17 = vround.rtne.f32 %v6828_v15  ;;  %v6702_v1 = vadd.f32 %v11914_v42, %v6626_v55  ;;  %v6628_v22 = vmul.f32 %v11908_v6, %v6466_v58  ;;  %v6954_v14 = vmul.f32 0.25, %v9389_v53 }
 0xa17   : > { %v6955_v8 = vmul.f32 0.25, %v9390_v56  ;;  %v6765_v26 = vmax.f32 %v6701_v49, 0.0  ;;  %v6703_v5 = vadd.f32 %v11911_v24, %v6627_v11 }
 0xa18   : > { %v6956_v29 = vmul.f32 0.25, %v9391_v17  ;;  %v6766_v19 = vmax.f32 %v6702_v1, 0.0  ;;  %v6704_v43 = vadd.f32 %v11914_v42, %v6628_v22 }
 0xa19   : > { %v7017_v40 = vpack.c.bf16 %v6955_v8, %v6953_v51  ;;  %v6829_v37 = vmin.f32 %v6765_v26, 4.0  ;;  %v6767_v63 = vmax.f32 %v6703_v5, 0.0 }
 0xa1a   : > { %v6830_v59 = vmin.f32 %v6766_v19, 4.0  ;;  %v6768_v0 = vmax.f32 %v6704_v43, 0.0  ;;  %v6470_v52 = vpop.f32.mrb[136].mxu1  ;;  %v7018_v60 = vpack.c.bf16 %v6956_v29, %v6954_v14 }
 0xa1b   : > { %v9392_v3 = vround.rtne.f32 %v6829_v37  ;;  %v6831_v15 = vmin.f32 %v6767_v63, 4.0  ;;  %v6629_v39 = vmul.f32 %v11905_v18, %v6470_v52  ;;  %v6472_v55 = vpop.f32.mrb[137].mxu1 }
 0xa1c   : > { %v9393_v35 = vround.rtne.f32 %v6830_v59  ;;  %v6832_v56 = vmin.f32 %v6768_v0, 4.0  ;;  %v6630_v53 = vmul.f32 %v11908_v6, %v6472_v55  ;;  %v6474_v49 = vpop.f32.mrb[138].mxu1  ;;  %7209 = vmatprep.mubr.bf16.mxu1 %v7018_v60 }
 0xa1d   : > { %v9394_v11 = vround.rtne.f32 %v6831_v15  ;;  %v6705_v58 = vadd.f32 %v11911_v24, %v6629_v39  ;;  %v6631_v17 = vmul.f32 %v11905_v18, %v6474_v49  ;;  %v6476_v1 = vpop.f32.mrb[139].mxu1  ;;  %7210 = vmatmul.mubr.bf16.vlgmr.msra.gmra.mrb[192].mxu1 %v7017_v40  ;;  %v6957_v26 = vmul.f32 0.25, %v9392_v3 }
 0xa1e   : > { %v9395_v22 = vround.rtne.f32 %v6832_v56  ;;  %v6706_v51 = vadd.f32 %v11914_v42, %v6630_v53  ;;  %v6632_v8 = vmul.f32 %v11908_v6, %v6476_v1  ;;  %v6958_v19 = vmul.f32 0.25, %v9393_v35 }
 0xa1f   : > { %v6959_v5 = vmul.f32 0.25, %v9394_v11  ;;  %v6769_v14 = vmax.f32 %v6705_v58, 0.0  ;;  %v6707_v29 = vadd.f32 %v11911_v24, %v6631_v17 }
 0xa20   : > { %v6960_v43 = vmul.f32 0.25, %v9395_v22  ;;  %v6770_v37 = vmax.f32 %v6706_v51, 0.0  ;;  %v6708_v63 = vadd.f32 %v11914_v42, %v6632_v8 }
 0xa21   : > { %v6833_v59 = vmin.f32 %v6769_v14, 4.0  ;;  %v6771_v0 = vmax.f32 %v6707_v29, 0.0  ;;  %v7019_v52 = vpack.c.bf16 %v6959_v5, %v6957_v26 }
 0xa22   : > { %v6834_v60 = vmin.f32 %v6770_v37, 4.0  ;;  %v6772_v40 = vmax.f32 %v6708_v63, 0.0  ;;  %v6480_v15 = vpop.f32.mrb[140].mxu1  ;;  %v7020_v39 = vpack.c.bf16 %v6960_v43, %v6958_v19 }
 0xa23   : > { %v9396_v55 = vround.rtne.f32 %v6833_v59  ;;  %v6835_v56 = vmin.f32 %v6771_v0, 4.0  ;;  %v6633_v3 = vmul.f32 %v11905_v18, %v6480_v15  ;;  %v6482_v53 = vpop.f32.mrb[141].mxu1 }
 0xa24   : > { %v9397_v49 = vround.rtne.f32 %v6834_v60  ;;  %v6836_v11 = vmin.f32 %v6772_v40, 4.0  ;;  %v6634_v35 = vmul.f32 %v11908_v6, %v6482_v53  ;;  %v6484_v58 = vpop.f32.mrb[142].mxu1  ;;  %7217 = vmatprep.mubr.bf16.mxu1 %v7020_v39 }
 0xa25   : > { %v9398_v17 = vround.rtne.f32 %v6835_v56  ;;  %v6709_v1 = vadd.f32 %v11911_v24, %v6633_v3  ;;  %v6635_v22 = vmul.f32 %v11905_v18, %v6484_v58  ;;  %v6486_v51 = vpop.f32.mrb[143].mxu1  ;;  %7218 = vmatmul.mubr.bf16.gmra.mrb[196].mxu1 %v7019_v52  ;;  %v6961_v14 = vmul.f32 0.25, %v9396_v55 }
 0xa26   : > { %v9399_v8 = vround.rtne.f32 %v6836_v11  ;;  %v6710_v26 = vadd.f32 %v11914_v42, %v6634_v35  ;;  %v6636_v5 = vmul.f32 %v11908_v6, %v6486_v51  ;;  %v6962_v37 = vmul.f32 0.25, %v9397_v49 }
 0xa27   : > { %v6963_v29 = vmul.f32 0.25, %v9398_v17  ;;  %v6773_v19 = vmax.f32 %v6709_v1, 0.0  ;;  %v6711_v43 = vadd.f32 %v11911_v24, %v6635_v22 }
 0xa28   : > { %v6964_v63 = vmul.f32 0.25, %v9399_v8  ;;  %v6774_v59 = vmax.f32 %v6710_v26, 0.0  ;;  %v6712_v0 = vadd.f32 %v11914_v42, %v6636_v5 }
 0xa29   : > { %v6837_v60 = vmin.f32 %v6773_v19, 4.0  ;;  %v6775_v40 = vmax.f32 %v6711_v43, 0.0  ;;  %v7021_v15 = vpack.c.bf16 %v6963_v29, %v6961_v14 }
 0xa2a   : > { %v6838_v39 = vmin.f32 %v6774_v59, 4.0  ;;  %v6776_v52 = vmax.f32 %v6712_v0, 0.0  ;;  %v6490_v56 = vpop.f32.mrb[144].mxu1  ;;  %v7022_v3 = vpack.c.bf16 %v6964_v63, %v6962_v37 }
 0xa2b   : > { %v9400_v53 = vround.rtne.f32 %v6837_v60  ;;  %v6839_v11 = vmin.f32 %v6775_v40, 4.0  ;;  %v6637_v55 = vmul.f32 %v11905_v18, %v6490_v56  ;;  %v6492_v35 = vpop.f32.mrb[145].mxu1 }
 0xa2c   : > { %v9401_v58 = vround.rtne.f32 %v6838_v39  ;;  %v6840_v17 = vmin.f32 %v6776_v52, 4.0  ;;  %v6638_v49 = vmul.f32 %v11908_v6, %v6492_v35  ;;  %v6494_v1 = vpop.f32.mrb[146].mxu1  ;;  %7225 = vmatprep.mubr.bf16.mxu1 %v7022_v3 }
 0xa2d   : > { %v9402_v22 = vround.rtne.f32 %v6839_v11  ;;  %v6713_v51 = vadd.f32 %v11911_v24, %v6637_v55  ;;  %v6639_v8 = vmul.f32 %v11905_v18, %v6494_v1  ;;  %v6496_v26 = vpop.f32.mrb[147].mxu1  ;;  %7226 = vmatmul.mubr.bf16.gmra.mrb[200].mxu1 %v7021_v15  ;;  %v6965_v19 = vmul.f32 0.25, %v9400_v53 }
 0xa2e   : > { %v9403_v5 = vround.rtne.f32 %v6840_v17  ;;  %v6714_v14 = vadd.f32 %v11914_v42, %v6638_v49  ;;  %v6640_v29 = vmul.f32 %v11908_v6, %v6496_v26  ;;  %v6966_v59 = vmul.f32 0.25, %v9401_v58 }
 0xa2f   : > { %v6967_v43 = vmul.f32 0.25, %v9402_v22  ;;  %v6777_v37 = vmax.f32 %v6713_v51, 0.0  ;;  %v6715_v63 = vadd.f32 %v11911_v24, %v6639_v8 }
 0xa30   : > { %v6968_v0 = vmul.f32 0.25, %v9403_v5  ;;  %v6778_v60 = vmax.f32 %v6714_v14, 0.0  ;;  %v6716_v40 = vadd.f32 %v11914_v42, %v6640_v29 }
 0xa31   : > { %v6841_v39 = vmin.f32 %v6777_v37, 4.0  ;;  %v6779_v52 = vmax.f32 %v6715_v63, 0.0  ;;  %v7023_v56 = vpack.c.bf16 %v6967_v43, %v6965_v19 }
 0xa32   : > { %v6842_v3 = vmin.f32 %v6778_v60, 4.0  ;;  %v6780_v15 = vmax.f32 %v6716_v40, 0.0  ;;  %v6500_v11 = vpop.f32.mrb[148].mxu1  ;;  %v7024_v55 = vpack.c.bf16 %v6968_v0, %v6966_v59 }
 0xa33   : > { %v9404_v35 = vround.rtne.f32 %v6841_v39  ;;  %v6843_v17 = vmin.f32 %v6779_v52, 4.0  ;;  %v6641_v53 = vmul.f32 %v11905_v18, %v6500_v11  ;;  %v6502_v49 = vpop.f32.mrb[149].mxu1 }
 0xa34   : > { %v9405_v1 = vround.rtne.f32 %v6842_v3  ;;  %v6844_v22 = vmin.f32 %v6780_v15, 4.0  ;;  %v6642_v58 = vmul.f32 %v11908_v6, %v6502_v49  ;;  %v6504_v51 = vpop.f32.mrb[150].mxu1  ;;  %7233 = vmatprep.mubr.bf16.mxu1 %v7024_v55 }
 0xa35   : > { %v9406_v8 = vround.rtne.f32 %v6843_v17  ;;  %v6717_v26 = vadd.f32 %v11911_v24, %v6641_v53  ;;  %v6643_v5 = vmul.f32 %v11905_v18, %v6504_v51  ;;  %v6506_v14 = vpop.f32.mrb[151].mxu1  ;;  %7234 = vmatmul.mubr.bf16.gmra.mrb[204].mxu1 %v7023_v56  ;;  %v6969_v37 = vmul.f32 0.25, %v9404_v35 }
 0xa36   : > { %v9407_v29 = vround.rtne.f32 %v6844_v22  ;;  %v6718_v19 = vadd.f32 %v11914_v42, %v6642_v58  ;;  %v6644_v43 = vmul.f32 %v11908_v6, %v6506_v14  ;;  %v6970_v60 = vmul.f32 0.25, %v9405_v1 }
 0xa37   : > { %v6971_v63 = vmul.f32 0.25, %v9406_v8  ;;  %v6781_v59 = vmax.f32 %v6717_v26, 0.0  ;;  %v6719_v0 = vadd.f32 %v11911_v24, %v6643_v5 }
 0xa38   : > { %v6972_v40 = vmul.f32 0.25, %v9407_v29  ;;  %v6782_v39 = vmax.f32 %v6718_v19, 0.0  ;;  %v6720_v52 = vadd.f32 %v11914_v42, %v6644_v43 }
 0xa39   : > { %v6845_v3 = vmin.f32 %v6781_v59, 4.0  ;;  %v6783_v15 = vmax.f32 %v6719_v0, 0.0  ;;  %v7025_v11 = vpack.c.bf16 %v6971_v63, %v6969_v37 }
 0xa3a   : > { %v6846_v55 = vmin.f32 %v6782_v39, 4.0  ;;  %v6784_v56 = vmax.f32 %v6720_v52, 0.0  ;;  %v6510_v17 = vpop.f32.mrb[152].mxu1  ;;  %v7026_v53 = vpack.c.bf16 %v6972_v40, %v6970_v60 }
 0xa3b   : > { %v9408_v49 = vround.rtne.f32 %v6845_v3  ;;  %v6847_v22 = vmin.f32 %v6783_v15, 4.0  ;;  %v6645_v35 = vmul.f32 %v11905_v18, %v6510_v17  ;;  %v6512_v58 = vpop.f32.mrb[153].mxu1 }
 0xa3c   : > { %v9409_v51 = vround.rtne.f32 %v6846_v55  ;;  %v6848_v8 = vmin.f32 %v6784_v56, 4.0  ;;  %v6646_v1 = vmul.f32 %v11908_v6, %v6512_v58  ;;  %v6514_v26 = vpop.f32.mrb[154].mxu1  ;;  %7241 = vmatprep.mubr.bf16.mxu1 %v7026_v53 }
 0xa3d   : > { %v9410_v5 = vround.rtne.f32 %v6847_v22  ;;  %v6721_v14 = vadd.f32 %v11911_v24, %v6645_v35  ;;  %v6647_v29 = vmul.f32 %v11905_v18, %v6514_v26  ;;  %v6516_v19 = vpop.f32.mrb[155].mxu1  ;;  %7242 = vmatmul.mubr.bf16.gmra.mrb[208].mxu1 %v7025_v11  ;;  %v6973_v59 = vmul.f32 0.25, %v9408_v49 }
 0xa3e   : > { %v9411_v43 = vround.rtne.f32 %v6848_v8  ;;  %v6722_v37 = vadd.f32 %v11914_v42, %v6646_v1  ;;  %v6648_v63 = vmul.f32 %v11908_v6, %v6516_v19  ;;  %v6974_v39 = vmul.f32 0.25, %v9409_v51 }
 0xa3f   : > { %v6975_v0 = vmul.f32 0.25, %v9410_v5  ;;  %v6785_v60 = vmax.f32 %v6721_v14, 0.0  ;;  %v6723_v40 = vadd.f32 %v11911_v24, %v6647_v29 }
 0xa40   : > { %v6976_v52 = vmul.f32 0.25, %v9411_v43  ;;  %v6786_v3 = vmax.f32 %v6722_v37, 0.0  ;;  %v6724_v15 = vadd.f32 %v11914_v42, %v6648_v63 }
 0xa41   : > { %v6849_v55 = vmin.f32 %v6785_v60, 4.0  ;;  %v6787_v56 = vmax.f32 %v6723_v40, 0.0  ;;  %v7027_v17 = vpack.c.bf16 %v6975_v0, %v6973_v59 }
 0xa42   : > { %v6850_v53 = vmin.f32 %v6786_v3, 4.0  ;;  %v6788_v11 = vmax.f32 %v6724_v15, 0.0  ;;  %v6520_v22 = vpop.f32.mrb[156].mxu1  ;;  %v7028_v35 = vpack.c.bf16 %v6976_v52, %v6974_v39 }
 0xa43   : > { %v9412_v58 = vround.rtne.f32 %v6849_v55  ;;  %v6851_v8 = vmin.f32 %v6787_v56, 4.0  ;;  %v6649_v49 = vmul.f32 %v11905_v18, %v6520_v22  ;;  %v6522_v1 = vpop.f32.mrb[157].mxu1 }
 0xa44   : > { %v9413_v26 = vround.rtne.f32 %v6850_v53  ;;  %v6852_v5 = vmin.f32 %v6788_v11, 4.0  ;;  %v6650_v51 = vmul.f32 %v11908_v6, %v6522_v1  ;;  %v6524_v14 = vpop.f32.mrb[158].mxu1  ;;  %7249 = vmatprep.mubr.bf16.mxu1 %v7028_v35 }
 0xa45   : > { %v9414_v29 = vround.rtne.f32 %v6851_v8  ;;  %v6725_v19 = vadd.f32 %v11911_v24, %v6649_v49  ;;  %v6651_v43 = vmul.f32 %v11905_v18, %v6524_v14  ;;  %v6526_v37 = vpop.f32.mrb[159].mxu1  ;;  %7250 = vmatmul.mubr.bf16.gmra.mrb[212].mxu1 %v7027_v17  ;;  %v6977_v60 = vmul.f32 0.25, %v9412_v58 }
 0xa46   : > { %v9415_v63 = vround.rtne.f32 %v6852_v5  ;;  %v6726_v59 = vadd.f32 %v11914_v42, %v6650_v51  ;;  %v6652_v0 = vmul.f32 %v11908_v6, %v6526_v37  ;;  %v6978_v3 = vmul.f32 0.25, %v9413_v26 }
 0xa47   : > { %v6979_v40 = vmul.f32 0.25, %v9414_v29  ;;  %v6789_v39 = vmax.f32 %v6725_v19, 0.0  ;;  %v6727_v52 = vadd.f32 %v11911_v24, %v6651_v43 }
 0xa48   : > { %v6980_v15 = vmul.f32 0.25, %v9415_v63  ;;  %v6790_v55 = vmax.f32 %v6726_v59, 0.0  ;;  %v6728_v56 = vadd.f32 %v11914_v42, %v6652_v0 }
 0xa49   : > { %v6853_v53 = vmin.f32 %v6789_v39, 4.0  ;;  %v6791_v11 = vmax.f32 %v6727_v52, 0.0  ;;  %v7029_v22 = vpack.c.bf16 %v6979_v40, %v6977_v60 }
 0xa4a   : > { %v6854_v35 = vmin.f32 %v6790_v55, 4.0  ;;  %v6792_v17 = vmax.f32 %v6728_v56, 0.0  ;;  %v6530_v8 = vpop.f32.mrb[160].mxu1  ;;  %v7030_v49 = vpack.c.bf16 %v6980_v15, %v6978_v3 }
 0xa4b   : > { %v9416_v1 = vround.rtne.f32 %v6853_v53  ;;  %v6855_v5 = vmin.f32 %v6791_v11, 4.0  ;;  %v6653_v58 = vmul.f32 %v11905_v18, %v6530_v8  ;;  %v6532_v51 = vpop.f32.mrb[161].mxu1 }
 0xa4c   : > { %v9417_v14 = vround.rtne.f32 %v6854_v35  ;;  %v6856_v29 = vmin.f32 %v6792_v17, 4.0  ;;  %v6654_v26 = vmul.f32 %v11908_v6, %v6532_v51  ;;  %v6534_v19 = vpop.f32.mrb[162].mxu1  ;;  %7257 = vmatprep.mubr.bf16.mxu1 %v7030_v49 }
 0xa4d   : > { %v9418_v43 = vround.rtne.f32 %v6855_v5  ;;  %v6729_v37 = vadd.f32 %v11911_v24, %v6653_v58  ;;  %v6655_v63 = vmul.f32 %v11905_v18, %v6534_v19  ;;  %v6536_v59 = vpop.f32.mrb[163].mxu1  ;;  %7258 = vmatmul.mubr.bf16.gmra.mrb[216].mxu1 %v7029_v22  ;;  %v6981_v39 = vmul.f32 0.25, %v9416_v1 }
 0xa4e   : > { %v9419_v0 = vround.rtne.f32 %v6856_v29  ;;  %v6730_v60 = vadd.f32 %v11914_v42, %v6654_v26  ;;  %v6656_v40 = vmul.f32 %v11908_v6, %v6536_v59  ;;  %v6982_v55 = vmul.f32 0.25, %v9417_v14 }
 0xa4f   : > { %v6983_v52 = vmul.f32 0.25, %v9418_v43  ;;  %v6793_v3 = vmax.f32 %v6729_v37, 0.0  ;;  %v6731_v15 = vadd.f32 %v11911_v24, %v6655_v63 }
 0xa50   : > { %v6984_v56 = vmul.f32 0.25, %v9419_v0  ;;  %v6794_v53 = vmax.f32 %v6730_v60, 0.0  ;;  %v6732_v11 = vadd.f32 %v11914_v42, %v6656_v40 }
 0xa51   : > { %v6857_v35 = vmin.f32 %v6793_v3, 4.0  ;;  %v6795_v17 = vmax.f32 %v6731_v15, 0.0  ;;  %v7031_v8 = vpack.c.bf16 %v6983_v52, %v6981_v39 }
 0xa52   : > { %v6858_v49 = vmin.f32 %v6794_v53, 4.0  ;;  %v6796_v22 = vmax.f32 %v6732_v11, 0.0  ;;  %v6540_v5 = vpop.f32.mrb[164].mxu1  ;;  %v7032_v58 = vpack.c.bf16 %v6984_v56, %v6982_v55 }
 0xa53   : > { %v9420_v51 = vround.rtne.f32 %v6857_v35  ;;  %v6859_v29 = vmin.f32 %v6795_v17, 4.0  ;;  %v6657_v1 = vmul.f32 %v11905_v18, %v6540_v5  ;;  %v6542_v26 = vpop.f32.mrb[165].mxu1 }
 0xa54   : > { %v9421_v19 = vround.rtne.f32 %v6858_v49  ;;  %v6860_v43 = vmin.f32 %v6796_v22, 4.0  ;;  %v6658_v14 = vmul.f32 %v11908_v6, %v6542_v26  ;;  %v6544_v37 = vpop.f32.mrb[166].mxu1  ;;  %7265 = vmatprep.mubr.bf16.mxu1 %v7032_v58 }
 0xa55   : > { %v9422_v63 = vround.rtne.f32 %v6859_v29  ;;  %v6733_v59 = vadd.f32 %v11911_v24, %v6657_v1  ;;  %v6659_v0 = vmul.f32 %v11905_v18, %v6544_v37  ;;  %v6546_v60 = vpop.f32.mrb[167].mxu1  ;;  %7266 = vmatmul.mubr.bf16.gmra.mrb[220].mxu1 %v7031_v8  ;;  %v6985_v3 = vmul.f32 0.25, %v9420_v51 }
 0xa56   : > { %v9423_v40 = vround.rtne.f32 %v6860_v43  ;;  %v6734_v39 = vadd.f32 %v11914_v42, %v6658_v14  ;;  %v6660_v52 = vmul.f32 %v11908_v6, %v6546_v60  ;;  %v6986_v53 = vmul.f32 0.25, %v9421_v19 }
 0xa57   : > { %v6987_v15 = vmul.f32 0.25, %v9422_v63  ;;  %v6797_v55 = vmax.f32 %v6733_v59, 0.0  ;;  %v6735_v56 = vadd.f32 %v11911_v24, %v6659_v0 }
 0xa58   : > { %v6988_v11 = vmul.f32 0.25, %v9423_v40  ;;  %v6798_v35 = vmax.f32 %v6734_v39, 0.0  ;;  %v6736_v17 = vadd.f32 %v11914_v42, %v6660_v52 }
 0xa59   : > { %v6861_v49 = vmin.f32 %v6797_v55, 4.0  ;;  %v6799_v22 = vmax.f32 %v6735_v56, 0.0  ;;  %v7033_v5 = vpack.c.bf16 %v6987_v15, %v6985_v3 }
 0xa5a   : > { %v6862_v58 = vmin.f32 %v6798_v35, 4.0  ;;  %v6800_v8 = vmax.f32 %v6736_v17, 0.0  ;;  %v6550_v29 = vpop.f32.mrb[168].mxu1  ;;  %v7034_v1 = vpack.c.bf16 %v6988_v11, %v6986_v53 }
 0xa5b   : > { %v9424_v26 = vround.rtne.f32 %v6861_v49  ;;  %v6863_v43 = vmin.f32 %v6799_v22, 4.0  ;;  %v6661_v51 = vmul.f32 %v11905_v18, %v6550_v29  ;;  %v6552_v14 = vpop.f32.mrb[169].mxu1 }
 0xa5c   : > { %v9425_v37 = vround.rtne.f32 %v6862_v58  ;;  %v6864_v63 = vmin.f32 %v6800_v8, 4.0  ;;  %v6662_v19 = vmul.f32 %v11908_v6, %v6552_v14  ;;  %v6554_v59 = vpop.f32.mrb[170].mxu1  ;;  %7273 = vmatprep.mubr.bf16.mxu1 %v7034_v1 }
 0xa5d   : > { %v9426_v0 = vround.rtne.f32 %v6863_v43  ;;  %v6737_v60 = vadd.f32 %v11911_v24, %v6661_v51  ;;  %v6663_v40 = vmul.f32 %v11905_v18, %v6554_v59  ;;  %v6556_v39 = vpop.f32.mrb[171].mxu1  ;;  %7274 = vmatmul.mubr.bf16.gmra.mrb[224].mxu1 %v7033_v5  ;;  %v6989_v55 = vmul.f32 0.25, %v9424_v26 }
 0xa5e   : > { %v9427_v52 = vround.rtne.f32 %v6864_v63  ;;  %v6738_v3 = vadd.f32 %v11914_v42, %v6662_v19  ;;  %v6664_v15 = vmul.f32 %v11908_v6, %v6556_v39  ;;  %v6990_v35 = vmul.f32 0.25, %v9425_v37 }
 0xa5f   : > { %v6991_v56 = vmul.f32 0.25, %v9426_v0  ;;  %v6801_v53 = vmax.f32 %v6737_v60, 0.0  ;;  %v6739_v11 = vadd.f32 %v11911_v24, %v6663_v40 }
 0xa60   : > { %v6992_v17 = vmul.f32 0.25, %v9427_v52  ;;  %v6802_v49 = vmax.f32 %v6738_v3, 0.0  ;;  %v6740_v22 = vadd.f32 %v11914_v42, %v6664_v15 }
 0xa61   : > { %v6865_v58 = vmin.f32 %v6801_v53, 4.0  ;;  %v6803_v8 = vmax.f32 %v6739_v11, 0.0  ;;  %v7035_v29 = vpack.c.bf16 %v6991_v56, %v6989_v55 }
 0xa62   : > { %v6866_v1 = vmin.f32 %v6802_v49, 4.0  ;;  %v6804_v5 = vmax.f32 %v6740_v22, 0.0  ;;  %v6560_v43 = vpop.f32.mrb[172].mxu1  ;;  %v7036_v51 = vpack.c.bf16 %v6992_v17, %v6990_v35 }
 0xa63   : > { %v9428_v14 = vround.rtne.f32 %v6865_v58  ;;  %v6867_v63 = vmin.f32 %v6803_v8, 4.0  ;;  %v6665_v26 = vmul.f32 %v11905_v18, %v6560_v43  ;;  %v6562_v19 = vpop.f32.mrb[173].mxu1 }
 0xa64   : > { %v9429_v59 = vround.rtne.f32 %v6866_v1  ;;  %v6868_v0 = vmin.f32 %v6804_v5, 4.0  ;;  %v6666_v37 = vmul.f32 %v11908_v6, %v6562_v19  ;;  %v6564_v60 = vpop.f32.mrb[174].mxu1  ;;  %7281 = vmatprep.mubr.bf16.mxu1 %v7036_v51 }
 0xa65   : > { %v9430_v40 = vround.rtne.f32 %v6867_v63  ;;  %v6741_v39 = vadd.f32 %v11911_v24, %v6665_v26  ;;  %v6667_v52 = vmul.f32 %v11905_v18, %v6564_v60  ;;  %v6566_v3 = vpop.f32.mrb[175].mxu1  ;;  %7282 = vmatmul.mubr.bf16.gmra.mrb[228].mxu1 %v7035_v29  ;;  %v6993_v53 = vmul.f32 0.25, %v9428_v14 }
 0xa66   : > { %v9431_v15 = vround.rtne.f32 %v6868_v0  ;;  %v6742_v55 = vadd.f32 %v11914_v42, %v6666_v37  ;;  %v6668_v56 = vmul.f32 %v11908_v6, %v6566_v3  ;;  %v6994_v49 = vmul.f32 0.25, %v9429_v59 }
 0xa67   : > { %v6995_v11 = vmul.f32 0.25, %v9430_v40  ;;  %v6805_v35 = vmax.f32 %v6741_v39, 0.0  ;;  %v6743_v17 = vadd.f32 %v11911_v24, %v6667_v52 }
 0xa68   : > { %v6996_v22 = vmul.f32 0.25, %v9431_v15  ;;  %v6806_v58 = vmax.f32 %v6742_v55, 0.0  ;;  %v6744_v8 = vadd.f32 %v11914_v42, %v6668_v56 }
 0xa69   : > { %v6869_v1 = vmin.f32 %v6805_v35, 4.0  ;;  %v6807_v5 = vmax.f32 %v6743_v17, 0.0  ;;  %v7037_v43 = vpack.c.bf16 %v6995_v11, %v6993_v53 }
 0xa6a   : > { %v6870_v51 = vmin.f32 %v6806_v58, 4.0  ;;  %v6808_v29 = vmax.f32 %v6744_v8, 0.0  ;;  %v6570_v63 = vpop.f32.mrb[176].mxu1  ;;  %v7038_v26 = vpack.c.bf16 %v6996_v22, %v6994_v49 }
 0xa6b   : > { %v9432_v19 = vround.rtne.f32 %v6869_v1  ;;  %v6871_v0 = vmin.f32 %v6807_v5, 4.0  ;;  %v6669_v14 = vmul.f32 %v11905_v18, %v6570_v63  ;;  %v6572_v37 = vpop.f32.mrb[177].mxu1 }
 0xa6c   : > { %v9433_v60 = vround.rtne.f32 %v6870_v51  ;;  %v6872_v40 = vmin.f32 %v6808_v29, 4.0  ;;  %v6670_v59 = vmul.f32 %v11908_v6, %v6572_v37  ;;  %v6574_v39 = vpop.f32.mrb[178].mxu1  ;;  %7289 = vmatprep.mubr.bf16.mxu1 %v7038_v26 }
 0xa6d   : > { %v9434_v52 = vround.rtne.f32 %v6871_v0  ;;  %v6745_v3 = vadd.f32 %v11911_v24, %v6669_v14  ;;  %v6671_v15 = vmul.f32 %v11905_v18, %v6574_v39  ;;  %v6576_v55 = vpop.f32.mrb[179].mxu1  ;;  %7290 = vmatmul.mubr.bf16.gmra.mrb[232].mxu1 %v7037_v43  ;;  %v6997_v35 = vmul.f32 0.25, %v9432_v19 }
 0xa6e   : > { %v9435_v56 = vround.rtne.f32 %v6872_v40  ;;  %v6746_v53 = vadd.f32 %v11914_v42, %v6670_v59  ;;  %v6672_v11 = vmul.f32 %v11908_v6, %v6576_v55  ;;  %v6998_v58 = vmul.f32 0.25, %v9433_v60 }
 0xa6f   : > { %v6999_v17 = vmul.f32 0.25, %v9434_v52  ;;  %v6809_v49 = vmax.f32 %v6745_v3, 0.0  ;;  %v6747_v22 = vadd.f32 %v11911_v24, %v6671_v15 }
 0xa70   : > { %v7000_v8 = vmul.f32 0.25, %v9435_v56  ;;  %v6810_v1 = vmax.f32 %v6746_v53, 0.0  ;;  %v6748_v5 = vadd.f32 %v11914_v42, %v6672_v11 }
 0xa71   : > { %v6873_v51 = vmin.f32 %v6809_v49, 4.0  ;;  %v6811_v29 = vmax.f32 %v6747_v22, 0.0  ;;  %v7039_v63 = vpack.c.bf16 %v6999_v17, %v6997_v35 }
 0xa72   : > { %v6874_v26 = vmin.f32 %v6810_v1, 4.0  ;;  %v6812_v43 = vmax.f32 %v6748_v5, 0.0  ;;  %v6580_v0 = vpop.f32.mrb[180].mxu1  ;;  %v7040_v14 = vpack.c.bf16 %v7000_v8, %v6998_v58 }
 0xa73   : > { %v9436_v37 = vround.rtne.f32 %v6873_v51  ;;  %v6875_v40 = vmin.f32 %v6811_v29, 4.0  ;;  %v6673_v19 = vmul.f32 %v11905_v18, %v6580_v0  ;;  %v6582_v59 = vpop.f32.mrb[181].mxu1 }
 0xa74   : > { %v9437_v39 = vround.rtne.f32 %v6874_v26  ;;  %v6876_v52 = vmin.f32 %v6812_v43, 4.0  ;;  %v6674_v60 = vmul.f32 %v11908_v6, %v6582_v59  ;;  %v6584_v3 = vpop.f32.mrb[182].mxu1  ;;  %7297 = vmatprep.mubr.bf16.mxu1 %v7040_v14 }
 0xa75   : > { %v9438_v15 = vround.rtne.f32 %v6875_v40  ;;  %v6749_v55 = vadd.f32 %v11911_v24, %v6673_v19  ;;  %v6675_v56 = vmul.f32 %v11905_v18, %v6584_v3  ;;  %v6586_v53 = vpop.f32.mrb[183].mxu1  ;;  %7298 = vmatmul.mubr.bf16.gmra.mrb[236].mxu1 %v7039_v63  ;;  %v7001_v49 = vmul.f32 0.25, %v9436_v37 }
 0xa76   : > { %v9439_v11 = vround.rtne.f32 %v6876_v52  ;;  %v6750_v35 = vadd.f32 %v11914_v42, %v6674_v60  ;;  %v6676_v17 = vmul.f32 %v11908_v6, %v6586_v53  ;;  %v7002_v1 = vmul.f32 0.25, %v9437_v39 }
 0xa77   : > { %v7003_v22 = vmul.f32 0.25, %v9438_v15  ;;  %v6813_v58 = vmax.f32 %v6749_v55, 0.0  ;;  %v6751_v8 = vadd.f32 %v11911_v24, %v6675_v56 }
 0xa78   : > { %v7004_v5 = vmul.f32 0.25, %v9439_v11  ;;  %v6814_v51 = vmax.f32 %v6750_v35, 0.0  ;;  %v6752_v29 = vadd.f32 %v11914_v42, %v6676_v17 }
 0xa79   : > { %v6877_v26 = vmin.f32 %v6813_v58, 4.0  ;;  %v6815_v43 = vmax.f32 %v6751_v8, 0.0  ;;  %v7041_v0 = vpack.c.bf16 %v7003_v22, %v7001_v49 }
 0xa7a   : > { %v6878_v14 = vmin.f32 %v6814_v51, 4.0  ;;  %v6816_v63 = vmax.f32 %v6752_v29, 0.0  ;;  %v6590_v40 = vpop.f32.mrb[184].mxu1  ;;  %v7042_v19 = vpack.c.bf16 %v7004_v5, %v7002_v1 }
 0xa7b   : > { %v9440_v59 = vround.rtne.f32 %v6877_v26  ;;  %v6879_v52 = vmin.f32 %v6815_v43, 4.0  ;;  %v6677_v37 = vmul.f32 %v11905_v18, %v6590_v40  ;;  %v6592_v60 = vpop.f32.mrb[185].mxu1 }
 0xa7c   : > { %v9441_v3 = vround.rtne.f32 %v6878_v14  ;;  %v6880_v15 = vmin.f32 %v6816_v63, 4.0  ;;  %v6678_v39 = vmul.f32 %v11908_v6, %v6592_v60  ;;  %v6594_v55 = vpop.f32.mrb[186].mxu1  ;;  %7305 = vmatprep.mubr.bf16.mxu1 %v7042_v19 }
 0xa7d   : > { %v9442_v56 = vround.rtne.f32 %v6879_v52  ;;  %v6753_v53 = vadd.f32 %v11911_v24, %v6677_v37  ;;  %v6679_v11 = vmul.f32 %v11905_v18, %v6594_v55  ;;  %v6596_v35 = vpop.f32.mrb[187].mxu1  ;;  %7306 = vmatmul.mubr.bf16.gmra.mrb[240].mxu1 %v7041_v0  ;;  %v7005_v58 = vmul.f32 0.25, %v9440_v59 }
 0xa7e   : > { %v9443_v17 = vround.rtne.f32 %v6880_v15  ;;  %v6754_v49 = vadd.f32 %v11914_v42, %v6678_v39  ;;  %v6680_v22 = vmul.f32 %v11908_v6, %v6596_v35  ;;  %v7006_v51 = vmul.f32 0.25, %v9441_v3 }
 0xa7f   : > { %v7007_v8 = vmul.f32 0.25, %v9442_v56  ;;  %v6817_v1 = vmax.f32 %v6753_v53, 0.0  ;;  %v6755_v5 = vadd.f32 %v11911_v24, %v6679_v11 }
 0xa80   : > { %v7008_v29 = vmul.f32 0.25, %v9443_v17  ;;  %v6818_v26 = vmax.f32 %v6754_v49, 0.0  ;;  %v6756_v43 = vadd.f32 %v11914_v42, %v6680_v22 }
 0xa81   : > { %v6881_v14 = vmin.f32 %v6817_v1, 4.0  ;;  %v6819_v63 = vmax.f32 %v6755_v5, 0.0  ;;  %v7043_v40 = vpack.c.bf16 %v7007_v8, %v7005_v58 }
 0xa82   : > { %v6882_v19 = vmin.f32 %v6818_v26, 4.0  ;;  %v6820_v0 = vmax.f32 %v6756_v43, 0.0  ;;  %v6600_v52 = vpop.f32.mrb[188].mxu1  ;;  %v7044_v37 = vpack.c.bf16 %v7008_v29, %v7006_v51 }
 0xa83   : > { %v9444_v60 = vround.rtne.f32 %v6881_v14  ;;  %v6883_v15 = vmin.f32 %v6819_v63, 4.0  ;;  %v6681_v59 = vmul.f32 %v11905_v18, %v6600_v52  ;;  %v6602_v39 = vpop.f32.mrb[189].mxu1 }
 0xa84   : > { %v9445_v55 = vround.rtne.f32 %v6882_v19  ;;  %v6884_v56 = vmin.f32 %v6820_v0, 4.0  ;;  %v6682_v3 = vmul.f32 %v11908_v6, %v6602_v39  ;;  %v6604_v53 = vpop.f32.mrb[190].mxu1  ;;  %7313 = vmatprep.mubr.bf16.mxu1 %v7044_v37 }
 0xa85   : > { %v9446_v11 = vround.rtne.f32 %v6883_v15  ;;  %v6757_v35 = vadd.f32 %v11911_v24, %v6681_v59  ;;  %v6683_v17 = vmul.f32 %v11905_v18, %v6604_v53  ;;  %v6606_v49 = vpop.f32.mrb[191].mxu1  ;;  %7314 = vmatmul.mubr.bf16.gmra.mrb[244].mxu1 %v7043_v40  ;;  %v7009_v1 = vmul.f32 0.25, %v9444_v60 }
 0xa86   : > { %v9447_v22 = vround.rtne.f32 %v6884_v56  ;;  %v6758_v58 = vadd.f32 %v11914_v42, %v6682_v3  ;;  %v6684_v8 = vmul.f32 %v11908_v6, %v6606_v49  ;;  %v7010_v26 = vmul.f32 0.25, %v9445_v55  ;;  %v12048_v49 = vld [vmem:[%s12548_s1] ss:$0 sm:$0xff]  ;;  %s12219_s1 = scalar_lea.hbm %s12551_s25, %s7927_s26 }
 0xa87   : > { %v7011_v5 = vmul.f32 0.25, %v9446_v11  ;;  %v6821_v51 = vmax.f32 %v6757_v35, 0.0  ;;  %v6759_v29 = vadd.f32 %v11911_v24, %v6683_v17 }
 0xa88   : > { %v7012_v43 = vmul.f32 0.25, %v9447_v22  ;;  %v6822_v14 = vmax.f32 %v6758_v58, 0.0  ;;  %v6760_v63 = vadd.f32 %v11914_v42, %v6684_v8 }
 0xa89   : > { %v6885_v19 = vmin.f32 %v6821_v51, 4.0  ;;  %v6823_v0 = vmax.f32 %v6759_v29, 0.0  ;;  %v7045_v18 = vpack.c.bf16 %v7011_v5, %v7009_v1  ;;  %v12056_v51 = vld [vmem:[%s12549_s20] ss:$0 sm:$0xff]  ;;  %s9717_s20 = scalar_lea.vmem %s9716_s30, 8192 }
 0xa8a   : > { %v6886_v52 = vmin.f32 %v6822_v14, 4.0  ;;  %v6824_v40 = vmax.f32 %v6760_v63, 0.0  ;;  %v7046_v37 = vpack.c.bf16 %v7012_v43, %v7010_v26  ;;  %p9719_p7 = scmp.lt.s32.totalorder %s9717_s20, %s9711_s4 }
 0xa8b   : > { %v9448_v15 = vround.rtne.f32 %v6885_v19  ;;  %v6887_v59 = vmin.f32 %v6823_v0, 4.0 }
 0xa8c   : > { %v9449_v6 = vround.rtne.f32 %v6886_v52  ;;  %v6888_v60 = vmin.f32 %v6824_v40, 4.0  ;;  %7321 = vmatprep.mubr.bf16.mxu1 %v7046_v37  ;;  %p9720_p8 = por %p9719_p7, %p9718_p4 }
 0xa8d   : > { %v9450_v39 = vround.rtne.f32 %v6887_v59  ;;  %7322 = vmatmul.mubr.bf16.gmra.mrb[248].mxu1 %v7045_v18  ;;  %v7013_v55 = vmul.f32 0.25, %v9448_v15 }
 0xa8e   : > { %v9451_v24 = vround.rtne.f32 %v6888_v60  ;;  %v7014_v3 = vmul.f32 0.25, %v9449_v6  ;;  %p9721_p11 = pnand %p9720_p8, %p9714_p3 }
 0xa8f   : > { %v7015_v56 = vmul.f32 0.25, %v9450_v39 }
 0xa90   : > { %v7016_v42 = vmul.f32 0.25, %v9451_v24 }
 0xa91   : > { %v7047_v53 = vpack.c.bf16 %v7015_v56, %v7013_v55 }
 0xa92   : > { %v7048_v11 = vpack.c.bf16 %v7016_v42, %v7014_v3 }
 0xa94   : > { %7329 = vmatprep.mubr.bf16.mxu1 %v7048_v11 }
 0xa95   : > { %7330 = vmatmul.mubr.bf16.gmra.mrb[252].mxu1 %v7047_v53 }
 0xaf0   : > { %v8268_v35 = vpop.f32.mrb[192].mxu1 }
 0xaf1   : > { %v8269_v17 = vpop.f32.mrb[193].mxu1 }
 0xaf2   : > { %v8270_v22 = vadd.f32 %v8269_v17, %v8268_v35  ;;  %v8271_v58 = vpop.f32.mrb[194].mxu1 }
 0xaf3   : > { %v8272_v8 = vpop.f32.mrb[195].mxu1 }
 0xaf4   : > { %v7345_v1 = vmul.f32 %v8270_v22, %v12048_v49  ;;  %v8273_v5 = vadd.f32 %v8272_v8, %v8271_v58 }
 0xaf6   : > { %v7377_v29 = vadd.f32 %v7345_v1, %v11626_v47  ;;  %v7346_v26 = vmul.f32 %v8273_v5, %v12048_v49 }
 0xaf8   : > { %v7416_v43 = vadd.f32 %v12056_v51, %v7377_v29  ;;  %v7378_v14 = vadd.f32 %v7346_v26, %v11637_v7  ;;  %v8274_v63 = vpop.f32.mrb[196].mxu1 }
 0xaf9   : > { %v8275_v19 = vpop.f32.mrb[197].mxu1 }
 0xafa   : > { %7448 = vst.msk [vmem:[%s12062_s21] sm:$0xff] %vm983_vm0, %v7416_v43  ;;  %v7417_v0 = vadd.f32 %v12056_v51, %v7378_v14  ;;  %v8276_v18 = vadd.f32 %v8275_v19, %v8274_v63  ;;  %v8277_v52 = vpop.f32.mrb[198].mxu1 }
 0xafb   : > { %v8278_v47 = vpop.f32.mrb[199].mxu1 }
 0xafc   : > { %7449 = vst.msk [vmem:[%s12062_s21 + $0x8] sm:$0xff] %vm983_vm0, %v7417_v0  ;;  %v7347_v40 = vmul.f32 %v8276_v18, %v12048_v49  ;;  %v8279_v7 = vadd.f32 %v8278_v47, %v8277_v52 }
 0xafe   : > { %v7379_v37 = vadd.f32 %v7347_v40, %v11630_v4  ;;  %v7348_v15 = vmul.f32 %v8279_v7, %v12048_v49 }
 0xb00   : > { %v7418_v59 = vadd.f32 %v12056_v51, %v7379_v37  ;;  %v7380_v6 = vadd.f32 %v7348_v15, %v11633_v41  ;;  %v8280_v60 = vpop.f32.mrb[200].mxu1 }
 0xb01   : > { %v8281_v39 = vpop.f32.mrb[201].mxu1 }
 0xb02   : > { %7450 = vst.msk [vmem:[%s12062_s21 + $0x10] sm:$0xff] %vm983_vm0, %v7418_v59  ;;  %v7419_v24 = vadd.f32 %v12056_v51, %v7380_v6  ;;  %v8282_v55 = vadd.f32 %v8281_v39, %v8280_v60  ;;  %v8283_v56 = vpop.f32.mrb[202].mxu1 }
 0xb03   : > { %v8284_v3 = vpop.f32.mrb[203].mxu1 }
 0xb04   : > { %7451 = vst.msk [vmem:[%s12062_s21 + $0x18] sm:$0xff] %vm983_vm0, %v7419_v24  ;;  %v7349_v4 = vmul.f32 %v8282_v55, %v12048_v49  ;;  %v8285_v42 = vadd.f32 %v8284_v3, %v8283_v56 }
 0xb06   : > { %v7381_v53 = vadd.f32 %v7349_v4, %v11652_v27  ;;  %v7350_v41 = vmul.f32 %v8285_v42, %v12048_v49 }
 0xb08   : > { %v7420_v11 = vadd.f32 %v12056_v51, %v7381_v53  ;;  %v7382_v35 = vadd.f32 %v7350_v41, %v11655_v10  ;;  %v8286_v17 = vpop.f32.mrb[204].mxu1 }
 0xb09   : > { %v8287_v22 = vpop.f32.mrb[205].mxu1 }
 0xb0a   : > { %7452 = vst.msk [vmem:[%s12062_s21 + $0x20] sm:$0xff] %vm983_vm0, %v7420_v11  ;;  %v7421_v58 = vadd.f32 %v12056_v51, %v7382_v35  ;;  %v8288_v8 = vadd.f32 %v8287_v22, %v8286_v17  ;;  %v8289_v1 = vpop.f32.mrb[206].mxu1 }
 0xb0b   : > { %v8290_v5 = vpop.f32.mrb[207].mxu1 }
 0xb0c   : > { %7453 = vst.msk [vmem:[%s12062_s21 + $0x28] sm:$0xff] %vm983_vm0, %v7421_v58  ;;  %v7351_v27 = vmul.f32 %v8288_v8, %v12048_v49  ;;  %v8291_v29 = vadd.f32 %v8290_v5, %v8289_v1 }
 0xb0e   : > { %v7383_v26 = vadd.f32 %v7351_v27, %v11680_v62  ;;  %v7352_v10 = vmul.f32 %v8291_v29, %v12048_v49 }
 0xb10   : > { %v7422_v43 = vadd.f32 %v12056_v51, %v7383_v26  ;;  %v7384_v14 = vadd.f32 %v7352_v10, %v11669_v2  ;;  %v8292_v63 = vpop.f32.mrb[208].mxu1 }
 0xb11   : > { %v8293_v19 = vpop.f32.mrb[209].mxu1 }
 0xb12   : > { %7454 = vst.msk [vmem:[%s12062_s21 + $0x30] sm:$0xff] %vm983_vm0, %v7422_v43  ;;  %v7423_v0 = vadd.f32 %v12056_v51, %v7384_v14  ;;  %v8294_v18 = vadd.f32 %v8293_v19, %v8292_v63  ;;  %v8295_v52 = vpop.f32.mrb[210].mxu1 }
 0xb13   : > { %v8296_v47 = vpop.f32.mrb[211].mxu1 }
 0xb14   : > { %7455 = vst.msk [vmem:[%s12062_s21 + $0x38] sm:$0xff] %vm983_vm0, %v7423_v0  ;;  %v7353_v62 = vmul.f32 %v8294_v18, %v12048_v49  ;;  %v8297_v40 = vadd.f32 %v8296_v47, %v8295_v52 }
 0xb16   : > { %v7385_v7 = vadd.f32 %v7353_v62, %v11713_v30  ;;  %v7354_v2 = vmul.f32 %v8297_v40, %v12048_v49 }
 0xb18   : > { %v7424_v37 = vadd.f32 %v12056_v51, %v7385_v7  ;;  %v7386_v15 = vadd.f32 %v7354_v2, %v11706_v9  ;;  %v8298_v59 = vpop.f32.mrb[212].mxu1 }
 0xb19   : > { %v8299_v6 = vpop.f32.mrb[213].mxu1 }
 0xb1a   : > { %7456 = vst.msk [vmem:[%s12062_s21 + $0x40] sm:$0xff] %vm983_vm0, %v7424_v37  ;;  %v7425_v60 = vadd.f32 %v12056_v51, %v7386_v15  ;;  %v8300_v39 = vadd.f32 %v8299_v6, %v8298_v59  ;;  %v8301_v24 = vpop.f32.mrb[214].mxu1 }
 0xb1b   : > { %v8302_v55 = vpop.f32.mrb[215].mxu1 }
 0xb1c   : > { %7457 = vst.msk [vmem:[%s12062_s21 + $0x48] sm:$0xff] %vm983_vm0, %v7425_v60  ;;  %v7355_v30 = vmul.f32 %v8300_v39, %v12048_v49  ;;  %v8303_v56 = vadd.f32 %v8302_v55, %v8301_v24 }
 0xb1e   : > { %v7387_v3 = vadd.f32 %v7355_v30, %v11749_v12  ;;  %v7356_v9 = vmul.f32 %v8303_v56, %v12048_v49 }
 0xb20   : > { %v7426_v4 = vadd.f32 %v12056_v51, %v7387_v3  ;;  %v7388_v42 = vadd.f32 %v7356_v9, %v11733_v61  ;;  %v8304_v53 = vpop.f32.mrb[216].mxu1 }
 0xb21   : > { %v8305_v41 = vpop.f32.mrb[217].mxu1 }
 0xb22   : > { %7458 = vst.msk [vmem:[%s12062_s21 + $0x50] sm:$0xff] %vm983_vm0, %v7426_v4  ;;  %v7427_v11 = vadd.f32 %v12056_v51, %v7388_v42  ;;  %v8306_v35 = vadd.f32 %v8305_v41, %v8304_v53  ;;  %v8307_v17 = vpop.f32.mrb[218].mxu1 }
 0xb23   : > { %v8308_v22 = vpop.f32.mrb[219].mxu1 }
 0xb24   : > { %7459 = vst.msk [vmem:[%s12062_s21 + $0x58] sm:$0xff] %vm983_vm0, %v7427_v11  ;;  %v7357_v12 = vmul.f32 %v8306_v35, %v12048_v49  ;;  %v8309_v58 = vadd.f32 %v8308_v22, %v8307_v17 }
 0xb26   : > { %v7389_v8 = vadd.f32 %v7357_v12, %v11790_v38  ;;  %v7358_v61 = vmul.f32 %v8309_v58, %v12048_v49 }
 0xb28   : > { %v7428_v1 = vadd.f32 %v12056_v51, %v7389_v8  ;;  %v7390_v5 = vadd.f32 %v7358_v61, %v11778_v44  ;;  %v8310_v27 = vpop.f32.mrb[220].mxu1 }
 0xb29   : > { %v8311_v29 = vpop.f32.mrb[221].mxu1 }
 0xb2a   : > { %7460 = vst.msk [vmem:[%s12062_s21 + $0x60] sm:$0xff] %vm983_vm0, %v7428_v1  ;;  %v7429_v26 = vadd.f32 %v12056_v51, %v7390_v5  ;;  %v8312_v10 = vadd.f32 %v8311_v29, %v8310_v27  ;;  %v8313_v43 = vpop.f32.mrb[222].mxu1 }
 0xb2b   : > { %v8314_v14 = vpop.f32.mrb[223].mxu1 }
 0xb2c   : > { %7461 = vst.msk [vmem:[%s12062_s21 + $0x68] sm:$0xff] %vm983_vm0, %v7429_v26  ;;  %v7359_v38 = vmul.f32 %v8312_v10, %v12048_v49  ;;  %v8315_v63 = vadd.f32 %v8314_v14, %v8313_v43 }
 0xb2e   : > { %v7391_v19 = vadd.f32 %v7359_v38, %v11822_v36  ;;  %v7360_v44 = vmul.f32 %v8315_v63, %v12048_v49 }
 0xb30   : > { %v7430_v0 = vadd.f32 %v12056_v51, %v7391_v19  ;;  %v7392_v18 = vadd.f32 %v7360_v44, %v11812_v21  ;;  %v8316_v52 = vpop.f32.mrb[224].mxu1 }
 0xb31   : > { %v8317_v47 = vpop.f32.mrb[225].mxu1 }
 0xb32   : > { %7462 = vst.msk [vmem:[%s12062_s21 + $0x70] sm:$0xff] %vm983_vm0, %v7430_v0  ;;  %v7431_v62 = vadd.f32 %v12056_v51, %v7392_v18  ;;  %v8318_v40 = vadd.f32 %v8317_v47, %v8316_v52  ;;  %v8319_v7 = vpop.f32.mrb[226].mxu1 }
 0xb33   : > { %v8320_v2 = vpop.f32.mrb[227].mxu1 }
 0xb34   : > { %7463 = vst.msk [vmem:[%s12062_s21 + $0x78] sm:$0xff] %vm983_vm0, %v7431_v62  ;;  %v7361_v36 = vmul.f32 %v8318_v40, %v12048_v49  ;;  %v8321_v37 = vadd.f32 %v8320_v2, %v8319_v7 }
 0xb36   : > { %v7393_v15 = vadd.f32 %v7361_v36, %v11745_v13  ;;  %v7362_v21 = vmul.f32 %v8321_v37, %v12048_v49 }
 0xb38   : > { %v7432_v59 = vadd.f32 %v12056_v51, %v7393_v15  ;;  %v7394_v6 = vadd.f32 %v7362_v21, %v11757_v45  ;;  %v8322_v60 = vpop.f32.mrb[228].mxu1 }
 0xb39   : > { %v8323_v39 = vpop.f32.mrb[229].mxu1 }
 0xb3a   : > { %7464 = vst.msk [vmem:[%s12062_s21 + $0x80] sm:$0xff] %vm983_vm0, %v7432_v59  ;;  %v7433_v24 = vadd.f32 %v12056_v51, %v7394_v6  ;;  %v8324_v55 = vadd.f32 %v8323_v39, %v8322_v60  ;;  %v8325_v30 = vpop.f32.mrb[230].mxu1 }
 0xb3b   : > { %v8326_v56 = vpop.f32.mrb[231].mxu1 }
 0xb3c   : > { %7465 = vst.msk [vmem:[%s12062_s21 + $0x88] sm:$0xff] %vm983_vm0, %v7433_v24  ;;  %v7363_v13 = vmul.f32 %v8324_v55, %v12048_v49  ;;  %v8327_v3 = vadd.f32 %v8326_v56, %v8325_v30 }
 0xb3e   : > { %v7395_v9 = vadd.f32 %v7363_v13, %v11736_v32  ;;  %v7364_v45 = vmul.f32 %v8327_v3, %v12048_v49 }
 0xb40   : > { %v7434_v4 = vadd.f32 %v12056_v51, %v7395_v9  ;;  %v7396_v42 = vadd.f32 %v7364_v45, %v11752_v50  ;;  %v8328_v53 = vpop.f32.mrb[232].mxu1 }
 0xb41   : > { %v8329_v41 = vpop.f32.mrb[233].mxu1 }
 0xb42   : > { %7466 = vst.msk [vmem:[%s12062_s21 + $0x90] sm:$0xff] %vm983_vm0, %v7434_v4  ;;  %v7435_v11 = vadd.f32 %v12056_v51, %v7396_v42  ;;  %v8330_v35 = vadd.f32 %v8329_v41, %v8328_v53  ;;  %v8331_v17 = vpop.f32.mrb[234].mxu1 }
 0xb43   : > { %v8332_v22 = vpop.f32.mrb[235].mxu1 }
 0xb44   : > { %7467 = vst.msk [vmem:[%s12062_s21 + $0x98] sm:$0xff] %vm983_vm0, %v7435_v11  ;;  %v7365_v32 = vmul.f32 %v8330_v35, %v12048_v49  ;;  %v8333_v12 = vadd.f32 %v8332_v22, %v8331_v17 }
 0xb46   : > { %v7397_v58 = vadd.f32 %v7365_v32, %v11781_v23  ;;  %v7366_v50 = vmul.f32 %v8333_v12, %v12048_v49 }
 0xb48   : > { %v7436_v8 = vadd.f32 %v12056_v51, %v7397_v58  ;;  %v7398_v61 = vadd.f32 %v7366_v50, %v11793_v34  ;;  %v8334_v1 = vpop.f32.mrb[236].mxu1 }
 0xb49   : > { %v8335_v5 = vpop.f32.mrb[237].mxu1 }
 0xb4a   : > { %7468 = vst.msk [vmem:[%s12062_s21 + $0xa0] sm:$0xff] %vm983_vm0, %v7436_v8  ;;  %v7437_v27 = vadd.f32 %v12056_v51, %v7398_v61  ;;  %v8336_v29 = vadd.f32 %v8335_v5, %v8334_v1  ;;  %v8337_v26 = vpop.f32.mrb[238].mxu1 }
 0xb4b   : > { %v8338_v10 = vpop.f32.mrb[239].mxu1 }
 0xb4c   : > { %7469 = vst.msk [vmem:[%s12062_s21 + $0xa8] sm:$0xff] %vm983_vm0, %v7437_v27  ;;  %v7367_v23 = vmul.f32 %v8336_v29, %v12048_v49  ;;  %v8339_v43 = vadd.f32 %v8338_v10, %v8337_v26 }
 0xb4e   : > { %v7399_v14 = vadd.f32 %v7367_v23, %v11773_v16  ;;  %v7368_v34 = vmul.f32 %v8339_v43, %v12048_v49 }
 0xb50   : > { %v7438_v38 = vadd.f32 %v12056_v51, %v7399_v14  ;;  %v7400_v63 = vadd.f32 %v7368_v34, %v11785_v25  ;;  %v8340_v19 = vpop.f32.mrb[240].mxu1 }
 0xb51   : > { %v8341_v44 = vpop.f32.mrb[241].mxu1 }
 0xb52   : > { %7470 = vst.msk [vmem:[%s12062_s21 + $0xb0] sm:$0xff] %vm983_vm0, %v7438_v38  ;;  %v7439_v0 = vadd.f32 %v12056_v51, %v7400_v63  ;;  %v8342_v18 = vadd.f32 %v8341_v44, %v8340_v19  ;;  %v8343_v52 = vpop.f32.mrb[242].mxu1 }
 0xb53   : > { %v8344_v47 = vpop.f32.mrb[243].mxu1 }
 0xb54   : > { %7471 = vst.msk [vmem:[%s12062_s21 + $0xb8] sm:$0xff] %vm983_vm0, %v7439_v0  ;;  %v7369_v16 = vmul.f32 %v8342_v18, %v12048_v49  ;;  %v8345_v62 = vadd.f32 %v8344_v47, %v8343_v52 }
 0xb56   : > { %v7401_v40 = vadd.f32 %v7369_v16, %v11815_v48  ;;  %v7370_v25 = vmul.f32 %v8345_v62, %v12048_v49 }
 0xb58   : > { %v7440_v7 = vadd.f32 %v12056_v51, %v7401_v40  ;;  %v7402_v2 = vadd.f32 %v7370_v25, %v11825_v57  ;;  %v8346_v36 = vpop.f32.mrb[244].mxu1 }
 0xb59   : > { %v8347_v37 = vpop.f32.mrb[245].mxu1 }
 0xb5a   : > { %7472 = vst.msk [vmem:[%s12062_s21 + $0xc0] sm:$0xff] %vm983_vm0, %v7440_v7  ;;  %v7441_v15 = vadd.f32 %v12056_v51, %v7402_v2  ;;  %v8348_v21 = vadd.f32 %v8347_v37, %v8346_v36  ;;  %v8349_v59 = vpop.f32.mrb[246].mxu1 }
 0xb5b   : > { %v8350_v6 = vpop.f32.mrb[247].mxu1 }
 0xb5c   : > { %7473 = vst.msk [vmem:[%s12062_s21 + $0xc8] sm:$0xff] %vm983_vm0, %v7441_v15  ;;  %v7371_v48 = vmul.f32 %v8348_v21, %v12048_v49  ;;  %v8351_v60 = vadd.f32 %v8350_v6, %v8349_v59 }
 0xb5e   : > { %v7403_v39 = vadd.f32 %v7371_v48, %v11807_v31  ;;  %v7372_v57 = vmul.f32 %v8351_v60, %v12048_v49 }
 0xb60   : > { %v7442_v24 = vadd.f32 %v12056_v51, %v7403_v39  ;;  %v7404_v55 = vadd.f32 %v7372_v57, %v11819_v54  ;;  %v8352_v30 = vpop.f32.mrb[248].mxu1 }
 0xb61   : > { %v8353_v56 = vpop.f32.mrb[249].mxu1 }
 0xb62   : > { %7474 = vst.msk [vmem:[%s12062_s21 + $0xd0] sm:$0xff] %vm983_vm0, %v7442_v24  ;;  %v7443_v13 = vadd.f32 %v12056_v51, %v7404_v55  ;;  %v8354_v3 = vadd.f32 %v8353_v56, %v8352_v30  ;;  %v8355_v9 = vpop.f32.mrb[250].mxu1 }
 0xb63   : > { %v8356_v45 = vpop.f32.mrb[251].mxu1 }
 0xb64   : > { %7475 = vst.msk [vmem:[%s12062_s21 + $0xd8] sm:$0xff] %vm983_vm0, %v7443_v13  ;;  %v7373_v31 = vmul.f32 %v8354_v3, %v12048_v49  ;;  %v8357_v4 = vadd.f32 %v8356_v45, %v8355_v9 }
 0xb66   : > { %v7405_v42 = vadd.f32 %v7373_v31, %v11842_v28  ;;  %v7374_v54 = vmul.f32 %v8357_v4, %v12048_v49 }
 0xb68   : > { %v7444_v53 = vadd.f32 %v12056_v51, %v7405_v42  ;;  %v7406_v41 = vadd.f32 %v7374_v54, %v11849_v33  ;;  %v8358_v11 = vpop.f32.mrb[252].mxu1 }
 0xb69   : > { %v8359_v35 = vpop.f32.mrb[253].mxu1 }
 0xb6a   : > { %7476 = vst.msk [vmem:[%s12062_s21 + $0xe0] sm:$0xff] %vm983_vm0, %v7444_v53  ;;  %v7445_v17 = vadd.f32 %v12056_v51, %v7406_v41  ;;  %v8360_v22 = vadd.f32 %v8359_v35, %v8358_v11  ;;  %v8361_v32 = vpop.f32.mrb[254].mxu1 }
 0xb6b   : > { %v8362_v28 = vpop.f32.mrb[255].mxu1 }
 0xb6c   : > { %7477 = vst.msk [vmem:[%s12062_s21 + $0xe8] sm:$0xff] %vm983_vm0, %v7445_v17  ;;  %v7375_v12 = vmul.f32 %v8360_v22, %v12048_v49  ;;  %v8363_v58 = vadd.f32 %v8362_v28, %v8361_v32 }
 0xb6e   : > { %v7407_v33 = vadd.f32 %v7375_v12, %v11837_v46  ;;  %v7376_v50 = vmul.f32 %v8363_v58, %v12048_v49 }
 0xb70   : > { %v7446_v8 = vadd.f32 %v12056_v51, %v7407_v33  ;;  %v7408_v61 = vadd.f32 %v7376_v50, %v11846_v20 }
 0xb72   : > { %7478 = vst.msk [vmem:[%s12062_s21 + $0xf0] sm:$0xff] %vm983_vm0, %v7446_v8  ;;  %v7447_v46 = vadd.f32 %v12056_v51, %v7408_v61 }
 0xb74   : > { %7479 = vst.msk [vmem:[%s12062_s21 + $0xf8] sm:$0xff] %vm983_vm0, %v7447_v46 }
 0xb75   : > { %9724 = shalt.err (!%p9721_p11)
}
 0xb76   : > { %s9725_s22 = scalar_lea.hbm %s12219_s1, 4096  ;;  %s9729_s26 = scalar_lea.hbm %s12551_s25, 8192 }
 0xb77   : > { %p9726_p13 = scmp.ne.s32.totalorder %s12219_s1, %s9725_s22  ;;  %p9730_p6 = scmp.lt.u32.totalorder %s12219_s1, %s12551_s25 }
 0xb78   : > { %p9731_p5 = scmp.lt.u32.totalorder %s9729_s26, %s9725_s22  ;;  %p9733_p12 = scmp.lt.u32.totalorder %s9725_s22, %s12219_s1 }
 0xb79   : > { %p9727_p0 = pnand %p9726_p13, %p12552_p10 }
 0xb7a   : > { %p9732_p9 = por %p9731_p5, %p9730_p6 }
 0xb7b   : > { %p9728_p1 = pneg %p9727_p0 }
 0xb7c   : > { %p9734_p2 = por %p9733_p12, %p9732_p9 }
 0xb7e   : > { %p9735_p3 = pnand %p9734_p2, %p9728_p1 }
 0xb80   : > { %9738 = shalt.err (!%p9735_p3)
}
 0xb81   : > { %s9792_s4 = smov 128   ;;  %s9793_s3 = smov 8  }
 0xb82   : > { %9464 = dma.vmem_to_hbm [thread:$0]  (%p12552_p10), %s12221_s18, 4096, %s12219_s1, %s12230_s2, %s9792_s4, %s9792_s4, %s9793_s3  }
 0xb83 PF: > { %s12553_s30 = sld [smem:[#allocation15_spill]]  ;;  %s12554_s20 = sld [smem:[#allocation12_spill]] }
 0xb84   : > { %s12555_s27 = sld [smem:[#allocation19_spill]] }
 0xb89   : > { %p9486_p4 = scmp.ge.s32.totalorder %s12553_s30, 2  ;;  %s7509_s21 = sand.u32 1, %s12554_s20  }
 0xb8a   : > { %p12556_p7 = scmp.ne.s32.totalorder %s12555_s27, 0  ;;  %s7510_s22 = scalar_lea.sflag [#allocation4], %s7509_s21 }
 0xb8c   : > { %p9477_p8 = pnand %p9486_p4, %p12556_p7 }
 0xb8e   : > { %9764 = dma.done.wait (!%p9477_p8), %s7510_s22, 4096  }
 0xb8f   : > { %9766 = vsyncadd (!%p9477_p8), %s7510_s22, 4294963200  ;;  %s12557_s24 = sld [smem:[#allocation16_spill]]  ;;  %s12558_s1 = sld [smem:[#allocation13_spill]] }
 0xb90   : > { %s12559_s22 = sld [smem:[#allocation14_spill]]  ;;  %s12560_s23 = sld [smem:[#allocation17_spill]] }
 0xb95   : > { %p32_p11 = scmp.ge.s32.totalorder %s12557_s24, 4  }
 0xb97   :  { %34 = sbr.rel (!%p32_p11) target bundleno = 14 (0xe), region = 151 }
 0xb9e   :  { %7515 = vsyncpa [#allocation3], 1 }
 0xb9f   :  { %7517 = vsyncpa [#allocation3 + $0x1], 1 }
 0xba0   :  { %7518 = vsyncpa [#allocation6], 1 }
 0xba1   :  { %7519 = vsyncpa [#allocation4], 1 }
 0xba2   :  { %7521 = vsyncpa [#allocation4 + $0x1], 1 }

</bundles_post_ra>
